<compile_context>
chip_gen: v7x
topology: tpu7x:2x2x1
jax: 0.10.0
libtpu: 0.0.40
codegen_flags: <defaults>
</compile_context>

<pallas_src>
import functools

import jax
import jax.numpy as jnp
from jax.experimental import pallas as pl
from jax.experimental.pallas import tpu as pltpu

NEG_SLOPE = 0.2  # nn.LeakyReLU(negative_slope=0.2)


def _round_up(x, m):
    return (x + m - 1) // m * m


def _vmem_budget():
    """Generation-aware VMEM budget: ~50% of physical VMEM, capped at 64 MiB.
    (v7x: 64 MiB physical -> 32 MiB budget; v5e/v6e: 128 MiB -> 64 MiB.)"""
    cap = 128 << 20
    try:
        cap = int(getattr(pltpu.get_tpu_info(), "vmem_capacity_bytes", cap))
    except Exception:
        pass
    return int(min(cap // 2, 64 << 20))


# ----------------------------------------------------------------------------
# Pallas kernel A: fused  act(W @ Xcols + b), K-tiled, VMEM-resident weights.
#   W: (Cout, K) bf16   Xcols: (K, M) bf16   b: (Cout, 1) f32   out: (Cout, M)
# ----------------------------------------------------------------------------
def _conv_gemm_kernel(w_ref, x_ref, b_ref, o_ref, acc_ref, *, act, tk):
    k = pl.program_id(1)

    @pl.when(k == 0)
    def _init():
        acc_ref[...] = jnp.zeros_like(acc_ref)

    if tk == w_ref.shape[1]:          # whole-K step: no slice needed
        wk = w_ref[...]
    else:                             # weights stay resident; slice the K chunk in VMEM
        start = k * tk
        if tk % 128 == 0:
            start = pl.multiple_of(start, 128)
        wk = w_ref[:, pl.ds(start, tk)]

    acc_ref[...] += jnp.dot(wk, x_ref[...], preferred_element_type=jnp.float32)

    @pl.when(k == pl.num_programs(1) - 1)
    def _finalize():
        r = acc_ref[...] + b_ref[...]           # (Cout, TM) + (Cout, 1), f32 epilogue
        if act == "leaky":
            r = jnp.where(r > 0, r, NEG_SLOPE * r)
        o_ref[...] = r.astype(o_ref.dtype)


def _choose_tiles(cout, K, m_pad, x_bytes, w_bytes, o_bytes, budget):
    """Largest (TM, TK) that fit the VMEM budget, preferring >=2 parallel M steps
    (v7x megacore), then whole-K, then the biggest M tile."""
    tk_cands = [K] + [c for c in (4096, 2048, 1024, 512, 256, 128)
                      if c < K and K % c == 0]
    tm_cands = [c for c in (2048, 1024, 512, 256, 128) if m_pad % c == 0] or [m_pad]

    def vmem_need(tm, tk):
        return (2 * cout * K * w_bytes      # resident weights (+ double-buffer headroom)
                + 2 * tk * tm * x_bytes     # xcols tile, double-buffered
                + 2 * cout * tm * o_bytes   # output tile, double-buffered
                + cout * tm * 4             # f32 accumulator scratch
                + 2 * cout * 4)             # bias

    best = None
    for tk in tk_cands:
        for tm in tm_cands:
            if vmem_need(tm, tk) > budget:
                continue
            score = (m_pad // tm >= 2, tk, tm)
            if best is None or score > best[0]:
                best = (score, tm, tk)
    if best is None:
        return tm_cands[-1], (128 if K % 128 == 0 else K)
    return best[1], best[2]


def conv_gemm_bias_act(wmat, xcols, bias, act, out_dtype):
    """out = act(wmat @ xcols + bias).  wmat (Cout, K) bf16, xcols (K, M) bf16, bias (Cout, 1) f32."""
    cout, K = wmat.shape
    K2, M = xcols.shape
    assert K == K2
    m_pad = _round_up(M, 128)
    if m_pad != M:   # only the tiny classifier GEMM at toy sizes hits this path
        xcols = jnp.pad(xcols, ((0, 0), (0, m_pad - M)))

    budget = _vmem_budget()
    x_bytes = xcols.dtype.itemsize
    w_bytes = wmat.dtype.itemsize
    o_bytes = jnp.dtype(out_dtype).itemsize
    tm, tk = _choose_tiles(cout, K, m_pad, x_bytes, w_bytes, o_bytes, budget)
    grid = (m_pad // tm, K // tk)

    out = pl.pallas_call(
        functools.partial(_conv_gemm_kernel, act=act, tk=tk),
        out_shape=jax.ShapeDtypeStruct((cout, m_pad), out_dtype),
        grid=grid,
        in_specs=[
            pl.BlockSpec((cout, K), lambda m, k: (0, 0)),   # weights resident in VMEM
            pl.BlockSpec((tk, tm), lambda m, k: (k, m)),
            pl.BlockSpec((cout, 1), lambda m, k: (0, 0)),
        ],
        out_specs=pl.BlockSpec((cout, tm), lambda m, k: (0, m)),
        scratch_shapes=[pltpu.VMEM((cout, tm), jnp.float32)],
        compiler_params=pltpu.CompilerParams(
            dimension_semantics=("parallel", "arbitrary"),
            vmem_limit_bytes=budget),
    )(wmat, xcols, bias)
    if m_pad != M:
        out = out[:, :M]
    return out


# ----------------------------------------------------------------------------
# Glue: GEMM-ready columns for Conv3d(k=4, s=2, p=1), channel-major layout
# ----------------------------------------------------------------------------
def im2col_T(x_cm, ksize=4, stride=2, pad=1):
    """x_cm: (C, N, D, H, W)  ->  (C*k^3, N*Do*Ho*Wo) in x_cm's dtype (bf16 here).

    Row order (c, kd, kh, kw) matches w.reshape(Cout, -1); column order (n, od, oh, ow)
    means the GEMM output (Cout, M) is already the channel-major layout the next layer
    consumes — no inter-layer transposes."""
    C, N, D, H, W = x_cm.shape
    Do = (D + 2 * pad - ksize) // stride + 1
    Ho = (H + 2 * pad - ksize) // stride + 1
    Wo = (W + 2 * pad - ksize) // stride + 1
    xp = jnp.pad(x_cm, ((0, 0), (0, 0), (pad, pad), (pad, pad), (pad, pad)))
    slabs = []
    for kd in range(ksize):
        for kh in range(ksize):
            for kw in range(ksize):
                slabs.append(
                    xp[:, :,
                       kd:kd + stride * Do:stride,
                       kh:kh + stride * Ho:stride,
                       kw:kw + stride * Wo:stride])
    cols = jnp.stack(slabs, axis=1)                       # (C, 64, N, Do, Ho, Wo)
    return cols.reshape(C * ksize ** 3, N * Do * Ho * Wo), (N, Do, Ho, Wo)


def conv3d_cm(x_cm, w, b, act, out_dtype):
    """Channel-major Conv3d(k=4, s=2, p=1).  (Cin, N, D, H, W) -> (Cout, N, Do, Ho, Wo)."""
    cout = w.shape[0]
    xcols, (N, Do, Ho, Wo) = im2col_T(x_cm)
    wmat = w.reshape(cout, -1).astype(x_cm.dtype)          # bf16 operands
    y = conv_gemm_bias_act(wmat, xcols, b.reshape(cout, 1).astype(jnp.float32),
                           act, out_dtype)
    return y.reshape(cout, N, Do, Ho, Wo)


# ----------------------------------------------------------------------------
# Pallas kernel B: separable trilinear x16 upsample (align_corners=True) + sigmoid
# ----------------------------------------------------------------------------
def _upsample_sigmoid_kernel(y_ref, wwT_ref, wdh_ref, o_ref):
    # y_ref: (1, d*h, w) classifier logits for one sample.
    t1 = jnp.dot(y_ref[0], wwT_ref[...], preferred_element_type=jnp.float32)   # (d*h, Wout)
    t2 = jnp.dot(wdh_ref[...], t1, preferred_element_type=jnp.float32)         # (TD*Hout, Wout)
    o_ref[...] = jax.nn.sigmoid(t2)[None].astype(o_ref.dtype)


def linear_interp_matrix(s_in, s_out):
    """(s_out, s_in) 1-D linear interpolation weights, align_corners=True."""
    if s_in == 1:
        return jnp.ones((s_out, 1), jnp.float32)
    coord = jnp.arange(s_out, dtype=jnp.float32) * (s_in - 1) / (s_out - 1)
    lo = jnp.clip(jnp.floor(coord).astype(jnp.int32), 0, s_in - 2)
    frac = coord - lo.astype(jnp.float32)
    rows = jnp.arange(s_out)
    W = jnp.zeros((s_out, s_in), jnp.float32)
    W = W.at[rows, lo].add(1.0 - frac)
    W = W.at[rows, lo + 1].add(frac)
    return W


def upsample_sigmoid(y, scale=16):
    """y: (N, 1, d, h, w) f32 logits -> (N, 1, d*scale, h*scale, w*scale) sigmoid outputs."""
    N, _, d, h, w = y.shape
    Dout, Hout, Wout = d * scale, h * scale, w * scale
    Wd = linear_interp_matrix(d, Dout)                      # (Dout, d)
    Wh = linear_interp_matrix(h, Hout)                      # (Hout, h)
    Ww = linear_interp_matrix(w, Wout)                      # (Wout, w)
    WwT = Ww.T                                              # (w, Wout)
    # Kron of the D and H interpolation matrices only: (Dout*Hout, d*h) — small, dense.
    Wdh = jnp.einsum("Dd,Hh->DHdh", Wd, Wh).reshape(Dout * Hout, d * h)
    y2 = y.reshape(N, d * h, w)                             # tiny, no transpose

    budget = _vmem_budget()
    # D tile: largest divisor of Dout whose working set stays a small fraction of the
    # budget (amortizes per-step overhead, keeps stores lane-dense, fits v7x VMEM).
    td = Dout
    while (td > 8 and td % 2 == 0
           and (2 * td * Hout * Wout * 4 + 2 * td * Hout * d * h * 4) > budget // 4):
        td //= 2
    n_dt = Dout // td

    out = pl.pallas_call(
        _upsample_sigmoid_kernel,
        out_shape=jax.ShapeDtypeStruct((N, Dout * Hout, Wout), jnp.float32),
        grid=(N, n_dt),
        in_specs=[
            pl.BlockSpec((1, d * h, w), lambda n, dt: (n, 0, 0)),
            pl.BlockSpec((w, Wout), lambda n, dt: (0, 0)),
            pl.BlockSpec((td * Hout, d * h), lambda n, dt: (dt, 0)),
        ],
        out_specs=pl.BlockSpec((1, td * Hout, Wout), lambda n, dt: (n, dt, 0)),
        compiler_params=pltpu.CompilerParams(
            dimension_semantics=("parallel", "parallel"),
            vmem_limit_bytes=budget),
    )(y2, WwT, Wdh)
    return out.reshape(N, 1, Dout, Hout, Wout)


# ----------------------------------------------------------------------------
# Model
# ----------------------------------------------------------------------------
def init_params(key, num_classes, ndf):
    ks = jax.random.split(key, 8)

    def conv_init(kw_, kb_, cin, cout):
        fan_in = cin * 4 * 4 * 4
        bound = 1.0 / (fan_in ** 0.5)
        w = jax.random.uniform(kw_, (cout, cin, 4, 4, 4), jnp.float32, -bound, bound)
        b = jax.random.uniform(kb_, (cout,), jnp.float32, -bound, bound)
        return w, b

    w1, b1 = conv_init(ks[0], ks[1], num_classes, ndf)
    w2, b2 = conv_init(ks[2], ks[3], ndf, ndf * 2)
    w3, b3 = conv_init(ks[4], ks[5], ndf * 2, ndf * 4)
    wc, bc = conv_init(ks[6], ks[7], ndf * 4, 1)
    return dict(w1=w1, b1=b1, w2=w2, b2=b2, w3=w3, b3=b3, wc=wc, bc=bc)


def fc_discriminator_dap_forward(x, params):
    """x: (N, C, D, H, W) NCDHW float32 — same interface as the PyTorch module."""
    # Single entry transpose to channel-major + bf16 staging of activations/operands.
    x_cm = jnp.transpose(x, (1, 0, 2, 3, 4)).astype(jnp.bfloat16)
    x_cm = conv3d_cm(x_cm, params["w1"], params["b1"], act="leaky", out_dtype=jnp.bfloat16)
    x_cm = conv3d_cm(x_cm, params["w2"], params["b2"], act="leaky", out_dtype=jnp.bfloat16)
    x_cm = conv3d_cm(x_cm, params["w3"], params["b3"], act="leaky", out_dtype=jnp.bfloat16)
    y = conv3d_cm(x_cm, params["wc"], params["bc"], act="none", out_dtype=jnp.float32)
    y = jnp.transpose(y, (1, 0, 2, 3, 4))                   # (N, 1, d, h, w), tiny
    return upsample_sigmoid(y, scale=16)


# ----------------------------------------------------------------------------
# Pure-JAX reference (for correctness check)
# ----------------------------------------------------------------------------
def ref_forward(x, params):
    def conv(v, w, b):
        y = jax.lax.conv_general_dilated(
            v, w, window_strides=(2, 2, 2), padding=[(1, 1)] * 3,
            dimension_numbers=("NCDHW", "OIDHW", "NCDHW"),
            precision=jax.lax.Precision.HIGHEST)
        return y + b[None, :, None, None, None]

    def leaky(v):
        return jnp.where(v > 0, v, NEG_SLOPE * v)

    y = leaky(conv(x, params["w1"], params["b1"]))
    y = leaky(conv(y, params["w2"], params["b2"]))
    y = leaky(conv(y, params["w3"], params["b3"]))
    y = conv(y, params["wc"], params["bc"])
    _, _, d, h, w = y.shape
    Wd = linear_interp_matrix(d, d * 16)
    Wh = linear_interp_matrix(h, h * 16)
    Ww = linear_interp_matrix(w, w * 16)
    y = jnp.einsum("ncdhw,Dd,Hh,Ww->ncDHW", y, Wd, Wh, Ww)
    return jax.nn.sigmoid(y)


if __name__ == "__main__":
    key = jax.random.PRNGKey(0)
    kx, kp = jax.random.split(key)

    num_classes, ndf = 4, 8          # small ndf for a fast synthetic run
    x = jax.random.normal(kx, (2, num_classes, 32, 32, 32), jnp.float32)
    params = init_params(kp, num_classes, ndf)

    fwd = jax.jit(fc_discriminator_dap_forward)
    out = jax.block_until_ready(fwd(x, params))
    ref = jax.block_until_ready(ref_forward(x, params))

    assert out.shape == (2, 1, 32, 32, 32), out.shape
    assert out.dtype == jnp.float32
    err = float(jnp.max(jnp.abs(out - ref)))
    # Tolerance re-validated for bf16 operand/activation staging (f32 accumulate + f32
    # epilogue); outputs are post-sigmoid in [0, 1].
    assert err < 2e-2, err

    print("KERNEL_OK")
</pallas_src>

<mosaic_0001>
module attributes {stable_mosaic.version = 11 : i64} {
  func.func private @main(%arg0: i32) attributes {dimension_semantics = [#tpu.dimension_semantics<core_parallel>], iteration_bounds = array<i64: 2>, tpu.core_type = #tpu.core_type<sc_scalar_subcore>, window_params = []} {
    return
  }
}

module attributes {stable_mosaic.version = 11 : i64} {
  func.func private @main(%arg0: i32) attributes {dimension_semantics = [#tpu.dimension_semantics<core_parallel>], iteration_bounds = array<i64: 2>, tpu.core_type = #tpu.core_type<sc_scalar_subcore>, window_params = []} {
    return
  }
}

module attributes {stable_mosaic.version = 11 : i64} {
  func.func @_conv_gemm_kernel(%arg0: i32, %arg1: i32, %arg2: memref<8x256xbf16, #tpu.memory_space<vmem>>, %arg3: memref<256x2048xbf16, #tpu.memory_space<vmem>>, %arg4: memref<8x1xf32, #tpu.memory_space<vmem>>, %arg5: memref<8x2048xbf16, #tpu.memory_space<vmem>>, %arg6: memref<8x2048xf32, #tpu.memory_space<vmem>>) attributes {dimension_semantics = [#tpu.dimension_semantics<parallel>, #tpu.dimension_semantics<arbitrary>], iteration_bounds = array<i64: 4, 1>, scalar_prefetch = 0 : i64, scratch_operands = 1 : i64, tpu.core_type = #tpu.core_type<tc>, window_params = [{pipeline_mode = #tpu.pipeline_mode<synchronous>, transform_indices = @transform_0, window_bounds = array<i64: 8, 256>}, {transform_indices = @transform_1, window_bounds = array<i64: 256, 2048>}, {pipeline_mode = #tpu.pipeline_mode<synchronous>, transform_indices = @transform_2, window_bounds = array<i64: 8, 1>}, {transform_indices = @transform_3, window_bounds = array<i64: 8, 2048>}]} {
    %c0_i32 = arith.constant 0 : i32
    %0 = arith.cmpi eq, %arg1, %c0_i32 : i32
    %1 = arith.extui %0 : i1 to i32
    %c0_i32_0 = arith.constant 0 : i32
    %2 = arith.cmpi ne, %1, %c0_i32_0 : i32
    scf.if %2 {
      %cst_10 = arith.constant 0.000000e+00 : f32
      %12 = vector.broadcast %cst_10 : f32 to vector<8x2048xf32>
      %c0_11 = arith.constant 0 : index
      %c0_12 = arith.constant 0 : index
      %13 = vector.load %arg6[%c0_11, %c0_12] : memref<8x2048xf32, #tpu.memory_space<vmem>>, vector<8x2048xf32>
      tpu.vector_store %arg6[%c0_11, %c0_12], %12 {strides = array<i32>} : memref<8x2048xf32, #tpu.memory_space<vmem>>, vector<8x2048xf32>,
    } else {
    }
    %c0 = arith.constant 0 : index
    %c0_1 = arith.constant 0 : index
    %3 = vector.load %arg2[%c0, %c0_1] : memref<8x256xbf16, #tpu.memory_space<vmem>>, vector<8x256xbf16>
    %c0_2 = arith.constant 0 : index
    %c0_3 = arith.constant 0 : index
    %4 = vector.load %arg6[%c0_2, %c0_3] : memref<8x2048xf32, #tpu.memory_space<vmem>>, vector<8x2048xf32>
    %c0_4 = arith.constant 0 : index
    %c0_5 = arith.constant 0 : index
    %5 = vector.load %arg3[%c0_4, %c0_5] : memref<256x2048xbf16, #tpu.memory_space<vmem>>, vector<256x2048xbf16>
    %cst = arith.constant dense<0.000000e+00> : vector<8x2048xf32>
    %6 = tpu.matmul %3, %5, %cst {dimension_numbers = #tpu.dot_dimension_numbers<[1], [0], [0], [1], [0, 0, 1, 1], [], []>} : vector<8x256xbf16>, vector<256x2048xbf16>, vector<8x2048xf32> -> vector<8x2048xf32>
    %7 = arith.addf %4, %6 : vector<8x2048xf32>
    %c0_6 = arith.constant 0 : index
    %c0_7 = arith.constant 0 : index
    %8 = vector.load %arg6[%c0_6, %c0_7] : memref<8x2048xf32, #tpu.memory_space<vmem>>, vector<8x2048xf32>
    tpu.vector_store %arg6[%c0_6, %c0_7], %7 {strides = array<i32>} : memref<8x2048xf32, #tpu.memory_space<vmem>>, vector<8x2048xf32>,
    %c0_i32_8 = arith.constant 0 : i32
    %9 = arith.cmpi eq, %arg1, %c0_i32_8 : i32
    %10 = arith.extui %9 : i1 to i32
    %c0_i32_9 = arith.constant 0 : i32
    %11 = arith.cmpi ne, %10, %c0_i32_9 : i32
    scf.if %11 {
      %c0_10 = arith.constant 0 : index
      %c0_11 = arith.constant 0 : index
      %12 = vector.load %arg6[%c0_10, %c0_11] : memref<8x2048xf32, #tpu.memory_space<vmem>>, vector<8x2048xf32>
      %c0_12 = arith.constant 0 : index
      %c0_13 = arith.constant 0 : index
      %13 = vector.load %arg4[%c0_12, %c0_13] : memref<8x1xf32, #tpu.memory_space<vmem>>, vector<8x1xf32>
      %14 = vector.broadcast %13 : vector<8x1xf32> to vector<8x2048xf32>
      %15 = arith.addf %12, %14 : vector<8x2048xf32>
      %cst_14 = arith.constant 0.000000e+00 : f32
      %16 = vector.broadcast %cst_14 : f32 to vector<8x2048xf32>
      %17 = arith.cmpf ogt, %15, %16 : vector<8x2048xf32>
      %cst_15 = arith.constant 2.000000e-01 : f32
      %18 = vector.broadcast %cst_15 : f32 to vector<8x2048xf32>
      %19 = arith.mulf %18, %15 : vector<8x2048xf32>
      %20 = arith.select %17, %15, %19 : vector<8x2048xi1>, vector<8x2048xf32>
      %21 = arith.truncf %20 : vector<8x2048xf32> to vector<8x2048xbf16>
      %c0_16 = arith.constant 0 : index
      %c0_17 = arith.constant 0 : index
      %22 = vector.load %arg5[%c0_16, %c0_17] : memref<8x2048xbf16, #tpu.memory_space<vmem>>, vector<8x2048xbf16>
      tpu.vector_store %arg5[%c0_16, %c0_17], %21 {strides = array<i32>} : memref<8x2048xbf16, #tpu.memory_space<vmem>>, vector<8x2048xbf16>,
    } else {
    }
    return
  }
  func.func @transform_0(%arg0: i32, %arg1: i32) -> (i32, i32) {
    %c0_i32 = arith.constant 0 : i32
    %c0_i32_0 = arith.constant 0 : i32
    %c0_i32_1 = arith.constant 0 : i32
    return %c0_i32, %c0_i32_0 : i32, i32
  }
  func.func @transform_1(%arg0: i32, %arg1: i32) -> (i32, i32) {
    %c0_i32 = arith.constant 0 : i32
    return %arg1, %arg0 : i32, i32
  }
  func.func @transform_2(%arg0: i32, %arg1: i32) -> (i32, i32) {
    %c0_i32 = arith.constant 0 : i32
    %c0_i32_0 = arith.constant 0 : i32
    %c0_i32_1 = arith.constant 0 : i32
    return %c0_i32, %c0_i32_0 : i32, i32
  }
  func.func @transform_3(%arg0: i32, %arg1: i32) -> (i32, i32) {
    %c0_i32 = arith.constant 0 : i32
    %c0_i32_0 = arith.constant 0 : i32
    return %c0_i32, %arg0 : i32, i32
  }
}

module attributes {stable_mosaic.version = 11 : i64} {
  func.func @_conv_gemm_kernel(%arg0: i32, %arg1: i32, %arg2: memref<16x512xbf16, #tpu.memory_space<vmem>>, %arg3: memref<512x512xbf16, #tpu.memory_space<vmem>>, %arg4: memref<16x1xf32, #tpu.memory_space<vmem>>, %arg5: memref<16x512xbf16, #tpu.memory_space<vmem>>, %arg6: memref<16x512xf32, #tpu.memory_space<vmem>>) attributes {dimension_semantics = [#tpu.dimension_semantics<parallel>, #tpu.dimension_semantics<arbitrary>], iteration_bounds = array<i64: 2, 1>, scalar_prefetch = 0 : i64, scratch_operands = 1 : i64, tpu.core_type = #tpu.core_type<tc>, window_params = [{pipeline_mode = #tpu.pipeline_mode<synchronous>, transform_indices = @transform_0, window_bounds = array<i64: 16, 512>}, {transform_indices = @transform_1, window_bounds = array<i64: 512, 512>}, {pipeline_mode = #tpu.pipeline_mode<synchronous>, transform_indices = @transform_2, window_bounds = array<i64: 16, 1>}, {transform_indices = @transform_3, window_bounds = array<i64: 16, 512>}]} {
    %c0_i32 = arith.constant 0 : i32
    %0 = arith.cmpi eq, %arg1, %c0_i32 : i32
    %1 = arith.extui %0 : i1 to i32
    %c0_i32_0 = arith.constant 0 : i32
    %2 = arith.cmpi ne, %1, %c0_i32_0 : i32
    scf.if %2 {
      %cst_10 = arith.constant 0.000000e+00 : f32
      %12 = vector.broadcast %cst_10 : f32 to vector<16x512xf32>
      %c0_11 = arith.constant 0 : index
      %c0_12 = arith.constant 0 : index
      %13 = vector.load %arg6[%c0_11, %c0_12] : memref<16x512xf32, #tpu.memory_space<vmem>>, vector<16x512xf32>
      tpu.vector_store %arg6[%c0_11, %c0_12], %12 {strides = array<i32>} : memref<16x512xf32, #tpu.memory_space<vmem>>, vector<16x512xf32>,
    } else {
    }
    %c0 = arith.constant 0 : index
    %c0_1 = arith.constant 0 : index
    %3 = vector.load %arg2[%c0, %c0_1] : memref<16x512xbf16, #tpu.memory_space<vmem>>, vector<16x512xbf16>
    %c0_2 = arith.constant 0 : index
    %c0_3 = arith.constant 0 : index
    %4 = vector.load %arg6[%c0_2, %c0_3] : memref<16x512xf32, #tpu.memory_space<vmem>>, vector<16x512xf32>
    %c0_4 = arith.constant 0 : index
    %c0_5 = arith.constant 0 : index
    %5 = vector.load %arg3[%c0_4, %c0_5] : memref<512x512xbf16, #tpu.memory_space<vmem>>, vector<512x512xbf16>
    %cst = arith.constant dense<0.000000e+00> : vector<16x512xf32>
    %6 = tpu.matmul %3, %5, %cst {dimension_numbers = #tpu.dot_dimension_numbers<[1], [0], [0], [1], [0, 0, 1, 1], [], []>} : vector<16x512xbf16>, vector<512x512xbf16>, vector<16x512xf32> -> vector<16x512xf32>
    %7 = arith.addf %4, %6 : vector<16x512xf32>
    %c0_6 = arith.constant 0 : index
    %c0_7 = arith.constant 0 : index
    %8 = vector.load %arg6[%c0_6, %c0_7] : memref<16x512xf32, #tpu.memory_space<vmem>>, vector<16x512xf32>
    tpu.vector_store %arg6[%c0_6, %c0_7], %7 {strides = array<i32>} : memref<16x512xf32, #tpu.memory_space<vmem>>, vector<16x512xf32>,
    %c0_i32_8 = arith.constant 0 : i32
    %9 = arith.cmpi eq, %arg1, %c0_i32_8 : i32
    %10 = arith.extui %9 : i1 to i32
    %c0_i32_9 = arith.constant 0 : i32
    %11 = arith.cmpi ne, %10, %c0_i32_9 : i32
    scf.if %11 {
      %c0_10 = arith.constant 0 : index
      %c0_11 = arith.constant 0 : index
      %12 = vector.load %arg6[%c0_10, %c0_11] : memref<16x512xf32, #tpu.memory_space<vmem>>, vector<16x512xf32>
      %c0_12 = arith.constant 0 : index
      %c0_13 = arith.constant 0 : index
      %13 = vector.load %arg4[%c0_12, %c0_13] : memref<16x1xf32, #tpu.memory_space<vmem>>, vector<16x1xf32>
      %14 = vector.broadcast %13 : vector<16x1xf32> to vector<16x512xf32>
      %15 = arith.addf %12, %14 : vector<16x512xf32>
      %cst_14 = arith.constant 0.000000e+00 : f32
      %16 = vector.broadcast %cst_14 : f32 to vector<16x512xf32>
      %17 = arith.cmpf ogt, %15, %16 : vector<16x512xf32>
      %cst_15 = arith.constant 2.000000e-01 : f32
      %18 = vector.broadcast %cst_15 : f32 to vector<16x512xf32>
      %19 = arith.mulf %18, %15 : vector<16x512xf32>
      %20 = arith.select %17, %15, %19 : vector<16x512xi1>, vector<16x512xf32>
      %21 = arith.truncf %20 : vector<16x512xf32> to vector<16x512xbf16>
      %c0_16 = arith.constant 0 : index
      %c0_17 = arith.constant 0 : index
      %22 = vector.load %arg5[%c0_16, %c0_17] : memref<16x512xbf16, #tpu.memory_space<vmem>>, vector<16x512xbf16>
      tpu.vector_store %arg5[%c0_16, %c0_17], %21 {strides = array<i32>} : memref<16x512xbf16, #tpu.memory_space<vmem>>, vector<16x512xbf16>,
    } else {
    }
    return
  }
  func.func @transform_0(%arg0: i32, %arg1: i32) -> (i32, i32) {
    %c0_i32 = arith.constant 0 : i32
    %c0_i32_0 = arith.constant 0 : i32
    %c0_i32_1 = arith.constant 0 : i32
    return %c0_i32, %c0_i32_0 : i32, i32
  }
  func.func @transform_1(%arg0: i32, %arg1: i32) -> (i32, i32) {
    %c0_i32 = arith.constant 0 : i32
    return %arg1, %arg0 : i32, i32
  }
  func.func @transform_2(%arg0: i32, %arg1: i32) -> (i32, i32) {
    %c0_i32 = arith.constant 0 : i32
    %c0_i32_0 = arith.constant 0 : i32
    %c0_i32_1 = arith.constant 0 : i32
    return %c0_i32, %c0_i32_0 : i32, i32
  }
  func.func @transform_3(%arg0: i32, %arg1: i32) -> (i32, i32) {
    %c0_i32 = arith.constant 0 : i32
    %c0_i32_0 = arith.constant 0 : i32
    return %c0_i32, %arg0 : i32, i32
  }
}

module attributes {stable_mosaic.version = 11 : i64} {
  func.func @_conv_gemm_kernel(%arg0: i32, %arg1: i32, %arg2: memref<32x1024xbf16, #tpu.memory_space<vmem>>, %arg3: memref<1024x128xbf16, #tpu.memory_space<vmem>>, %arg4: memref<32x1xf32, #tpu.memory_space<vmem>>, %arg5: memref<32x128xbf16, #tpu.memory_space<vmem>>, %arg6: memref<32x128xf32, #tpu.memory_space<vmem>>) attributes {dimension_semantics = [#tpu.dimension_semantics<parallel>, #tpu.dimension_semantics<arbitrary>], iteration_bounds = array<i64: 1, 1>, scalar_prefetch = 0 : i64, scratch_operands = 1 : i64, tpu.core_type = #tpu.core_type<tc>, window_params = [{pipeline_mode = #tpu.pipeline_mode<synchronous>, transform_indices = @transform_0, window_bounds = array<i64: 32, 1024>}, {transform_indices = @transform_1, window_bounds = array<i64: 1024, 128>}, {pipeline_mode = #tpu.pipeline_mode<synchronous>, transform_indices = @transform_2, window_bounds = array<i64: 32, 1>}, {transform_indices = @transform_3, window_bounds = array<i64: 32, 128>}]} {
    %c0_i32 = arith.constant 0 : i32
    %0 = arith.cmpi eq, %arg1, %c0_i32 : i32
    %1 = arith.extui %0 : i1 to i32
    %c0_i32_0 = arith.constant 0 : i32
    %2 = arith.cmpi ne, %1, %c0_i32_0 : i32
    scf.if %2 {
      %cst_10 = arith.constant 0.000000e+00 : f32
      %12 = vector.broadcast %cst_10 : f32 to vector<32x128xf32>
      %c0_11 = arith.constant 0 : index
      %c0_12 = arith.constant 0 : index
      %13 = vector.load %arg6[%c0_11, %c0_12] : memref<32x128xf32, #tpu.memory_space<vmem>>, vector<32x128xf32>
      tpu.vector_store %arg6[%c0_11, %c0_12], %12 {strides = array<i32>} : memref<32x128xf32, #tpu.memory_space<vmem>>, vector<32x128xf32>,
    } else {
    }
    %c0 = arith.constant 0 : index
    %c0_1 = arith.constant 0 : index
    %3 = vector.load %arg2[%c0, %c0_1] : memref<32x1024xbf16, #tpu.memory_space<vmem>>, vector<32x1024xbf16>
    %c0_2 = arith.constant 0 : index
    %c0_3 = arith.constant 0 : index
    %4 = vector.load %arg6[%c0_2, %c0_3] : memref<32x128xf32, #tpu.memory_space<vmem>>, vector<32x128xf32>
    %c0_4 = arith.constant 0 : index
    %c0_5 = arith.constant 0 : index
    %5 = vector.load %arg3[%c0_4, %c0_5] : memref<1024x128xbf16, #tpu.memory_space<vmem>>, vector<1024x128xbf16>
    %cst = arith.constant dense<0.000000e+00> : vector<32x128xf32>
    %6 = tpu.matmul %3, %5, %cst {dimension_numbers = #tpu.dot_dimension_numbers<[1], [0], [0], [1], [0, 0, 1, 1], [], []>} : vector<32x1024xbf16>, vector<1024x128xbf16>, vector<32x128xf32> -> vector<32x128xf32>
    %7 = arith.addf %4, %6 : vector<32x128xf32>
    %c0_6 = arith.constant 0 : index
    %c0_7 = arith.constant 0 : index
    %8 = vector.load %arg6[%c0_6, %c0_7] : memref<32x128xf32, #tpu.memory_space<vmem>>, vector<32x128xf32>
    tpu.vector_store %arg6[%c0_6, %c0_7], %7 {strides = array<i32>} : memref<32x128xf32, #tpu.memory_space<vmem>>, vector<32x128xf32>,
    %c0_i32_8 = arith.constant 0 : i32
    %9 = arith.cmpi eq, %arg1, %c0_i32_8 : i32
    %10 = arith.extui %9 : i1 to i32
    %c0_i32_9 = arith.constant 0 : i32
    %11 = arith.cmpi ne, %10, %c0_i32_9 : i32
    scf.if %11 {
      %c0_10 = arith.constant 0 : index
      %c0_11 = arith.constant 0 : index
      %12 = vector.load %arg6[%c0_10, %c0_11] : memref<32x128xf32, #tpu.memory_space<vmem>>, vector<32x128xf32>
      %c0_12 = arith.constant 0 : index
      %c0_13 = arith.constant 0 : index
      %13 = vector.load %arg4[%c0_12, %c0_13] : memref<32x1xf32, #tpu.memory_space<vmem>>, vector<32x1xf32>
      %14 = vector.broadcast %13 : vector<32x1xf32> to vector<32x128xf32>
      %15 = arith.addf %12, %14 : vector<32x128xf32>
      %cst_14 = arith.constant 0.000000e+00 : f32
      %16 = vector.broadcast %cst_14 : f32 to vector<32x128xf32>
      %17 = arith.cmpf ogt, %15, %16 : vector<32x128xf32>
      %cst_15 = arith.constant 2.000000e-01 : f32
      %18 = vector.broadcast %cst_15 : f32 to vector<32x128xf32>
      %19 = arith.mulf %18, %15 : vector<32x128xf32>
      %20 = arith.select %17, %15, %19 : vector<32x128xi1>, vector<32x128xf32>
      %21 = arith.truncf %20 : vector<32x128xf32> to vector<32x128xbf16>
      %c0_16 = arith.constant 0 : index
      %c0_17 = arith.constant 0 : index
      %22 = vector.load %arg5[%c0_16, %c0_17] : memref<32x128xbf16, #tpu.memory_space<vmem>>, vector<32x128xbf16>
      tpu.vector_store %arg5[%c0_16, %c0_17], %21 {strides = array<i32>} : memref<32x128xbf16, #tpu.memory_space<vmem>>, vector<32x128xbf16>,
    } else {
    }
    return
  }
  func.func @transform_0(%arg0: i32, %arg1: i32) -> (i32, i32) {
    %c0_i32 = arith.constant 0 : i32
    %c0_i32_0 = arith.constant 0 : i32
    %c0_i32_1 = arith.constant 0 : i32
    return %c0_i32, %c0_i32_0 : i32, i32
  }
  func.func @transform_1(%arg0: i32, %arg1: i32) -> (i32, i32) {
    %c0_i32 = arith.constant 0 : i32
    return %arg1, %arg0 : i32, i32
  }
  func.func @transform_2(%arg0: i32, %arg1: i32) -> (i32, i32) {
    %c0_i32 = arith.constant 0 : i32
    %c0_i32_0 = arith.constant 0 : i32
    %c0_i32_1 = arith.constant 0 : i32
    return %c0_i32, %c0_i32_0 : i32, i32
  }
  func.func @transform_3(%arg0: i32, %arg1: i32) -> (i32, i32) {
    %c0_i32 = arith.constant 0 : i32
    %c0_i32_0 = arith.constant 0 : i32
    return %c0_i32, %arg0 : i32, i32
  }
}

module attributes {stable_mosaic.version = 11 : i64} {
  func.func @_conv_gemm_kernel(%arg0: i32, %arg1: i32, %arg2: memref<1x2048xbf16, #tpu.memory_space<vmem>>, %arg3: memref<2048x128xbf16, #tpu.memory_space<vmem>>, %arg4: memref<1x1xf32, #tpu.memory_space<vmem>>, %arg5: memref<1x128xf32, #tpu.memory_space<vmem>>, %arg6: memref<1x128xf32, #tpu.memory_space<vmem>>) attributes {dimension_semantics = [#tpu.dimension_semantics<parallel>, #tpu.dimension_semantics<arbitrary>], iteration_bounds = array<i64: 1, 1>, scalar_prefetch = 0 : i64, scratch_operands = 1 : i64, tpu.core_type = #tpu.core_type<tc>, window_params = [{pipeline_mode = #tpu.pipeline_mode<synchronous>, transform_indices = @transform_0, window_bounds = array<i64: 1, 2048>}, {transform_indices = @transform_1, window_bounds = array<i64: 2048, 128>}, {pipeline_mode = #tpu.pipeline_mode<synchronous>, transform_indices = @transform_2, window_bounds = array<i64: 1, 1>}, {transform_indices = @transform_3, window_bounds = array<i64: 1, 128>}]} {
    %c0_i32 = arith.constant 0 : i32
    %0 = arith.cmpi eq, %arg1, %c0_i32 : i32
    %1 = arith.extui %0 : i1 to i32
    %c0_i32_0 = arith.constant 0 : i32
    %2 = arith.cmpi ne, %1, %c0_i32_0 : i32
    scf.if %2 {
      %cst_10 = arith.constant 0.000000e+00 : f32
      %12 = vector.broadcast %cst_10 : f32 to vector<1x128xf32>
      %c0_11 = arith.constant 0 : index
      %c0_12 = arith.constant 0 : index
      %13 = vector.load %arg6[%c0_11, %c0_12] : memref<1x128xf32, #tpu.memory_space<vmem>>, vector<1x128xf32>
      tpu.vector_store %arg6[%c0_11, %c0_12], %12 {strides = array<i32>} : memref<1x128xf32, #tpu.memory_space<vmem>>, vector<1x128xf32>,
    } else {
    }
    %c0 = arith.constant 0 : index
    %c0_1 = arith.constant 0 : index
    %3 = vector.load %arg2[%c0, %c0_1] : memref<1x2048xbf16, #tpu.memory_space<vmem>>, vector<1x2048xbf16>
    %c0_2 = arith.constant 0 : index
    %c0_3 = arith.constant 0 : index
    %4 = vector.load %arg6[%c0_2, %c0_3] : memref<1x128xf32, #tpu.memory_space<vmem>>, vector<1x128xf32>
    %c0_4 = arith.constant 0 : index
    %c0_5 = arith.constant 0 : index
    %5 = vector.load %arg3[%c0_4, %c0_5] : memref<2048x128xbf16, #tpu.memory_space<vmem>>, vector<2048x128xbf16>
    %cst = arith.constant dense<0.000000e+00> : vector<1x128xf32>
    %6 = tpu.matmul %3, %5, %cst {dimension_numbers = #tpu.dot_dimension_numbers<[1], [0], [0], [1], [0, 0, 1, 1], [], []>} : vector<1x2048xbf16>, vector<2048x128xbf16>, vector<1x128xf32> -> vector<1x128xf32>
    %7 = arith.addf %4, %6 : vector<1x128xf32>
    %c0_6 = arith.constant 0 : index
    %c0_7 = arith.constant 0 : index
    %8 = vector.load %arg6[%c0_6, %c0_7] : memref<1x128xf32, #tpu.memory_space<vmem>>, vector<1x128xf32>
    tpu.vector_store %arg6[%c0_6, %c0_7], %7 {strides = array<i32>} : memref<1x128xf32, #tpu.memory_space<vmem>>, vector<1x128xf32>,
    %c0_i32_8 = arith.constant 0 : i32
    %9 = arith.cmpi eq, %arg1, %c0_i32_8 : i32
    %10 = arith.extui %9 : i1 to i32
    %c0_i32_9 = arith.constant 0 : i32
    %11 = arith.cmpi ne, %10, %c0_i32_9 : i32
    scf.if %11 {
      %c0_10 = arith.constant 0 : index
      %c0_11 = arith.constant 0 : index
      %12 = vector.load %arg6[%c0_10, %c0_11] : memref<1x128xf32, #tpu.memory_space<vmem>>, vector<1x128xf32>
      %c0_12 = arith.constant 0 : index
      %c0_13 = arith.constant 0 : index
      %13 = vector.load %arg4[%c0_12, %c0_13] : memref<1x1xf32, #tpu.memory_space<vmem>>, vector<1x1xf32>
      %14 = vector.broadcast %13 : vector<1x1xf32> to vector<1x128xf32>
      %15 = arith.addf %12, %14 : vector<1x128xf32>
      %c0_14 = arith.constant 0 : index
      %c0_15 = arith.constant 0 : index
      %16 = vector.load %arg5[%c0_14, %c0_15] : memref<1x128xf32, #tpu.memory_space<vmem>>, vector<1x128xf32>
      tpu.vector_store %arg5[%c0_14, %c0_15], %15 {strides = array<i32>} : memref<1x128xf32, #tpu.memory_space<vmem>>, vector<1x128xf32>,
    } else {
    }
    return
  }
  func.func @transform_0(%arg0: i32, %arg1: i32) -> (i32, i32) {
    %c0_i32 = arith.constant 0 : i32
    %c0_i32_0 = arith.constant 0 : i32
    %c0_i32_1 = arith.constant 0 : i32
    return %c0_i32, %c0_i32_0 : i32, i32
  }
  func.func @transform_1(%arg0: i32, %arg1: i32) -> (i32, i32) {
    %c0_i32 = arith.constant 0 : i32
    return %arg1, %arg0 : i32, i32
  }
  func.func @transform_2(%arg0: i32, %arg1: i32) -> (i32, i32) {
    %c0_i32 = arith.constant 0 : i32
    %c0_i32_0 = arith.constant 0 : i32
    %c0_i32_1 = arith.constant 0 : i32
    return %c0_i32, %c0_i32_0 : i32, i32
  }
  func.func @transform_3(%arg0: i32, %arg1: i32) -> (i32, i32) {
    %c0_i32 = arith.constant 0 : i32
    %c0_i32_0 = arith.constant 0 : i32
    return %c0_i32, %arg0 : i32, i32
  }
}

module attributes {stable_mosaic.version = 11 : i64} {
  func.func @_upsample_sigmoid_kernel(%arg0: i32, %arg1: i32, %arg2: memref<1x4x2xf32, #tpu.memory_space<vmem>>, %arg3: memref<2x32xf32, #tpu.memory_space<vmem>>, %arg4: memref<1024x4xf32, #tpu.memory_space<vmem>>, %arg5: memref<1x1024x32xf32, #tpu.memory_space<vmem>>) attributes {dimension_semantics = [#tpu.dimension_semantics<parallel>, #tpu.dimension_semantics<parallel>], iteration_bounds = array<i64: 2, 1>, scalar_prefetch = 0 : i64, scratch_operands = 0 : i64, tpu.core_type = #tpu.core_type<tc>, window_params = [{transform_indices = @transform_0, window_bounds = array<i64: 1, 4, 2>}, {pipeline_mode = #tpu.pipeline_mode<synchronous>, transform_indices = @transform_1, window_bounds = array<i64: 2, 32>}, {transform_indices = @transform_2, window_bounds = array<i64: 1024, 4>}, {transform_indices = @transform_3, window_bounds = array<i64: 1, 1024, 32>}]} {
    %c0 = arith.constant 0 : index
    %c0_0 = arith.constant 0 : index
    %c0_1 = arith.constant 0 : index
    %0 = vector.load %arg2[%c0, %c0_0, %c0_1] : memref<1x4x2xf32, #tpu.memory_space<vmem>>, vector<1x4x2xf32>
    %1 = vector.shape_cast %0 : vector<1x4x2xf32> to vector<4x2xf32>
    %c0_2 = arith.constant 0 : index
    %c0_3 = arith.constant 0 : index
    %2 = vector.load %arg3[%c0_2, %c0_3] : memref<2x32xf32, #tpu.memory_space<vmem>>, vector<2x32xf32>
    %cst = arith.constant dense<0.000000e+00> : vector<4x32xf32>
    %3 = tpu.matmul %1, %2, %cst {dimension_numbers = #tpu.dot_dimension_numbers<[1], [0], [0], [1], [0, 0, 1, 1], [], []>} : vector<4x2xf32>, vector<2x32xf32>, vector<4x32xf32> -> vector<4x32xf32>
    %c0_4 = arith.constant 0 : index
    %c0_5 = arith.constant 0 : index
    %4 = vector.load %arg4[%c0_4, %c0_5] : memref<1024x4xf32, #tpu.memory_space<vmem>>, vector<1024x4xf32>
    %cst_6 = arith.constant dense<0.000000e+00> : vector<1024x32xf32>
    %5 = tpu.matmul %4, %3, %cst_6 {dimension_numbers = #tpu.dot_dimension_numbers<[1], [0], [0], [1], [0, 0, 1, 1], [], []>} : vector<1024x4xf32>, vector<4x32xf32>, vector<1024x32xf32> -> vector<1024x32xf32>
    %6 = arith.negf %5 : vector<1024x32xf32>
    %7 = math.exp %6 : vector<1024x32xf32>
    %cst_7 = arith.constant 1.000000e+00 : f32
    %8 = vector.broadcast %cst_7 : f32 to vector<1024x32xf32>
    %9 = arith.addf %8, %7 : vector<1024x32xf32>
    %10 = arith.divf %8, %9 : vector<1024x32xf32>
    %11 = vector.shape_cast %10 : vector<1024x32xf32> to vector<1x1024x32xf32>
    %c0_8 = arith.constant 0 : index
    %c0_9 = arith.constant 0 : index
    %c0_10 = arith.constant 0 : index
    %12 = vector.load %arg5[%c0_8, %c0_9, %c0_10] : memref<1x1024x32xf32, #tpu.memory_space<vmem>>, vector<1x1024x32xf32>
    tpu.vector_store %arg5[%c0_8, %c0_9, %c0_10], %11 {strides = array<i32>} : memref<1x1024x32xf32, #tpu.memory_space<vmem>>, vector<1x1024x32xf32>,
    return
  }
  func.func @transform_0(%arg0: i32, %arg1: i32) -> (i32, i32, i32) {
    %c0_i32 = arith.constant 0 : i32
    %c0_i32_0 = arith.constant 0 : i32
    %c0_i32_1 = arith.constant 0 : i32
    return %arg0, %c0_i32, %c0_i32_0 : i32, i32, i32
  }
  func.func @transform_1(%arg0: i32, %arg1: i32) -> (i32, i32) {
    %c0_i32 = arith.constant 0 : i32
    %c0_i32_0 = arith.constant 0 : i32
    %c0_i32_1 = arith.constant 0 : i32
    return %c0_i32, %c0_i32_0 : i32, i32
  }
  func.func @transform_2(%arg0: i32, %arg1: i32) -> (i32, i32) {
    %c0_i32 = arith.constant 0 : i32
    %c0_i32_0 = arith.constant 0 : i32
    return %arg1, %c0_i32 : i32, i32
  }
  func.func @transform_3(%arg0: i32, %arg1: i32) -> (i32, i32, i32) {
    %c0_i32 = arith.constant 0 : i32
    %c0_i32_0 = arith.constant 0 : i32
    return %arg0, %arg1, %c0_i32 : i32, i32, i32
  }
}

</mosaic_0001>

<bundles_post_ra>
// kernel: fc_discriminator_dap_forward.5
= control target key start
LH: loop header
LB: loop body
LE: loop exit
PB: predicated region body
PF: predicated region fallthrough
CT: control target
= control target key end

     0   :  { %8 = vsyncpa [#allocation4], 0  ;;  %s3606_s0 = inlined_call_operand.hbm [shape: bf16[8,256], index: 0, kind: input, shape index: {}]   ;;  %s3607_s1 = inlined_call_operand.hbm [shape: bf16[256,8192], index: 1, kind: input, shape index: {}]   ;;  %s3608_s2 = inlined_call_operand.hbm [shape: f32[8,1], index: 2, kind: input, shape index: {}]   ;;  %s3609_s3 = inlined_call_operand.hbm [shape: bf16[8,8192], index: 3, kind: output, shape index: {}]  }
   0x1   :  { %9 = vsyncpa [#allocation7], 0 }
   0x2   :  { %11 = vsyncpa [#allocation7 + $0x1], 0 }
   0x3   :  { %12 = vsyncpa [#allocation5], 0 }
   0x4   :  { %14 = vsyncpa [#allocation5 + $0x1], 0  ;;  %s3043_s12 = smov 0   ;;  %s3045_s13 = smov 0  }
   0x5   :  { %s3047_s14 = smov 0   ;;  %s3049_s15 = smov 0  }
   0x6   :  { %s3051_s16 = smov 0   ;;  %s3053_s17 = smov 0  }
   0x7 LB: > { %s3074_s18 = sadd.s32 4294967295, %s3013_s17   ;;  %s2453_s19 = sadd.s32 4294967294, %s3013_s17   ;;  %s3013_s17 = sphi %s3053_s17, %s20_s17   ;;  %s3009_s16 = sphi %s3051_s16, %s3635_s16   ;;  %s3005_s15 = sphi %s3049_s15, %s3634_s15   ;;  %s3001_s14 = sphi %s3047_s14, %s3633_s14   ;;  %s2997_s13 = sphi %s3045_s13, %s3632_s13   ;;  %s2993_s12 = sphi %s3043_s12, %s3631_s12  }
   0x8   : > { %s62_s20 = sadd.s32 1, %s3001_s14  ;;  %p69_p0 = scmp.ne.s32.totalorder %s3001_s14, %s2997_s13 }
   0x9   : > { %p70_p1 = scmp.eq.s32.totalorder %s3013_s17, 0  ;;  %p75_p2 = scmp.ne.s32.totalorder %s2997_s13, %s2993_s12 }
   0xa   : > { %p3610_p3 = scmp.eq.s32.totalorder %s3074_s18, 0  ;;  %p120_p4 = scmp.eq.s32.totalorder %s3074_s18, 3 }
   0xb   : > { %p3085_p5 = por %p70_p1, %p69_p0  ;;  %p126_p6 = scmp.eq.s32.totalorder %s2453_s19, 3 }
   0xc   : > { %p3091_p7 = por %p3610_p3, %p75_p2  ;;  %p3095_p8 = por %p120_p4, %p69_p0 }
   0xd   : > { %p3099_p9 = por %p126_p6, %p75_p2  ;;  %p2454_p10 = scmp.ge.s32.totalorder %s3013_s17, 1 }
   0xe   : > { %s3616_s22 = scalar_select %p3091_p7, 1, 0 }
   0xf   : > { %s3617_s23 = scalar_select %p3095_p8, 1, 0 }
  0x10   : > { %s3618_s24 = scalar_select %p3099_p9, 1, 0 }
  0x11   : > { %p133_p11 = scmp.lt.s32.totalorder %s3013_s17, 5  ;;  %s3015_s26 = smov [#allocation8]  }
  0x12   : > { %s157_s27 = sshll.u32 %s3015_s26, 4  ;;  %p2776_p13 = scmp.lt.s32.totalorder %s3013_s17, 4  ;;  %s158_s27 = int_to_ptr.vmem [resolvable:$true] %s157_s27 }
  0x13   : > { %p3105_p12 = pnand %p2454_p10, %p133_p11  ;;  %s3016_s30 = smov [#allocation3]  }
  0x14   : > { %p3114_p1 = pnand %p2776_p13, %p3085_p5  ;;  %s146_s4 = sshll.u32 %s3016_s30, 4  ;;  %s3124_s4 = int_to_ptr.vmem [resolvable:$true] %s146_s4 }
  0x15   : > { %s3619_s25 = scalar_select %p3105_p12, 1, 0 }
  0x16   : > { %p2759_p0 = pneg %p3105_p12  ;;  %s2837_s7 = scalar_lea.hbm %s3608_s2, 128 }
  0x17   : > { %s3620_s28 = scalar_select %p3114_p1, 1, 0 }
  0x18   : > { %p3120_p2 = pnand %p2759_p0, %p3610_p3  ;;  %p2838_p4 = scmp.ne.s32.totalorder %s3608_s2, %s2837_s7 }
  0x19   : > { %p2844_p11 = scmp.lt.u32.totalorder %s2837_s7, %s3608_s2 }
  0x1a   : > { %p2839_p5 = pneg %p3120_p2 }
  0x1c   : > { %p2840_p6 = pnand %p2839_p5, %p2838_p4 }
  0x1e   : > { %p2841_p10 = pneg %p2840_p6 }
  0x20   : > { %p2846_p13 = pnand %p2844_p11, %p2841_p10 }
  0x22   : > { %2849 = shalt.err (!%p2846_p13)
}
  0x23   : > { %s2850_s19 = scalar_lea.vmem %s158_s27, 128  ;;  %p2858_p8 = scmp.lt.s32.totalorder %s158_s27, %s158_s27 }
  0x24   : > { %p2851_p0 = scmp.ne.s32.totalorder %s158_s27, %s2850_s19  ;;  %p2859_p7 = scmp.lt.s32.totalorder %s2850_s19, %s2850_s19 }
  0x26   : > { %p2853_p3 = pnand %p2851_p0, %p2839_p5  ;;  %p2860_p12 = por %p2859_p7, %p2858_p8 }
  0x28   : > { %p2854_p9 = pneg %p2853_p3 }
  0x2a   : > { %p2861_p1 = pnand %p2860_p12, %p2854_p9 }
  0x2c   : > { %2864 = shalt.err (!%p2861_p1)
}
  0x2d   : > { %2765 = dma.hbm_to_vmem [thread:$0]  (!%p3120_p2), %s3608_s2, 128, %s158_s27, [#allocation7]  }
  0x2e   : > { %s2865_s6 = scalar_lea.hbm %s3606_s0, 128 }
  0x2f   : > { %p2866_p3 = scmp.ne.s32.totalorder %s3606_s0, %s2865_s6  ;;  %p2872_p9 = scmp.lt.u32.totalorder %s2865_s6, %s3606_s0 }
  0x31   : > { %p2868_p7 = pnand %p2866_p3, %p2839_p5 }
  0x33   : > { %p2869_p8 = pneg %p2868_p7 }
  0x35   : > { %p2874_p12 = pnand %p2872_p9, %p2869_p8 }
  0x37   : > { %2877 = shalt.err (!%p2874_p12)
}
  0x38   : > { %s2878_s27 = scalar_lea.vmem %s3124_s4, 128  ;;  %p2886_p10 = scmp.lt.s32.totalorder %s3124_s4, %s3124_s4 }
  0x39   : > { %p2879_p1 = scmp.ne.s32.totalorder %s3124_s4, %s2878_s27  ;;  %p2887_p11 = scmp.lt.s32.totalorder %s2878_s27, %s2878_s27 }
  0x3b   : > { %p2881_p4 = pnand %p2879_p1, %p2839_p5  ;;  %p2888_p13 = por %p2887_p11, %p2886_p10 }
  0x3d   : > { %p2882_p6 = pneg %p2881_p4 }
  0x3f   : > { %p2889_p0 = pnand %p2888_p13, %p2882_p6 }
  0x41   : > { %2892 = shalt.err (!%p2889_p0)
}
  0x42   : > { %2762 = dma.hbm_to_vmem [thread:$0]  (!%p3120_p2), %s3606_s0, 128, %s3124_s4, [#allocation4]  }
  0x43   : > { %s168_s21 = sand.u32 1, %s3013_s17   ;;  %s32_s26 = sadd.s32 1, %s3009_s16 }
  0x44   : > { %s170_s30 = sand.u32 1, %s3001_s14   ;;  %p34_p5 = scmp.ge.s32.totalorder %s32_s26, 4 }
  0x45   : > { %s2458_s5 = sshll.u32 %s170_s30, 11  ;;  %s2737_s29 = sshll.u32 %s3009_s16, 10 }
  0x46   : > { %s3637_s26 = smov (%p34_p5, %s32_s26), 0  ;;  %s3182_s8 = scalar_lea.hbm %s3607_s1, %s2737_s29 }
  0x47   : > { %s172_s4 = scalar_lea.vmem [#allocation6], %s2458_s5  ;;  %s58_s10 = ssub.s32 %s3009_s16, %s3637_s26 }
  0x48   : > { %s182_s9 = sshll.u32 %s172_s4, 4  ;;  %p60_p2 = scmp.eq.s32.totalorder %s58_s10, 0  ;;  %s3186_s9 = int_to_ptr.vmem [resolvable:$true] %s182_s9 }
  0x49   : > { %s3193_s11 = scalar_lea.sflag [#allocation7], %s168_s21  ;;  %s2893_s19 = scalar_lea.hbm %s3182_s8, 32768 }
  0x4a   : > { %s3191_s27 = scalar_select %p60_p2, %s3001_s14, %s62_s20  }
  0x4b   : > { %p2894_p3 = scmp.ne.s32.totalorder %s3182_s8, %s2893_s19  ;;  %p3622_p7 = scmp.ne.s32.totalorder %s3620_s28, 0 }
  0x4c   : > { %s2898_s29 = scalar_lea.hbm %s3607_s1, 131072  ;;  %p2899_p1 = scmp.lt.u32.totalorder %s3182_s8, %s3607_s1 }
  0x4d   : > { %p2895_p8 = pneg %p3622_p7  ;;  %p2900_p4 = scmp.lt.u32.totalorder %s2898_s29, %s2893_s19 }
  0x4e   : > { %p2902_p10 = scmp.lt.u32.totalorder %s2893_s19, %s3182_s8 }
  0x4f   : > { %p2896_p9 = pnand %p2895_p8, %p2894_p3  ;;  %p2901_p6 = por %p2900_p4, %p2899_p1 }
  0x51   : > { %p2897_p12 = pneg %p2896_p9  ;;  %p2903_p11 = por %p2902_p10, %p2901_p6 }
  0x53   : > { %p2904_p13 = pnand %p2903_p11, %p2897_p12 }
  0x55   : > { %2907 = shalt.err (!%p2904_p13)
}
  0x56   : > { %s2908_s20 = scalar_lea.vmem %s3186_s9, 32768  ;;  %s3017_s21 = smov [#allocation6]  }
  0x57   : > { %p2909_p0 = scmp.ne.s32.totalorder %s3186_s9, %s2908_s20  ;;  %s2913_s4 = sshll.u32 %s3017_s21, 4  ;;  %s2914_s4 = int_to_ptr.vmem [resolvable:$false] %s2913_s4 }
  0x58   : > { %s2915_s10 = scalar_lea.vmem %s2914_s4, 65536  ;;  %p2916_p3 = scmp.lt.s32.totalorder %s3186_s9, %s2914_s4 }
  0x59   : > { %p2911_p5 = pnand %p2909_p0, %p2895_p8  ;;  %p2917_p9 = scmp.lt.s32.totalorder %s2915_s10, %s2908_s20 }
  0x5b   : > { %p2912_p2 = pneg %p2911_p5  ;;  %p2918_p1 = por %p2917_p9, %p2916_p3 }
  0x5d   : > { %p2919_p4 = pnand %p2918_p1, %p2912_p2 }
  0x5f   : > { %2922 = shalt.err (!%p2919_p4)
}
  0x60   : > { %s3018_s19 = smov 4096   ;;  %s3019_s30 = smov 1024  }
  0x61   : > { %s3020_s5 = smov 64   ;;  %p3623_p8 = scmp.ne.s32.totalorder %s3619_s25, 0 }
  0x62   : > { %2769 = dma.hbm_to_vmem [thread:$0]  (!%p3622_p7), %s3182_s8, 32768, %s3186_s9, %s3193_s11, %s3018_s19, %s3019_s30, %s3020_s5  }
  0x63   : > { %194 = sbr.rel (%p3623_p8) target bundleno = 610 (0x262), region = 32  ;;  %p3624_p12 = scmp.eq.s32.totalorder (!%p3623_p8), %s3074_s18, 0 }
  0x6a   : > { %2976 = dma.done.wait (%p3624_p12), [#allocation4], 128   ;;  %p3625_p6 = pmov %p3624_p12 }
  0x6b   : > { %s200_s29 = sand.u32 1, %s3074_s18   ;;  %s3229_s6 = sand.u32 1, %s2997_s13  }
  0x6c   : > { %2978 = vsyncadd (%p3625_p6), [#allocation4], 4294967168  ;;  %s2463_s7 = sshll.u32 %s3229_s6, 11  ;;  %s201_s20 = scalar_lea.sflag [#allocation7], %s200_s29 }
  0x6d   : > { %s3232_s28 = scalar_lea.vmem [#allocation6], %s2463_s7  ;;  %p3626_p7 = scmp.ne.s32.totalorder %s3616_s22, 0 }
  0x6f   : > { %2980 = dma.done.wait (%p3626_p7), %s201_s20, 32768  }
  0x70   : > { %2982 = vsyncadd (%p3626_p7), %s201_s20, 4294934528  ;;  %p3627_p10 = pmov %p3625_p6 }
  0x71   : > { %p3628_p11 = pmov %p3625_p6 }
  0x72   : > { %2984 = dma.done.wait (%p3627_p10), [#allocation7], 128  }
  0x73   : > { %2986 = vsyncadd (%p3628_p11), [#allocation7], 4294967168  ;;  %v271_v0 = vld [vmem:[%s3232_s28] sm:$0xff]  ;;  %v272_v2 = vld [vmem:[%s3232_s28 + $0x8] sm:$0xff]  ;;  %v3021_v60 = vmov 0   ;;  %s2465_s18 = sshll.u32 %s3229_s6, 6 }
  0x74   : > { %v279_v1 = vld [vmem:[%s3232_s28 + $0x40] sm:$0xff]  ;;  %v280_v4 = vld [vmem:[%s3232_s28 + $0x48] sm:$0xff]  ;;  %v3270_v53 = vld [vmem:[#allocation3] sm:$0xff]  ;;  %2834 = vset.pattern.permute.xlu0 %v3021_v60  ;;  %s3531_s22 = scalar_lea.vmem [#allocation9], %s2465_s18  ;;  %s2746_s25 = sshll.u32 %s3005_s15, 10 }
  0x75   : > { %v2469_v3 = vcombine.high %v271_v0, %v279_v1  ;;  %v2468_v5 = vcombine.low %v271_v0, %v279_v1  ;;  %v287_v6 = vld [vmem:[%s3232_s28 + $0x80] sm:$0xff]  ;;  %v2471_v8 = vcombine.high %v272_v2, %v280_v4  ;;  %v2470_v9 = vcombine.low %v272_v2, %v280_v4  ;;  %v288_v11 = vld [vmem:[%s3232_s28 + $0x88] sm:$0xff]  ;;  %s2350_s8 = sshll.u32 %s3531_s22, 4  ;;  %s3556_s21 = scalar_lea.hbm %s3609_s3, %s2746_s25  ;;  %s3558_s8 = int_to_ptr.vmem [resolvable:$true] %s2350_s8 }
  0x76   : > { %v295_v7 = vld [vmem:[%s3232_s28 + $0xc0] sm:$0xff]  ;;  %v296_v12 = vld [vmem:[%s3232_s28 + $0xc8] sm:$0xff]  ;;  %v3276_v57 = vcombine.high %v3270_v53, %v3270_v53  ;;  %s2336_s4 = scalar_lea.sflag [#allocation5], %s3229_s6  ;;  %s2923_s15 = scalar_lea.vmem %s3558_s8, 1024 }
  0x77   : > { %v2485_v10 = vcombine.high %v287_v6, %v295_v7  ;;  %v303_v13 = vld [vmem:[%s3232_s28 + $0x100] sm:$0xff]  ;;  %1814 = vmatprep.subr.bf16.mxu0 %v2469_v3  ;;  %v2487_v14 = vcombine.high %v288_v11, %v296_v12  ;;  %v304_v16 = vld [vmem:[%s3232_s28 + $0x108] sm:$0xff]  ;;  %1855 = vmatprep.subr.bf16.mxu1 %v2471_v8  ;;  %v2484_v18 = vcombine.low %v287_v6, %v295_v7  ;;  %p2924_p13 = scmp.ne.s32.totalorder %s3558_s8, %s2923_s15  ;;  %p3629_p0 = scmp.ne.s32.totalorder %s3617_s23, 0 }
  0x78   : > { %v311_v15 = vld [vmem:[%s3232_s28 + $0x140] sm:$0xff]  ;;  %v312_v17 = vld [vmem:[%s3232_s28 + $0x148] sm:$0xff]  ;;  %1815 = vmatpush1.bf16.msra.mxu0 %v2468_v5  ;;  %1856 = vmatpush1.bf16.msra.mxu1 %v2470_v9  ;;  %v2486_v19 = vcombine.low %v288_v11, %v296_v12  ;;  %s3022_s10 = smov [#allocation9]  }
  0x79   : > { %1816 = vmatprep.subr.bf16.mxu0 %v2485_v10  ;;  %v2501_v20 = vcombine.high %v303_v13, %v311_v15  ;;  %1857 = vmatprep.subr.bf16.mxu1 %v2487_v14  ;;  %v2503_v21 = vcombine.high %v304_v16, %v312_v17  ;;  %v319_v22 = vld [vmem:[%s3232_s28 + $0x180] sm:$0xff]  ;;  %v320_v24 = vld [vmem:[%s3232_s28 + $0x188] sm:$0xff]  ;;  %v2500_v26 = vcombine.low %v303_v13, %v311_v15  ;;  %p2925_p5 = pnand %p2924_p13, %p3629_p0  ;;  %s2927_s19 = sshll.u32 %s3022_s10, 4  ;;  %s2928_s19 = int_to_ptr.vmem [resolvable:$false] %s2927_s19 }
  0x7a   : > { %v327_v23 = vld [vmem:[%s3232_s28 + $0x1c0] sm:$0xff]  ;;  %v328_v25 = vld [vmem:[%s3232_s28 + $0x1c8] sm:$0xff]  ;;  %v2502_v27 = vcombine.low %v304_v16, %v312_v17  ;;  %1846 = vmatprep.mubr.bf16.mxu0 %v3276_v57  ;;  %1887 = vmatprep.mubr.bf16.mxu1 %v3276_v57  ;;  %s2929_s30 = scalar_lea.vmem %s2928_s19, 2048  ;;  %p2930_p3 = scmp.lt.s32.totalorder %s3558_s8, %s2928_s19 }
  0x7b   : > { %v2517_v28 = vcombine.high %v319_v22, %v327_v23  ;;  %v2519_v29 = vcombine.high %v320_v24, %v328_v25  ;;  %v335_v30 = vld [vmem:[%s3232_s28 + $0x200] sm:$0xff]  ;;  %v336_v32 = vld [vmem:[%s3232_s28 + $0x208] sm:$0xff]  ;;  %v2516_v34 = vcombine.low %v319_v22, %v327_v23  ;;  %v2518_v35 = vcombine.low %v320_v24, %v328_v25  ;;  %p2926_p2 = pneg %p2925_p5  ;;  %p2931_p9 = scmp.lt.s32.totalorder %s2929_s30, %s2923_s15 }
  0x7c   : > { %1817 = vmatpush1.bf16.msra.mxu0 %v2484_v18  ;;  %1858 = vmatpush1.bf16.msra.mxu1 %v2486_v19  ;;  %v343_v31 = vld [vmem:[%s3232_s28 + $0x240] sm:$0xff]  ;;  %v344_v33 = vld [vmem:[%s3232_s28 + $0x248] sm:$0xff] }
  0x7d   : > { %1818 = vmatprep.subr.bf16.mxu0 %v2501_v20  ;;  %1859 = vmatprep.subr.bf16.mxu1 %v2503_v21  ;;  %v2533_v36 = vcombine.high %v335_v30, %v343_v31  ;;  %v2535_v37 = vcombine.high %v336_v32, %v344_v33  ;;  %v351_v38 = vld [vmem:[%s3232_s28 + $0x280] sm:$0xff]  ;;  %v352_v40 = vld [vmem:[%s3232_s28 + $0x288] sm:$0xff]  ;;  %v2532_v42 = vcombine.low %v335_v30, %v343_v31  ;;  %p2932_p1 = por %p2931_p9, %p2930_p3 }
  0x7e   : > { %v359_v39 = vld [vmem:[%s3232_s28 + $0x2c0] sm:$0xff]  ;;  %v360_v41 = vld [vmem:[%s3232_s28 + $0x2c8] sm:$0xff]  ;;  %v2534_v43 = vcombine.low %v336_v32, %v344_v33 }
  0x7f   : > { %v2549_v44 = vcombine.high %v351_v38, %v359_v39  ;;  %v2551_v45 = vcombine.high %v352_v40, %v360_v41  ;;  %v367_v46 = vld [vmem:[%s3232_s28 + $0x300] sm:$0xff]  ;;  %v368_v48 = vld [vmem:[%s3232_s28 + $0x308] sm:$0xff]  ;;  %v2548_v50 = vcombine.low %v351_v38, %v359_v39  ;;  %v2550_v51 = vcombine.low %v352_v40, %v360_v41  ;;  %p2933_p4 = pnand %p2932_p1, %p2926_p2 }
  0x80   : > { %1819 = vmatpush1.bf16.msra.mxu0 %v2500_v26  ;;  %1860 = vmatpush1.bf16.msra.mxu1 %v2502_v27  ;;  %v375_v47 = vld [vmem:[%s3232_s28 + $0x340] sm:$0xff]  ;;  %v376_v49 = vld [vmem:[%s3232_s28 + $0x348] sm:$0xff] }
  0x81   : > { %1820 = vmatprep.subr.bf16.mxu0 %v2517_v28  ;;  %1861 = vmatprep.subr.bf16.mxu1 %v2519_v29  ;;  %v2565_v52 = vcombine.high %v367_v46, %v375_v47  ;;  %v2567_v54 = vcombine.high %v368_v48, %v376_v49  ;;  %v383_v55 = vld [vmem:[%s3232_s28 + $0x380] sm:$0xff]  ;;  %v384_v58 = vld [vmem:[%s3232_s28 + $0x388] sm:$0xff]  ;;  %v2564_v61 = vcombine.low %v367_v46, %v375_v47 }
  0x82   : > { %v391_v56 = vld [vmem:[%s3232_s28 + $0x3c0] sm:$0xff]  ;;  %v392_v59 = vld [vmem:[%s3232_s28 + $0x3c8] sm:$0xff]  ;;  %v2566_v62 = vcombine.low %v368_v48, %v376_v49 }
  0x83   : > { %v2581_v63 = vcombine.high %v383_v55, %v391_v56  ;;  %v2583_v0 = vcombine.high %v384_v58, %v392_v59  ;;  %v399_v1 = vld [vmem:[%s3232_s28 + $0x400] sm:$0xff]  ;;  %v400_v3 = vld [vmem:[%s3232_s28 + $0x408] sm:$0xff]  ;;  %v2580_v5 = vcombine.low %v383_v55, %v391_v56  ;;  %v2582_v6 = vcombine.low %v384_v58, %v392_v59 }
  0x84   : > { %1821 = vmatpush1.bf16.msra.mxu0 %v2516_v34  ;;  %1862 = vmatpush1.bf16.msra.mxu1 %v2518_v35  ;;  %v407_v2 = vld [vmem:[%s3232_s28 + $0x440] sm:$0xff]  ;;  %v408_v4 = vld [vmem:[%s3232_s28 + $0x448] sm:$0xff] }
  0x85   : > { %1822 = vmatprep.subr.bf16.mxu0 %v2533_v36  ;;  %1863 = vmatprep.subr.bf16.mxu1 %v2535_v37  ;;  %v2597_v7 = vcombine.high %v399_v1, %v407_v2  ;;  %v2599_v8 = vcombine.high %v400_v3, %v408_v4  ;;  %v415_v9 = vld [vmem:[%s3232_s28 + $0x480] sm:$0xff]  ;;  %v416_v11 = vld [vmem:[%s3232_s28 + $0x488] sm:$0xff]  ;;  %v2596_v13 = vcombine.low %v399_v1, %v407_v2 }
  0x86   : > { %v423_v10 = vld [vmem:[%s3232_s28 + $0x4c0] sm:$0xff]  ;;  %v424_v12 = vld [vmem:[%s3232_s28 + $0x4c8] sm:$0xff]  ;;  %v2598_v14 = vcombine.low %v400_v3, %v408_v4  ;;  %v273_v4 = vld [vmem:[%s3232_s28 + $0x10] sm:$0xff] }
  0x87   : > { %v2613_v15 = vcombine.high %v415_v9, %v423_v10  ;;  %v2615_v16 = vcombine.high %v416_v11, %v424_v12  ;;  %v431_v17 = vld [vmem:[%s3232_s28 + $0x500] sm:$0xff]  ;;  %v432_v19 = vld [vmem:[%s3232_s28 + $0x508] sm:$0xff]  ;;  %v2612_v21 = vcombine.low %v415_v9, %v423_v10  ;;  %v2614_v22 = vcombine.low %v416_v11, %v424_v12  ;;  %v289_v12 = vld [vmem:[%s3232_s28 + $0x90] sm:$0xff] }
  0x88   : > { %1823 = vmatpush1.bf16.msra.mxu0 %v2532_v42  ;;  %1864 = vmatpush1.bf16.msra.mxu1 %v2534_v43  ;;  %v439_v18 = vld [vmem:[%s3232_s28 + $0x540] sm:$0xff]  ;;  %v440_v20 = vld [vmem:[%s3232_s28 + $0x548] sm:$0xff] }
  0x89   : > { %1824 = vmatprep.subr.bf16.mxu0 %v2549_v44  ;;  %1865 = vmatprep.subr.bf16.mxu1 %v2551_v45  ;;  %v2629_v23 = vcombine.high %v431_v17, %v439_v18  ;;  %v2631_v24 = vcombine.high %v432_v19, %v440_v20  ;;  %v447_v25 = vld [vmem:[%s3232_s28 + $0x580] sm:$0xff]  ;;  %v448_v27 = vld [vmem:[%s3232_s28 + $0x588] sm:$0xff]  ;;  %v2628_v29 = vcombine.low %v431_v17, %v439_v18 }
  0x8a   : > { %v455_v26 = vld [vmem:[%s3232_s28 + $0x5c0] sm:$0xff]  ;;  %v456_v28 = vld [vmem:[%s3232_s28 + $0x5c8] sm:$0xff]  ;;  %v2630_v30 = vcombine.low %v432_v19, %v440_v20 }
  0x8b   : > { %v2645_v31 = vcombine.high %v447_v25, %v455_v26  ;;  %v2647_v32 = vcombine.high %v448_v27, %v456_v28  ;;  %v463_v33 = vld [vmem:[%s3232_s28 + $0x600] sm:$0xff]  ;;  %v464_v35 = vld [vmem:[%s3232_s28 + $0x608] sm:$0xff]  ;;  %v2644_v37 = vcombine.low %v447_v25, %v455_v26  ;;  %v2646_v38 = vcombine.low %v448_v27, %v456_v28  ;;  %v321_v28 = vld [vmem:[%s3232_s28 + $0x190] sm:$0xff] }
  0x8c   : > { %1825 = vmatpush1.bf16.msra.mxu0 %v2548_v50  ;;  %1866 = vmatpush1.bf16.msra.mxu1 %v2550_v51  ;;  %v471_v34 = vld [vmem:[%s3232_s28 + $0x640] sm:$0xff]  ;;  %v472_v36 = vld [vmem:[%s3232_s28 + $0x648] sm:$0xff] }
  0x8d   : > { %1826 = vmatprep.subr.bf16.mxu0 %v2565_v52  ;;  %1867 = vmatprep.subr.bf16.mxu1 %v2567_v54  ;;  %v2661_v39 = vcombine.high %v463_v33, %v471_v34  ;;  %v2663_v40 = vcombine.high %v464_v35, %v472_v36  ;;  %v479_v41 = vld [vmem:[%s3232_s28 + $0x680] sm:$0xff]  ;;  %v480_v43 = vld [vmem:[%s3232_s28 + $0x688] sm:$0xff]  ;;  %v2660_v45 = vcombine.low %v463_v33, %v471_v34 }
  0x8e   : > { %v487_v42 = vld [vmem:[%s3232_s28 + $0x6c0] sm:$0xff]  ;;  %v488_v44 = vld [vmem:[%s3232_s28 + $0x6c8] sm:$0xff]  ;;  %v2662_v46 = vcombine.low %v464_v35, %v472_v36  ;;  %v337_v36 = vld [vmem:[%s3232_s28 + $0x210] sm:$0xff] }
  0x8f   : > { %v2677_v47 = vcombine.high %v479_v41, %v487_v42  ;;  %v2193_v48 = vld [vmem:[#allocation8] sm:$0xff]  ;;  %v2679_v49 = vcombine.high %v480_v43, %v488_v44  ;;  %v496_v52 = vld [vmem:[%s3232_s28 + $0x708] sm:$0xff]  ;;  %v2676_v55 = vcombine.low %v479_v41, %v487_v42  ;;  %v2678_v56 = vcombine.low %v480_v43, %v488_v44  ;;  %v353_v44 = vld [vmem:[%s3232_s28 + $0x290] sm:$0xff] }
  0x90   : > { %1827 = vmatpush1.bf16.msra.mxu0 %v2564_v61  ;;  %1868 = vmatpush1.bf16.msra.mxu1 %v2566_v62  ;;  %v495_v50 = vld [vmem:[%s3232_s28 + $0x700] sm:$0xff]  ;;  %v504_v54 = vld [vmem:[%s3232_s28 + $0x748] sm:$0xff] }
  0x91   : > { %1828 = vmatprep.subr.bf16.mxu0 %v2581_v63  ;;  %1869 = vmatprep.subr.bf16.mxu1 %v2583_v0  ;;  %v503_v51 = vld [vmem:[%s3232_s28 + $0x740] sm:$0xff]  ;;  %v2695_v59 = vcombine.high %v496_v52, %v504_v54  ;;  %v512_v62 = vld [vmem:[%s3232_s28 + $0x788] sm:$0xff]  ;;  %v2694_v1 = vcombine.low %v496_v52, %v504_v54  ;;  %v369_v52 = vld [vmem:[%s3232_s28 + $0x310] sm:$0xff] }
  0x92   : > { %2196 = vperm.xlu0 %2834, %v2193_v48   ;;  %v2693_v58 = vcombine.high %v495_v50, %v503_v51  ;;  %v511_v60 = vld [vmem:[%s3232_s28 + $0x780] sm:$0xff]  ;;  %v520_v63 = vld [vmem:[%s3232_s28 + $0x7c8] sm:$0xff]  ;;  %v2692_v0 = vcombine.low %v495_v50, %v503_v51  ;;  %v377_v54 = vld [vmem:[%s3232_s28 + $0x350] sm:$0xff] }
  0x93   : > { %v519_v61 = vld [vmem:[%s3232_s28 + $0x7c0] sm:$0xff]  ;;  %v2711_v3 = vcombine.high %v512_v62, %v520_v63  ;;  %v2710_v9 = vcombine.low %v512_v62, %v520_v63  ;;  %v385_v62 = vld [vmem:[%s3232_s28 + $0x390] sm:$0xff] }
  0x94   : > { %1829 = vmatpush1.bf16.msra.mxu0 %v2580_v5  ;;  %1870 = vmatpush1.bf16.msra.mxu1 %v2582_v6  ;;  %v2709_v2 = vcombine.high %v511_v60, %v519_v61  ;;  %v281_v5 = vld [vmem:[%s3232_s28 + $0x50] sm:$0xff]  ;;  %v274_v6 = vld [vmem:[%s3232_s28 + $0x18] sm:$0xff] }
  0x95   : > { %1830 = vmatprep.subr.bf16.mxu0 %v2597_v7  ;;  %1871 = vmatprep.subr.bf16.mxu1 %v2599_v8  ;;  %v282_v7 = vld [vmem:[%s3232_s28 + $0x58] sm:$0xff]  ;;  %v2708_v8 = vcombine.low %v511_v60, %v519_v61  ;;  %v2473_v10 = vcombine.high %v273_v4, %v281_v5  ;;  %v2472_v17 = vcombine.low %v273_v4, %v281_v5  ;;  %v393_v63 = vld [vmem:[%s3232_s28 + $0x3d0] sm:$0xff] }
  0x96   : > { %v2475_v11 = vcombine.high %v274_v6, %v282_v7  ;;  %v2474_v18 = vcombine.low %v274_v6, %v282_v7  ;;  %v2569_v60 = vcombine.high %v369_v52, %v377_v54  ;;  %v2585_v4 = vcombine.high %v385_v62, %v393_v63  ;;  %v401_v6 = vld [vmem:[%s3232_s28 + $0x410] sm:$0xff] }
  0x97   : > { %v409_v7 = vld [vmem:[%s3232_s28 + $0x450] sm:$0xff] }
  0x98   : > { %1831 = vmatpush1.bf16.msra.mxu0 %v2596_v13  ;;  %1872 = vmatpush1.bf16.msra.mxu1 %v2598_v14  ;;  %v297_v13 = vld [vmem:[%s3232_s28 + $0xd0] sm:$0xff]  ;;  %v3322_v14 = vcombine.low %v3270_v53, %v3270_v53  ;;  %v306_v53 = vld [vmem:[%s3232_s28 + $0x118] sm:$0xff] }
  0x99   : > { %1832 = vmatprep.subr.bf16.mxu0 %v2613_v15  ;;  %1873 = vmatprep.subr.bf16.mxu1 %v2615_v16  ;;  %v290_v15 = vld [vmem:[%s3232_s28 + $0x98] sm:$0xff]  ;;  %v2489_v19 = vcombine.high %v289_v12, %v297_v13 }
  0x9a   : > { %v298_v16 = vld [vmem:[%s3232_s28 + $0xd8] sm:$0xff] }
  0x9b   : > { %v2491_v20 = vcombine.high %v290_v15, %v298_v16  ;;  %v2490_v25 = vcombine.low %v290_v15, %v298_v16  ;;  %v417_v15 = vld [vmem:[%s3232_s28 + $0x490] sm:$0xff] }
  0x9c   : > { %1833 = vmatpush1.bf16.msra.mxu0 %v2612_v21  ;;  %1874 = vmatpush1.bf16.msra.mxu1 %v2614_v22  ;;  %v305_v21 = vld [vmem:[%s3232_s28 + $0x110] sm:$0xff] }
  0x9d   : > { %1834 = vmatprep.subr.bf16.mxu0 %v2629_v23  ;;  %1875 = vmatprep.subr.bf16.mxu1 %v2631_v24  ;;  %v313_v22 = vld [vmem:[%s3232_s28 + $0x150] sm:$0xff]  ;;  %v314_v23 = vld [vmem:[%s3232_s28 + $0x158] sm:$0xff]  ;;  %v2488_v24 = vcombine.low %v289_v12, %v297_v13  ;;  %v2601_v12 = vcombine.high %v401_v6, %v409_v7 }
  0x9e   : > { %v2505_v26 = vcombine.high %v305_v21, %v313_v22  ;;  %v2507_v27 = vcombine.high %v306_v53, %v314_v23  ;;  %v2506_v33 = vcombine.low %v306_v53, %v314_v23  ;;  %v425_v16 = vld [vmem:[%s3232_s28 + $0x4d0] sm:$0xff] }
  0x9f   : > { %v433_v53 = vld [vmem:[%s3232_s28 + $0x510] sm:$0xff] }
  0xa0   : > { %1835 = vmatpush1.bf16.msra.mxu0 %v2628_v29  ;;  %1876 = vmatpush1.bf16.msra.mxu1 %v2630_v30  ;;  %v329_v29 = vld [vmem:[%s3232_s28 + $0x1d0] sm:$0xff]  ;;  %v322_v30 = vld [vmem:[%s3232_s28 + $0x198] sm:$0xff] }
  0xa1   : > { %1836 = vmatprep.subr.bf16.mxu0 %v2645_v31  ;;  %1877 = vmatprep.subr.bf16.mxu1 %v2647_v32  ;;  %v330_v31 = vld [vmem:[%s3232_s28 + $0x1d8] sm:$0xff]  ;;  %v2504_v32 = vcombine.low %v305_v21, %v313_v22  ;;  %v2521_v34 = vcombine.high %v321_v28, %v329_v29  ;;  %v2617_v21 = vcombine.high %v417_v15, %v425_v16  ;;  %v441_v23 = vld [vmem:[%s3232_s28 + $0x550] sm:$0xff] }
  0xa2   : > { %v2523_v35 = vcombine.high %v322_v30, %v330_v31  ;;  %v2522_v41 = vcombine.low %v322_v30, %v330_v31  ;;  %v449_v30 = vld [vmem:[%s3232_s28 + $0x590] sm:$0xff] }
  0xa3   : > { %v457_v31 = vld [vmem:[%s3232_s28 + $0x5d0] sm:$0xff] }
  0xa4   : > { %1837 = vmatpush1.bf16.msra.mxu0 %v2644_v37  ;;  %1878 = vmatpush1.bf16.msra.mxu1 %v2646_v38  ;;  %v345_v37 = vld [vmem:[%s3232_s28 + $0x250] sm:$0xff]  ;;  %v338_v38 = vld [vmem:[%s3232_s28 + $0x218] sm:$0xff] }
  0xa5   : > { %1838 = vmatprep.subr.bf16.mxu0 %v2661_v39  ;;  %1879 = vmatprep.subr.bf16.mxu1 %v2663_v40  ;;  %v346_v39 = vld [vmem:[%s3232_s28 + $0x258] sm:$0xff]  ;;  %v2520_v40 = vcombine.low %v321_v28, %v329_v29  ;;  %v2537_v42 = vcombine.high %v337_v36, %v345_v37  ;;  %v2536_v48 = vcombine.low %v337_v36, %v345_v37 }
  0xa6   : > { %v2539_v43 = vcombine.high %v338_v38, %v346_v39  ;;  %v2633_v28 = vcombine.high %v433_v53, %v441_v23  ;;  %v2649_v36 = vcombine.high %v449_v30, %v457_v31 }
  0xa8   : > { %1839 = vmatpush1.bf16.msra.mxu0 %v2660_v45  ;;  %1880 = vmatpush1.bf16.msra.mxu1 %v2662_v46  ;;  %v361_v45 = vld [vmem:[%s3232_s28 + $0x2d0] sm:$0xff]  ;;  %v354_v46 = vld [vmem:[%s3232_s28 + $0x298] sm:$0xff] }
  0xa9   : > { %1840 = vmatprep.subr.bf16.mxu0 %v2677_v47  ;;  %1881 = vmatprep.subr.bf16.mxu1 %v2679_v49  ;;  %v362_v47 = vld [vmem:[%s3232_s28 + $0x2d8] sm:$0xff]  ;;  %v2538_v49 = vcombine.low %v338_v38, %v346_v39  ;;  %v2553_v50 = vcombine.high %v353_v44, %v361_v45  ;;  %v465_v38 = vld [vmem:[%s3232_s28 + $0x610] sm:$0xff] }
  0xaa   : > { %v2555_v51 = vcombine.high %v354_v46, %v362_v47  ;;  %v473_v39 = vld [vmem:[%s3232_s28 + $0x650] sm:$0xff] }
  0xac   : > { %1841 = vmatpush1.bf16.msra.mxu0 %v2676_v55  ;;  %1882 = vmatpush1.bf16.msra.mxu1 %v2678_v56  ;;  %v370_v55 = vld [vmem:[%s3232_s28 + $0x318] sm:$0xff] }
  0xad   : > { %1842 = vmatprep.subr.bf16.mxu0 %v2693_v58  ;;  %1883 = vmatprep.subr.bf16.mxu1 %v2695_v59  ;;  %v378_v56 = vld [vmem:[%s3232_s28 + $0x358] sm:$0xff]  ;;  %v2552_v58 = vcombine.low %v353_v44, %v361_v45  ;;  %v2554_v59 = vcombine.low %v354_v46, %v362_v47  ;;  %v2665_v44 = vcombine.high %v465_v38, %v473_v39  ;;  %v481_v46 = vld [vmem:[%s3232_s28 + $0x690] sm:$0xff] }
  0xae   : > { %v2571_v61 = vcombine.high %v370_v55, %v378_v56  ;;  %v489_v47 = vld [vmem:[%s3232_s28 + $0x6d0] sm:$0xff] }
  0xb0   : > { %1843 = vmatpush1.bf16.msra.mxu0 %v2692_v0  ;;  %1884 = vmatpush1.bf16.msra.mxu1 %v2694_v1  ;;  %v386_v0 = vld [vmem:[%s3232_s28 + $0x398] sm:$0xff] }
  0xb1   : > { %1844 = vmatprep.subr.bf16.mxu0 %v2709_v2  ;;  %1885 = vmatprep.subr.bf16.mxu1 %v2711_v3  ;;  %v394_v1 = vld [vmem:[%s3232_s28 + $0x3d8] sm:$0xff]  ;;  %v2568_v2 = vcombine.low %v369_v52, %v377_v54  ;;  %v2570_v3 = vcombine.low %v370_v55, %v378_v56  ;;  %v2681_v52 = vcombine.high %v481_v46, %v489_v47  ;;  %v497_v55 = vld [vmem:[%s3232_s28 + $0x710] sm:$0xff] }
  0xb2   : > { %v2587_v5 = vcombine.high %v386_v0, %v394_v1  ;;  %v505_v56 = vld [vmem:[%s3232_s28 + $0x750] sm:$0xff] }
  0xb4   : > { %1845 = vmatpush1.bf16.msra.mxu0 %v2708_v8  ;;  %1886 = vmatpush1.bf16.msra.mxu1 %v2710_v9  ;;  %v402_v8 = vld [vmem:[%s3232_s28 + $0x418] sm:$0xff] }
  0xb5   : > { %1896 = vmatprep.subr.bf16.mxu0 %v2473_v10  ;;  %1937 = vmatprep.subr.bf16.mxu1 %v2475_v11  ;;  %v410_v9 = vld [vmem:[%s3232_s28 + $0x458] sm:$0xff]  ;;  %v2584_v10 = vcombine.low %v385_v62, %v393_v63  ;;  %v2586_v11 = vcombine.low %v386_v0, %v394_v1  ;;  %v2697_v62 = vcombine.high %v497_v55, %v505_v56  ;;  %v513_v0 = vld [vmem:[%s3232_s28 + $0x790] sm:$0xff] }
  0xb6   : > { %v2603_v13 = vcombine.high %v402_v8, %v410_v9  ;;  %v521_v1 = vld [vmem:[%s3232_s28 + $0x7d0] sm:$0xff] }
  0xb7   : > { %1847 = vmatmul.mubr.bf16.vlgmr.msra.gmra.mrb[0].mxu0 %v3322_v14  ;;  %1888 = vmatmul.mubr.bf16.vlgmr.msra.gmra.mrb[0].mxu1 %v3322_v14 }
  0xb8   : > { %1897 = vmatpush1.bf16.msra.mxu0 %v2472_v17  ;;  %1938 = vmatpush1.bf16.msra.mxu1 %v2474_v18  ;;  %v418_v17 = vld [vmem:[%s3232_s28 + $0x498] sm:$0xff] }
  0xb9   : > { %1898 = vmatprep.subr.bf16.mxu0 %v2489_v19  ;;  %1939 = vmatprep.subr.bf16.mxu1 %v2491_v20  ;;  %v426_v18 = vld [vmem:[%s3232_s28 + $0x4d8] sm:$0xff]  ;;  %v2600_v19 = vcombine.low %v401_v6, %v409_v7  ;;  %v2602_v20 = vcombine.low %v402_v8, %v410_v9  ;;  %v2713_v6 = vcombine.high %v513_v0, %v521_v1  ;;  %v275_v8 = vld [vmem:[%s3232_s28 + $0x20] sm:$0xff] }
  0xba   : > { %1928 = vmatprep.mubr.bf16.mxu0 %v3276_v57  ;;  %1969 = vmatprep.mubr.bf16.mxu1 %v3276_v57  ;;  %v2619_v22 = vcombine.high %v418_v17, %v426_v18  ;;  %v283_v9 = vld [vmem:[%s3232_s28 + $0x60] sm:$0xff] }
  0xbc   : > { %1899 = vmatpush1.bf16.msra.mxu0 %v2488_v24  ;;  %1940 = vmatpush1.bf16.msra.mxu1 %v2490_v25  ;;  %v434_v24 = vld [vmem:[%s3232_s28 + $0x518] sm:$0xff] }
  0xbd   : > { %1900 = vmatprep.subr.bf16.mxu0 %v2505_v26  ;;  %1941 = vmatprep.subr.bf16.mxu1 %v2507_v27  ;;  %v442_v25 = vld [vmem:[%s3232_s28 + $0x558] sm:$0xff]  ;;  %v2616_v26 = vcombine.low %v417_v15, %v425_v16  ;;  %v2618_v27 = vcombine.low %v418_v17, %v426_v18  ;;  %v2477_v15 = vcombine.high %v275_v8, %v283_v9  ;;  %v291_v17 = vld [vmem:[%s3232_s28 + $0xa0] sm:$0xff] }
  0xbe   : > { %v2635_v29 = vcombine.high %v434_v24, %v442_v25  ;;  %v299_v18 = vld [vmem:[%s3232_s28 + $0xe0] sm:$0xff] }
  0xc0   : > { %1901 = vmatpush1.bf16.msra.mxu0 %v2504_v32  ;;  %1942 = vmatpush1.bf16.msra.mxu1 %v2506_v33  ;;  %v450_v32 = vld [vmem:[%s3232_s28 + $0x598] sm:$0xff] }
  0xc1   : > { %1902 = vmatprep.subr.bf16.mxu0 %v2521_v34  ;;  %1943 = vmatprep.subr.bf16.mxu1 %v2523_v35  ;;  %v458_v33 = vld [vmem:[%s3232_s28 + $0x5d8] sm:$0xff]  ;;  %v2632_v34 = vcombine.low %v433_v53, %v441_v23  ;;  %v2634_v35 = vcombine.low %v434_v24, %v442_v25  ;;  %v2493_v53 = vcombine.high %v291_v17, %v299_v18  ;;  %v307_v24 = vld [vmem:[%s3232_s28 + $0x120] sm:$0xff] }
  0xc2   : > { %v2651_v37 = vcombine.high %v450_v32, %v458_v33  ;;  %v315_v25 = vld [vmem:[%s3232_s28 + $0x160] sm:$0xff] }
  0xc4   : > { %1903 = vmatpush1.bf16.msra.mxu0 %v2520_v40  ;;  %1944 = vmatpush1.bf16.msra.mxu1 %v2522_v41  ;;  %v466_v40 = vld [vmem:[%s3232_s28 + $0x618] sm:$0xff] }
  0xc5   : > { %1904 = vmatprep.subr.bf16.mxu0 %v2537_v42  ;;  %1945 = vmatprep.subr.bf16.mxu1 %v2539_v43  ;;  %v474_v41 = vld [vmem:[%s3232_s28 + $0x658] sm:$0xff]  ;;  %v2648_v42 = vcombine.low %v449_v30, %v457_v31  ;;  %v2650_v43 = vcombine.low %v450_v32, %v458_v33  ;;  %v2509_v30 = vcombine.high %v307_v24, %v315_v25  ;;  %v323_v32 = vld [vmem:[%s3232_s28 + $0x1a0] sm:$0xff] }
  0xc6   : > { %v2667_v45 = vcombine.high %v466_v40, %v474_v41  ;;  %v331_v33 = vld [vmem:[%s3232_s28 + $0x1e0] sm:$0xff] }
  0xc8   : > { %1905 = vmatpush1.bf16.msra.mxu0 %v2536_v48  ;;  %1946 = vmatpush1.bf16.msra.mxu1 %v2538_v49  ;;  %v482_v48 = vld [vmem:[%s3232_s28 + $0x698] sm:$0xff] }
  0xc9   : > { %1906 = vmatprep.subr.bf16.mxu0 %v2553_v50  ;;  %1947 = vmatprep.subr.bf16.mxu1 %v2555_v51  ;;  %v490_v49 = vld [vmem:[%s3232_s28 + $0x6d8] sm:$0xff]  ;;  %v2664_v50 = vcombine.low %v465_v38, %v473_v39  ;;  %v2666_v51 = vcombine.low %v466_v40, %v474_v41  ;;  %v2525_v38 = vcombine.high %v323_v32, %v331_v33  ;;  %v339_v40 = vld [vmem:[%s3232_s28 + $0x220] sm:$0xff] }
  0xca   : > { %v2683_v54 = vcombine.high %v482_v48, %v490_v49  ;;  %v347_v41 = vld [vmem:[%s3232_s28 + $0x260] sm:$0xff] }
  0xcc   : > { %1907 = vmatpush1.bf16.msra.mxu0 %v2552_v58  ;;  %1948 = vmatpush1.bf16.msra.mxu1 %v2554_v59  ;;  %v498_v58 = vld [vmem:[%s3232_s28 + $0x718] sm:$0xff] }
  0xcd   : > { %1908 = vmatprep.subr.bf16.mxu0 %v2569_v60  ;;  %1949 = vmatprep.subr.bf16.mxu1 %v2571_v61  ;;  %v506_v59 = vld [vmem:[%s3232_s28 + $0x758] sm:$0xff]  ;;  %v2680_v60 = vcombine.low %v481_v46, %v489_v47  ;;  %v2682_v61 = vcombine.low %v482_v48, %v490_v49  ;;  %v2541_v46 = vcombine.high %v339_v40, %v347_v41  ;;  %v355_v48 = vld [vmem:[%s3232_s28 + $0x2a0] sm:$0xff] }
  0xce   : > { %v2699_v63 = vcombine.high %v498_v58, %v506_v59  ;;  %v363_v49 = vld [vmem:[%s3232_s28 + $0x2e0] sm:$0xff] }
  0xd0   : > { %1909 = vmatpush1.bf16.msra.mxu0 %v2568_v2  ;;  %1950 = vmatpush1.bf16.msra.mxu1 %v2570_v3  ;;  %v514_v2 = vld [vmem:[%s3232_s28 + $0x798] sm:$0xff] }
  0xd1   : > { %1910 = vmatprep.subr.bf16.mxu0 %v2585_v4  ;;  %1951 = vmatprep.subr.bf16.mxu1 %v2587_v5  ;;  %v522_v3 = vld [vmem:[%s3232_s28 + $0x7d8] sm:$0xff]  ;;  %v2696_v4 = vcombine.low %v497_v55, %v505_v56  ;;  %v2698_v5 = vcombine.low %v498_v58, %v506_v59  ;;  %v2557_v55 = vcombine.high %v355_v48, %v363_v49  ;;  %v371_v58 = vld [vmem:[%s3232_s28 + $0x320] sm:$0xff] }
  0xd2   : > { %v2715_v7 = vcombine.high %v514_v2, %v522_v3  ;;  %v379_v59 = vld [vmem:[%s3232_s28 + $0x360] sm:$0xff] }
  0xd4   : > { %1911 = vmatpush1.bf16.msra.mxu0 %v2584_v10  ;;  %1952 = vmatpush1.bf16.msra.mxu1 %v2586_v11  ;;  %v276_v10 = vld [vmem:[%s3232_s28 + $0x28] sm:$0xff] }
  0xd5   : > { %1912 = vmatprep.subr.bf16.mxu0 %v2601_v12  ;;  %1953 = vmatprep.subr.bf16.mxu1 %v2603_v13  ;;  %v284_v11 = vld [vmem:[%s3232_s28 + $0x68] sm:$0xff]  ;;  %v2712_v12 = vcombine.low %v513_v0, %v521_v1  ;;  %v2714_v13 = vcombine.low %v514_v2, %v522_v3  ;;  %v2573_v0 = vcombine.high %v371_v58, %v379_v59  ;;  %v387_v2 = vld [vmem:[%s3232_s28 + $0x3a0] sm:$0xff] }
  0xd6   : > { %v2479_v16 = vcombine.high %v276_v10, %v284_v11  ;;  %v395_v3 = vld [vmem:[%s3232_s28 + $0x3e0] sm:$0xff] }
  0xd8   : > { %1913 = vmatpush1.bf16.msra.mxu0 %v2600_v19  ;;  %1954 = vmatpush1.bf16.msra.mxu1 %v2602_v20  ;;  %v292_v19 = vld [vmem:[%s3232_s28 + $0xa8] sm:$0xff] }
  0xd9   : > { %1914 = vmatprep.subr.bf16.mxu0 %v2617_v21  ;;  %1955 = vmatprep.subr.bf16.mxu1 %v2619_v22  ;;  %v300_v20 = vld [vmem:[%s3232_s28 + $0xe8] sm:$0xff]  ;;  %v2476_v21 = vcombine.low %v275_v8, %v283_v9  ;;  %v2478_v22 = vcombine.low %v276_v10, %v284_v11  ;;  %v2589_v8 = vcombine.high %v387_v2, %v395_v3  ;;  %v403_v10 = vld [vmem:[%s3232_s28 + $0x420] sm:$0xff] }
  0xda   : > { %v2495_v23 = vcombine.high %v292_v19, %v300_v20  ;;  %v411_v11 = vld [vmem:[%s3232_s28 + $0x460] sm:$0xff] }
  0xdc   : > { %1915 = vmatpush1.bf16.msra.mxu0 %v2616_v26  ;;  %1956 = vmatpush1.bf16.msra.mxu1 %v2618_v27  ;;  %v308_v26 = vld [vmem:[%s3232_s28 + $0x128] sm:$0xff] }
  0xdd   : > { %1916 = vmatprep.subr.bf16.mxu0 %v2633_v28  ;;  %1957 = vmatprep.subr.bf16.mxu1 %v2635_v29  ;;  %v316_v27 = vld [vmem:[%s3232_s28 + $0x168] sm:$0xff]  ;;  %v2492_v28 = vcombine.low %v291_v17, %v299_v18  ;;  %v2494_v29 = vcombine.low %v292_v19, %v300_v20  ;;  %v2605_v17 = vcombine.high %v403_v10, %v411_v11  ;;  %v419_v19 = vld [vmem:[%s3232_s28 + $0x4a0] sm:$0xff] }
  0xde   : > { %v2511_v31 = vcombine.high %v308_v26, %v316_v27  ;;  %v427_v20 = vld [vmem:[%s3232_s28 + $0x4e0] sm:$0xff] }
  0xe0   : > { %1917 = vmatpush1.bf16.msra.mxu0 %v2632_v34  ;;  %1958 = vmatpush1.bf16.msra.mxu1 %v2634_v35  ;;  %v324_v34 = vld [vmem:[%s3232_s28 + $0x1a8] sm:$0xff] }
  0xe1   : > { %1918 = vmatprep.subr.bf16.mxu0 %v2649_v36  ;;  %1959 = vmatprep.subr.bf16.mxu1 %v2651_v37  ;;  %v332_v35 = vld [vmem:[%s3232_s28 + $0x1e8] sm:$0xff]  ;;  %v2508_v36 = vcombine.low %v307_v24, %v315_v25  ;;  %v2510_v37 = vcombine.low %v308_v26, %v316_v27  ;;  %v2621_v24 = vcombine.high %v419_v19, %v427_v20  ;;  %v435_v26 = vld [vmem:[%s3232_s28 + $0x520] sm:$0xff] }
  0xe2   : > { %v2527_v39 = vcombine.high %v324_v34, %v332_v35  ;;  %v443_v27 = vld [vmem:[%s3232_s28 + $0x560] sm:$0xff] }
  0xe4   : > { %1919 = vmatpush1.bf16.msra.mxu0 %v2648_v42  ;;  %1960 = vmatpush1.bf16.msra.mxu1 %v2650_v43  ;;  %v340_v42 = vld [vmem:[%s3232_s28 + $0x228] sm:$0xff] }
  0xe5   : > { %1920 = vmatprep.subr.bf16.mxu0 %v2665_v44  ;;  %1961 = vmatprep.subr.bf16.mxu1 %v2667_v45  ;;  %v348_v43 = vld [vmem:[%s3232_s28 + $0x268] sm:$0xff]  ;;  %v2524_v44 = vcombine.low %v323_v32, %v331_v33  ;;  %v2526_v45 = vcombine.low %v324_v34, %v332_v35  ;;  %v2637_v32 = vcombine.high %v435_v26, %v443_v27  ;;  %v451_v34 = vld [vmem:[%s3232_s28 + $0x5a0] sm:$0xff] }
  0xe6   : > { %v2543_v47 = vcombine.high %v340_v42, %v348_v43  ;;  %v459_v35 = vld [vmem:[%s3232_s28 + $0x5e0] sm:$0xff] }
  0xe8   : > { %1921 = vmatpush1.bf16.msra.mxu0 %v2664_v50  ;;  %1962 = vmatpush1.bf16.msra.mxu1 %v2666_v51  ;;  %v356_v50 = vld [vmem:[%s3232_s28 + $0x2a8] sm:$0xff] }
  0xe9   : > { %1922 = vmatprep.subr.bf16.mxu0 %v2681_v52  ;;  %1963 = vmatprep.subr.bf16.mxu1 %v2683_v54  ;;  %v364_v51 = vld [vmem:[%s3232_s28 + $0x2e8] sm:$0xff]  ;;  %v2540_v52 = vcombine.low %v339_v40, %v347_v41  ;;  %v2542_v54 = vcombine.low %v340_v42, %v348_v43  ;;  %v2653_v40 = vcombine.high %v451_v34, %v459_v35  ;;  %v467_v42 = vld [vmem:[%s3232_s28 + $0x620] sm:$0xff] }
  0xea   : > { %v2559_v56 = vcombine.high %v356_v50, %v364_v51  ;;  %v475_v43 = vld [vmem:[%s3232_s28 + $0x660] sm:$0xff] }
  0xec   : > { %1923 = vmatpush1.bf16.msra.mxu0 %v2680_v60  ;;  %1964 = vmatpush1.bf16.msra.mxu1 %v2682_v61  ;;  %v372_v60 = vld [vmem:[%s3232_s28 + $0x328] sm:$0xff] }
  0xed   : > { %1924 = vmatprep.subr.bf16.mxu0 %v2697_v62  ;;  %1965 = vmatprep.subr.bf16.mxu1 %v2699_v63  ;;  %v380_v61 = vld [vmem:[%s3232_s28 + $0x368] sm:$0xff]  ;;  %v2556_v62 = vcombine.low %v355_v48, %v363_v49  ;;  %v2558_v63 = vcombine.low %v356_v50, %v364_v51  ;;  %v2669_v48 = vcombine.high %v467_v42, %v475_v43  ;;  %v483_v50 = vld [vmem:[%s3232_s28 + $0x6a0] sm:$0xff] }
  0xee   : > { %v2575_v1 = vcombine.high %v372_v60, %v380_v61  ;;  %v491_v51 = vld [vmem:[%s3232_s28 + $0x6e0] sm:$0xff] }
  0xf0   : > { %1925 = vmatpush1.bf16.msra.mxu0 %v2696_v4  ;;  %1966 = vmatpush1.bf16.msra.mxu1 %v2698_v5  ;;  %v388_v4 = vld [vmem:[%s3232_s28 + $0x3a8] sm:$0xff] }
  0xf1   : > { %1926 = vmatprep.subr.bf16.mxu0 %v2713_v6  ;;  %1967 = vmatprep.subr.bf16.mxu1 %v2715_v7  ;;  %v396_v5 = vld [vmem:[%s3232_s28 + $0x3e8] sm:$0xff]  ;;  %v2572_v6 = vcombine.low %v371_v58, %v379_v59  ;;  %v2574_v7 = vcombine.low %v372_v60, %v380_v61  ;;  %v2685_v58 = vcombine.high %v483_v50, %v491_v51  ;;  %v499_v60 = vld [vmem:[%s3232_s28 + $0x720] sm:$0xff] }
  0xf2   : > { %v2591_v9 = vcombine.high %v388_v4, %v396_v5  ;;  %v507_v61 = vld [vmem:[%s3232_s28 + $0x760] sm:$0xff] }
  0xf4   : > { %1927 = vmatpush1.bf16.msra.mxu0 %v2712_v12  ;;  %1968 = vmatpush1.bf16.msra.mxu1 %v2714_v13  ;;  %v404_v12 = vld [vmem:[%s3232_s28 + $0x428] sm:$0xff] }
  0xf5   : > { %1978 = vmatprep.subr.bf16.mxu0 %v2477_v15  ;;  %2019 = vmatprep.subr.bf16.mxu1 %v2479_v16  ;;  %v412_v13 = vld [vmem:[%s3232_s28 + $0x468] sm:$0xff]  ;;  %v2588_v15 = vcombine.low %v387_v2, %v395_v3  ;;  %v2590_v16 = vcombine.low %v388_v4, %v396_v5  ;;  %v2701_v2 = vcombine.high %v499_v60, %v507_v61  ;;  %v515_v4 = vld [vmem:[%s3232_s28 + $0x7a0] sm:$0xff] }
  0xf6   : > { %v2607_v18 = vcombine.high %v404_v12, %v412_v13  ;;  %v523_v5 = vld [vmem:[%s3232_s28 + $0x7e0] sm:$0xff] }
  0xf7   : > { %1929 = vmatmul.mubr.bf16.vlgmr.msra.gmra.mrb[4].mxu0 %v3322_v14  ;;  %1970 = vmatmul.mubr.bf16.vlgmr.msra.gmra.mrb[4].mxu1 %v3322_v14 }
  0xf8   : > { %1979 = vmatpush1.bf16.msra.mxu0 %v2476_v21  ;;  %2020 = vmatpush1.bf16.msra.mxu1 %v2478_v22  ;;  %v420_v21 = vld [vmem:[%s3232_s28 + $0x4a8] sm:$0xff] }
  0xf9   : > { %1980 = vmatprep.subr.bf16.mxu0 %v2493_v53  ;;  %2021 = vmatprep.subr.bf16.mxu1 %v2495_v23  ;;  %v428_v22 = vld [vmem:[%s3232_s28 + $0x4e8] sm:$0xff]  ;;  %v2604_v53 = vcombine.low %v403_v10, %v411_v11  ;;  %v2606_v23 = vcombine.low %v404_v12, %v412_v13  ;;  %v2717_v10 = vcombine.high %v515_v4, %v523_v5  ;;  %v277_v12 = vld [vmem:[%s3232_s28 + $0x30] sm:$0xff] }
  0xfa   : > { %2010 = vmatprep.mubr.bf16.mxu0 %v3276_v57  ;;  %2051 = vmatprep.mubr.bf16.mxu1 %v3276_v57  ;;  %v2623_v25 = vcombine.high %v420_v21, %v428_v22  ;;  %v285_v13 = vld [vmem:[%s3232_s28 + $0x70] sm:$0xff] }
  0xfc   : > { %1981 = vmatpush1.bf16.msra.mxu0 %v2492_v28  ;;  %2022 = vmatpush1.bf16.msra.mxu1 %v2494_v29  ;;  %v436_v28 = vld [vmem:[%s3232_s28 + $0x528] sm:$0xff] }
  0xfd   : > { %1982 = vmatprep.subr.bf16.mxu0 %v2509_v30  ;;  %2023 = vmatprep.subr.bf16.mxu1 %v2511_v31  ;;  %v444_v29 = vld [vmem:[%s3232_s28 + $0x568] sm:$0xff]  ;;  %v2620_v30 = vcombine.low %v419_v19, %v427_v20  ;;  %v2622_v31 = vcombine.low %v420_v21, %v428_v22  ;;  %v2481_v19 = vcombine.high %v277_v12, %v285_v13  ;;  %v293_v21 = vld [vmem:[%s3232_s28 + $0xb0] sm:$0xff] }
  0xfe   : > { %v2639_v33 = vcombine.high %v436_v28, %v444_v29  ;;  %v301_v22 = vld [vmem:[%s3232_s28 + $0xf0] sm:$0xff] }
 0x100   : > { %1983 = vmatpush1.bf16.msra.mxu0 %v2508_v36  ;;  %2024 = vmatpush1.bf16.msra.mxu1 %v2510_v37  ;;  %v452_v36 = vld [vmem:[%s3232_s28 + $0x5a8] sm:$0xff] }
 0x101   : > { %1984 = vmatprep.subr.bf16.mxu0 %v2525_v38  ;;  %2025 = vmatprep.subr.bf16.mxu1 %v2527_v39  ;;  %v460_v37 = vld [vmem:[%s3232_s28 + $0x5e8] sm:$0xff]  ;;  %v2636_v38 = vcombine.low %v435_v26, %v443_v27  ;;  %v2638_v39 = vcombine.low %v436_v28, %v444_v29  ;;  %v2497_v26 = vcombine.high %v293_v21, %v301_v22  ;;  %v309_v28 = vld [vmem:[%s3232_s28 + $0x130] sm:$0xff] }
 0x102   : > { %v2655_v41 = vcombine.high %v452_v36, %v460_v37  ;;  %v317_v29 = vld [vmem:[%s3232_s28 + $0x170] sm:$0xff] }
 0x104   : > { %1985 = vmatpush1.bf16.msra.mxu0 %v2524_v44  ;;  %2026 = vmatpush1.bf16.msra.mxu1 %v2526_v45  ;;  %v468_v44 = vld [vmem:[%s3232_s28 + $0x628] sm:$0xff] }
 0x105   : > { %1986 = vmatprep.subr.bf16.mxu0 %v2541_v46  ;;  %2027 = vmatprep.subr.bf16.mxu1 %v2543_v47  ;;  %v476_v45 = vld [vmem:[%s3232_s28 + $0x668] sm:$0xff]  ;;  %v2652_v46 = vcombine.low %v451_v34, %v459_v35  ;;  %v2654_v47 = vcombine.low %v452_v36, %v460_v37  ;;  %v2513_v34 = vcombine.high %v309_v28, %v317_v29  ;;  %v325_v36 = vld [vmem:[%s3232_s28 + $0x1b0] sm:$0xff] }
 0x106   : > { %v2671_v49 = vcombine.high %v468_v44, %v476_v45  ;;  %v333_v37 = vld [vmem:[%s3232_s28 + $0x1f0] sm:$0xff] }
 0x108   : > { %1987 = vmatpush1.bf16.msra.mxu0 %v2540_v52  ;;  %2028 = vmatpush1.bf16.msra.mxu1 %v2542_v54  ;;  %v484_v52 = vld [vmem:[%s3232_s28 + $0x6a8] sm:$0xff] }
 0x109   : > { %1988 = vmatprep.subr.bf16.mxu0 %v2557_v55  ;;  %2029 = vmatprep.subr.bf16.mxu1 %v2559_v56  ;;  %v492_v54 = vld [vmem:[%s3232_s28 + $0x6e8] sm:$0xff]  ;;  %v2668_v55 = vcombine.low %v467_v42, %v475_v43  ;;  %v2670_v56 = vcombine.low %v468_v44, %v476_v45  ;;  %v2529_v42 = vcombine.high %v325_v36, %v333_v37  ;;  %v341_v44 = vld [vmem:[%s3232_s28 + $0x230] sm:$0xff] }
 0x10a   : > { %v2687_v59 = vcombine.high %v484_v52, %v492_v54  ;;  %v349_v45 = vld [vmem:[%s3232_s28 + $0x270] sm:$0xff] }
 0x10c   : > { %1989 = vmatpush1.bf16.msra.mxu0 %v2556_v62  ;;  %2030 = vmatpush1.bf16.msra.mxu1 %v2558_v63  ;;  %v500_v62 = vld [vmem:[%s3232_s28 + $0x728] sm:$0xff] }
 0x10d   : > { %1990 = vmatprep.subr.bf16.mxu0 %v2573_v0  ;;  %2031 = vmatprep.subr.bf16.mxu1 %v2575_v1  ;;  %v508_v63 = vld [vmem:[%s3232_s28 + $0x768] sm:$0xff]  ;;  %v2684_v0 = vcombine.low %v483_v50, %v491_v51  ;;  %v2686_v1 = vcombine.low %v484_v52, %v492_v54  ;;  %v357_v51 = vld [vmem:[%s3232_s28 + $0x2b0] sm:$0xff]  ;;  %v358_v54 = vld [vmem:[%s3232_s28 + $0x2b8] sm:$0xff] }
 0x10e   : > { %v2703_v3 = vcombine.high %v500_v62, %v508_v63  ;;  %v365_v52 = vld [vmem:[%s3232_s28 + $0x2f0] sm:$0xff] }
 0x110   : > { %1991 = vmatpush1.bf16.msra.mxu0 %v2572_v6  ;;  %2032 = vmatpush1.bf16.msra.mxu1 %v2574_v7  ;;  %v516_v6 = vld [vmem:[%s3232_s28 + $0x7a8] sm:$0xff] }
 0x111   : > { %1992 = vmatprep.subr.bf16.mxu0 %v2589_v8  ;;  %2033 = vmatprep.subr.bf16.mxu1 %v2591_v9  ;;  %v524_v7 = vld [vmem:[%s3232_s28 + $0x7e8] sm:$0xff]  ;;  %v2700_v8 = vcombine.low %v499_v60, %v507_v61  ;;  %v2702_v9 = vcombine.low %v500_v62, %v508_v63  ;;  %v373_v61 = vld [vmem:[%s3232_s28 + $0x330] sm:$0xff]  ;;  %v374_v63 = vld [vmem:[%s3232_s28 + $0x338] sm:$0xff] }
 0x112   : > { %v2719_v11 = vcombine.high %v516_v6, %v524_v7  ;;  %v381_v62 = vld [vmem:[%s3232_s28 + $0x370] sm:$0xff] }
 0x114   : > { %1993 = vmatpush1.bf16.msra.mxu0 %v2588_v15  ;;  %2034 = vmatpush1.bf16.msra.mxu1 %v2590_v16  ;;  %v278_v15 = vld [vmem:[%s3232_s28 + $0x38] sm:$0xff] }
 0x115   : > { %1994 = vmatprep.subr.bf16.mxu0 %v2605_v17  ;;  %2035 = vmatprep.subr.bf16.mxu1 %v2607_v18  ;;  %v286_v16 = vld [vmem:[%s3232_s28 + $0x78] sm:$0xff]  ;;  %v2716_v17 = vcombine.low %v515_v4, %v523_v5  ;;  %v2718_v18 = vcombine.low %v516_v6, %v524_v7  ;;  %v389_v5 = vld [vmem:[%s3232_s28 + $0x3b0] sm:$0xff] }
 0x116   : > { %v2483_v20 = vcombine.high %v278_v15, %v286_v16  ;;  %v397_v6 = vld [vmem:[%s3232_s28 + $0x3f0] sm:$0xff]  ;;  %v390_v7 = vld [vmem:[%s3232_s28 + $0x3b8] sm:$0xff] }
 0x118   : > { %1995 = vmatpush1.bf16.msra.mxu0 %v2604_v53  ;;  %2036 = vmatpush1.bf16.msra.mxu1 %v2606_v23  ;;  %v294_v53 = vld [vmem:[%s3232_s28 + $0xb8] sm:$0xff] }
 0x119   : > { %1996 = vmatprep.subr.bf16.mxu0 %v2621_v24  ;;  %2037 = vmatprep.subr.bf16.mxu1 %v2623_v25  ;;  %v302_v23 = vld [vmem:[%s3232_s28 + $0xf8] sm:$0xff]  ;;  %v2480_v24 = vcombine.low %v277_v12, %v285_v13  ;;  %v2482_v25 = vcombine.low %v278_v15, %v286_v16  ;;  %v405_v13 = vld [vmem:[%s3232_s28 + $0x430] sm:$0xff] }
 0x11a   : > { %v2499_v27 = vcombine.high %v294_v53, %v302_v23  ;;  %v413_v15 = vld [vmem:[%s3232_s28 + $0x470] sm:$0xff]  ;;  %v406_v16 = vld [vmem:[%s3232_s28 + $0x438] sm:$0xff] }
 0x11c   : > { %1997 = vmatpush1.bf16.msra.mxu0 %v2620_v30  ;;  %2038 = vmatpush1.bf16.msra.mxu1 %v2622_v31  ;;  %v310_v30 = vld [vmem:[%s3232_s28 + $0x138] sm:$0xff] }
 0x11d   : > { %1998 = vmatprep.subr.bf16.mxu0 %v2637_v32  ;;  %2039 = vmatprep.subr.bf16.mxu1 %v2639_v33  ;;  %v318_v31 = vld [vmem:[%s3232_s28 + $0x178] sm:$0xff]  ;;  %v2496_v32 = vcombine.low %v293_v21, %v301_v22  ;;  %v2498_v33 = vcombine.low %v294_v53, %v302_v23  ;;  %v421_v22 = vld [vmem:[%s3232_s28 + $0x4b0] sm:$0xff] }
 0x11e   : > { %v2515_v35 = vcombine.high %v310_v30, %v318_v31  ;;  %v429_v53 = vld [vmem:[%s3232_s28 + $0x4f0] sm:$0xff]  ;;  %v422_v23 = vld [vmem:[%s3232_s28 + $0x4b8] sm:$0xff] }
 0x120   : > { %1999 = vmatpush1.bf16.msra.mxu0 %v2636_v38  ;;  %2040 = vmatpush1.bf16.msra.mxu1 %v2638_v39  ;;  %v326_v38 = vld [vmem:[%s3232_s28 + $0x1b8] sm:$0xff] }
 0x121   : > { %2000 = vmatprep.subr.bf16.mxu0 %v2653_v40  ;;  %2041 = vmatprep.subr.bf16.mxu1 %v2655_v41  ;;  %v334_v39 = vld [vmem:[%s3232_s28 + $0x1f8] sm:$0xff]  ;;  %v2512_v40 = vcombine.low %v309_v28, %v317_v29  ;;  %v2514_v41 = vcombine.low %v310_v30, %v318_v31  ;;  %v437_v29 = vld [vmem:[%s3232_s28 + $0x530] sm:$0xff] }
 0x122   : > { %v2531_v43 = vcombine.high %v326_v38, %v334_v39  ;;  %v445_v30 = vld [vmem:[%s3232_s28 + $0x570] sm:$0xff]  ;;  %v438_v31 = vld [vmem:[%s3232_s28 + $0x538] sm:$0xff] }
 0x124   : > { %2001 = vmatpush1.bf16.msra.mxu0 %v2652_v46  ;;  %2042 = vmatpush1.bf16.msra.mxu1 %v2654_v47  ;;  %v342_v46 = vld [vmem:[%s3232_s28 + $0x238] sm:$0xff] }
 0x125   : > { %2002 = vmatprep.subr.bf16.mxu0 %v2669_v48  ;;  %2043 = vmatprep.subr.bf16.mxu1 %v2671_v49  ;;  %v350_v47 = vld [vmem:[%s3232_s28 + $0x278] sm:$0xff]  ;;  %v2528_v48 = vcombine.low %v325_v36, %v333_v37  ;;  %v2545_v49 = vcombine.high %v341_v44, %v349_v45  ;;  %v453_v37 = vld [vmem:[%s3232_s28 + $0x5b0] sm:$0xff] }
 0x126   : > { %v2547_v50 = vcombine.high %v342_v46, %v350_v47 }
 0x128   : > { %2003 = vmatpush1.bf16.msra.mxu0 %v2668_v55  ;;  %2044 = vmatpush1.bf16.msra.mxu1 %v2670_v56  ;;  %v366_v55 = vld [vmem:[%s3232_s28 + $0x2f8] sm:$0xff]  ;;  %v2544_v56 = vcombine.low %v341_v44, %v349_v45  ;;  %v469_v45 = vld [vmem:[%s3232_s28 + $0x630] sm:$0xff] }
 0x129   : > { %2004 = vmatprep.subr.bf16.mxu0 %v2685_v58  ;;  %2045 = vmatprep.subr.bf16.mxu1 %v2687_v59  ;;  %v2546_v58 = vcombine.low %v342_v46, %v350_v47  ;;  %v2561_v59 = vcombine.high %v357_v51, %v365_v52  ;;  %v2563_v60 = vcombine.high %v358_v54, %v366_v55  ;;  %v477_v46 = vld [vmem:[%s3232_s28 + $0x670] sm:$0xff]  ;;  %v470_v47 = vld [vmem:[%s3232_s28 + $0x638] sm:$0xff] }
 0x12c   : > { %2005 = vmatpush1.bf16.msra.mxu0 %v2684_v0  ;;  %2046 = vmatpush1.bf16.msra.mxu1 %v2686_v1  ;;  %v382_v0 = vld [vmem:[%s3232_s28 + $0x378] sm:$0xff]  ;;  %v2560_v1 = vcombine.low %v357_v51, %v365_v52  ;;  %v485_v52 = vld [vmem:[%s3232_s28 + $0x6b0] sm:$0xff] }
 0x12d   : > { %2006 = vmatprep.subr.bf16.mxu0 %v2701_v2  ;;  %2047 = vmatprep.subr.bf16.mxu1 %v2703_v3  ;;  %v2562_v2 = vcombine.low %v358_v54, %v366_v55  ;;  %v2577_v3 = vcombine.high %v373_v61, %v381_v62  ;;  %v2579_v4 = vcombine.high %v374_v63, %v382_v0  ;;  %v493_v54 = vld [vmem:[%s3232_s28 + $0x6f0] sm:$0xff]  ;;  %v486_v55 = vld [vmem:[%s3232_s28 + $0x6b8] sm:$0xff] }
 0x130   : > { %2007 = vmatpush1.bf16.msra.mxu0 %v2700_v8  ;;  %2048 = vmatpush1.bf16.msra.mxu1 %v2702_v9  ;;  %v398_v8 = vld [vmem:[%s3232_s28 + $0x3f8] sm:$0xff]  ;;  %v2576_v9 = vcombine.low %v373_v61, %v381_v62  ;;  %v501_v62 = vld [vmem:[%s3232_s28 + $0x730] sm:$0xff] }
 0x131   : > { %2008 = vmatprep.subr.bf16.mxu0 %v2717_v10  ;;  %2049 = vmatprep.subr.bf16.mxu1 %v2719_v11  ;;  %v2578_v10 = vcombine.low %v374_v63, %v382_v0  ;;  %v2593_v11 = vcombine.high %v389_v5, %v397_v6  ;;  %v2595_v12 = vcombine.high %v390_v7, %v398_v8  ;;  %v509_v63 = vld [vmem:[%s3232_s28 + $0x770] sm:$0xff]  ;;  %v502_v0 = vld [vmem:[%s3232_s28 + $0x738] sm:$0xff] }
 0x134   : > { %2009 = vmatpush1.bf16.msra.mxu0 %v2716_v17  ;;  %2050 = vmatpush1.bf16.msra.mxu1 %v2718_v18  ;;  %v414_v17 = vld [vmem:[%s3232_s28 + $0x478] sm:$0xff]  ;;  %v2592_v18 = vcombine.low %v389_v5, %v397_v6  ;;  %v517_v6 = vld [vmem:[%s3232_s28 + $0x7b0] sm:$0xff] }
 0x135   : > { %2060 = vmatprep.subr.bf16.mxu0 %v2481_v19  ;;  %2101 = vmatprep.subr.bf16.mxu1 %v2483_v20  ;;  %v2594_v19 = vcombine.low %v390_v7, %v398_v8  ;;  %v2609_v20 = vcombine.high %v405_v13, %v413_v15  ;;  %v2611_v21 = vcombine.high %v406_v16, %v414_v17  ;;  %v525_v7 = vld [vmem:[%s3232_s28 + $0x7f0] sm:$0xff]  ;;  %v518_v8 = vld [vmem:[%s3232_s28 + $0x7b8] sm:$0xff] }
 0x137   : > { %2011 = vmatmul.mubr.bf16.vlgmr.msra.gmra.mrb[8].mxu0 %v3322_v14  ;;  %2052 = vmatmul.mubr.bf16.vlgmr.msra.gmra.mrb[8].mxu1 %v3322_v14 }
 0x138   : > { %2061 = vmatpush1.bf16.msra.mxu0 %v2480_v24  ;;  %2102 = vmatpush1.bf16.msra.mxu1 %v2482_v25  ;;  %v430_v24 = vld [vmem:[%s3232_s28 + $0x4f8] sm:$0xff]  ;;  %v2608_v25 = vcombine.low %v405_v13, %v413_v15  ;;  %v2720_v15 = vcombine.low %v517_v6, %v525_v7 }
 0x139   : > { %2062 = vmatprep.subr.bf16.mxu0 %v2497_v26  ;;  %2103 = vmatprep.subr.bf16.mxu1 %v2499_v27  ;;  %v2610_v26 = vcombine.low %v406_v16, %v414_v17  ;;  %v2625_v27 = vcombine.high %v421_v22, %v429_v53  ;;  %v2627_v28 = vcombine.high %v422_v23, %v430_v24  ;;  %v3524_v17 = vpop.permute.xlu0 %2196 }
 0x13a   : > { %2092 = vmatprep.mubr.bf16.mxu0 %v3276_v57  ;;  %2133 = vmatprep.mubr.bf16.mxu1 %v3276_v57  ;;  %v2530_v57 = vcombine.low %v326_v38, %v334_v39  ;;  %v461_v38 = vld [vmem:[%s3232_s28 + $0x5f0] sm:$0xff]  ;;  %v454_v39 = vld [vmem:[%s3232_s28 + $0x5b8] sm:$0xff] }
 0x13c   : > { %2063 = vmatpush1.bf16.msra.mxu0 %v2496_v32  ;;  %2104 = vmatpush1.bf16.msra.mxu1 %v2498_v33  ;;  %v446_v32 = vld [vmem:[%s3232_s28 + $0x578] sm:$0xff]  ;;  %v2624_v33 = vcombine.low %v421_v22, %v429_v53 }
 0x13d   : > { %2064 = vmatprep.subr.bf16.mxu0 %v2513_v34  ;;  %2105 = vmatprep.subr.bf16.mxu1 %v2515_v35  ;;  %v2626_v34 = vcombine.low %v422_v23, %v430_v24  ;;  %v2641_v35 = vcombine.high %v437_v29, %v445_v30  ;;  %v2643_v36 = vcombine.high %v438_v31, %v446_v32 }
 0x140   : > { %2065 = vmatpush1.bf16.msra.mxu0 %v2512_v40  ;;  %2106 = vmatpush1.bf16.msra.mxu1 %v2514_v41  ;;  %v462_v40 = vld [vmem:[%s3232_s28 + $0x5f8] sm:$0xff]  ;;  %v2640_v41 = vcombine.low %v437_v29, %v445_v30 }
 0x141   : > { %2066 = vmatprep.subr.bf16.mxu0 %v2529_v42  ;;  %2107 = vmatprep.subr.bf16.mxu1 %v2531_v43  ;;  %v2642_v42 = vcombine.low %v438_v31, %v446_v32  ;;  %v2657_v43 = vcombine.high %v453_v37, %v461_v38  ;;  %v2659_v44 = vcombine.high %v454_v39, %v462_v40 }
 0x144   : > { %2067 = vmatpush1.bf16.msra.mxu0 %v2528_v48  ;;  %2108 = vmatpush1.bf16.msra.mxu1 %v2530_v57  ;;  %v478_v48 = vld [vmem:[%s3232_s28 + $0x678] sm:$0xff]  ;;  %v2656_v57 = vcombine.low %v453_v37, %v461_v38 }
 0x145   : > { %2068 = vmatprep.subr.bf16.mxu0 %v2545_v49  ;;  %2109 = vmatprep.subr.bf16.mxu1 %v2547_v50  ;;  %v2658_v49 = vcombine.low %v454_v39, %v462_v40  ;;  %v2673_v50 = vcombine.high %v469_v45, %v477_v46  ;;  %v2675_v51 = vcombine.high %v470_v47, %v478_v48 }
 0x148   : > { %2069 = vmatpush1.bf16.msra.mxu0 %v2544_v56  ;;  %2110 = vmatpush1.bf16.msra.mxu1 %v2546_v58  ;;  %v494_v56 = vld [vmem:[%s3232_s28 + $0x6f8] sm:$0xff]  ;;  %v2672_v58 = vcombine.low %v469_v45, %v477_v46 }
 0x149   : > { %2070 = vmatprep.subr.bf16.mxu0 %v2561_v59  ;;  %2111 = vmatprep.subr.bf16.mxu1 %v2563_v60  ;;  %v2674_v59 = vcombine.low %v470_v47, %v478_v48  ;;  %v2689_v60 = vcombine.high %v485_v52, %v493_v54  ;;  %v2691_v61 = vcombine.high %v486_v55, %v494_v56 }
 0x14c   : > { %2071 = vmatpush1.bf16.msra.mxu0 %v2560_v1  ;;  %2112 = vmatpush1.bf16.msra.mxu1 %v2562_v2  ;;  %v510_v1 = vld [vmem:[%s3232_s28 + $0x778] sm:$0xff]  ;;  %v2688_v2 = vcombine.low %v485_v52, %v493_v54 }
 0x14d   : > { %2072 = vmatprep.subr.bf16.mxu0 %v2577_v3  ;;  %2113 = vmatprep.subr.bf16.mxu1 %v2579_v4  ;;  %v2690_v3 = vcombine.low %v486_v55, %v494_v56  ;;  %v2705_v4 = vcombine.high %v501_v62, %v509_v63  ;;  %v2707_v5 = vcombine.high %v502_v0, %v510_v1 }
 0x150   : > { %2073 = vmatpush1.bf16.msra.mxu0 %v2576_v9  ;;  %2114 = vmatpush1.bf16.msra.mxu1 %v2578_v10  ;;  %v526_v9 = vld [vmem:[%s3232_s28 + $0x7f8] sm:$0xff]  ;;  %v2704_v10 = vcombine.low %v501_v62, %v509_v63 }
 0x151   : > { %2074 = vmatprep.subr.bf16.mxu0 %v2593_v11  ;;  %2115 = vmatprep.subr.bf16.mxu1 %v2595_v12  ;;  %v2706_v11 = vcombine.low %v502_v0, %v510_v1  ;;  %v2721_v12 = vcombine.high %v517_v6, %v525_v7  ;;  %v2723_v13 = vcombine.high %v518_v8, %v526_v9 }
 0x152   : > { %v2722_v16 = vcombine.low %v518_v8, %v526_v9 }
 0x154   : > { %2075 = vmatpush1.bf16.msra.mxu0 %v2592_v18  ;;  %2116 = vmatpush1.bf16.msra.mxu1 %v2594_v19 }
 0x155   : > { %2076 = vmatprep.subr.bf16.mxu0 %v2609_v20  ;;  %2117 = vmatprep.subr.bf16.mxu1 %v2611_v21 }
 0x158   : > { %2077 = vmatpush1.bf16.msra.mxu0 %v2608_v25  ;;  %2118 = vmatpush1.bf16.msra.mxu1 %v2610_v26 }
 0x159   : > { %2078 = vmatprep.subr.bf16.mxu0 %v2625_v27  ;;  %2119 = vmatprep.subr.bf16.mxu1 %v2627_v28 }
 0x15c   : > { %2079 = vmatpush1.bf16.msra.mxu0 %v2624_v33  ;;  %2120 = vmatpush1.bf16.msra.mxu1 %v2626_v34 }
 0x15d   : > { %2080 = vmatprep.subr.bf16.mxu0 %v2641_v35  ;;  %2121 = vmatprep.subr.bf16.mxu1 %v2643_v36 }
 0x160   : > { %2081 = vmatpush1.bf16.msra.mxu0 %v2640_v41  ;;  %2122 = vmatpush1.bf16.msra.mxu1 %v2642_v42 }
 0x161   : > { %2082 = vmatprep.subr.bf16.mxu0 %v2657_v43  ;;  %2123 = vmatprep.subr.bf16.mxu1 %v2659_v44 }
 0x164   : > { %2083 = vmatpush1.bf16.msra.mxu0 %v2656_v57  ;;  %2124 = vmatpush1.bf16.msra.mxu1 %v2658_v49 }
 0x165   : > { %2084 = vmatprep.subr.bf16.mxu0 %v2673_v50  ;;  %2125 = vmatprep.subr.bf16.mxu1 %v2675_v51 }
 0x168   : > { %2085 = vmatpush1.bf16.msra.mxu0 %v2672_v58  ;;  %2126 = vmatpush1.bf16.msra.mxu1 %v2674_v59 }
 0x169   : > { %2086 = vmatprep.subr.bf16.mxu0 %v2689_v60  ;;  %2127 = vmatprep.subr.bf16.mxu1 %v2691_v61 }
 0x16c   : > { %2087 = vmatpush1.bf16.msra.mxu0 %v2688_v2  ;;  %2128 = vmatpush1.bf16.msra.mxu1 %v2690_v3 }
 0x16d   : > { %2088 = vmatprep.subr.bf16.mxu0 %v2705_v4  ;;  %2129 = vmatprep.subr.bf16.mxu1 %v2707_v5 }
 0x170   : > { %2089 = vmatpush1.bf16.msra.mxu0 %v2704_v10  ;;  %2130 = vmatpush1.bf16.msra.mxu1 %v2706_v11 }
 0x171   : > { %2090 = vmatprep.subr.bf16.mxu0 %v2721_v12  ;;  %2131 = vmatprep.subr.bf16.mxu1 %v2723_v13 }
 0x174   : > { %2091 = vmatpush1.bf16.msra.mxu0 %v2720_v15  ;;  %2132 = vmatpush1.bf16.msra.mxu1 %v2722_v16 }
 0x177   : > { %2093 = vmatmul.mubr.bf16.vlgmr.msra.gmra.mrb[12].mxu0 %v3322_v14  ;;  %2134 = vmatmul.mubr.bf16.vlgmr.msra.gmra.mrb[12].mxu1 %v3322_v14 }
 0x18a   : > { %v1848_v18 = vpop.f32.mrb[0].mxu0  ;;  %v1889_v20 = vpop.f32.mrb[0].mxu1 }
 0x18b   : > { %v2199_v19 = vadd.f32 %v3524_v17, %v1848_v18  ;;  %v1850_v21 = vpop.f32.mrb[1].mxu0  ;;  %v2201_v22 = vadd.f32 %v3524_v17, %v1889_v20  ;;  %v1891_v23 = vpop.f32.mrb[1].mxu1 }
 0x18c   : > { %v2200_v53 = vadd.f32 %v3524_v17, %v1850_v21  ;;  %v1852_v24 = vpop.f32.mrb[2].mxu0  ;;  %v2202_v26 = vadd.f32 %v3524_v17, %v1891_v23  ;;  %v1893_v27 = vpop.f32.mrb[2].mxu1 }
 0x18d   : > { %vm2215_vm0 = vcmp.gt.f32.partialorder %v2199_v19, 0.0  ;;  %v2231_v25 = vmul.f32 0.2, %v2199_v19  ;;  %v1853_v14 = vpop.f32.mrb[3].mxu0  ;;  %vm2217_vm1 = vcmp.gt.f32.partialorder %v2201_v22, 0.0  ;;  %v1894_v32 = vpop.f32.mrb[3].mxu1 }
 0x18e   : > { %v2233_v28 = vmul.f32 0.2, %v2201_v22  ;;  %vm2216_vm2 = vcmp.gt.f32.partialorder %v2200_v53, 0.0  ;;  %v2232_v29 = vmul.f32 0.2, %v2200_v53  ;;  %vm2218_vm3 = vcmp.gt.f32.partialorder %v2202_v26, 0.0 }
 0x18f   : > { %v2247_v30 = vsel %vm2215_vm0, %v2199_v19, %v2231_v25  ;;  %v2234_v31 = vmul.f32 0.2, %v2202_v26 }
 0x190   : > { %v2249_v33 = vsel %vm2217_vm1, %v2201_v22, %v2233_v28  ;;  %v2248_v34 = vsel %vm2216_vm2, %v2200_v53, %v2232_v29 }
 0x191   : > { %v2738_v35 = vpack.c.bf16 %v2248_v34, %v2247_v30  ;;  %v2250_v36 = vsel %vm2218_vm3, %v2202_v26, %v2234_v31 }
 0x192   : > { %v2739_v37 = vpack.c.bf16 %v2250_v36, %v2249_v33 }
 0x193   : > { %2327 = vst [vmem:[%s3531_s22] sm:$0xff] %v2738_v35 }
 0x194   : > { %2328 = vst [vmem:[%s3531_s22 + $0x8] sm:$0xff] %v2739_v37 }
 0x1ca   : > { %v1930_v38 = vpop.f32.mrb[4].mxu0  ;;  %v1971_v40 = vpop.f32.mrb[4].mxu1 }
 0x1cb   : > { %v2203_v39 = vadd.f32 %v3524_v17, %v1930_v38  ;;  %v1932_v41 = vpop.f32.mrb[5].mxu0  ;;  %v2205_v42 = vadd.f32 %v3524_v17, %v1971_v40  ;;  %v1973_v44 = vpop.f32.mrb[5].mxu1 }
 0x1cc   : > { %v2204_v43 = vadd.f32 %v3524_v17, %v1932_v41  ;;  %v1934_v45 = vpop.f32.mrb[6].mxu0  ;;  %v2206_v47 = vadd.f32 %v3524_v17, %v1973_v44  ;;  %v1975_v48 = vpop.f32.mrb[6].mxu1 }
 0x1cd   : > { %vm2219_vm4 = vcmp.gt.f32.partialorder %v2203_v39, 0.0  ;;  %v2235_v46 = vmul.f32 0.2, %v2203_v39  ;;  %v1935_v57 = vpop.f32.mrb[7].mxu0  ;;  %vm2221_vm5 = vcmp.gt.f32.partialorder %v2205_v42, 0.0  ;;  %v1976_v54 = vpop.f32.mrb[7].mxu1 }
 0x1ce   : > { %v2237_v49 = vmul.f32 0.2, %v2205_v42  ;;  %vm2220_vm6 = vcmp.gt.f32.partialorder %v2204_v43, 0.0  ;;  %v2236_v50 = vmul.f32 0.2, %v2204_v43  ;;  %vm2222_vm7 = vcmp.gt.f32.partialorder %v2206_v47, 0.0 }
 0x1cf   : > { %v2251_v51 = vsel %vm2219_vm4, %v2203_v39, %v2235_v46  ;;  %v2238_v52 = vmul.f32 0.2, %v2206_v47 }
 0x1d0   : > { %v2253_v55 = vsel %vm2221_vm5, %v2205_v42, %v2237_v49  ;;  %v2252_v56 = vsel %vm2220_vm6, %v2204_v43, %v2236_v50 }
 0x1d1   : > { %v2740_v58 = vpack.c.bf16 %v2252_v56, %v2251_v51  ;;  %v2254_v59 = vsel %vm2222_vm7, %v2206_v47, %v2238_v52 }
 0x1d2   : > { %v2741_v60 = vpack.c.bf16 %v2254_v59, %v2253_v55 }
 0x1d3   : > { %2329 = vst [vmem:[%s3531_s22 + $0x10] sm:$0xff] %v2740_v58 }
 0x1d4   : > { %2330 = vst [vmem:[%s3531_s22 + $0x18] sm:$0xff] %v2741_v60 }
 0x20a   : > { %v2012_v61 = vpop.f32.mrb[8].mxu0  ;;  %v2053_v63 = vpop.f32.mrb[8].mxu1 }
 0x20b   : > { %v2207_v62 = vadd.f32 %v3524_v17, %v2012_v61  ;;  %v2014_v0 = vpop.f32.mrb[9].mxu0  ;;  %v2209_v1 = vadd.f32 %v3524_v17, %v2053_v63  ;;  %v2055_v3 = vpop.f32.mrb[9].mxu1 }
 0x20c   : > { %v2208_v2 = vadd.f32 %v3524_v17, %v2014_v0  ;;  %v2016_v4 = vpop.f32.mrb[10].mxu0  ;;  %v2210_v6 = vadd.f32 %v3524_v17, %v2055_v3  ;;  %v2057_v7 = vpop.f32.mrb[10].mxu1 }
 0x20d   : > { %vm2223_vm8 = vcmp.gt.f32.partialorder %v2207_v62, 0.0  ;;  %v2239_v5 = vmul.f32 0.2, %v2207_v62  ;;  %v2017_v8 = vpop.f32.mrb[11].mxu0  ;;  %vm2225_vm9 = vcmp.gt.f32.partialorder %v2209_v1, 0.0  ;;  %v2058_v13 = vpop.f32.mrb[11].mxu1 }
 0x20e   : > { %v2241_v9 = vmul.f32 0.2, %v2209_v1  ;;  %vm2224_vm10 = vcmp.gt.f32.partialorder %v2208_v2, 0.0  ;;  %v2240_v10 = vmul.f32 0.2, %v2208_v2  ;;  %vm2226_vm11 = vcmp.gt.f32.partialorder %v2210_v6, 0.0 }
 0x20f   : > { %v2255_v11 = vsel %vm2223_vm8, %v2207_v62, %v2239_v5  ;;  %v2242_v12 = vmul.f32 0.2, %v2210_v6 }
 0x210   : > { %v2257_v15 = vsel %vm2225_vm9, %v2209_v1, %v2241_v9  ;;  %v2256_v16 = vsel %vm2224_vm10, %v2208_v2, %v2240_v10 }
 0x211   : > { %v2742_v18 = vpack.c.bf16 %v2256_v16, %v2255_v11  ;;  %v2258_v19 = vsel %vm2226_vm11, %v2210_v6, %v2242_v12 }
 0x212   : > { %v2743_v20 = vpack.c.bf16 %v2258_v19, %v2257_v15 }
 0x213   : > { %2331 = vst [vmem:[%s3531_s22 + $0x20] sm:$0xff] %v2742_v18 }
 0x214   : > { %2332 = vst [vmem:[%s3531_s22 + $0x28] sm:$0xff] %v2743_v20 }
 0x24a   : > { %v2094_v21 = vpop.f32.mrb[12].mxu0  ;;  %v2135_v53 = vpop.f32.mrb[12].mxu1 }
 0x24b   : > { %v2211_v22 = vadd.f32 %v3524_v17, %v2094_v21  ;;  %v2096_v23 = vpop.f32.mrb[13].mxu0  ;;  %v2213_v24 = vadd.f32 %v3524_v17, %v2135_v53  ;;  %v2137_v26 = vpop.f32.mrb[13].mxu1 }
 0x24c   : > { %v2212_v25 = vadd.f32 %v3524_v17, %v2096_v23  ;;  %v2098_v27 = vpop.f32.mrb[14].mxu0  ;;  %v2214_v28 = vadd.f32 %v3524_v17, %v2137_v26  ;;  %v2139_v29 = vpop.f32.mrb[14].mxu1 }
 0x24d   : > { %vm2227_vm12 = vcmp.gt.f32.partialorder %v2211_v22, 0.0  ;;  %v2243_v14 = vmul.f32 0.2, %v2211_v22  ;;  %v2099_v30 = vpop.f32.mrb[15].mxu0  ;;  %vm2229_vm13 = vcmp.gt.f32.partialorder %v2213_v24, 0.0  ;;  %v2140_v35 = vpop.f32.mrb[15].mxu1 }
 0x24e   : > { %v2245_v31 = vmul.f32 0.2, %v2213_v24  ;;  %vm2228_vm14 = vcmp.gt.f32.partialorder %v2212_v25, 0.0  ;;  %v2244_v32 = vmul.f32 0.2, %v2212_v25  ;;  %vm2230_vm15 = vcmp.gt.f32.partialorder %v2214_v28, 0.0 }
 0x24f   : > { %v2259_v33 = vsel %vm2227_vm12, %v2211_v22, %v2243_v14  ;;  %v2246_v34 = vmul.f32 0.2, %v2214_v28 }
 0x250   : > { %v2261_v36 = vsel %vm2229_vm13, %v2213_v24, %v2245_v31  ;;  %v2260_v37 = vsel %vm2228_vm14, %v2212_v25, %v2244_v32 }
 0x251   : > { %v2744_v38 = vpack.c.bf16 %v2260_v37, %v2259_v33  ;;  %v2262_v17 = vsel %vm2230_vm15, %v2214_v28, %v2246_v34 }
 0x252   : > { %v2745_v39 = vpack.c.bf16 %v2262_v17, %v2261_v36 }
 0x253   : > { %2333 = vst [vmem:[%s3531_s22 + $0x30] sm:$0xff] %v2744_v38 }
 0x254   : > { %2334 = vst [vmem:[%s3531_s22 + $0x38] sm:$0xff] %v2745_v39 }
 0x255   : > { %2936 = shalt.err (!%p2933_p4)
}
 0x256   : > { %s2937_s5 = scalar_lea.hbm %s3556_s21, 1024  ;;  %s2941_s7 = scalar_lea.hbm %s3609_s3, 4096 }
 0x257   : > { %p2938_p8 = scmp.ne.s32.totalorder %s3556_s21, %s2937_s5  ;;  %p2942_p7 = scmp.lt.u32.totalorder %s3556_s21, %s3609_s3 }
 0x258   : > { %p2943_p10 = scmp.lt.u32.totalorder %s2941_s7, %s2937_s5  ;;  %p2945_p13 = scmp.lt.u32.totalorder %s2937_s5, %s3556_s21 }
 0x259   : > { %p2939_p12 = pnand %p2938_p8, %p3629_p0 }
 0x25a   : > { %p2944_p11 = por %p2943_p10, %p2942_p7 }
 0x25b   : > { %p2940_p6 = pneg %p2939_p12 }
 0x25c   : > { %p2946_p5 = por %p2945_p13, %p2944_p11 }
 0x25e   : > { %p2947_p2 = pnand %p2946_p5, %p2940_p6 }
 0x260   : > { %2950 = shalt.err (!%p2947_p2)
}
 0x261   : > { %2757 = dma.vmem_to_hbm [thread:$0]  (%p3629_p0), %s3558_s8, 1024, %s3556_s21, %s2336_s4  }
 0x262 PF: > { %p2779_p3 = scmp.ge.s32.totalorder %s3013_s17, 2  ;;  %s2362_s18 = sand.u32 1, %s2993_s12  }
 0x263   : > { %p3630_p9 = scmp.ne.s32.totalorder %s3618_s24, 0  ;;  %s2363_s22 = scalar_lea.sflag [#allocation5], %s2362_s18 }
 0x265   : > { %p2771_p1 = pnand %p2779_p3, %p3630_p9 }
 0x267   : > { %2988 = dma.done.wait (!%p2771_p1), %s2363_s22, 1024  }
 0x268   : > { %2990 = vsyncadd (!%p2771_p1), %s2363_s22, 4294966272  ;;  %s20_s17 = sadd.s32 1, %s3013_s17   ;;  %s3631_s12 = smov %s2997_s13 }
 0x269   : > { %p17_p4 = scmp.ge.s32.totalorder %s20_s17, 6   ;;  %s3632_s13 = smov %s3001_s14 }
 0x26a   : > { %s3633_s14 = smov %s3191_s27  ;;  %s3634_s15 = smov %s3009_s16 }
 0x26b   : > { %s3635_s16 = smov %s3637_s26  ;;  %19 = sbr.rel (!%p17_p4) target bundleno = 7 (0x7), region = 94 }
 0x272   :  { %2368 = vsyncpa [#allocation4], 1 }
 0x273   :  { %2370 = vsyncpa [#allocation4 + $0x1], 1 }
 0x274   :  { %2371 = vsyncpa [#allocation7], 1 }
 0x275   :  { %2373 = vsyncpa [#allocation7 + $0x1], 1 }
 0x276   :  { %2374 = vsyncpa [#allocation5], 1 }
 0x277   :  { %2376 = vsyncpa [#allocation5 + $0x1], 1 }

// kernel: fc_discriminator_dap_forward.6
= control target key start
LH: loop header
LB: loop body
LE: loop exit
PB: predicated region body
PF: predicated region fallthrough
CT: control target
= control target key end

     0   :  { %8 = vsyncpa [#allocation4], 0  ;;  %s2508_s0 = inlined_call_operand.hbm [shape: bf16[16,512], index: 0, kind: input, shape index: {}]   ;;  %s2509_s1 = inlined_call_operand.hbm [shape: bf16[512,1024], index: 1, kind: input, shape index: {}]   ;;  %s2510_s2 = inlined_call_operand.hbm [shape: f32[16,1], index: 2, kind: input, shape index: {}]   ;;  %s2511_s3 = inlined_call_operand.hbm [shape: bf16[16,1024], index: 3, kind: output, shape index: {}]  }
   0x1   :  { %9 = vsyncpa [#allocation7], 0 }
   0x2   :  { %11 = vsyncpa [#allocation7 + $0x1], 0 }
   0x3   :  { %12 = vsyncpa [#allocation5], 0 }
   0x4   :  { %14 = vsyncpa [#allocation5 + $0x1], 0  ;;  %s2111_s12 = smov 0   ;;  %s2113_s13 = smov 0  }
   0x5   :  { %s2115_s14 = smov 0   ;;  %s2117_s15 = smov 0  }
   0x6   :  { %s2119_s16 = smov 0   ;;  %s2121_s17 = smov 0  }
   0x7 LB: > { %s2142_s18 = sadd.s32 4294967295, %s2076_s17   ;;  %s1441_s19 = sadd.s32 4294967294, %s2076_s17   ;;  %s2076_s17 = sphi %s2121_s17, %s20_s17   ;;  %s2072_s16 = sphi %s2119_s16, %s2540_s16   ;;  %s2068_s15 = sphi %s2117_s15, %s2539_s15   ;;  %s2064_s14 = sphi %s2115_s14, %s2538_s14   ;;  %s2060_s13 = sphi %s2113_s13, %s2537_s13   ;;  %s2056_s12 = sphi %s2111_s12, %s2536_s12  }
   0x8   : > { %p69_p0 = scmp.ne.s32.totalorder %s2064_s14, %s2060_s13  ;;  %p70_p1 = scmp.eq.s32.totalorder %s2076_s17, 0 }
   0x9   : > { %p75_p2 = scmp.ne.s32.totalorder %s2060_s13, %s2056_s12  ;;  %p2512_p3 = scmp.eq.s32.totalorder %s2142_s18, 0 }
   0xa   : > { %p120_p4 = scmp.eq.s32.totalorder %s2142_s18, 1  ;;  %p2153_p5 = por %p70_p1, %p69_p0 }
   0xb   : > { %p126_p6 = scmp.eq.s32.totalorder %s1441_s19, 1  ;;  %p2159_p7 = por %p2512_p3, %p75_p2 }
   0xc   : > { %p2163_p8 = por %p120_p4, %p69_p0  ;;  %p1442_p10 = scmp.ge.s32.totalorder %s2076_s17, 1 }
   0xd   : > { %s2518_s22 = scalar_select %p2159_p7, 1, 0 }
   0xe   : > { %s2519_s23 = scalar_select %p2163_p8, 1, 0 }
   0xf   : > { %p2167_p9 = por %p126_p6, %p75_p2  ;;  %p133_p11 = scmp.lt.s32.totalorder %s2076_s17, 3 }
  0x10   : > { %s2078_s26 = smov [#allocation8]   ;;  %p1638_p1 = scmp.lt.s32.totalorder %s2076_s17, 2 }
  0x11   : > { %s2520_s24 = scalar_select %p2167_p9, 1, 0 }
  0x12   : > { %p2173_p12 = pnand %p1442_p10, %p133_p11  ;;  %s158_s27 = sshll.u32 %s2078_s26, 4  ;;  %s2177_s27 = int_to_ptr.vmem [resolvable:$true] %s158_s27 }
  0x13   : > { %p2191_p4 = pnand %p1638_p1, %p2153_p5  ;;  %s2079_s30 = smov [#allocation3]  }
  0x14   : > { %s2521_s25 = scalar_select %p2173_p12, 1, 0 }
  0x15   : > { %p1621_p13 = pneg %p2173_p12  ;;  %s145_s4 = sshll.u32 %s2079_s30, 4  ;;  %s146_s4 = int_to_ptr.vmem [resolvable:$true] %s145_s4 }
  0x16   : > { %s2523_s29 = scalar_select %p2191_p4, 1, 0 }
  0x17   : > { %p2185_p2 = pnand %p1621_p13, %p2512_p3  ;;  %s1900_s7 = scalar_lea.hbm %s2510_s2, 256 }
  0x18   : > { %p1901_p6 = scmp.ne.s32.totalorder %s2510_s2, %s1900_s7  ;;  %p1907_p5 = scmp.lt.u32.totalorder %s1900_s7, %s2510_s2 }
  0x19   : > { %p1902_p10 = pneg %p2185_p2 }
  0x1b   : > { %p1903_p11 = pnand %p1902_p10, %p1901_p6 }
  0x1d   : > { %p1904_p13 = pneg %p1903_p11 }
  0x1f   : > { %p1909_p1 = pnand %p1907_p5, %p1904_p13 }
  0x21   : > { %1912 = shalt.err (!%p1909_p1)
}
  0x22   : > { %s1913_s19 = scalar_lea.vmem %s2177_s27, 256  ;;  %p1921_p8 = scmp.lt.s32.totalorder %s2177_s27, %s2177_s27 }
  0x23   : > { %p1914_p0 = scmp.ne.s32.totalorder %s2177_s27, %s1913_s19  ;;  %p1922_p6 = scmp.lt.s32.totalorder %s1913_s19, %s1913_s19 }
  0x25   : > { %p1916_p3 = pnand %p1914_p0, %p1902_p10  ;;  %p1923_p11 = por %p1922_p6, %p1921_p8 }
  0x27   : > { %p1917_p9 = pneg %p1916_p3 }
  0x29   : > { %p1924_p7 = pnand %p1923_p11, %p1917_p9 }
  0x2b   : > { %1927 = shalt.err (!%p1924_p7)
}
  0x2c   : > { %s2080_s21 = smov 128   ;;  %s2081_s26 = smov 8  }
  0x2d   : > { %1627 = dma.hbm_to_vmem [thread:$0]  (!%p2185_p2), %s2510_s2, 256, %s2177_s27, [#allocation7], %s2080_s21, %s2080_s21, %s2081_s26  }
  0x2e   : > { %s1928_s8 = scalar_lea.hbm %s2508_s0, 512 }
  0x2f   : > { %p1929_p3 = scmp.ne.s32.totalorder %s2508_s0, %s1928_s8  ;;  %p1935_p9 = scmp.lt.u32.totalorder %s1928_s8, %s2508_s0 }
  0x31   : > { %p1931_p7 = pnand %p1929_p3, %p1902_p10 }
  0x33   : > { %p1932_p8 = pneg %p1931_p7 }
  0x35   : > { %p1937_p0 = pnand %p1935_p9, %p1932_p8 }
  0x37   : > { %1940 = shalt.err (!%p1937_p0)
}
  0x38   : > { %s1941_s27 = scalar_lea.vmem %s146_s4, 512  ;;  %p1949_p6 = scmp.lt.s32.totalorder %s146_s4, %s146_s4 }
  0x39   : > { %p1942_p13 = scmp.ne.s32.totalorder %s146_s4, %s1941_s27  ;;  %p1950_p11 = scmp.lt.s32.totalorder %s1941_s27, %s1941_s27 }
  0x3b   : > { %p1944_p5 = pnand %p1942_p13, %p1902_p10  ;;  %p1951_p12 = por %p1950_p11, %p1949_p6 }
  0x3d   : > { %p1945_p1 = pneg %p1944_p5 }
  0x3f   : > { %p1952_p4 = pnand %p1951_p12, %p1945_p1 }
  0x41   : > { %1955 = shalt.err (!%p1952_p4)
}
  0x42   : > { %s2082_s21 = smov 256   ;;  %s2083_s26 = smov 16  }
  0x43   : > { %1624 = dma.hbm_to_vmem [thread:$0]  (!%p2185_p2), %s2508_s0, 512, %s146_s4, [#allocation4], %s2082_s21, %s2082_s21, %s2083_s26  }
  0x44   : > { %s172_s6 = sand.u32 1, %s2076_s17   ;;  %s32_s7 = sadd.s32 1, %s2072_s16 }
  0x45   : > { %s174_s8 = sand.u32 1, %s2064_s14   ;;  %p34_p12 = scmp.ge.s32.totalorder %s32_s7, 2 }
  0x46   : > { %s1446_s9 = sshll.u32 %s174_s8, 10  ;;  %s1595_s10 = sshll.u32 %s2072_s16, 8 }
  0x47   : > { %s2542_s7 = smov (%p34_p12, %s32_s7), 0  ;;  %s2254_s28 = scalar_lea.hbm %s2509_s1, %s1595_s10 }
  0x48   : > { %s176_s4 = scalar_lea.vmem [#allocation6], %s1446_s9  ;;  %s58_s30 = ssub.s32 %s2072_s16, %s2542_s7 }
  0x49   : > { %s186_s27 = sshll.u32 %s176_s4, 4  ;;  %p2260_p2 = scmp.eq.s32.totalorder %s58_s30, 0  ;;  %s2258_s27 = int_to_ptr.vmem [resolvable:$true] %s186_s27 }
  0x4a   : > { %s2264_s8 = scalar_lea.sflag [#allocation7], %s172_s6  ;;  %s1956_s20 = scalar_lea.hbm %s2254_s28, 16384 }
  0x4b   : > { %p1957_p4 = scmp.ne.s32.totalorder %s2254_s28, %s1956_s20  ;;  %p2525_p10 = scmp.ne.s32.totalorder %s2523_s29, 0 }
  0x4c   : > { %s1961_s11 = scalar_lea.hbm %s2509_s1, 32768  ;;  %p1962_p9 = scmp.lt.u32.totalorder %s2254_s28, %s2509_s1 }
  0x4d   : > { %p1958_p3 = pneg %p2525_p10  ;;  %p1963_p0 = scmp.lt.u32.totalorder %s1961_s11, %s1956_s20 }
  0x4e   : > { %p1965_p5 = scmp.lt.u32.totalorder %s1956_s20, %s2254_s28 }
  0x4f   : > { %p1959_p7 = pnand %p1958_p3, %p1957_p4  ;;  %p1964_p13 = por %p1963_p0, %p1962_p9 }
  0x51   : > { %p1960_p8 = pneg %p1959_p7  ;;  %p1966_p1 = por %p1965_p5, %p1964_p13 }
  0x53   : > { %p1967_p6 = pnand %p1966_p1, %p1960_p8 }
  0x55   : > { %1970 = shalt.err (!%p1967_p6)
}
  0x56   : > { %s1971_s6 = scalar_lea.vmem %s2258_s27, 16384  ;;  %s2084_s30 = smov [#allocation6]  }
  0x57   : > { %p1972_p11 = scmp.ne.s32.totalorder %s2258_s27, %s1971_s6  ;;  %s1976_s10 = sshll.u32 %s2084_s30, 4  ;;  %s1977_s10 = int_to_ptr.vmem [resolvable:$false] %s1976_s10 }
  0x58   : > { %s1978_s9 = scalar_lea.vmem %s1977_s10, 32768  ;;  %p1979_p7 = scmp.lt.s32.totalorder %s2258_s27, %s1977_s10 }
  0x59   : > { %p1974_p12 = pnand %p1972_p11, %p1958_p3  ;;  %p1980_p9 = scmp.lt.s32.totalorder %s1978_s9, %s1971_s6 }
  0x5b   : > { %p1975_p4 = pneg %p1974_p12  ;;  %p1981_p0 = por %p1980_p9, %p1979_p7 }
  0x5d   : > { %p1982_p13 = pnand %p1981_p0, %p1975_p4 }
  0x5f   : > { %1985 = shalt.err (!%p1982_p13)
}
  0x60   : > { %s2085_s20 = smov 512   ;;  %s2526_s11 = sadd.s32 1, %s2064_s14 }
  0x61   : > { %1631 = dma.hbm_to_vmem [thread:$0]  (!%p2525_p10), %s2254_s28, 16384, %s2258_s27, %s2264_s8, %s2085_s20, %s2082_s21, %s2083_s26  }
  0x62   : > { %s2299_s19 = scalar_select %p2260_p2, %s2064_s14, %s2526_s11  }
  0x63   : > { %p2527_p3 = scmp.ne.s32.totalorder %s2521_s25, 0 }
  0x64   : > { %p2528_p8 = scmp.eq.s32.totalorder (!%p2527_p3), %s2142_s18, 0 }
  0x65   : > { %198 = sbr.rel (%p2527_p3) target bundleno = 487 (0x1e7), region = 32 }
  0x6c   : > { %2039 = dma.done.wait (%p2528_p8), [#allocation4], 512   ;;  %p2529_p5 = pmov %p2528_p8 }
  0x6d   : > { %s204_s29 = sand.u32 1, %s2142_s18   ;;  %s2309_s4 = sand.u32 1, %s2060_s13  }
  0x6e   : > { %2041 = vsyncadd (%p2529_p5), [#allocation4], 4294966784  ;;  %s1451_s21 = sshll.u32 %s2309_s4, 10  ;;  %s205_s26 = scalar_lea.sflag [#allocation7], %s204_s29 }
  0x6f   : > { %s2312_s28 = scalar_lea.vmem [#allocation6], %s1451_s21  ;;  %p2530_p2 = scmp.ne.s32.totalorder %s2518_s22, 0 }
  0x71   : > { %2043 = dma.done.wait (%p2530_p2), %s205_s26, 16384  }
  0x72   : > { %2045 = vsyncadd (%p2530_p2), %s205_s26, 4294950912  ;;  %p2531_p10 = pmov %p2529_p5 }
  0x73   : > { %p2532_p1 = pmov %p2529_p5 }
  0x74   : > { %2047 = dma.done.wait (%p2531_p10), [#allocation7], 256  }
  0x75   : > { %2049 = vsyncadd (%p2532_p1), [#allocation7], 4294967040  ;;  %v1702_v0 = vld [vmem:[%s2312_s28 + $0x4] ss:$16 sps:$4 sm:$0xff]   ;;  %v1704_v1 = vld [vmem:[%s2312_s28 + $0xc] ss:$16 sps:$4 sm:$0xff]  }
  0x76   : > { %1050 = vmatprep.subr.bf16.mxu0 %v1702_v0  ;;  %v1706_v2 = vld [vmem:[%s2312_s28] ss:$16 sps:$4 sm:$0xff]   ;;  %v1707_v3 = vld [vmem:[%s2312_s28 + $0x8] ss:$16 sps:$4 sm:$0xff]   ;;  %1136 = vmatprep.subr.bf16.mxu1 %v1704_v1  ;;  %v1708_v4 = vld [vmem:[%s2312_s28 + $0x24] ss:$16 sps:$4 sm:$0xff]  }
  0x77   : > { %1051 = vmatpush1.bf16.msra.mxu0 %v1706_v2  ;;  %1137 = vmatpush1.bf16.msra.mxu1 %v1707_v3  ;;  %v1710_v5 = vld [vmem:[%s2312_s28 + $0x2c] ss:$16 sps:$4 sm:$0xff]   ;;  %v1712_v6 = vld [vmem:[%s2312_s28 + $0x20] ss:$16 sps:$4 sm:$0xff]   ;;  %v1713_v7 = vld [vmem:[%s2312_s28 + $0x28] ss:$16 sps:$4 sm:$0xff]  }
  0x78   : > { %1052 = vmatprep.subr.bf16.mxu0 %v1708_v4  ;;  %v2086_v8 = vmov 0   ;;  %1138 = vmatprep.subr.bf16.mxu1 %v1710_v5  ;;  %v1714_v9 = vld [vmem:[%s2312_s28 + $0x44] ss:$16 sps:$4 sm:$0xff]   ;;  %v1716_v10 = vld [vmem:[%s2312_s28 + $0x4c] ss:$16 sps:$4 sm:$0xff]   ;;  %s1453_s18 = sshll.u32 %s2309_s4, 5 }
  0x79   : > { %1701 = vset.pattern.permute.xlu0 %v2086_v8  ;;  %v1718_v11 = vld [vmem:[%s2312_s28 + $0x40] ss:$16 sps:$4 sm:$0xff]   ;;  %v1719_v12 = vld [vmem:[%s2312_s28 + $0x48] ss:$16 sps:$4 sm:$0xff]   ;;  %v1720_v13 = vld [vmem:[%s2312_s28 + $0x64] ss:$16 sps:$4 sm:$0xff]  }
  0x7a   : > { %v1722_v14 = vld [vmem:[%s2312_s28 + $0x6c] ss:$16 sps:$4 sm:$0xff]   ;;  %v1724_v15 = vld [vmem:[%s2312_s28 + $0x60] ss:$16 sps:$4 sm:$0xff]   ;;  %v1725_v16 = vld [vmem:[%s2312_s28 + $0x68] ss:$16 sps:$4 sm:$0xff]  }
  0x7b   : > { %1053 = vmatpush1.bf16.msra.mxu0 %v1712_v6  ;;  %1139 = vmatpush1.bf16.msra.mxu1 %v1713_v7  ;;  %v1726_v17 = vld [vmem:[%s2312_s28 + $0x84] ss:$16 sps:$4 sm:$0xff]   ;;  %v1728_v18 = vld [vmem:[%s2312_s28 + $0x8c] ss:$16 sps:$4 sm:$0xff]   ;;  %v1730_v19 = vld [vmem:[%s2312_s28 + $0x80] ss:$16 sps:$4 sm:$0xff]  }
  0x7c   : > { %1054 = vmatprep.subr.bf16.mxu0 %v1714_v9  ;;  %1140 = vmatprep.subr.bf16.mxu1 %v1716_v10  ;;  %v1731_v20 = vld [vmem:[%s2312_s28 + $0x88] ss:$16 sps:$4 sm:$0xff]   ;;  %v1732_v21 = vld [vmem:[%s2312_s28 + $0xa4] ss:$16 sps:$4 sm:$0xff]   ;;  %v1734_v22 = vld [vmem:[%s2312_s28 + $0xac] ss:$16 sps:$4 sm:$0xff]  }
  0x7d   : > { %v1736_v23 = vld [vmem:[%s2312_s28 + $0xa0] ss:$16 sps:$4 sm:$0xff]   ;;  %v1737_v24 = vld [vmem:[%s2312_s28 + $0xa8] ss:$16 sps:$4 sm:$0xff]   ;;  %v1738_v25 = vld [vmem:[%s2312_s28 + $0xc4] ss:$16 sps:$4 sm:$0xff]  }
  0x7e   : > { %v1740_v26 = vld [vmem:[%s2312_s28 + $0xcc] ss:$16 sps:$4 sm:$0xff]   ;;  %v1742_v27 = vld [vmem:[%s2312_s28 + $0xc0] ss:$16 sps:$4 sm:$0xff]   ;;  %v1743_v28 = vld [vmem:[%s2312_s28 + $0xc8] ss:$16 sps:$4 sm:$0xff]  }
  0x7f   : > { %1055 = vmatpush1.bf16.msra.mxu0 %v1718_v11  ;;  %1141 = vmatpush1.bf16.msra.mxu1 %v1719_v12  ;;  %v1744_v29 = vld [vmem:[%s2312_s28 + $0xe4] ss:$16 sps:$4 sm:$0xff]   ;;  %v1746_v30 = vld [vmem:[%s2312_s28 + $0xec] ss:$16 sps:$4 sm:$0xff]   ;;  %v1748_v31 = vld [vmem:[%s2312_s28 + $0xe0] ss:$16 sps:$4 sm:$0xff]  }
  0x80   : > { %1056 = vmatprep.subr.bf16.mxu0 %v1720_v13  ;;  %1142 = vmatprep.subr.bf16.mxu1 %v1722_v14  ;;  %v1749_v32 = vld [vmem:[%s2312_s28 + $0xe8] ss:$16 sps:$4 sm:$0xff]   ;;  %v1750_v33 = vld [vmem:[%s2312_s28 + $0x104] ss:$16 sps:$4 sm:$0xff]   ;;  %v1752_v34 = vld [vmem:[%s2312_s28 + $0x10c] ss:$16 sps:$4 sm:$0xff]  }
  0x81   : > { %v1754_v35 = vld [vmem:[%s2312_s28 + $0x100] ss:$16 sps:$4 sm:$0xff]   ;;  %v1755_v36 = vld [vmem:[%s2312_s28 + $0x108] ss:$16 sps:$4 sm:$0xff]   ;;  %v1756_v37 = vld [vmem:[%s2312_s28 + $0x124] ss:$16 sps:$4 sm:$0xff]  }
  0x82   : > { %v1758_v38 = vld [vmem:[%s2312_s28 + $0x12c] ss:$16 sps:$4 sm:$0xff]   ;;  %v1760_v39 = vld [vmem:[%s2312_s28 + $0x120] ss:$16 sps:$4 sm:$0xff]   ;;  %v1761_v40 = vld [vmem:[%s2312_s28 + $0x128] ss:$16 sps:$4 sm:$0xff]  }
  0x83   : > { %1057 = vmatpush1.bf16.msra.mxu0 %v1724_v15  ;;  %1143 = vmatpush1.bf16.msra.mxu1 %v1725_v16  ;;  %v1762_v41 = vld [vmem:[%s2312_s28 + $0x144] ss:$16 sps:$4 sm:$0xff]   ;;  %v1764_v42 = vld [vmem:[%s2312_s28 + $0x14c] ss:$16 sps:$4 sm:$0xff]   ;;  %v1766_v43 = vld [vmem:[%s2312_s28 + $0x140] ss:$16 sps:$4 sm:$0xff]  }
  0x84   : > { %1058 = vmatprep.subr.bf16.mxu0 %v1726_v17  ;;  %1144 = vmatprep.subr.bf16.mxu1 %v1728_v18  ;;  %v1767_v44 = vld [vmem:[%s2312_s28 + $0x148] ss:$16 sps:$4 sm:$0xff]   ;;  %v1768_v45 = vld [vmem:[%s2312_s28 + $0x164] ss:$16 sps:$4 sm:$0xff]   ;;  %v1770_v46 = vld [vmem:[%s2312_s28 + $0x16c] ss:$16 sps:$4 sm:$0xff]  }
  0x85   : > { %v1772_v47 = vld [vmem:[%s2312_s28 + $0x160] ss:$16 sps:$4 sm:$0xff]   ;;  %v1773_v48 = vld [vmem:[%s2312_s28 + $0x168] ss:$16 sps:$4 sm:$0xff]   ;;  %v1800_v49 = vld [vmem:[#allocation3 + $0x4] ss:$16 sps:$4 sm:$0xff]  }
  0x86   : > { %v1774_v50 = vld [vmem:[%s2312_s28 + $0x184] ss:$16 sps:$4 sm:$0xff]   ;;  %v1776_v51 = vld [vmem:[%s2312_s28 + $0x18c] ss:$16 sps:$4 sm:$0xff]   ;;  %1082 = vmatprep.mubr.bf16.mxu0 %v1800_v49  ;;  %1168 = vmatprep.mubr.bf16.mxu1 %v1800_v49  ;;  %v1778_v52 = vld [vmem:[%s2312_s28 + $0x180] ss:$16 sps:$4 sm:$0xff]  }
  0x87   : > { %1059 = vmatpush1.bf16.msra.mxu0 %v1730_v19  ;;  %1145 = vmatpush1.bf16.msra.mxu1 %v1731_v20  ;;  %v1779_v53 = vld [vmem:[%s2312_s28 + $0x188] ss:$16 sps:$4 sm:$0xff]   ;;  %v1780_v54 = vld [vmem:[%s2312_s28 + $0x1a4] ss:$16 sps:$4 sm:$0xff]   ;;  %v1782_v55 = vld [vmem:[%s2312_s28 + $0x1ac] ss:$16 sps:$4 sm:$0xff]  }
  0x88   : > { %1060 = vmatprep.subr.bf16.mxu0 %v1732_v21  ;;  %1146 = vmatprep.subr.bf16.mxu1 %v1734_v22  ;;  %v1784_v56 = vld [vmem:[%s2312_s28 + $0x1a0] ss:$16 sps:$4 sm:$0xff]   ;;  %v1785_v57 = vld [vmem:[%s2312_s28 + $0x1a8] ss:$16 sps:$4 sm:$0xff]   ;;  %v1786_v58 = vld [vmem:[%s2312_s28 + $0x1c4] ss:$16 sps:$4 sm:$0xff]  }
  0x89   : > { %v1788_v59 = vld [vmem:[%s2312_s28 + $0x1cc] ss:$16 sps:$4 sm:$0xff]   ;;  %v1790_v60 = vld [vmem:[%s2312_s28 + $0x1c0] ss:$16 sps:$4 sm:$0xff]   ;;  %v1791_v61 = vld [vmem:[%s2312_s28 + $0x1c8] ss:$16 sps:$4 sm:$0xff]  }
  0x8a   : > { %v1792_v62 = vld [vmem:[%s2312_s28 + $0x1e4] ss:$16 sps:$4 sm:$0xff]   ;;  %v1794_v63 = vld [vmem:[%s2312_s28 + $0x1ec] ss:$16 sps:$4 sm:$0xff]   ;;  %v1796_v0 = vld [vmem:[%s2312_s28 + $0x1e0] ss:$16 sps:$4 sm:$0xff]  }
  0x8b   : > { %1061 = vmatpush1.bf16.msra.mxu0 %v1736_v23  ;;  %1147 = vmatpush1.bf16.msra.mxu1 %v1737_v24  ;;  %v1797_v1 = vld [vmem:[%s2312_s28 + $0x1e8] ss:$16 sps:$4 sm:$0xff]   ;;  %v1803_v2 = vld [vmem:[%s2312_s28 + $0x204] ss:$16 sps:$4 sm:$0xff]   ;;  %v1806_v3 = vld [vmem:[%s2312_s28 + $0x20c] ss:$16 sps:$4 sm:$0xff]  }
  0x8c   : > { %1062 = vmatprep.subr.bf16.mxu0 %v1738_v25  ;;  %1148 = vmatprep.subr.bf16.mxu1 %v1740_v26  ;;  %v1798_v4 = vld [vmem:[#allocation3] ss:$16 sps:$4 sm:$0xff]   ;;  %v1804_v6 = vld [vmem:[%s2312_s28 + $0x208] ss:$16 sps:$4 sm:$0xff]   ;;  %v1809_v7 = vld [vmem:[%s2312_s28 + $0x224] ss:$16 sps:$4 sm:$0xff]  }
  0x8d   : > { %v1801_v5 = vld [vmem:[%s2312_s28 + $0x200] ss:$16 sps:$4 sm:$0xff]   ;;  %v1812_v8 = vld [vmem:[%s2312_s28 + $0x22c] ss:$16 sps:$4 sm:$0xff]   ;;  %v1810_v10 = vld [vmem:[%s2312_s28 + $0x228] ss:$16 sps:$4 sm:$0xff]  }
  0x8e   : > { %v1807_v9 = vld [vmem:[%s2312_s28 + $0x220] ss:$16 sps:$4 sm:$0xff]   ;;  %v1815_v11 = vld [vmem:[%s2312_s28 + $0x244] ss:$16 sps:$4 sm:$0xff]   ;;  %v1818_v12 = vld [vmem:[%s2312_s28 + $0x24c] ss:$16 sps:$4 sm:$0xff]  }
  0x8f   : > { %1063 = vmatpush1.bf16.msra.mxu0 %v1742_v27  ;;  %1149 = vmatpush1.bf16.msra.mxu1 %v1743_v28  ;;  %v1813_v13 = vld [vmem:[%s2312_s28 + $0x240] ss:$16 sps:$4 sm:$0xff]   ;;  %v1816_v14 = vld [vmem:[%s2312_s28 + $0x248] ss:$16 sps:$4 sm:$0xff]   ;;  %v1821_v15 = vld [vmem:[%s2312_s28 + $0x264] ss:$16 sps:$4 sm:$0xff]  }
  0x90   : > { %1064 = vmatprep.subr.bf16.mxu0 %v1744_v29  ;;  %1150 = vmatprep.subr.bf16.mxu1 %v1746_v30  ;;  %v1824_v16 = vld [vmem:[%s2312_s28 + $0x26c] ss:$16 sps:$4 sm:$0xff]   ;;  %v1819_v17 = vld [vmem:[%s2312_s28 + $0x260] ss:$16 sps:$4 sm:$0xff]   ;;  %v1822_v18 = vld [vmem:[%s2312_s28 + $0x268] ss:$16 sps:$4 sm:$0xff]  }
  0x91   : > { %v1827_v19 = vld [vmem:[%s2312_s28 + $0x284] ss:$16 sps:$4 sm:$0xff]   ;;  %v1830_v20 = vld [vmem:[%s2312_s28 + $0x28c] ss:$16 sps:$4 sm:$0xff]   ;;  %v1825_v21 = vld [vmem:[%s2312_s28 + $0x280] ss:$16 sps:$4 sm:$0xff]  }
  0x92   : > { %v1828_v22 = vld [vmem:[%s2312_s28 + $0x288] ss:$16 sps:$4 sm:$0xff]   ;;  %v1833_v23 = vld [vmem:[%s2312_s28 + $0x2a4] ss:$16 sps:$4 sm:$0xff]   ;;  %v1836_v24 = vld [vmem:[%s2312_s28 + $0x2ac] ss:$16 sps:$4 sm:$0xff]  }
  0x93   : > { %1065 = vmatpush1.bf16.msra.mxu0 %v1748_v31  ;;  %1151 = vmatpush1.bf16.msra.mxu1 %v1749_v32  ;;  %v1831_v25 = vld [vmem:[%s2312_s28 + $0x2a0] ss:$16 sps:$4 sm:$0xff]   ;;  %v1834_v26 = vld [vmem:[%s2312_s28 + $0x2a8] ss:$16 sps:$4 sm:$0xff]   ;;  %v1839_v27 = vld [vmem:[%s2312_s28 + $0x2c4] ss:$16 sps:$4 sm:$0xff]  }
  0x94   : > { %1066 = vmatprep.subr.bf16.mxu0 %v1750_v33  ;;  %1152 = vmatprep.subr.bf16.mxu1 %v1752_v34  ;;  %v1842_v28 = vld [vmem:[%s2312_s28 + $0x2cc] ss:$16 sps:$4 sm:$0xff]   ;;  %v1837_v30 = vld [vmem:[%s2312_s28 + $0x2c0] ss:$16 sps:$4 sm:$0xff]   ;;  %v1840_v31 = vld [vmem:[%s2312_s28 + $0x2c8] ss:$16 sps:$4 sm:$0xff]  }
  0x95   : > { %v1899_v29 = vld [vmem:[#allocation3 + $0xc] ss:$16 sps:$4 sm:$0xff]   ;;  %v1249_v32 = vld [vmem:[#allocation8] sm:$0xff]  ;;  %v1864_v49 = vld [vmem:[%s2312_s28 + $0x348] ss:$16 sps:$4 sm:$0xff]   ;;  %s234_s22 = scalar_lea.vmem [#allocation9], %s1453_s18 }
  0x96   : > { %v1845_v33 = vld [vmem:[%s2312_s28 + $0x2e4] ss:$16 sps:$4 sm:$0xff]   ;;  %v1848_v34 = vld [vmem:[%s2312_s28 + $0x2ec] ss:$16 sps:$4 sm:$0xff]   ;;  %1253 = vperm.xlu0 %1701, %v1249_v32   ;;  %s1335_s25 = sshll.u32 %s234_s22, 4  ;;  %s1600_s27 = sshll.u32 %s2068_s15, 8  ;;  %s2454_s25 = int_to_ptr.vmem [resolvable:$true] %s1335_s25 }
  0x97   : > { %1067 = vmatpush1.bf16.msra.mxu0 %v1754_v35  ;;  %1153 = vmatpush1.bf16.msra.mxu1 %v1755_v36  ;;  %v1843_v35 = vld [vmem:[%s2312_s28 + $0x2e0] ss:$16 sps:$4 sm:$0xff]   ;;  %v1846_v36 = vld [vmem:[%s2312_s28 + $0x2e8] ss:$16 sps:$4 sm:$0xff]   ;;  %s2459_s8 = scalar_lea.hbm %s2511_s3, %s1600_s27  ;;  %s1322_s6 = scalar_lea.sflag [#allocation5], %s2309_s4 }
  0x98   : > { %1068 = vmatprep.subr.bf16.mxu0 %v1756_v37  ;;  %1154 = vmatprep.subr.bf16.mxu1 %v1758_v38  ;;  %v1250_v37 = vld [vmem:[#allocation8 + $0x8] sm:$0xff]  ;;  %v1851_v38 = vld [vmem:[%s2312_s28 + $0x304] ss:$16 sps:$4 sm:$0xff]   ;;  %s1986_s30 = scalar_lea.vmem %s2454_s25, 512  ;;  %p2533_p11 = scmp.ne.s32.totalorder %s2519_s23, 0 }
  0x99   : > { %p1987_p6 = scmp.ne.s32.totalorder %s2454_s25, %s1986_s30  ;;  %s2087_s10 = smov [#allocation9]  }
  0x9a   : > { %1258 = vperm.xlu0 %1701, %v1250_v37   ;;  %s1990_s9 = sshll.u32 %s2087_s10, 4  ;;  %s1991_s9 = int_to_ptr.vmem [resolvable:$false] %s1990_s9 }
  0x9b   : > { %1069 = vmatpush1.bf16.msra.mxu0 %v1760_v39  ;;  %1155 = vmatpush1.bf16.msra.mxu1 %v1761_v40  ;;  %v1854_v39 = vld [vmem:[%s2312_s28 + $0x30c] ss:$16 sps:$4 sm:$0xff]   ;;  %v1849_v40 = vld [vmem:[%s2312_s28 + $0x300] ss:$16 sps:$4 sm:$0xff]   ;;  %p1988_p12 = pnand %p1987_p6, %p2533_p11  ;;  %s1992_s20 = scalar_lea.vmem %s1991_s9, 1024 }
  0x9c   : > { %1070 = vmatprep.subr.bf16.mxu0 %v1762_v41  ;;  %1156 = vmatprep.subr.bf16.mxu1 %v1764_v42  ;;  %v1852_v41 = vld [vmem:[%s2312_s28 + $0x308] ss:$16 sps:$4 sm:$0xff]   ;;  %v1857_v42 = vld [vmem:[%s2312_s28 + $0x324] ss:$16 sps:$4 sm:$0xff]   ;;  %p1993_p7 = scmp.lt.s32.totalorder %s2454_s25, %s1991_s9  ;;  %p1994_p9 = scmp.lt.s32.totalorder %s1992_s20, %s1986_s30 }
  0x9d   : > { %p1989_p4 = pneg %p1988_p12 }
  0x9e   : > { %p1995_p0 = por %p1994_p9, %p1993_p7 }
  0x9f   : > { %1071 = vmatpush1.bf16.msra.mxu0 %v1766_v43  ;;  %1157 = vmatpush1.bf16.msra.mxu1 %v1767_v44  ;;  %v1860_v43 = vld [vmem:[%s2312_s28 + $0x32c] ss:$16 sps:$4 sm:$0xff]   ;;  %v1855_v44 = vld [vmem:[%s2312_s28 + $0x320] ss:$16 sps:$4 sm:$0xff]  }
  0xa0   : > { %1072 = vmatprep.subr.bf16.mxu0 %v1768_v45  ;;  %1158 = vmatprep.subr.bf16.mxu1 %v1770_v46  ;;  %v1858_v45 = vld [vmem:[%s2312_s28 + $0x328] ss:$16 sps:$4 sm:$0xff]   ;;  %v1863_v46 = vld [vmem:[%s2312_s28 + $0x344] ss:$16 sps:$4 sm:$0xff]   ;;  %p1996_p13 = pnand %p1995_p0, %p1989_p4 }
  0xa3   : > { %1073 = vmatpush1.bf16.msra.mxu0 %v1772_v47  ;;  %1159 = vmatpush1.bf16.msra.mxu1 %v1773_v48  ;;  %v1866_v47 = vld [vmem:[%s2312_s28 + $0x34c] ss:$16 sps:$4 sm:$0xff]   ;;  %v1861_v48 = vld [vmem:[%s2312_s28 + $0x340] ss:$16 sps:$4 sm:$0xff]  }
  0xa4   : > { %1074 = vmatprep.subr.bf16.mxu0 %v1774_v50  ;;  %1160 = vmatprep.subr.bf16.mxu1 %v1776_v51  ;;  %v1869_v50 = vld [vmem:[%s2312_s28 + $0x364] ss:$16 sps:$4 sm:$0xff]   ;;  %v1872_v51 = vld [vmem:[%s2312_s28 + $0x36c] ss:$16 sps:$4 sm:$0xff]  }
  0xa7   : > { %1075 = vmatpush1.bf16.msra.mxu0 %v1778_v52  ;;  %1161 = vmatpush1.bf16.msra.mxu1 %v1779_v53  ;;  %v1867_v52 = vld [vmem:[%s2312_s28 + $0x360] ss:$16 sps:$4 sm:$0xff]   ;;  %v1870_v53 = vld [vmem:[%s2312_s28 + $0x368] ss:$16 sps:$4 sm:$0xff]  }
  0xa8   : > { %1076 = vmatprep.subr.bf16.mxu0 %v1780_v54  ;;  %1162 = vmatprep.subr.bf16.mxu1 %v1782_v55  ;;  %v1875_v54 = vld [vmem:[%s2312_s28 + $0x384] ss:$16 sps:$4 sm:$0xff]   ;;  %v1878_v55 = vld [vmem:[%s2312_s28 + $0x38c] ss:$16 sps:$4 sm:$0xff]  }
  0xab   : > { %1077 = vmatpush1.bf16.msra.mxu0 %v1784_v56  ;;  %1163 = vmatpush1.bf16.msra.mxu1 %v1785_v57  ;;  %v1873_v56 = vld [vmem:[%s2312_s28 + $0x380] ss:$16 sps:$4 sm:$0xff]   ;;  %v1876_v57 = vld [vmem:[%s2312_s28 + $0x388] ss:$16 sps:$4 sm:$0xff]  }
  0xac   : > { %1078 = vmatprep.subr.bf16.mxu0 %v1786_v58  ;;  %1164 = vmatprep.subr.bf16.mxu1 %v1788_v59  ;;  %v1881_v58 = vld [vmem:[%s2312_s28 + $0x3a4] ss:$16 sps:$4 sm:$0xff]   ;;  %v1884_v59 = vld [vmem:[%s2312_s28 + $0x3ac] ss:$16 sps:$4 sm:$0xff]  }
  0xaf   : > { %1079 = vmatpush1.bf16.msra.mxu0 %v1790_v60  ;;  %1165 = vmatpush1.bf16.msra.mxu1 %v1791_v61  ;;  %v1879_v60 = vld [vmem:[%s2312_s28 + $0x3a0] ss:$16 sps:$4 sm:$0xff]   ;;  %v1882_v61 = vld [vmem:[%s2312_s28 + $0x3a8] ss:$16 sps:$4 sm:$0xff]  }
  0xb0   : > { %1080 = vmatprep.subr.bf16.mxu0 %v1792_v62  ;;  %1166 = vmatprep.subr.bf16.mxu1 %v1794_v63  ;;  %v1887_v62 = vld [vmem:[%s2312_s28 + $0x3c4] ss:$16 sps:$4 sm:$0xff]   ;;  %v1890_v63 = vld [vmem:[%s2312_s28 + $0x3cc] ss:$16 sps:$4 sm:$0xff]  }
  0xb3   : > { %1081 = vmatpush1.bf16.msra.mxu0 %v1796_v0  ;;  %1167 = vmatpush1.bf16.msra.mxu1 %v1797_v1  ;;  %v1885_v0 = vld [vmem:[%s2312_s28 + $0x3c0] ss:$16 sps:$4 sm:$0xff]   ;;  %v1888_v1 = vld [vmem:[%s2312_s28 + $0x3c8] ss:$16 sps:$4 sm:$0xff]  }
  0xb4   : > { %1093 = vmatprep.subr.bf16.mxu0 %v1803_v2  ;;  %1179 = vmatprep.subr.bf16.mxu1 %v1806_v3  ;;  %v1893_v2 = vld [vmem:[%s2312_s28 + $0x3e4] ss:$16 sps:$4 sm:$0xff]   ;;  %v1896_v3 = vld [vmem:[%s2312_s28 + $0x3ec] ss:$16 sps:$4 sm:$0xff]  }
  0xb6   : > { %1083 = vmatmul.mubr.bf16.vlgmr.msra.gmra.mrb[0].mxu0 %v1798_v4  ;;  %1169 = vmatmul.mubr.bf16.vlgmr.msra.gmra.mrb[0].mxu1 %v1798_v4  ;;  %v1891_v4 = vld [vmem:[%s2312_s28 + $0x3e0] ss:$16 sps:$4 sm:$0xff]  }
  0xb7   : > { %1094 = vmatpush1.bf16.msra.mxu0 %v1801_v5  ;;  %1180 = vmatpush1.bf16.msra.mxu1 %v1804_v6  ;;  %v1894_v5 = vld [vmem:[%s2312_s28 + $0x3e8] ss:$16 sps:$4 sm:$0xff]  }
  0xb8   : > { %1095 = vmatprep.subr.bf16.mxu0 %v1809_v7  ;;  %1181 = vmatprep.subr.bf16.mxu1 %v1812_v8  ;;  %v1897_v6 = vld [vmem:[#allocation3 + $0x8] ss:$16 sps:$4 sm:$0xff]  }
  0xb9   : > { %1125 = vmatprep.mubr.bf16.mxu0 %v1899_v29  ;;  %1211 = vmatprep.mubr.bf16.mxu1 %v1899_v29 }
  0xbb   : > { %1096 = vmatpush1.bf16.msra.mxu0 %v1807_v9  ;;  %1182 = vmatpush1.bf16.msra.mxu1 %v1810_v10 }
  0xbc   : > { %1097 = vmatprep.subr.bf16.mxu0 %v1815_v11  ;;  %1183 = vmatprep.subr.bf16.mxu1 %v1818_v12 }
  0xbf   : > { %1098 = vmatpush1.bf16.msra.mxu0 %v1813_v13  ;;  %1184 = vmatpush1.bf16.msra.mxu1 %v1816_v14 }
  0xc0   : > { %1099 = vmatprep.subr.bf16.mxu0 %v1821_v15  ;;  %1185 = vmatprep.subr.bf16.mxu1 %v1824_v16 }
  0xc3   : > { %1100 = vmatpush1.bf16.msra.mxu0 %v1819_v17  ;;  %1186 = vmatpush1.bf16.msra.mxu1 %v1822_v18 }
  0xc4   : > { %1101 = vmatprep.subr.bf16.mxu0 %v1827_v19  ;;  %1187 = vmatprep.subr.bf16.mxu1 %v1830_v20 }
  0xc7   : > { %1102 = vmatpush1.bf16.msra.mxu0 %v1825_v21  ;;  %1188 = vmatpush1.bf16.msra.mxu1 %v1828_v22 }
  0xc8   : > { %1103 = vmatprep.subr.bf16.mxu0 %v1833_v23  ;;  %1189 = vmatprep.subr.bf16.mxu1 %v1836_v24 }
  0xcb   : > { %1104 = vmatpush1.bf16.msra.mxu0 %v1831_v25  ;;  %1190 = vmatpush1.bf16.msra.mxu1 %v1834_v26 }
  0xcc   : > { %1105 = vmatprep.subr.bf16.mxu0 %v1839_v27  ;;  %1191 = vmatprep.subr.bf16.mxu1 %v1842_v28 }
  0xcf   : > { %1106 = vmatpush1.bf16.msra.mxu0 %v1837_v30  ;;  %1192 = vmatpush1.bf16.msra.mxu1 %v1840_v31 }
  0xd0   : > { %1107 = vmatprep.subr.bf16.mxu0 %v1845_v33  ;;  %1193 = vmatprep.subr.bf16.mxu1 %v1848_v34 }
  0xd3   : > { %1108 = vmatpush1.bf16.msra.mxu0 %v1843_v35  ;;  %1194 = vmatpush1.bf16.msra.mxu1 %v1846_v36 }
  0xd4   : > { %1109 = vmatprep.subr.bf16.mxu0 %v1851_v38  ;;  %1195 = vmatprep.subr.bf16.mxu1 %v1854_v39 }
  0xd7   : > { %1110 = vmatpush1.bf16.msra.mxu0 %v1849_v40  ;;  %1196 = vmatpush1.bf16.msra.mxu1 %v1852_v41 }
  0xd8   : > { %1111 = vmatprep.subr.bf16.mxu0 %v1857_v42  ;;  %1197 = vmatprep.subr.bf16.mxu1 %v1860_v43 }
  0xdb   : > { %1112 = vmatpush1.bf16.msra.mxu0 %v1855_v44  ;;  %1198 = vmatpush1.bf16.msra.mxu1 %v1858_v45 }
  0xdc   : > { %1113 = vmatprep.subr.bf16.mxu0 %v1863_v46  ;;  %1199 = vmatprep.subr.bf16.mxu1 %v1866_v47 }
  0xdf   : > { %1114 = vmatpush1.bf16.msra.mxu0 %v1861_v48  ;;  %1200 = vmatpush1.bf16.msra.mxu1 %v1864_v49 }
  0xe0   : > { %1115 = vmatprep.subr.bf16.mxu0 %v1869_v50  ;;  %1201 = vmatprep.subr.bf16.mxu1 %v1872_v51 }
  0xe3   : > { %1116 = vmatpush1.bf16.msra.mxu0 %v1867_v52  ;;  %1202 = vmatpush1.bf16.msra.mxu1 %v1870_v53 }
  0xe4   : > { %1117 = vmatprep.subr.bf16.mxu0 %v1875_v54  ;;  %1203 = vmatprep.subr.bf16.mxu1 %v1878_v55 }
  0xe7   : > { %1118 = vmatpush1.bf16.msra.mxu0 %v1873_v56  ;;  %1204 = vmatpush1.bf16.msra.mxu1 %v1876_v57 }
  0xe8   : > { %1119 = vmatprep.subr.bf16.mxu0 %v1881_v58  ;;  %1205 = vmatprep.subr.bf16.mxu1 %v1884_v59 }
  0xeb   : > { %1120 = vmatpush1.bf16.msra.mxu0 %v1879_v60  ;;  %1206 = vmatpush1.bf16.msra.mxu1 %v1882_v61 }
  0xec   : > { %1121 = vmatprep.subr.bf16.mxu0 %v1887_v62  ;;  %1207 = vmatprep.subr.bf16.mxu1 %v1890_v63 }
  0xef   : > { %1122 = vmatpush1.bf16.msra.mxu0 %v1885_v0  ;;  %1208 = vmatpush1.bf16.msra.mxu1 %v1888_v1 }
  0xf0   : > { %1123 = vmatprep.subr.bf16.mxu0 %v1893_v2  ;;  %1209 = vmatprep.subr.bf16.mxu1 %v1896_v3 }
  0xf3   : > { %1124 = vmatpush1.bf16.msra.mxu0 %v1891_v4  ;;  %1210 = vmatpush1.bf16.msra.mxu1 %v1894_v5 }
  0xf6   : > { %1126 = vmatmul.mubr.bf16.vlgmr.msra.gmra.mrb[0].mxu0 %v1897_v6  ;;  %1212 = vmatmul.mubr.bf16.vlgmr.msra.gmra.mrb[0].mxu1 %v1897_v6 }
 0x115   : > { %v1254_v7 = vpop.permute.xlu0 %1253 }
 0x119   : > { %v1259_v20 = vpop.permute.xlu0 %1258 }
 0x1c9   : > { %v1127_v8 = vpop.f32.mrb[0].mxu0  ;;  %v1213_v9 = vpop.f32.mrb[0].mxu1 }
 0x1ca   : > { %v1261_v10 = vadd.f32 %v1254_v7, %v1127_v8  ;;  %v1263_v11 = vadd.f32 %v1254_v7, %v1213_v9  ;;  %v1129_v12 = vpop.f32.mrb[1].mxu0  ;;  %v1215_v13 = vpop.f32.mrb[1].mxu1 }
 0x1cb   : > { %v1262_v14 = vadd.f32 %v1254_v7, %v1129_v12  ;;  %v1264_v15 = vadd.f32 %v1254_v7, %v1215_v13  ;;  %v1131_v16 = vpop.f32.mrb[2].mxu0  ;;  %v1217_v17 = vpop.f32.mrb[2].mxu1 }
 0x1cc   : > { %vm1269_vm0 = vcmp.gt.f32.partialorder %v1261_v10, 0.0  ;;  %v1277_v18 = vmul.f32 0.2, %v1261_v10  ;;  %vm1271_vm1 = vcmp.gt.f32.partialorder %v1263_v11, 0.0  ;;  %v1279_v19 = vmul.f32 0.2, %v1263_v11 }
 0x1cd   : > { %vm1270_vm2 = vcmp.gt.f32.partialorder %v1262_v14, 0.0  ;;  %v1278_v21 = vmul.f32 0.2, %v1262_v14  ;;  %vm1272_vm3 = vcmp.gt.f32.partialorder %v1264_v15, 0.0  ;;  %v1280_v22 = vmul.f32 0.2, %v1264_v15 }
 0x1ce   : > { %v1285_v23 = vsel %vm1269_vm0, %v1261_v10, %v1277_v18  ;;  %v1287_v24 = vsel %vm1271_vm1, %v1263_v11, %v1279_v19  ;;  %v1265_v25 = vadd.f32 %v1259_v20, %v1131_v16  ;;  %v1267_v26 = vadd.f32 %v1259_v20, %v1217_v17  ;;  %v1133_v27 = vpop.f32.mrb[3].mxu0  ;;  %v1219_v28 = vpop.f32.mrb[3].mxu1 }
 0x1cf   : > { %v1286_v29 = vsel %vm1270_vm2, %v1262_v14, %v1278_v21  ;;  %v1288_v30 = vsel %vm1272_vm3, %v1264_v15, %v1280_v22  ;;  %v1266_v31 = vadd.f32 %v1259_v20, %v1133_v27  ;;  %v1268_v32 = vadd.f32 %v1259_v20, %v1219_v28 }
 0x1d0   : > { %v1596_v33 = vpack.c.bf16 %v1286_v29, %v1285_v23  ;;  %v1597_v34 = vpack.c.bf16 %v1288_v30, %v1287_v24  ;;  %vm1273_vm4 = vcmp.gt.f32.partialorder %v1265_v25, 0.0  ;;  %v1281_v35 = vmul.f32 0.2, %v1265_v25 }
 0x1d1   : > { %vm1275_vm5 = vcmp.gt.f32.partialorder %v1267_v26, 0.0  ;;  %v1283_v36 = vmul.f32 0.2, %v1267_v26  ;;  %vm1274_vm6 = vcmp.gt.f32.partialorder %v1266_v31, 0.0  ;;  %v1282_v37 = vmul.f32 0.2, %v1266_v31 }
 0x1d2   : > { %1317 = vst [vmem:[%s234_s22] sm:$0xff] %v1596_v33  ;;  %1318 = vst [vmem:[%s234_s22 + $0x8] sm:$0xff] %v1597_v34  ;;  %v1289_v38 = vsel %vm1273_vm4, %v1265_v25, %v1281_v35  ;;  %vm1276_vm7 = vcmp.gt.f32.partialorder %v1268_v32, 0.0  ;;  %v1284_v39 = vmul.f32 0.2, %v1268_v32 }
 0x1d3   : > { %v1291_v40 = vsel %vm1275_vm5, %v1267_v26, %v1283_v36  ;;  %v1290_v41 = vsel %vm1274_vm6, %v1266_v31, %v1282_v37 }
 0x1d4   : > { %v1598_v42 = vpack.c.bf16 %v1290_v41, %v1289_v38  ;;  %v1292_v43 = vsel %vm1276_vm7, %v1268_v32, %v1284_v39 }
 0x1d5   : > { %v1599_v44 = vpack.c.bf16 %v1292_v43, %v1291_v40 }
 0x1d6   : > { %1319 = vst [vmem:[%s234_s22 + $0x10] sm:$0xff] %v1598_v42 }
 0x1d7   : > { %1320 = vst [vmem:[%s234_s22 + $0x18] sm:$0xff] %v1599_v44 }
 0x1d8   : > { %1999 = shalt.err (!%p1996_p13)
}
 0x1d9   : > { %s2000_s11 = scalar_lea.hbm %s2459_s8, 512  ;;  %s2004_s26 = scalar_lea.hbm %s2511_s3, 1024 }
 0x1da   : > { %p2001_p3 = scmp.ne.s32.totalorder %s2459_s8, %s2000_s11  ;;  %p2005_p2 = scmp.lt.u32.totalorder %s2459_s8, %s2511_s3 }
 0x1db   : > { %p2006_p10 = scmp.lt.u32.totalorder %s2004_s26, %s2000_s11  ;;  %p2008_p6 = scmp.lt.u32.totalorder %s2000_s11, %s2459_s8 }
 0x1dc   : > { %p2002_p8 = pnand %p2001_p3, %p2533_p11 }
 0x1dd   : > { %p2007_p1 = por %p2006_p10, %p2005_p2 }
 0x1de   : > { %p2003_p5 = pneg %p2002_p8 }
 0x1df   : > { %p2009_p12 = por %p2008_p6, %p2007_p1 }
 0x1e1   : > { %p2010_p4 = pnand %p2009_p12, %p2003_p5 }
 0x1e3   : > { %2013 = shalt.err (!%p2010_p4)
}
 0x1e4   : > { %s2088_s22 = smov 256   ;;  %s2089_s27 = smov 512  }
 0x1e5   : > { %s2090_s15 = smov 16  }
 0x1e6   : > { %1619 = dma.vmem_to_hbm [thread:$0]  (%p2533_p11), %s2454_s25, 512, %s2459_s8, %s1322_s6, %s2088_s22, %s2089_s27, %s2090_s15  }
 0x1e7 PF: > { %s1350_s5 = sand.u32 1, %s2056_s12   ;;  %p2534_p7 = scmp.ne.s32.totalorder %s2520_s24, 0 }
 0x1e8   : > { %p2535_p9 = scmp.ge.s32.totalorder %s2076_s17, 2  ;;  %s1351_s30 = scalar_lea.sflag [#allocation5], %s1350_s5 }
 0x1ea   : > { %p1633_p0 = pnand %p2535_p9, %p2534_p7 }
 0x1ec   : > { %2051 = dma.done.wait (!%p1633_p0), %s1351_s30, 512  }
 0x1ed   : > { %2053 = vsyncadd (!%p1633_p0), %s1351_s30, 4294966784  ;;  %s20_s17 = sadd.s32 1, %s2076_s17   ;;  %s2536_s12 = smov %s2060_s13 }
 0x1ee   : > { %p17_p13 = scmp.ge.s32.totalorder %s20_s17, 4   ;;  %s2537_s13 = smov %s2064_s14 }
 0x1ef   : > { %s2538_s14 = smov %s2299_s19  ;;  %s2539_s15 = smov %s2072_s16 }
 0x1f0   : > { %s2540_s16 = smov %s2542_s7  ;;  %19 = sbr.rel (!%p17_p13) target bundleno = 7 (0x7), region = 94 }
 0x1f7   :  { %1356 = vsyncpa [#allocation4], 1 }
 0x1f8   :  { %1358 = vsyncpa [#allocation4 + $0x1], 1 }
 0x1f9   :  { %1359 = vsyncpa [#allocation7], 1 }
 0x1fa   :  { %1361 = vsyncpa [#allocation7 + $0x1], 1 }
 0x1fb   :  { %1362 = vsyncpa [#allocation5], 1 }
 0x1fc   :  { %1364 = vsyncpa [#allocation5 + $0x1], 1 }

// kernel: fc_discriminator_dap_forward.7
= control target key start
LH: loop header
LB: loop body
LE: loop exit
PB: predicated region body
PF: predicated region fallthrough
CT: control target
= control target key end

     0   :  { %8 = vsyncpa [#allocation4], 0  ;;  %s1433_s0 = inlined_call_operand.hbm [shape: bf16[32,1024], index: 0, kind: input, shape index: {}]   ;;  %s1434_s1 = inlined_call_operand.hbm [shape: bf16[1024,128], index: 1, kind: input, shape index: {}]   ;;  %s1435_s2 = inlined_call_operand.hbm [shape: f32[32,1], index: 2, kind: input, shape index: {}]   ;;  %s1436_s3 = inlined_call_operand.hbm [shape: bf16[32,128], index: 3, kind: output, shape index: {}]  }
   0x1   :  { %9 = vsyncpa [#allocation7], 0 }
   0x2   :  { %10 = vsyncpa [#allocation5], 0  ;;  %s1348_s12 = smov [#allocation6]   ;;  %s1254_s16 = scalar_lea.hbm %s1434_s1, 8192 }
   0x3   :  { %s28_s13 = sshll.u32 %s1348_s12, 4  ;;  %p1255_p0 = scmp.ne.s32.totalorder %s1434_s1, %s1254_s16  ;;  %s29_s13 = int_to_ptr.vmem [resolvable:$true] %s28_s13 }
   0x4   :  { %p1258_p1 = scmp.lt.u32.totalorder %s1254_s16, %s1434_s1 }
   0x6   :  { %p1260_p2 = pnand %p1258_p1, %p1255_p0 }
   0x8   :  { %1263 = shalt.err (!%p1260_p2)
}
   0x9   :  { %s1264_s21 = scalar_lea.vmem %s29_s13, 8192  ;;  %p1269_p4 = scmp.lt.s32.totalorder %s29_s13, %s29_s13 }
   0xa   :  { %p1265_p3 = scmp.ne.s32.totalorder %s29_s13, %s1264_s21  ;;  %p1270_p5 = scmp.lt.s32.totalorder %s1264_s21, %s1264_s21 }
   0xc   :  { %p1271_p6 = por %p1270_p5, %p1269_p4 }
   0xe   :  { %p1272_p7 = pnand %p1271_p6, %p1265_p3 }
  0x10   :  { %1275 = shalt.err (!%p1272_p7)
}
  0x11   :  { %s1349_s22 = smov 64   ;;  %s1350_s23 = smov 4  }
  0x12   :  { %34 = dma.hbm_to_vmem [thread:$0]  %s1434_s1, 8192, %s29_s13, [#allocation7], %s1349_s22, %s1349_s22, %s1350_s23  }
  0x13   :  { %s1351_s26 = smov [#allocation3]   ;;  %s1276_s30 = scalar_lea.hbm %s1433_s0, 2048 }
  0x14   :  { %s16_s27 = sshll.u32 %s1351_s26, 4  ;;  %p1277_p8 = scmp.ne.s32.totalorder %s1433_s0, %s1276_s30  ;;  %s17_s27 = int_to_ptr.vmem [resolvable:$true] %s16_s27 }
  0x15   :  { %p1280_p9 = scmp.lt.u32.totalorder %s1276_s30, %s1433_s0 }
  0x17   :  { %p1282_p10 = pnand %p1280_p9, %p1277_p8 }
  0x19   :  { %1285 = shalt.err (!%p1282_p10)
}
  0x1a   :  { %s1286_s8 = scalar_lea.vmem %s17_s27, 2048  ;;  %p1291_p12 = scmp.lt.s32.totalorder %s17_s27, %s17_s27 }
  0x1b   :  { %p1287_p11 = scmp.ne.s32.totalorder %s17_s27, %s1286_s8  ;;  %p1292_p13 = scmp.lt.s32.totalorder %s1286_s8, %s1286_s8 }
  0x1d   :  { %p1293_p0 = por %p1292_p13, %p1291_p12 }
  0x1f   :  { %p1294_p1 = pnand %p1293_p0, %p1287_p11 }
  0x21   :  { %1297 = shalt.err (!%p1294_p1)
}
  0x22   :  { %s1352_s1 = smov 512   ;;  %s1353_s9 = smov 32  }
  0x23   :  { %22 = dma.hbm_to_vmem [thread:$0]  %s1433_s0, 2048, %s17_s27, [#allocation4], %s1352_s1, %s1352_s1, %s1353_s9  }
  0x24   :  { %s1354_s12 = smov [#allocation8]   ;;  %s1298_s16 = scalar_lea.hbm %s1435_s2, 512 }
  0x25   :  { %s40_s13 = sshll.u32 %s1354_s12, 4  ;;  %p1299_p2 = scmp.ne.s32.totalorder %s1435_s2, %s1298_s16  ;;  %s41_s13 = int_to_ptr.vmem [resolvable:$true] %s40_s13 }
  0x26   :  { %p1302_p3 = scmp.lt.u32.totalorder %s1298_s16, %s1435_s2 }
  0x28   :  { %p1304_p4 = pnand %p1302_p3, %p1299_p2 }
  0x2a   :  { %1307 = shalt.err (!%p1304_p4)
}
  0x2b   :  { %s1308_s21 = scalar_lea.vmem %s41_s13, 512  ;;  %p1313_p6 = scmp.lt.s32.totalorder %s41_s13, %s41_s13 }
  0x2c   :  { %p1309_p5 = scmp.ne.s32.totalorder %s41_s13, %s1308_s21  ;;  %p1314_p7 = scmp.lt.s32.totalorder %s1308_s21, %s1308_s21 }
  0x2e   :  { %p1315_p8 = por %p1314_p7, %p1313_p6 }
  0x30   :  { %p1316_p9 = pnand %p1315_p8, %p1309_p5 }
  0x32   :  { %1319 = shalt.err (!%p1316_p9)
}
  0x33   :  { %s1355_s0 = smov 128   ;;  %s1356_s24 = smov 8  }
  0x34   :  { %46 = dma.hbm_to_vmem [thread:$0]  %s1435_s2, 512, %s41_s13, [#allocation7], %s1355_s0, %s1355_s0, %s1356_s24  }
  0x35   :  { %1342 = dma.done.wait [#allocation4], 2048  }
  0x36   :  { %1343 = vsyncadd [#allocation4], 4294965248 }
  0x37   :  { %1344 = dma.done.wait [#allocation7], 8704  }
  0x38   :  { %1345 = vsyncadd [#allocation7], 4294958592  ;;  %v1357_v0 = vmov 0   ;;  %v1190_v1 = vld [vmem:[#allocation6 + $0x40] sm:$0xff]   ;;  %v1194_v5 = vld [vmem:[#allocation6 + $0x48] sm:$0xff]   ;;  %s1358_s2 = smov [#allocation9]  }
  0x39   :  { %1188 = vset.pattern.permute.xlu0 %v1357_v0  ;;  %1189 = vset.pattern.permute.xlu1 %v1357_v0  ;;  %v1191_v2 = vld [vmem:[#allocation6 + $0xc0] sm:$0xff]   ;;  %v1195_v6 = vld [vmem:[#allocation6 + $0xc8] sm:$0xff]   ;;  %v1198_v9 = vld [vmem:[#allocation6 + $0x50] sm:$0xff]   ;;  %s953_s27 = sshll.u32 %s1358_s2, 4  ;;  %s954_s27 = int_to_ptr.vmem [resolvable:$true] %s953_s27 }
  0x3a   :  { %1065 = vmatprep.subr.bf16.mxu0 %v1190_v1  ;;  %v1192_v3 = vld [vmem:[#allocation6] sm:$0xff]   ;;  %1093 = vmatprep.subr.bf16.mxu1 %v1191_v2  ;;  %v1196_v7 = vld [vmem:[#allocation6 + $0x8] sm:$0xff]   ;;  %v1199_v10 = vld [vmem:[#allocation6 + $0xd0] sm:$0xff]   ;;  %s1320_s28 = scalar_lea.vmem %s954_s27, 256  ;;  %p1325_p11 = scmp.lt.s32.totalorder %s954_s27, %s954_s27 }
  0x3b   :  { %v1193_v4 = vld [vmem:[#allocation6 + $0x80] sm:$0xff]   ;;  %1066 = vmatpush3.bf16.msra.mxu0 %v1192_v3  ;;  %v1197_v8 = vld [vmem:[#allocation6 + $0x88] sm:$0xff]   ;;  %v1200_v11 = vld [vmem:[#allocation6 + $0x10] sm:$0xff]   ;;  %p1321_p10 = scmp.ne.s32.totalorder %s954_s27, %s1320_s28  ;;  %p1326_p12 = scmp.lt.s32.totalorder %s1320_s28, %s1320_s28 }
  0x3c   :  { %1094 = vmatpush3.bf16.msra.mxu1 %v1193_v4  ;;  %1067 = vmatprep.subr.bf16.mxu0 %v1194_v5  ;;  %v1201_v12 = vld [vmem:[#allocation6 + $0x90] sm:$0xff]   ;;  %v1202_v13 = vld [vmem:[#allocation6 + $0x58] sm:$0xff]   ;;  %v1206_v17 = vld [vmem:[#allocation6 + $0x60] sm:$0xff]  }
  0x3d   :  { %1095 = vmatprep.subr.bf16.mxu1 %v1195_v6  ;;  %v1203_v14 = vld [vmem:[#allocation6 + $0xd8] sm:$0xff]   ;;  %v1207_v18 = vld [vmem:[#allocation6 + $0xe0] sm:$0xff]   ;;  %v1210_v21 = vld [vmem:[#allocation6 + $0x68] sm:$0xff]   ;;  %p1327_p13 = por %p1326_p12, %p1325_p11 }
  0x3e   :  { %v1204_v15 = vld [vmem:[#allocation6 + $0x18] sm:$0xff]   ;;  %v1208_v19 = vld [vmem:[#allocation6 + $0x20] sm:$0xff]   ;;  %v1211_v22 = vld [vmem:[#allocation6 + $0xe8] sm:$0xff]  }
  0x3f   :  { %1068 = vmatpush3.bf16.msra.mxu0 %v1196_v7  ;;  %v1205_v16 = vld [vmem:[#allocation6 + $0x98] sm:$0xff]   ;;  %v1209_v20 = vld [vmem:[#allocation6 + $0xa0] sm:$0xff]   ;;  %v1212_v23 = vld [vmem:[#allocation6 + $0x28] sm:$0xff]   ;;  %p1328_p0 = pnand %p1327_p13, %p1321_p10 }
  0x40   :  { %1096 = vmatpush3.bf16.msra.mxu1 %v1197_v8  ;;  %1069 = vmatprep.subr.bf16.mxu0 %v1198_v9  ;;  %v1213_v24 = vld [vmem:[#allocation6 + $0xa8] sm:$0xff]   ;;  %v1214_v25 = vld [vmem:[#allocation6 + $0x70] sm:$0xff]   ;;  %v1218_v29 = vld [vmem:[#allocation6 + $0x78] sm:$0xff]  }
  0x41   :  { %1097 = vmatprep.subr.bf16.mxu1 %v1199_v10  ;;  %v1215_v26 = vld [vmem:[#allocation6 + $0xf0] sm:$0xff]   ;;  %v1219_v30 = vld [vmem:[#allocation6 + $0xf8] sm:$0xff]   ;;  %v65_v33 = vld [vmem:[#allocation3] sm:$0xff] }
  0x42   :  { %v1216_v27 = vld [vmem:[#allocation6 + $0x30] sm:$0xff]   ;;  %v1220_v31 = vld [vmem:[#allocation6 + $0x38] sm:$0xff]   ;;  %v69_v34 = vld [vmem:[#allocation3 + $0x20] sm:$0xff] }
  0x43   :  { %1070 = vmatpush3.bf16.msra.mxu0 %v1200_v11  ;;  %v1217_v28 = vld [vmem:[#allocation6 + $0xb0] sm:$0xff]   ;;  %v1221_v32 = vld [vmem:[#allocation6 + $0xb8] sm:$0xff]   ;;  %v66_v35 = vld [vmem:[#allocation3 + $0x8] sm:$0xff]  ;;  %v966_v36 = vcombine.low %v65_v33, %v69_v34  ;;  %v967_v37 = vcombine.high %v65_v33, %v69_v34 }
  0x44   :  { %1098 = vmatpush3.bf16.msra.mxu1 %v1201_v12  ;;  %1071 = vmatprep.subr.bf16.mxu0 %v1202_v13  ;;  %v70_v38 = vld [vmem:[#allocation3 + $0x28] sm:$0xff]  ;;  %v1222_v41 = vld [vmem:[#allocation6 + $0x140] sm:$0xff]   ;;  %v1230_v49 = vld [vmem:[#allocation6 + $0x150] sm:$0xff]  }
  0x45   :  { %1099 = vmatprep.subr.bf16.mxu1 %v1203_v14  ;;  %v968_v39 = vcombine.low %v66_v35, %v70_v38  ;;  %v969_v40 = vcombine.high %v66_v35, %v70_v38  ;;  %709 = vmatprep.mubr.bf16.mxu0 %v967_v37  ;;  %v1223_v42 = vld [vmem:[#allocation6 + $0x1c0] sm:$0xff]   ;;  %v1226_v45 = vld [vmem:[#allocation6 + $0x148] sm:$0xff]   ;;  %v1231_v50 = vld [vmem:[#allocation6 + $0x1d0] sm:$0xff]  }
  0x46   :  { %v1224_v43 = vld [vmem:[#allocation6 + $0x100] sm:$0xff]   ;;  %v1227_v46 = vld [vmem:[#allocation6 + $0x1c8] sm:$0xff]   ;;  %v1232_v51 = vld [vmem:[#allocation6 + $0x110] sm:$0xff]  }
  0x47   :  { %1072 = vmatpush3.bf16.msra.mxu0 %v1204_v15  ;;  %758 = vmatprep.mubr.bf16.mxu1 %v969_v40  ;;  %v1225_v44 = vld [vmem:[#allocation6 + $0x180] sm:$0xff]   ;;  %v1228_v47 = vld [vmem:[#allocation6 + $0x108] sm:$0xff]   ;;  %v1233_v52 = vld [vmem:[#allocation6 + $0x190] sm:$0xff]  }
  0x48   :  { %1100 = vmatpush3.bf16.msra.mxu1 %v1205_v16  ;;  %1073 = vmatprep.subr.bf16.mxu0 %v1206_v17  ;;  %v1229_v48 = vld [vmem:[#allocation6 + $0x188] sm:$0xff]   ;;  %v1234_v53 = vld [vmem:[#allocation6 + $0x158] sm:$0xff]   ;;  %v1238_v57 = vld [vmem:[#allocation6 + $0x160] sm:$0xff]  }
  0x49   :  { %1101 = vmatprep.subr.bf16.mxu1 %v1207_v18  ;;  %v1235_v54 = vld [vmem:[#allocation6 + $0x1d8] sm:$0xff]   ;;  %v1239_v58 = vld [vmem:[#allocation6 + $0x1e0] sm:$0xff]   ;;  %v74_v0 = vld [vmem:[#allocation3 + $0x48] sm:$0xff] }
  0x4a   :  { %v1236_v55 = vld [vmem:[#allocation6 + $0x118] sm:$0xff]   ;;  %v1240_v59 = vld [vmem:[#allocation6 + $0x120] sm:$0xff]   ;;  %v78_v1 = vld [vmem:[#allocation3 + $0x68] sm:$0xff] }
  0x4b   :  { %1074 = vmatpush3.bf16.msra.mxu0 %v1208_v19  ;;  %v1237_v56 = vld [vmem:[#allocation6 + $0x198] sm:$0xff]   ;;  %v1241_v60 = vld [vmem:[#allocation6 + $0x1a0] sm:$0xff]   ;;  %v977_v3 = vcombine.high %v74_v0, %v78_v1  ;;  %v1242_v4 = vld [vmem:[#allocation6 + $0x168] sm:$0xff]   ;;  %v976_v5 = vcombine.low %v74_v0, %v78_v1 }
  0x4c   :  { %1102 = vmatpush3.bf16.msra.mxu1 %v1209_v20  ;;  %1075 = vmatprep.subr.bf16.mxu0 %v1210_v21  ;;  %v73_v61 = vld [vmem:[#allocation3 + $0x40] sm:$0xff]  ;;  %v1243_v6 = vld [vmem:[#allocation6 + $0x1e8] sm:$0xff]   ;;  %v1246_v9 = vld [vmem:[#allocation6 + $0x170] sm:$0xff]  }
  0x4d   :  { %1103 = vmatprep.subr.bf16.mxu1 %v1211_v22  ;;  %v77_v62 = vld [vmem:[#allocation3 + $0x60] sm:$0xff]  ;;  %v1244_v7 = vld [vmem:[#allocation6 + $0x128] sm:$0xff]   ;;  %v1247_v10 = vld [vmem:[#allocation6 + $0x1f0] sm:$0xff]  }
  0x4e   :  { %v975_v63 = vcombine.high %v73_v61, %v77_v62  ;;  %v974_v2 = vcombine.low %v73_v61, %v77_v62  ;;  %v1245_v8 = vld [vmem:[#allocation6 + $0x1a8] sm:$0xff]   ;;  %v1248_v11 = vld [vmem:[#allocation6 + $0x130] sm:$0xff]   ;;  %v1250_v13 = vld [vmem:[#allocation6 + $0x178] sm:$0xff]  }
  0x4f   :  { %1076 = vmatpush3.bf16.msra.mxu0 %v1212_v23  ;;  %v1249_v12 = vld [vmem:[#allocation6 + $0x1b0] sm:$0xff]   ;;  %v1251_v14 = vld [vmem:[#allocation6 + $0x1f8] sm:$0xff]   ;;  %v889_v33 = vld [vmem:[#allocation8 + $0x8] sm:$0xff] }
  0x50   :  { %1104 = vmatpush3.bf16.msra.mxu1 %v1213_v24  ;;  %1077 = vmatprep.subr.bf16.mxu0 %v1214_v25  ;;  %v1252_v15 = vld [vmem:[#allocation6 + $0x138] sm:$0xff]   ;;  %v67_v17 = vld [vmem:[#allocation3 + $0x10] sm:$0xff] }
  0x51   :  { %1105 = vmatprep.subr.bf16.mxu1 %v1215_v26  ;;  %v1253_v16 = vld [vmem:[#allocation6 + $0x1b8] sm:$0xff]   ;;  %v71_v18 = vld [vmem:[#allocation3 + $0x30] sm:$0xff] }
  0x52   :  { %v68_v19 = vld [vmem:[#allocation3 + $0x18] sm:$0xff]  ;;  %v970_v21 = vcombine.low %v67_v17, %v71_v18  ;;  %v971_v22 = vcombine.high %v67_v17, %v71_v18  ;;  %v75_v25 = vld [vmem:[#allocation3 + $0x50] sm:$0xff] }
  0x53   :  { %1078 = vmatpush3.bf16.msra.mxu0 %v1216_v27  ;;  %v72_v20 = vld [vmem:[#allocation3 + $0x38] sm:$0xff]  ;;  %v79_v26 = vld [vmem:[#allocation3 + $0x70] sm:$0xff] }
  0x54   :  { %1106 = vmatpush3.bf16.msra.mxu1 %v1217_v28  ;;  %1079 = vmatprep.subr.bf16.mxu0 %v1218_v29  ;;  %v972_v23 = vcombine.low %v68_v19, %v72_v20  ;;  %v973_v24 = vcombine.high %v68_v19, %v72_v20  ;;  %v76_v27 = vld [vmem:[#allocation3 + $0x58] sm:$0xff]  ;;  %v979_v28 = vcombine.high %v75_v25, %v79_v26 }
  0x55   :  { %1107 = vmatprep.subr.bf16.mxu1 %v1219_v30  ;;  %v80_v29 = vld [vmem:[#allocation3 + $0x78] sm:$0xff]  ;;  %v978_v35 = vcombine.low %v75_v25, %v79_v26 }
  0x56   :  { %v981_v30 = vcombine.high %v76_v27, %v80_v29  ;;  %v891_v34 = vld [vmem:[#allocation8 + $0x18] sm:$0xff] }
  0x57   :  { %1080 = vmatpush3.bf16.msra.mxu0 %v1220_v31  ;;  %v888_v31 = vld [vmem:[#allocation8] sm:$0xff] }
  0x58   :  { %1108 = vmatpush3.bf16.msra.mxu1 %v1221_v32  ;;  %1121 = vmatprep.subr.bf16.mxu0 %v1222_v41  ;;  %v890_v32 = vld [vmem:[#allocation8 + $0x10] sm:$0xff] }
  0x59   :  { %1149 = vmatprep.subr.bf16.mxu1 %v1223_v42  ;;  %894 = vperm.xlu0 %1188, %v888_v31  }
  0x5a   :  { %710 = vmatmul.mubr.bf16.vlgmr.msra.gmra.mrb[0].mxu0 %v966_v36  ;;  %904 = vperm.xlu1 %1189, %v890_v32   ;;  %v980_v36 = vcombine.low %v76_v27, %v80_v29 }
  0x5b   :  { %759 = vmatmul.mubr.bf16.vlgmr.msra.gmra.mrb[0].mxu1 %v968_v39  ;;  %1122 = vmatpush3.bf16.msra.mxu0 %v1224_v43 }
  0x5c   :  { %1150 = vmatpush3.bf16.msra.mxu1 %v1225_v44  ;;  %1123 = vmatprep.subr.bf16.mxu0 %v1226_v45 }
  0x5d   :  { %1151 = vmatprep.subr.bf16.mxu1 %v1227_v46  ;;  %717 = vmatprep.mubr.bf16.mxu0 %v975_v63 }
  0x5e   :  { %766 = vmatprep.mubr.bf16.mxu1 %v977_v3  ;;  %899 = vperm.xlu0 %1188, %v889_v33  }
  0x5f   :  { %1124 = vmatpush3.bf16.msra.mxu0 %v1228_v47  ;;  %909 = vperm.xlu1 %1189, %v891_v34  }
  0x60   :  { %1152 = vmatpush3.bf16.msra.mxu1 %v1229_v48  ;;  %1125 = vmatprep.subr.bf16.mxu0 %v1230_v49 }
  0x61   :  { %1153 = vmatprep.subr.bf16.mxu1 %v1231_v50 }
  0x62   :  { %718 = vmatmul.mubr.bf16.gmra.mrb[4].mxu0 %v974_v2 }
  0x63   :  { %1126 = vmatpush3.bf16.msra.mxu0 %v1232_v51  ;;  %767 = vmatmul.mubr.bf16.gmra.mrb[4].mxu1 %v976_v5 }
  0x64   :  { %1154 = vmatpush3.bf16.msra.mxu1 %v1233_v52  ;;  %1127 = vmatprep.subr.bf16.mxu0 %v1234_v53 }
  0x65   :  { %1155 = vmatprep.subr.bf16.mxu1 %v1235_v54  ;;  %807 = vmatprep.mubr.bf16.mxu0 %v971_v22 }
  0x66   :  { %856 = vmatprep.mubr.bf16.mxu1 %v973_v24 }
  0x67   :  { %1128 = vmatpush3.bf16.msra.mxu0 %v1236_v55 }
  0x68   :  { %1156 = vmatpush3.bf16.msra.mxu1 %v1237_v56  ;;  %1129 = vmatprep.subr.bf16.mxu0 %v1238_v57 }
  0x69   :  { %1157 = vmatprep.subr.bf16.mxu1 %v1239_v58 }
  0x6b   :  { %1130 = vmatpush3.bf16.msra.mxu0 %v1240_v59 }
  0x6c   :  { %1158 = vmatpush3.bf16.msra.mxu1 %v1241_v60  ;;  %1131 = vmatprep.subr.bf16.mxu0 %v1242_v4 }
  0x6d   :  { %1159 = vmatprep.subr.bf16.mxu1 %v1243_v6 }
  0x6f   :  { %1132 = vmatpush3.bf16.msra.mxu0 %v1244_v7 }
  0x70   :  { %1160 = vmatpush3.bf16.msra.mxu1 %v1245_v8  ;;  %1133 = vmatprep.subr.bf16.mxu0 %v1246_v9 }
  0x71   :  { %1161 = vmatprep.subr.bf16.mxu1 %v1247_v10 }
  0x73   :  { %1134 = vmatpush3.bf16.msra.mxu0 %v1248_v11 }
  0x74   :  { %1162 = vmatpush3.bf16.msra.mxu1 %v1249_v12  ;;  %1135 = vmatprep.subr.bf16.mxu0 %v1250_v13 }
  0x75   :  { %1163 = vmatprep.subr.bf16.mxu1 %v1251_v14 }
  0x77   :  { %1136 = vmatpush3.bf16.msra.mxu0 %v1252_v15 }
  0x78   :  { %1164 = vmatpush3.bf16.msra.mxu1 %v1253_v16 }
  0x7a   :  { %808 = vmatmul.mubr.bf16.vlgmr.msra.gmra.mrb[8].mxu0 %v970_v21 }
  0x7b   :  { %857 = vmatmul.mubr.bf16.vlgmr.msra.gmra.mrb[8].mxu1 %v972_v23  ;;  %815 = vmatprep.mubr.bf16.mxu0 %v979_v28 }
  0x7c   :  { %864 = vmatprep.mubr.bf16.mxu1 %v981_v30 }
  0x82   :  { %816 = vmatmul.mubr.bf16.gmra.mrb[12].mxu0 %v978_v35 }
  0x83   :  { %865 = vmatmul.mubr.bf16.gmra.mrb[12].mxu1 %v980_v36 }
  0xd8   :  { %v895_v1 = vpop.permute.xlu0 %894 }
  0xd9   :  { %v905_v32 = vpop.permute.xlu1 %904 }
  0xdd   :  { %v900_v17 = vpop.permute.xlu0 %899 }
 0x12d   :  { %v1081_v37 = vpop.f32.mrb[0].mxu0 }
 0x12e   :  { %v1109_v38 = vpop.f32.mrb[0].mxu1  ;;  %v1082_v39 = vpop.f32.mrb[1].mxu0 }
 0x12f   :  { %v1083_v40 = vadd.f32 %v1082_v39, %v1081_v37  ;;  %v1110_v41 = vpop.f32.mrb[1].mxu1  ;;  %v1084_v42 = vpop.f32.mrb[2].mxu0 }
 0x130   :  { %v1111_v43 = vadd.f32 %v1110_v41, %v1109_v38  ;;  %v1112_v44 = vpop.f32.mrb[2].mxu1  ;;  %v1085_v45 = vpop.f32.mrb[3].mxu0 }
 0x131   :  { %v1086_v46 = vadd.f32 %v1085_v45, %v1084_v42  ;;  %v1113_v47 = vpop.f32.mrb[3].mxu1 }
 0x132   :  { %v761_v48 = vadd.f32 %v1111_v43, %v1083_v40  ;;  %v1114_v49 = vadd.f32 %v1113_v47, %v1112_v44  ;;  %v910_v44 = vpop.permute.xlu1 %909 }
 0x134   :  { %v764_v50 = vadd.f32 %v1114_v49, %v1086_v46 }
 0x135   :  { %v1087_v51 = vpop.f32.mrb[4].mxu0 }
 0x136   :  { %v1115_v52 = vpop.f32.mrb[4].mxu1  ;;  %v1088_v53 = vpop.f32.mrb[5].mxu0 }
 0x137   :  { %v1089_v54 = vadd.f32 %v1088_v53, %v1087_v51  ;;  %v1116_v55 = vpop.f32.mrb[5].mxu1  ;;  %v1090_v56 = vpop.f32.mrb[6].mxu0 }
 0x138   :  { %v1117_v57 = vadd.f32 %v1116_v55, %v1115_v52  ;;  %v1118_v58 = vpop.f32.mrb[6].mxu1  ;;  %v1091_v59 = vpop.f32.mrb[7].mxu0 }
 0x139   :  { %v1092_v60 = vadd.f32 %v1091_v59, %v1090_v56  ;;  %v1119_v61 = vpop.f32.mrb[7].mxu1 }
 0x13a   :  { %v769_v62 = vadd.f32 %v1117_v57, %v1089_v54  ;;  %v1120_v63 = vadd.f32 %v1119_v61, %v1118_v58 }
 0x13c   :  { %v772_v0 = vadd.f32 %v1120_v63, %v1092_v60 }
 0x14d   :  { %v1137_v2 = vpop.f32.mrb[8].mxu0 }
 0x14e   :  { %v1165_v3 = vpop.f32.mrb[8].mxu1  ;;  %v1138_v4 = vpop.f32.mrb[9].mxu0 }
 0x14f   :  { %v1166_v5 = vpop.f32.mrb[9].mxu1  ;;  %v1139_v6 = vadd.f32 %v1138_v4, %v1137_v2  ;;  %v1140_v8 = vpop.f32.mrb[10].mxu0 }
 0x150   :  { %v1167_v7 = vadd.f32 %v1166_v5, %v1165_v3  ;;  %v1168_v9 = vpop.f32.mrb[10].mxu1  ;;  %v1141_v10 = vpop.f32.mrb[11].mxu0 }
 0x151   :  { %v1169_v11 = vpop.f32.mrb[11].mxu1  ;;  %v810_v12 = vadd.f32 %v1139_v6, %v761_v48  ;;  %v1142_v13 = vadd.f32 %v1141_v10, %v1140_v8 }
 0x152   :  { %v1170_v14 = vadd.f32 %v1169_v11, %v1168_v9 }
 0x153   :  { %v813_v15 = vadd.f32 %v1142_v13, %v764_v50  ;;  %v859_v16 = vadd.f32 %v1167_v7, %v810_v12 }
 0x155   :  { %v912_v18 = vadd.f32 %v895_v1, %v859_v16  ;;  %v1143_v19 = vpop.f32.mrb[12].mxu0  ;;  %v862_v21 = vadd.f32 %v1170_v14, %v813_v15 }
 0x156   :  { %v1171_v20 = vpop.f32.mrb[12].mxu1  ;;  %v1144_v22 = vpop.f32.mrb[13].mxu0 }
 0x157   :  { %v1172_v23 = vpop.f32.mrb[13].mxu1  ;;  %v920_v24 = vmul.f32 0.2, %v912_v18  ;;  %v913_v25 = vadd.f32 %v900_v17, %v862_v21  ;;  %v1145_v26 = vadd.f32 %v1144_v22, %v1143_v19  ;;  %v1146_v27 = vpop.f32.mrb[14].mxu0  ;;  %vm916_vm0 = vcmp.gt.f32.partialorder %v912_v18, 0.0 }
 0x158   :  { %v1174_v28 = vpop.f32.mrb[14].mxu1  ;;  %v1173_v29 = vadd.f32 %v1172_v23, %v1171_v20  ;;  %v1147_v30 = vpop.f32.mrb[15].mxu0 }
 0x159   :  { %v1175_v31 = vpop.f32.mrb[15].mxu1  ;;  %vm917_vm1 = vcmp.gt.f32.partialorder %v913_v25, 0.0  ;;  %v921_v33 = vmul.f32 0.2, %v913_v25  ;;  %v818_v34 = vadd.f32 %v1145_v26, %v769_v62  ;;  %v1148_v35 = vadd.f32 %v1147_v30, %v1146_v27 }
 0x15a   :  { %v1176_v36 = vadd.f32 %v1175_v31, %v1174_v28  ;;  %v924_v37 = vsel %vm916_vm0, %v912_v18, %v920_v24 }
 0x15b   :  { %v925_v38 = vsel %vm917_vm1, %v913_v25, %v921_v33  ;;  %v867_v39 = vadd.f32 %v1173_v29, %v818_v34  ;;  %v821_v40 = vadd.f32 %v1148_v35, %v772_v0 }
 0x15c   :  { %v1057_v41 = vpack.c.bf16 %v925_v38, %v924_v37 }
 0x15d   :  { %v914_v42 = vadd.f32 %v905_v32, %v867_v39  ;;  %v870_v43 = vadd.f32 %v1176_v36, %v821_v40 }
 0x15e   :  { %1058 = vst [vmem:[#allocation9] sm:$0xff] %v1057_v41  }
 0x15f   :  { %v922_v45 = vmul.f32 0.2, %v914_v42  ;;  %v915_v46 = vadd.f32 %v910_v44, %v870_v43  ;;  %vm918_vm2 = vcmp.gt.f32.partialorder %v914_v42, 0.0 }
 0x161   :  { %vm919_vm3 = vcmp.gt.f32.partialorder %v915_v46, 0.0  ;;  %v923_v47 = vmul.f32 0.2, %v915_v46  ;;  %v926_v49 = vsel %vm918_vm2, %v914_v42, %v922_v45 }
 0x163   :  { %v927_v48 = vsel %vm919_vm3, %v915_v46, %v923_v47 }
 0x164   :  { %v1062_v50 = vpack.c.bf16 %v927_v48, %v926_v49 }
 0x166   :  { %1064 = vst [vmem:[#allocation9 + $0x8] sm:$0xff] %v1062_v50  }
 0x167   :  { %1331 = shalt.err (!%p1328_p0)
}
 0x168   :  { %s1332_s4 = scalar_lea.hbm %s1436_s3, 256 }
 0x169   :  { %p1333_p1 = scmp.ne.s32.totalorder %s1436_s3, %s1332_s4  ;;  %p1336_p2 = scmp.lt.u32.totalorder %s1332_s4, %s1436_s3 }
 0x16b   :  { %p1338_p3 = pnand %p1336_p2, %p1333_p1 }
 0x16d   :  { %1341 = shalt.err (!%p1338_p3)
}
 0x16e   :  { %959 = dma.vmem_to_hbm [thread:$0]  %s954_s27, 256, %s1436_s3, [#allocation5], %s1349_s22, %s1349_s22, %s1350_s23  }
 0x16f   :  { %1346 = dma.done.wait [#allocation5], 256  }
 0x170   :  { %1347 = vsyncadd [#allocation5], 4294967040 }
 0x171   :  { %963 = vsyncpa [#allocation4], 1 }
 0x172   :  { %964 = vsyncpa [#allocation7], 1 }
 0x173   :  { %965 = vsyncpa [#allocation5], 1 }

// kernel: fc_discriminator_dap_forward.8
= control target key start
LH: loop header
LB: loop body
LE: loop exit
PB: predicated region body
PF: predicated region fallthrough
CT: control target
= control target key end

     0   :  { %s2163_s0 = inlined_call_operand.hbm [shape: bf16[1,2048], index: 0, kind: input, shape index: {}]   ;;  %s2164_s1 = inlined_call_operand.hbm [shape: bf16[2048,128], index: 1, kind: input, shape index: {}]   ;;  %s2165_s2 = inlined_call_operand.<no memory space> [shape: f32[1,1], index: 2, kind: input, shape index: {}]   ;;  %s2166_s3 = inlined_call_operand.hbm [shape: f32[1,128], index: 3, kind: output, shape index: {}]  }
   0x1   :  { %v8_v0 = vstv %s2165_s2 }
   0x2   :  { %9 = vst [vmem:[#allocation3] sm:$0x1] %v8_v0 }
   0x3   :  { %10 = vsyncpa [#allocation5], 0 }
   0x4   :  { %11 = vsyncpa [#allocation8], 0 }
   0x5   :  { %12 = vsyncpa [#allocation6], 0  ;;  %s2061_s14 = smov [#allocation4]   ;;  %s2062_s16 = smov [#allocation7]  }
   0x6   :  { %s19_s15 = sshll.u32 %s2061_s14, 4  ;;  %s28_s17 = sshll.u32 %s2062_s16, 4  ;;  %s20_s15 = int_to_ptr.vmem [resolvable:$true] %s19_s15  ;;  %s2092_s17 = int_to_ptr.vmem [resolvable:$true] %s28_s17 }
   0x7   :  { %s1989_s20 = scalar_lea.hbm %s2163_s0, 256 }
   0x8   :  { %p1990_p0 = scmp.ne.s32.totalorder %s2163_s0, %s1989_s20  ;;  %p1993_p1 = scmp.lt.u32.totalorder %s1989_s20, %s2163_s0 }
   0xa   :  { %p1995_p2 = pnand %p1993_p1, %p1990_p0 }
   0xc   :  { %1998 = shalt.err (!%p1995_p2)
}
   0xd   :  { %s1999_s24 = scalar_lea.vmem %s20_s15, 256  ;;  %p2004_p4 = scmp.lt.s32.totalorder %s20_s15, %s20_s15 }
   0xe   :  { %p2000_p3 = scmp.ne.s32.totalorder %s20_s15, %s1999_s24  ;;  %p2005_p5 = scmp.lt.s32.totalorder %s1999_s24, %s1999_s24 }
  0x10   :  { %p2006_p6 = por %p2005_p5, %p2004_p4 }
  0x12   :  { %p2007_p7 = pnand %p2006_p6, %p2000_p3 }
  0x14   :  { %2010 = shalt.err (!%p2007_p7)
}
  0x15   :  { %22 = dma.hbm_to_vmem [thread:$0]  %s2163_s0, 256, %s20_s15, [#allocation5]  }
  0x16   :  { %s2011_s29 = scalar_lea.hbm %s2164_s1, 16384 }
  0x17   :  { %p2012_p8 = scmp.ne.s32.totalorder %s2164_s1, %s2011_s29  ;;  %p2015_p9 = scmp.lt.u32.totalorder %s2011_s29, %s2164_s1 }
  0x19   :  { %p2017_p10 = pnand %p2015_p9, %p2012_p8 }
  0x1b   :  { %2020 = shalt.err (!%p2017_p10)
}
  0x1c   :  { %s2021_s7 = scalar_lea.vmem %s2092_s17, 16384  ;;  %p2026_p12 = scmp.lt.s32.totalorder %s2092_s17, %s2092_s17 }
  0x1d   :  { %p2022_p11 = scmp.ne.s32.totalorder %s2092_s17, %s2021_s7  ;;  %p2027_p13 = scmp.lt.s32.totalorder %s2021_s7, %s2021_s7 }
  0x1f   :  { %p2028_p0 = por %p2027_p13, %p2026_p12 }
  0x21   :  { %p2029_p1 = pnand %p2028_p0, %p2022_p11 }
  0x23   :  { %2032 = shalt.err (!%p2029_p1)
}
  0x24   :  { %s2063_s0 = smov 64   ;;  %s2064_s8 = smov 4  }
  0x25   :  { %34 = dma.hbm_to_vmem [thread:$0]  %s2164_s1, 16384, %s2092_s17, [#allocation8], %s2063_s0, %s2063_s0, %s2064_s8  }
  0x26   :  { %2055 = dma.done.wait [#allocation5], 256  }
  0x27   :  { %2056 = vsyncadd [#allocation5], 4294967040 }
  0x28   :  { %2057 = dma.done.wait [#allocation8], 16384  }
  0x29   :  { %2058 = vsyncadd [#allocation8], 4294950912  ;;  %v1859_v1 = vld [vmem:[#allocation7 + $0x40] sm:$0xff]   ;;  %v1863_v5 = vld [vmem:[#allocation7 + $0x48] sm:$0xff]   ;;  %v2065_v13 = vmov 0   ;;  %v314_v26 = vlaneseq  ;;  %s2068_s1 = smov [#allocation9]  }
  0x2a   :  { %v1860_v2 = vld [vmem:[#allocation7 + $0xc0] sm:$0xff]   ;;  %1674 = vmatprep.subr.bf16.mxu0 %v1859_v1  ;;  %v1864_v6 = vld [vmem:[#allocation7 + $0xc8] sm:$0xff]   ;;  %v1867_v9 = vld [vmem:[#allocation7 + $0x50] sm:$0xff]   ;;  %1858 = vset.pattern.permute.xlu0 %v2065_v13  ;;  %v2066_v24 = vmov 1966171168   ;;  %s1536_s11 = sshll.u32 %s2068_s1, 4  ;;  %s1537_s11 = int_to_ptr.vmem [resolvable:$true] %s1536_s11 }
  0x2b   :  { %v1861_v3 = vld [vmem:[#allocation7] sm:$0xff]   ;;  %1696 = vmatprep.subr.bf16.mxu1 %v1860_v2  ;;  %v1865_v7 = vld [vmem:[#allocation7 + $0x8] sm:$0xff]   ;;  %v1868_v10 = vld [vmem:[#allocation7 + $0xd0] sm:$0xff]   ;;  %v312_v25 = vunpack.c.l.s4 %v2066_v24  ;;  %v2123_v32 = vshrl.u32 %v314_v26, 7  ;;  %s2033_s12 = scalar_lea.vmem %s1537_s11, 16  ;;  %s2037_s13 = scalar_lea.vmem %s1537_s11, 32 }
  0x2c   :  { %v1862_v4 = vld [vmem:[#allocation7 + $0x80] sm:$0xff]   ;;  %1675 = vmatpush3.bf16.msra.mxu0 %v1861_v3  ;;  %v1866_v8 = vld [vmem:[#allocation7 + $0x88] sm:$0xff]   ;;  %v1869_v11 = vld [vmem:[#allocation7 + $0x10] sm:$0xff]   ;;  %p2034_p2 = scmp.ne.s32.totalorder %s1537_s11, %s2033_s12  ;;  %p2038_p3 = scmp.lt.s32.totalorder %s1537_s11, %s1537_s11 }
  0x2d   :  { %1697 = vmatpush3.bf16.msra.mxu1 %v1862_v4  ;;  %1676 = vmatprep.subr.bf16.mxu0 %v1863_v5  ;;  %v1870_v12 = vld [vmem:[#allocation7 + $0x90] sm:$0xff]   ;;  %v1871_v14 = vld [vmem:[#allocation7 + $0x58] sm:$0xff]   ;;  %v1875_v18 = vld [vmem:[#allocation7 + $0x60] sm:$0xff]   ;;  %v313_v31 = vunpack.c.0.s8 %v312_v25  ;;  %p2039_p4 = scmp.lt.s32.totalorder %s2037_s13, %s2033_s12 }
  0x2e   :  { %1698 = vmatprep.subr.bf16.mxu1 %v1864_v6  ;;  %v1872_v15 = vld [vmem:[#allocation7 + $0xd8] sm:$0xff]   ;;  %v1876_v19 = vld [vmem:[#allocation7 + $0xe0] sm:$0xff]   ;;  %v1879_v22 = vld [vmem:[#allocation7 + $0x68] sm:$0xff]  }
  0x2f   :  { %v1873_v16 = vld [vmem:[#allocation7 + $0x18] sm:$0xff]   ;;  %v1877_v20 = vld [vmem:[#allocation7 + $0x20] sm:$0xff]   ;;  %v1880_v23 = vld [vmem:[#allocation7 + $0xe8] sm:$0xff]   ;;  %v2126_v37 = vsub.s32 %v313_v31, %v2123_v32  ;;  %p2040_p5 = por %p2039_p4, %p2038_p3 }
  0x30   :  { %1677 = vmatpush3.bf16.msra.mxu0 %v1865_v7  ;;  %v1874_v17 = vld [vmem:[#allocation7 + $0x98] sm:$0xff]   ;;  %v1878_v21 = vld [vmem:[#allocation7 + $0xa0] sm:$0xff]   ;;  %v1881_v27 = vld [vmem:[#allocation7 + $0x28] sm:$0xff]  }
  0x31   :  { %1699 = vmatpush3.bf16.msra.mxu1 %v1866_v8  ;;  %1678 = vmatprep.subr.bf16.mxu0 %v1867_v9  ;;  %v1882_v28 = vld [vmem:[#allocation7 + $0xa8] sm:$0xff]   ;;  %v1883_v29 = vld [vmem:[#allocation7 + $0x70] sm:$0xff]   ;;  %v1887_v35 = vld [vmem:[#allocation7 + $0x78] sm:$0xff]   ;;  %p2041_p6 = pnand %p2040_p5, %p2034_p2 }
  0x32   :  { %1700 = vmatprep.subr.bf16.mxu1 %v1868_v10  ;;  %v1884_v30 = vld [vmem:[#allocation7 + $0xf0] sm:$0xff]   ;;  %v1888_v36 = vld [vmem:[#allocation7 + $0xf8] sm:$0xff]   ;;  %v1892_v43 = vld [vmem:[#allocation7 + $0x140] sm:$0xff]  }
  0x33   :  { %v1885_v33 = vld [vmem:[#allocation7 + $0x30] sm:$0xff]   ;;  %v1889_v38 = vld [vmem:[#allocation7 + $0x38] sm:$0xff]   ;;  %v1893_v44 = vld [vmem:[#allocation7 + $0x1c0] sm:$0xff]  }
  0x34   :  { %1679 = vmatpush3.bf16.msra.mxu0 %v1869_v11  ;;  %v1886_v34 = vld [vmem:[#allocation7 + $0xb0] sm:$0xff]   ;;  %v1890_v39 = vld [vmem:[#allocation7 + $0xb8] sm:$0xff]   ;;  %v1894_v49 = vld [vmem:[#allocation7 + $0x100] sm:$0xff]  }
  0x35   :  { %1701 = vmatpush3.bf16.msra.mxu1 %v1870_v12  ;;  %1680 = vmatprep.subr.bf16.mxu0 %v1871_v14  ;;  %v49_v40 = vld [vmem:[#allocation4] sm:$0xff]  ;;  %v1896_v52 = vld [vmem:[#allocation7 + $0x148] sm:$0xff]   ;;  %v1895_v54 = vld [vmem:[#allocation7 + $0x180] sm:$0xff]  }
  0x36   :  { %1702 = vmatprep.subr.bf16.mxu1 %v1872_v15  ;;  %v310_v41 = vcombine.high %v49_v40, %v49_v40  ;;  %v317_v42 = vrot.slane %v49_v40, %v2126_v37  ;;  %v1897_v56 = vld [vmem:[#allocation7 + $0x1c8] sm:$0xff]   ;;  %v1900_v59 = vld [vmem:[#allocation7 + $0x150] sm:$0xff]   ;;  %v1904_v63 = vld [vmem:[#allocation7 + $0x158] sm:$0xff]  }
  0x37   :  { %v1898_v57 = vld [vmem:[#allocation7 + $0x108] sm:$0xff]   ;;  %v1901_v61 = vld [vmem:[#allocation7 + $0x1d0] sm:$0xff]   ;;  %v1905_v1 = vld [vmem:[#allocation7 + $0x1d8] sm:$0xff]  }
  0x38   :  { %1681 = vmatpush3.bf16.msra.mxu0 %v1873_v16  ;;  %v325_v45 = vcombine.high %v317_v42, %v317_v42  ;;  %v333_v46 = vrot.slane %v317_v42, %v2126_v37  ;;  %v2131_v47 = vrot.slane %v310_v41, %v2126_v37  ;;  %v1899_v60 = vld [vmem:[#allocation7 + $0x188] sm:$0xff]   ;;  %v1902_v62 = vld [vmem:[#allocation7 + $0x110] sm:$0xff]   ;;  %v1906_v2 = vld [vmem:[#allocation7 + $0x118] sm:$0xff]  }
  0x39   :  { %1703 = vmatpush3.bf16.msra.mxu1 %v1874_v17  ;;  %1682 = vmatprep.subr.bf16.mxu0 %v1875_v18  ;;  %v1903_v0 = vld [vmem:[#allocation7 + $0x190] sm:$0xff]   ;;  %v1908_v3 = vld [vmem:[#allocation7 + $0x160] sm:$0xff]   ;;  %v1907_v4 = vld [vmem:[#allocation7 + $0x198] sm:$0xff]  }
  0x3a   :  { %1704 = vmatprep.subr.bf16.mxu1 %v1876_v19  ;;  %v347_v48 = vrot.slane %v325_v45, %v2126_v37  ;;  %v326_v50 = vcombine.high %v2131_v47, %v2131_v47  ;;  %v355_v51 = vcombine.high %v333_v46, %v333_v46  ;;  %v1909_v5 = vld [vmem:[#allocation7 + $0x1e0] sm:$0xff]   ;;  %v1912_v7 = vld [vmem:[#allocation7 + $0x168] sm:$0xff]   ;;  %v1916_v11 = vld [vmem:[#allocation7 + $0x170] sm:$0xff]   ;;  %v340_v19 = vrot.slane %v2131_v47, %v2126_v37 }
  0x3b   :  { %v1910_v6 = vld [vmem:[#allocation7 + $0x120] sm:$0xff]   ;;  %v1913_v9 = vld [vmem:[#allocation7 + $0x1e8] sm:$0xff]   ;;  %v1917_v13 = vld [vmem:[#allocation7 + $0x1f0] sm:$0xff]  }
  0x3c   :  { %1683 = vmatpush3.bf16.msra.mxu0 %v1877_v20  ;;  %1224 = vmatprep.mubr.bf16.mxu0 %v347_v48  ;;  %v357_v53 = vcombine.high %v347_v48, %v347_v48  ;;  %v354_v55 = vrot.slane %v326_v50, %v2126_v37  ;;  %v1911_v8 = vld [vmem:[#allocation7 + $0x1a0] sm:$0xff]   ;;  %v1914_v10 = vld [vmem:[#allocation7 + $0x128] sm:$0xff]   ;;  %v1918_v14 = vld [vmem:[#allocation7 + $0x130] sm:$0xff]   ;;  %v356_v24 = vcombine.high %v340_v19, %v340_v19 }
  0x3d   :  { %1705 = vmatpush3.bf16.msra.mxu1 %v1878_v21  ;;  %1684 = vmatprep.subr.bf16.mxu0 %v1879_v22  ;;  %v1915_v12 = vld [vmem:[#allocation7 + $0x1a8] sm:$0xff]   ;;  %v1920_v15 = vld [vmem:[#allocation7 + $0x178] sm:$0xff]   ;;  %v1919_v16 = vld [vmem:[#allocation7 + $0x1b0] sm:$0xff]  }
  0x3e   :  { %1706 = vmatprep.subr.bf16.mxu1 %v1880_v23  ;;  %1264 = vmatprep.mubr.bf16.mxu1 %v357_v53  ;;  %v358_v58 = vcombine.high %v354_v55, %v354_v55  ;;  %v1921_v17 = vld [vmem:[#allocation7 + $0x1f8] sm:$0xff]   ;;  %v1924_v20 = vld [vmem:[#allocation7 + $0x240] sm:$0xff]   ;;  %v1928_v25 = vld [vmem:[#allocation7 + $0x248] sm:$0xff]  }
  0x3f   :  { %v1922_v18 = vld [vmem:[#allocation7 + $0x138] sm:$0xff]   ;;  %v1925_v22 = vld [vmem:[#allocation7 + $0x2c0] sm:$0xff]   ;;  %v1933_v31 = vld [vmem:[#allocation7 + $0x2d0] sm:$0xff]  }
  0x40   :  { %1685 = vmatpush3.bf16.msra.mxu0 %v1881_v27  ;;  %v1923_v21 = vld [vmem:[#allocation7 + $0x1b8] sm:$0xff]   ;;  %v1926_v23 = vld [vmem:[#allocation7 + $0x200] sm:$0xff]   ;;  %v1929_v27 = vld [vmem:[#allocation7 + $0x2c8] sm:$0xff]  }
  0x41   :  { %1707 = vmatpush3.bf16.msra.mxu1 %v1882_v28  ;;  %1686 = vmatprep.subr.bf16.mxu0 %v1883_v29  ;;  %v1927_v26 = vld [vmem:[#allocation7 + $0x280] sm:$0xff]   ;;  %v1930_v28 = vld [vmem:[#allocation7 + $0x208] sm:$0xff]   ;;  %v1932_v29 = vld [vmem:[#allocation7 + $0x250] sm:$0xff]  }
  0x42   :  { %1708 = vmatprep.subr.bf16.mxu1 %v1884_v30  ;;  %v1931_v30 = vld [vmem:[#allocation7 + $0x288] sm:$0xff]   ;;  %v1939_v40 = vld [vmem:[#allocation7 + $0x298] sm:$0xff]   ;;  %v1941_v41 = vld [vmem:[#allocation7 + $0x2e0] sm:$0xff]  }
  0x43   :  { %v1942_v42 = vld [vmem:[#allocation7 + $0x220] sm:$0xff]   ;;  %v1945_v45 = vld [vmem:[#allocation7 + $0x2e8] sm:$0xff]   ;;  %v1948_v47 = vld [vmem:[#allocation7 + $0x270] sm:$0xff]  }
  0x44   :  { %1687 = vmatpush3.bf16.msra.mxu0 %v1885_v33  ;;  %v1934_v33 = vld [vmem:[#allocation7 + $0x210] sm:$0xff]   ;;  %v1947_v48 = vld [vmem:[#allocation7 + $0x2a8] sm:$0xff]   ;;  %v1953_v53 = vld [vmem:[#allocation7 + $0x2f8] sm:$0xff]  }
  0x45   :  { %1709 = vmatpush3.bf16.msra.mxu1 %v1886_v34  ;;  %1688 = vmatprep.subr.bf16.mxu0 %v1887_v35  ;;  %v1936_v34 = vld [vmem:[#allocation7 + $0x258] sm:$0xff]   ;;  %v1935_v35 = vld [vmem:[#allocation7 + $0x290] sm:$0xff]  }
  0x46   :  { %1710 = vmatprep.subr.bf16.mxu1 %v1888_v36  ;;  %v1937_v36 = vld [vmem:[#allocation7 + $0x2d8] sm:$0xff]   ;;  %v1950_v50 = vld [vmem:[#allocation7 + $0x230] sm:$0xff]  }
  0x48   :  { %1689 = vmatpush3.bf16.msra.mxu0 %v1889_v38  ;;  %v1938_v38 = vld [vmem:[#allocation7 + $0x218] sm:$0xff]  }
  0x49   :  { %1711 = vmatpush3.bf16.msra.mxu1 %v1890_v39  ;;  %1718 = vmatprep.subr.bf16.mxu0 %v1892_v43  ;;  %v1940_v39 = vld [vmem:[#allocation7 + $0x260] sm:$0xff]   ;;  %v1944_v43 = vld [vmem:[#allocation7 + $0x268] sm:$0xff]  }
  0x4a   :  { %1740 = vmatprep.subr.bf16.mxu1 %v1893_v44  ;;  %v1943_v44 = vld [vmem:[#allocation7 + $0x2a0] sm:$0xff]  }
  0x4b   :  { %1225 = vmatmul.mubr.bf16.vlgmr.msra.gmra.mrb[0].mxu0 %v333_v46  ;;  %v1946_v46 = vld [vmem:[#allocation7 + $0x228] sm:$0xff]  }
  0x4c   :  { %1719 = vmatpush3.bf16.msra.mxu0 %v1894_v49  ;;  %1265 = vmatmul.mubr.bf16.vlgmr.msra.gmra.mrb[0].mxu1 %v355_v51  ;;  %v1949_v49 = vld [vmem:[#allocation7 + $0x2f0] sm:$0xff]   ;;  %v1952_v51 = vld [vmem:[#allocation7 + $0x278] sm:$0xff]  }
  0x4d   :  { %1720 = vmatprep.subr.bf16.mxu0 %v1896_v52  ;;  %1741 = vmatpush3.bf16.msra.mxu1 %v1895_v54  ;;  %v1951_v52 = vld [vmem:[#allocation7 + $0x2b0] sm:$0xff]   ;;  %v50_v54 = vld [vmem:[#allocation4 + $0x8] sm:$0xff] }
  0x4e   :  { %1304 = vmatprep.mubr.bf16.mxu0 %v354_v55  ;;  %1742 = vmatprep.subr.bf16.mxu1 %v1897_v56  ;;  %v1954_v55 = vld [vmem:[#allocation7 + $0x238] sm:$0xff]   ;;  %v366_v56 = vrot.slane %v50_v54, %v2126_v37 }
  0x4f   :  { %1344 = vmatprep.mubr.bf16.mxu1 %v358_v58  ;;  %v1956_v58 = vld [vmem:[#allocation7 + $0x340] sm:$0xff]  }
  0x50   :  { %1721 = vmatpush3.bf16.msra.mxu0 %v1898_v57  ;;  %v359_v57 = vcombine.high %v50_v54, %v50_v54 }
  0x51   :  { %1722 = vmatprep.subr.bf16.mxu0 %v1900_v59  ;;  %1743 = vmatpush3.bf16.msra.mxu1 %v1899_v60  ;;  %v1955_v59 = vld [vmem:[#allocation7 + $0x2b8] sm:$0xff]   ;;  %v374_v60 = vcombine.high %v366_v56, %v366_v56 }
  0x52   :  { %1744 = vmatprep.subr.bf16.mxu1 %v1901_v61  ;;  %v382_v61 = vrot.slane %v366_v56, %v2126_v37 }
  0x54   :  { %1723 = vmatpush3.bf16.msra.mxu0 %v1902_v62  ;;  %v2142_v62 = vrot.slane %v359_v57, %v2126_v37 }
  0x55   :  { %1724 = vmatprep.subr.bf16.mxu0 %v1904_v63  ;;  %1745 = vmatpush3.bf16.msra.mxu1 %v1903_v0  ;;  %v1957_v63 = vld [vmem:[#allocation7 + $0x3c0] sm:$0xff]   ;;  %v396_v0 = vrot.slane %v374_v60, %v2126_v37 }
  0x56   :  { %1746 = vmatprep.subr.bf16.mxu1 %v1905_v1  ;;  %v1958_v1 = vld [vmem:[#allocation7 + $0x300] sm:$0xff]  }
  0x58   :  { %1725 = vmatpush3.bf16.msra.mxu0 %v1906_v2  ;;  %v375_v2 = vcombine.high %v2142_v62, %v2142_v62 }
  0x59   :  { %1726 = vmatprep.subr.bf16.mxu0 %v1908_v3  ;;  %1747 = vmatpush3.bf16.msra.mxu1 %v1907_v4  ;;  %v404_v3 = vcombine.high %v382_v61, %v382_v61  ;;  %v1960_v4 = vld [vmem:[#allocation7 + $0x348] sm:$0xff]  }
  0x5a   :  { %1748 = vmatprep.subr.bf16.mxu1 %v1909_v5  ;;  %v406_v5 = vcombine.high %v396_v0, %v396_v0 }
  0x5c   :  { %1727 = vmatpush3.bf16.msra.mxu0 %v1910_v6  ;;  %v1959_v6 = vld [vmem:[#allocation7 + $0x380] sm:$0xff]  }
  0x5d   :  { %1728 = vmatprep.subr.bf16.mxu0 %v1912_v7  ;;  %1749 = vmatpush3.bf16.msra.mxu1 %v1911_v8  ;;  %v403_v7 = vrot.slane %v375_v2, %v2126_v37  ;;  %v1961_v8 = vld [vmem:[#allocation7 + $0x3c8] sm:$0xff]  }
  0x5e   :  { %1750 = vmatprep.subr.bf16.mxu1 %v1913_v9  ;;  %v1962_v9 = vld [vmem:[#allocation7 + $0x308] sm:$0xff]  }
  0x60   :  { %1729 = vmatpush3.bf16.msra.mxu0 %v1914_v10  ;;  %v407_v10 = vcombine.high %v403_v7, %v403_v7 }
  0x61   :  { %1730 = vmatprep.subr.bf16.mxu0 %v1916_v11  ;;  %1751 = vmatpush3.bf16.msra.mxu1 %v1915_v12  ;;  %v1964_v11 = vld [vmem:[#allocation7 + $0x350] sm:$0xff]   ;;  %v1963_v12 = vld [vmem:[#allocation7 + $0x388] sm:$0xff]  }
  0x62   :  { %1752 = vmatprep.subr.bf16.mxu1 %v1917_v13  ;;  %v1965_v13 = vld [vmem:[#allocation7 + $0x3d0] sm:$0xff]  }
  0x64   :  { %1731 = vmatpush3.bf16.msra.mxu0 %v1918_v14  ;;  %v1966_v14 = vld [vmem:[#allocation7 + $0x310] sm:$0xff]  }
  0x65   :  { %1732 = vmatprep.subr.bf16.mxu0 %v1920_v15  ;;  %1753 = vmatpush3.bf16.msra.mxu1 %v1919_v16  ;;  %v1968_v15 = vld [vmem:[#allocation7 + $0x358] sm:$0xff]   ;;  %v1967_v16 = vld [vmem:[#allocation7 + $0x390] sm:$0xff]  }
  0x66   :  { %1754 = vmatprep.subr.bf16.mxu1 %v1921_v17  ;;  %v1969_v17 = vld [vmem:[#allocation7 + $0x3d8] sm:$0xff]  }
  0x68   :  { %1733 = vmatpush3.bf16.msra.mxu0 %v1922_v18  ;;  %v1970_v18 = vld [vmem:[#allocation7 + $0x318] sm:$0xff]  }
  0x69   :  { %1762 = vmatprep.subr.bf16.mxu0 %v1924_v20  ;;  %1755 = vmatpush3.bf16.msra.mxu1 %v1923_v21  ;;  %v1971_v20 = vld [vmem:[#allocation7 + $0x398] sm:$0xff]   ;;  %v1973_v21 = vld [vmem:[#allocation7 + $0x3e0] sm:$0xff]  }
  0x6a   :  { %1784 = vmatprep.subr.bf16.mxu1 %v1925_v22  ;;  %v1974_v22 = vld [vmem:[#allocation7 + $0x320] sm:$0xff]  }
  0x6b   :  { %1305 = vmatmul.mubr.bf16.vlgmr.msra.gmra.mrb[4].mxu0 %v340_v19  ;;  %v1972_v19 = vld [vmem:[#allocation7 + $0x360] sm:$0xff]  }
  0x6c   :  { %1763 = vmatpush3.bf16.msra.mxu0 %v1926_v23  ;;  %1345 = vmatmul.mubr.bf16.vlgmr.msra.gmra.mrb[4].mxu1 %v356_v24  ;;  %v1976_v23 = vld [vmem:[#allocation7 + $0x368] sm:$0xff]   ;;  %v1975_v24 = vld [vmem:[#allocation7 + $0x3a0] sm:$0xff]  }
  0x6d   :  { %1764 = vmatprep.subr.bf16.mxu0 %v1928_v25  ;;  %1785 = vmatpush3.bf16.msra.mxu1 %v1927_v26  ;;  %v1977_v25 = vld [vmem:[#allocation7 + $0x3e8] sm:$0xff]  }
  0x6e   :  { %1786 = vmatprep.subr.bf16.mxu1 %v1929_v27  ;;  %1384 = vmatprep.mubr.bf16.mxu0 %v396_v0  ;;  %v1978_v26 = vld [vmem:[#allocation7 + $0x328] sm:$0xff]   ;;  %v1980_v27 = vld [vmem:[#allocation7 + $0x370] sm:$0xff]  }
  0x6f   :  { %1424 = vmatprep.mubr.bf16.mxu1 %v406_v5 }
  0x70   :  { %1765 = vmatpush3.bf16.msra.mxu0 %v1930_v28  ;;  %v1979_v28 = vld [vmem:[#allocation7 + $0x3a8] sm:$0xff]  }
  0x71   :  { %1766 = vmatprep.subr.bf16.mxu0 %v1932_v29  ;;  %1787 = vmatpush3.bf16.msra.mxu1 %v1931_v30  ;;  %v1981_v29 = vld [vmem:[#allocation7 + $0x3f0] sm:$0xff]  }
  0x72   :  { %1788 = vmatprep.subr.bf16.mxu1 %v1933_v31  ;;  %v1982_v30 = vld [vmem:[#allocation7 + $0x330] sm:$0xff]   ;;  %v1984_v31 = vld [vmem:[#allocation7 + $0x378] sm:$0xff]  }
  0x74   :  { %1767 = vmatpush3.bf16.msra.mxu0 %v1934_v33  ;;  %v1983_v33 = vld [vmem:[#allocation7 + $0x3b0] sm:$0xff]  }
  0x75   :  { %1768 = vmatprep.subr.bf16.mxu0 %v1936_v34  ;;  %1789 = vmatpush3.bf16.msra.mxu1 %v1935_v35  ;;  %v1985_v34 = vld [vmem:[#allocation7 + $0x3f8] sm:$0xff]   ;;  %v1518_v35 = vld [vmem:[#allocation3] sm:$0x1] }
  0x76   :  { %1790 = vmatprep.subr.bf16.mxu1 %v1937_v36  ;;  %v1986_v36 = vld [vmem:[#allocation7 + $0x338] sm:$0xff]   ;;  %1521 = vperm.xlu0 %1858, %v1518_v35  }
  0x78   :  { %1769 = vmatpush3.bf16.msra.mxu0 %v1938_v38  ;;  %v389_v38 = vrot.slane %v2142_v62, %v2126_v37 }
  0x79   :  { %1770 = vmatprep.subr.bf16.mxu0 %v1940_v39  ;;  %1791 = vmatpush3.bf16.msra.mxu1 %v1939_v40  ;;  %v1987_v39 = vld [vmem:[#allocation7 + $0x3b8] sm:$0xff]  }
  0x7a   :  { %1792 = vmatprep.subr.bf16.mxu1 %v1941_v41  ;;  %v405_v40 = vcombine.high %v389_v38, %v389_v38  ;;  %v2067_v41 = vmov 0.0  }
  0x7b   :  { %48 = vst [vmem:[#allocation2] sm:$0x1] %v2067_v41 }
  0x7c   :  { %1771 = vmatpush3.bf16.msra.mxu0 %v1942_v42 }
  0x7d   :  { %1772 = vmatprep.subr.bf16.mxu0 %v1944_v43  ;;  %1793 = vmatpush3.bf16.msra.mxu1 %v1943_v44 }
  0x7e   :  { %1794 = vmatprep.subr.bf16.mxu1 %v1945_v45 }
  0x80   :  { %1773 = vmatpush3.bf16.msra.mxu0 %v1946_v46 }
  0x81   :  { %1774 = vmatprep.subr.bf16.mxu0 %v1948_v47  ;;  %1795 = vmatpush3.bf16.msra.mxu1 %v1947_v48 }
  0x82   :  { %1796 = vmatprep.subr.bf16.mxu1 %v1949_v49 }
  0x84   :  { %1775 = vmatpush3.bf16.msra.mxu0 %v1950_v50 }
  0x85   :  { %1776 = vmatprep.subr.bf16.mxu0 %v1952_v51  ;;  %1797 = vmatpush3.bf16.msra.mxu1 %v1951_v52 }
  0x86   :  { %1798 = vmatprep.subr.bf16.mxu1 %v1953_v53 }
  0x88   :  { %1777 = vmatpush3.bf16.msra.mxu0 %v1954_v55 }
  0x89   :  { %1806 = vmatprep.subr.bf16.mxu0 %v1956_v58  ;;  %1799 = vmatpush3.bf16.msra.mxu1 %v1955_v59 }
  0x8a   :  { %1828 = vmatprep.subr.bf16.mxu1 %v1957_v63 }
  0x8b   :  { %1385 = vmatmul.mubr.bf16.vlgmr.msra.gmra.mrb[8].mxu0 %v382_v61 }
  0x8c   :  { %1807 = vmatpush3.bf16.msra.mxu0 %v1958_v1  ;;  %1425 = vmatmul.mubr.bf16.vlgmr.msra.gmra.mrb[8].mxu1 %v404_v3 }
  0x8d   :  { %1808 = vmatprep.subr.bf16.mxu0 %v1960_v4  ;;  %1829 = vmatpush3.bf16.msra.mxu1 %v1959_v6 }
  0x8e   :  { %1464 = vmatprep.mubr.bf16.mxu0 %v403_v7  ;;  %1830 = vmatprep.subr.bf16.mxu1 %v1961_v8 }
  0x8f   :  { %1504 = vmatprep.mubr.bf16.mxu1 %v407_v10 }
  0x90   :  { %1809 = vmatpush3.bf16.msra.mxu0 %v1962_v9 }
  0x91   :  { %1810 = vmatprep.subr.bf16.mxu0 %v1964_v11  ;;  %1831 = vmatpush3.bf16.msra.mxu1 %v1963_v12 }
  0x92   :  { %1832 = vmatprep.subr.bf16.mxu1 %v1965_v13 }
  0x94   :  { %1811 = vmatpush3.bf16.msra.mxu0 %v1966_v14 }
  0x95   :  { %1812 = vmatprep.subr.bf16.mxu0 %v1968_v15  ;;  %1833 = vmatpush3.bf16.msra.mxu1 %v1967_v16 }
  0x96   :  { %1834 = vmatprep.subr.bf16.mxu1 %v1969_v17 }
  0x98   :  { %1813 = vmatpush3.bf16.msra.mxu0 %v1970_v18 }
  0x99   :  { %1814 = vmatprep.subr.bf16.mxu0 %v1972_v19  ;;  %1835 = vmatpush3.bf16.msra.mxu1 %v1971_v20 }
  0x9a   :  { %1836 = vmatprep.subr.bf16.mxu1 %v1973_v21 }
  0x9c   :  { %1815 = vmatpush3.bf16.msra.mxu0 %v1974_v22  ;;  %v51_v22 = vld [vmem:[#allocation2] sm:$0x1] }
  0x9d   :  { %1816 = vmatprep.subr.bf16.mxu0 %v1976_v23  ;;  %1837 = vmatpush3.bf16.msra.mxu1 %v1975_v24 }
  0x9e   :  { %1838 = vmatprep.subr.bf16.mxu1 %v1977_v25 }
  0xa0   :  { %1817 = vmatpush3.bf16.msra.mxu0 %v1978_v26  ;;  %v1526_v26 = vsub.s32 0, %v2123_v32 }
  0xa1   :  { %1818 = vmatprep.subr.bf16.mxu0 %v1980_v27  ;;  %1839 = vmatpush3.bf16.msra.mxu1 %v1979_v28 }
  0xa2   :  { %1840 = vmatprep.subr.bf16.mxu1 %v1981_v29 }
  0xa4   :  { %1819 = vmatpush3.bf16.msra.mxu0 %v1982_v30 }
  0xa5   :  { %1820 = vmatprep.subr.bf16.mxu0 %v1984_v31  ;;  %1841 = vmatpush3.bf16.msra.mxu1 %v1983_v33 }
  0xa6   :  { %1842 = vmatprep.subr.bf16.mxu1 %v1985_v34 }
  0xa8   :  { %1821 = vmatpush3.bf16.msra.mxu0 %v1986_v36 }
  0xa9   :  { %1843 = vmatpush3.bf16.msra.mxu1 %v1987_v39 }
  0xab   :  { %1465 = vmatmul.mubr.bf16.vlgmr.msra.gmra.mrb[12].mxu0 %v389_v38 }
  0xac   :  { %1505 = vmatmul.mubr.bf16.vlgmr.msra.gmra.mrb[12].mxu1 %v405_v40 }
  0xf5   :  { %v1522_v27 = vpop.permute.xlu0 %1521 }
  0xf6   :  { %v1527_v28 = vrot.slane %v1522_v27, %v1526_v26 }
 0x11e   :  { %v1690_v42 = vpop.f32.mrb[0].mxu0 }
 0x11f   :  { %v1691_v43 = vpop.f32.mrb[1].mxu0  ;;  %v1712_v44 = vpop.f32.mrb[0].mxu1 }
 0x120   :  { %v1692_v45 = vadd.f32 %v1691_v43, %v1690_v42  ;;  %v1693_v46 = vpop.f32.mrb[2].mxu0  ;;  %v1713_v47 = vpop.f32.mrb[1].mxu1 }
 0x121   :  { %v1694_v48 = vpop.f32.mrb[3].mxu0  ;;  %v1714_v49 = vadd.f32 %v1713_v47, %v1712_v44  ;;  %v1715_v50 = vpop.f32.mrb[2].mxu1 }
 0x122   :  { %v1716_v37 = vpop.f32.mrb[3].mxu1 }
 0x123   :  { %v1267_v51 = vadd.f32 %v1714_v49, %v1692_v45 }
 0x13e   :  { %v1734_v52 = vpop.f32.mrb[4].mxu0 }
 0x13f   :  { %v1735_v53 = vpop.f32.mrb[5].mxu0  ;;  %v1756_v54 = vpop.f32.mrb[4].mxu1 }
 0x140   :  { %v1736_v55 = vadd.f32 %v1735_v53, %v1734_v52  ;;  %v1737_v56 = vpop.f32.mrb[6].mxu0  ;;  %v1757_v57 = vpop.f32.mrb[5].mxu1 }
 0x141   :  { %v1738_v58 = vpop.f32.mrb[7].mxu0  ;;  %v1758_v60 = vadd.f32 %v1757_v57, %v1756_v54  ;;  %v1759_v61 = vpop.f32.mrb[6].mxu1 }
 0x142   :  { %v1307_v59 = vadd.f32 %v1736_v55, %v1267_v51  ;;  %v1760_v62 = vpop.f32.mrb[7].mxu1 }
 0x144   :  { %v1347_v63 = vadd.f32 %v1758_v60, %v1307_v59 }
 0x15e   :  { %v1778_v0 = vpop.f32.mrb[8].mxu0 }
 0x15f   :  { %v1779_v1 = vpop.f32.mrb[9].mxu0  ;;  %v1800_v2 = vpop.f32.mrb[8].mxu1 }
 0x160   :  { %v1780_v3 = vadd.f32 %v1779_v1, %v1778_v0  ;;  %v1781_v4 = vpop.f32.mrb[10].mxu0  ;;  %v1801_v5 = vpop.f32.mrb[9].mxu1 }
 0x161   :  { %v1782_v6 = vpop.f32.mrb[11].mxu0  ;;  %v1802_v8 = vadd.f32 %v1801_v5, %v1800_v2  ;;  %v1803_v9 = vpop.f32.mrb[10].mxu1 }
 0x162   :  { %v1387_v7 = vadd.f32 %v1780_v3, %v1347_v63  ;;  %v1804_v10 = vpop.f32.mrb[11].mxu1 }
 0x164   :  { %v1427_v11 = vadd.f32 %v1802_v8, %v1387_v7 }
 0x17e   :  { %v1822_v12 = vpop.f32.mrb[12].mxu0 }
 0x17f   :  { %v1823_v13 = vpop.f32.mrb[13].mxu0  ;;  %v1844_v14 = vpop.f32.mrb[12].mxu1 }
 0x180   :  { %v1824_v15 = vadd.f32 %v1823_v13, %v1822_v12  ;;  %v1825_v16 = vpop.f32.mrb[14].mxu0  ;;  %v1845_v17 = vpop.f32.mrb[13].mxu1 }
 0x181   :  { %v1826_v18 = vpop.f32.mrb[15].mxu0  ;;  %v1846_v20 = vadd.f32 %v1845_v17, %v1844_v14  ;;  %v1847_v21 = vpop.f32.mrb[14].mxu1 }
 0x182   :  { %v1467_v19 = vadd.f32 %v1824_v15, %v1427_v11  ;;  %v1848_v23 = vpop.f32.mrb[15].mxu1 }
 0x184   :  { %v1507_v24 = vadd.f32 %v1846_v20, %v1467_v19 }
 0x186   :  { %v1512_v25 = vadd.f32 %v1507_v24, %v51_v22 }
 0x188   :  { %1513 = vst [vmem:[#allocation2] sm:$0x1] %v1512_v25 }
 0x18f   :  { %v1517_v29 = vld [vmem:[#allocation2] sm:$0x1] }
 0x190   :  { %v1528_v30 = vadd.f32 %v1527_v28, %v1517_v29 }
 0x192   :  { %1529 = vst [vmem:[#allocation9] sm:$0x1] %v1528_v30 }
 0x193   :  { %2044 = shalt.err (!%p2041_p6)
}
 0x194   :  { %s2045_s16 = scalar_lea.hbm %s2166_s3, 16 }
 0x195   :  { %p2046_p7 = scmp.ne.s32.totalorder %s2166_s3, %s2045_s16  ;;  %p2049_p8 = scmp.lt.u32.totalorder %s2045_s16, %s2166_s3 }
 0x197   :  { %p2051_p9 = pnand %p2049_p8, %p2046_p7 }
 0x199   :  { %2054 = shalt.err (!%p2051_p9)
}
 0x19a   :  { %1539 = dma.vmem_to_hbm [thread:$0]  %s1537_s11, 16, %s2166_s3, [#allocation6]  }
 0x19b   :  { %2059 = dma.done.wait [#allocation6], 16  }
 0x19c   :  { %2060 = vsyncadd [#allocation6], 4294967280 }
 0x19d   :  { %1543 = vsyncpa [#allocation5], 1 }
 0x19e   :  { %1544 = vsyncpa [#allocation8], 1 }
 0x19f   :  { %1545 = vsyncpa [#allocation6], 1 }

// kernel: fc_discriminator_dap_forward.9
= control target key start
LH: loop header
LB: loop body
LE: loop exit
PB: predicated region body
PF: predicated region fallthrough
CT: control target
= control target key end

     0   :  { %8 = vsyncpa [#allocation3], 0  ;;  %s4929_s0 = inlined_call_operand.hbm [shape: f32[2,4,2], index: 0, kind: input, shape index: {}]   ;;  %s4930_s1 = inlined_call_operand.hbm [shape: f32[2,32], index: 1, kind: input, shape index: {}]   ;;  %s4931_s2 = inlined_call_operand.hbm [shape: f32[1024,4], index: 2, kind: input, shape index: {}]   ;;  %s4932_s3 = inlined_call_operand.hbm [shape: f32[2,1024,32], index: 3, kind: output, shape index: {}]  }
   0x1   :  { %10 = vsyncpa [#allocation3 + $0x1], 0 }
   0x2   :  { %11 = vsyncpa [#allocation6], 0 }
   0x3   :  { %12 = vsyncpa [#allocation4], 0 }
   0x4   :  { %14 = vsyncpa [#allocation4 + $0x1], 0  ;;  %s3972_s12 = smov 0   ;;  %s3974_s13 = smov 0  }
   0x5   :  { %s3976_s14 = smov 0   ;;  %s3978_s15 = smov 0  }
   0x6   :  { %s3980_s16 = smov 0   ;;  %s3982_s17 = smov 0  }
   0x7 LB: > { %s2557_s18 = sadd.s32 4294967295, %s3940_s17   ;;  %s2558_s19 = sadd.s32 4294967294, %s3940_s17   ;;  %s3940_s17 = sphi %s3982_s17, %s20_s17   ;;  %s3936_s16 = sphi %s3980_s16, %s4975_s16   ;;  %s3932_s15 = sphi %s3978_s15, %s4974_s15   ;;  %s3928_s14 = sphi %s3976_s14, %s4973_s14   ;;  %s3924_s13 = sphi %s3974_s13, %s4972_s13   ;;  %s3920_s12 = sphi %s3972_s12, %s4971_s12  }
   0x8   : > { %p52_p0 = scmp.ne.s32.totalorder %s3924_s13, %s3920_s12  ;;  %p4006_p1 = scmp.eq.s32.totalorder %s2557_s18, 0 }
   0x9   : > { %p4010_p2 = scmp.eq.s32.totalorder %s2557_s18, 1  ;;  %p131_p3 = scmp.eq.s32.totalorder %s2558_s19, 1 }
   0xa   : > { %s4937_s20 = scalar_select %p4006_p1, 1, 0 }
   0xb   : > { %s4938_s21 = scalar_select %p4010_p2, 1, 0 }
   0xc   : > { %p4016_p4 = por %p4006_p1, %p52_p0  ;;  %p2559_p5 = scmp.ge.s32.totalorder %s3940_s17, 1 }
   0xd   : > { %p4021_p6 = por %p131_p3, %p52_p0  ;;  %p138_p7 = scmp.lt.s32.totalorder %s3940_s17, 3 }
   0xe   : > { %s4939_s22 = scalar_select %p4016_p4, 1, 0 }
   0xf   : > { %s4940_s23 = scalar_select %p4021_p6, 1, 0 }
  0x10   : > { %p4026_p8 = pnand %p2559_p5, %p138_p7  ;;  %s3942_s25 = smov [#allocation5]  }
  0x11   : > { %s151_s26 = sshll.u32 %s3942_s25, 4  ;;  %s3943_s27 = smov [#allocation7]   ;;  %s152_s26 = int_to_ptr.vmem [resolvable:$true] %s151_s26 }
  0x12   : > { %s4941_s24 = scalar_select %p4026_p8, 1, 0 }
  0x13   : > { %p3179_p10 = pneg %p4026_p8  ;;  %s164_s28 = sshll.u32 %s3943_s27, 4  ;;  %s4039_s28 = int_to_ptr.vmem [resolvable:$true] %s164_s28 }
  0x14   : > { %s3768_s5 = scalar_lea.hbm %s4930_s1, 32 }
  0x15   : > { %p4035_p11 = pnand %p3179_p10, %p4006_p1  ;;  %p3769_p12 = scmp.ne.s32.totalorder %s4930_s1, %s3768_s5 }
  0x16   : > { %p3775_p5 = scmp.lt.u32.totalorder %s3768_s5, %s4930_s1 }
  0x17   : > { %p3770_p13 = pneg %p4035_p11 }
  0x19   : > { %p3771_p0 = pnand %p3770_p13, %p3769_p12 }
  0x1b   : > { %p3772_p3 = pneg %p3771_p0 }
  0x1d   : > { %p3777_p7 = pnand %p3775_p5, %p3772_p3 }
  0x1f   : > { %3780 = shalt.err (!%p3777_p7)
}
  0x20   : > { %s3781_s10 = scalar_lea.vmem %s152_s26, 32  ;;  %p3789_p1 = scmp.lt.s32.totalorder %s152_s26, %s152_s26 }
  0x21   : > { %p3782_p10 = scmp.ne.s32.totalorder %s152_s26, %s3781_s10  ;;  %p3790_p4 = scmp.lt.s32.totalorder %s3781_s10, %s3781_s10 }
  0x23   : > { %p3784_p9 = pnand %p3782_p10, %p3770_p13  ;;  %p3791_p8 = por %p3790_p4, %p3789_p1 }
  0x25   : > { %p3785_p6 = pneg %p3784_p9 }
  0x27   : > { %p3792_p2 = pnand %p3791_p8, %p3785_p6 }
  0x29   : > { %3795 = shalt.err (!%p3792_p2)
}
  0x2a   : > { %3182 = dma.hbm_to_vmem [thread:$0]  (!%p4035_p11), %s4930_s1, 32, %s152_s26, [#allocation6]  }
  0x2b   : > { %s3796_s27 = scalar_lea.hbm %s4931_s2, 16384 }
  0x2c   : > { %p3797_p9 = scmp.ne.s32.totalorder %s4931_s2, %s3796_s27  ;;  %p3803_p2 = scmp.lt.u32.totalorder %s3796_s27, %s4931_s2 }
  0x2e   : > { %p3799_p1 = pnand %p3797_p9, %p3770_p13 }
  0x30   : > { %p3800_p4 = pneg %p3799_p1 }
  0x32   : > { %p3805_p6 = pnand %p3803_p2, %p3800_p4 }
  0x34   : > { %3808 = shalt.err (!%p3805_p6)
}
  0x35   : > { %s3809_s26 = scalar_lea.vmem %s4039_s28, 16384  ;;  %p3817_p3 = scmp.lt.s32.totalorder %s4039_s28, %s4039_s28 }
  0x36   : > { %p3810_p8 = scmp.ne.s32.totalorder %s4039_s28, %s3809_s26  ;;  %p3818_p5 = scmp.lt.s32.totalorder %s3809_s26, %s3809_s26 }
  0x38   : > { %p3812_p12 = pnand %p3810_p8, %p3770_p13  ;;  %p3819_p7 = por %p3818_p5, %p3817_p3 }
  0x3a   : > { %p3813_p0 = pneg %p3812_p12 }
  0x3c   : > { %p3820_p10 = pnand %p3819_p7, %p3813_p0 }
  0x3e   : > { %3823 = shalt.err (!%p3820_p10)
}
  0x3f   : > { %s3944_s7 = smov 128   ;;  %s3945_s8 = smov 8  }
  0x40   : > { %3185 = dma.hbm_to_vmem [thread:$0]  (!%p4035_p11), %s4931_s2, 16384, %s4039_s28, [#allocation6], %s3944_s7, %s3944_s7, %s3945_s8  }
  0x41   : > { %s32_s11 = sadd.s32 1, %s3936_s16  ;;  %s39_s18 = sadd.s32 1, %s3928_s14 }
  0x42   : > { %p34_p13 = scmp.ge.s32.totalorder %s32_s11, 2  ;;  %p46_p9 = scmp.ne.s32.totalorder %s3928_s14, %s3924_s13 }
  0x43   : > { %p47_p1 = scmp.eq.s32.totalorder %s3940_s17, 0  ;;  %p3196_p4 = scmp.lt.s32.totalorder %s3940_s17, 2 }
  0x44   : > { %s4977_s11 = smov (%p34_p13, %s32_s11), 0  ;;  %p4943_p6 = scmp.ne.s32.totalorder %s4938_s21, 0 }
  0x45   : > { %p48_p2 = por %p47_p1, %p46_p9  ;;  %s36_s29 = ssub.s32 %s3936_s16, %s4977_s11 }
  0x46   : > { %p4098_p8 = por %p4943_p6, %p46_p9  ;;  %s178_s25 = sand.u32 1, %s3928_s14  }
  0x47   : > { %p37_p12 = scmp.eq.s32.totalorder %s36_s29, 0  ;;  %s2563_s28 = sshll.u32 %s178_s25, 2 }
  0x48   : > { %s2564_s27 = sshll.u32 %s3936_s16, 6  ;;  %s182_s21 = scalar_lea.vmem [#allocation2], %s2563_s28 }
  0x49   : > { %s4107_s30 = scalar_select %p37_p12, %s3928_s14, %s39_s18  }
  0x4a   : > { %s4112_s6 = scalar_lea.hbm %s4929_s0, %s2564_s27  ;;  %s189_s26 = sshll.u32 %s182_s21, 4  ;;  %s4120_s26 = int_to_ptr.vmem [resolvable:$true] %s189_s26 }
  0x4b   : > { %p4116_p11 = pnand %p3196_p4, %p48_p2  ;;  %s179_s8 = scalar_lea.sflag [#allocation3], %s178_s25 }
  0x4c   : > { %s3824_s9 = scalar_lea.hbm %s4112_s6, 64  ;;  %s3829_s29 = scalar_lea.hbm %s4929_s0, 128 }
  0x4d   : > { %p3825_p0 = scmp.ne.s32.totalorder %s4112_s6, %s3824_s9  ;;  %p3826_p3 = pneg %p4116_p11 }
  0x4e   : > { %p3830_p10 = scmp.lt.u32.totalorder %s4112_s6, %s4929_s0  ;;  %p3831_p13 = scmp.lt.u32.totalorder %s3829_s29, %s3824_s9 }
  0x4f   : > { %p3827_p5 = pnand %p3826_p3, %p3825_p0  ;;  %p3833_p1 = scmp.lt.u32.totalorder %s3824_s9, %s4112_s6 }
  0x50   : > { %p3832_p9 = por %p3831_p13, %p3830_p10 }
  0x51   : > { %p3828_p7 = pneg %p3827_p5 }
  0x52   : > { %p3834_p4 = por %p3833_p1, %p3832_p9 }
  0x54   : > { %p3835_p2 = pnand %p3834_p4, %p3828_p7 }
  0x56   : > { %3838 = shalt.err (!%p3835_p2)
}
  0x57   : > { %s3839_s25 = scalar_lea.vmem %s4120_s26, 64  ;;  %s3946_s4 = smov [#allocation2]  }
  0x58   : > { %p3840_p6 = scmp.ne.s32.totalorder %s4120_s26, %s3839_s25  ;;  %s3844_s5 = sshll.u32 %s3946_s4, 4  ;;  %s3845_s5 = int_to_ptr.vmem [resolvable:$false] %s3844_s5 }
  0x59   : > { %s3846_s21 = scalar_lea.vmem %s3845_s5, 128  ;;  %p3847_p5 = scmp.lt.s32.totalorder %s4120_s26, %s3845_s5 }
  0x5a   : > { %p3842_p12 = pnand %p3840_p6, %p3826_p3  ;;  %p3848_p10 = scmp.lt.s32.totalorder %s3846_s21, %s3839_s25 }
  0x5c   : > { %p3843_p0 = pneg %p3842_p12  ;;  %p3849_p13 = por %p3848_p10, %p3847_p5 }
  0x5e   : > { %p3850_p9 = pnand %p3849_p13, %p3843_p0 }
  0x60   : > { %3853 = shalt.err (!%p3850_p9)
}
  0x61   : > { %3189 = dma.hbm_to_vmem [thread:$0]  (!%p4116_p11), %s4112_s6, 64, %s4120_s26, %s179_s8  }
  0x62   : > { %p4946_p7 = scmp.ne.s32.totalorder %s4941_s24, 0 }
  0x64   : > { %198 = sbr.rel (%p4946_p7) target bundleno = 830 (0x33e), region = 32 }
  0x6b   : > { %s4150_s9 = sand.u32 1, %s3924_s13   ;;  %p4947_p3 = scmp.ne.s32.totalorder %s4939_s22, 0 }
  0x6c   : > { %s2566_s10 = sshll.u32 %s4150_s9, 2  ;;  %s201_s18 = scalar_lea.sflag [#allocation3], %s4150_s9 }
  0x6d   : > { %s204_s29 = scalar_lea.vmem [#allocation2], %s2566_s10 }
  0x6e   : > { %3907 = dma.done.wait (%p4947_p3), %s201_s18, 64  }
  0x6f   : > { %3909 = vsyncadd (%p4947_p3), %s201_s18, 4294967232  ;;  %p4948_p1 = scmp.ne.s32.totalorder %s4937_s20, 0 }
  0x71   : > { %3911 = dma.done.wait (%p4948_p1), [#allocation6], 16416  }
  0x72   : > { %3913 = vsyncadd (%p4948_p1), [#allocation6], 4294950880  ;;  %v3947_v0 = vmov 0.0   ;;  %vm3948_vm0 = vmmov 0   ;;  %vm243_vm1 = vcmask 1041408   ;;  %vm239_vm2 = vcmask 15360  }
  0x73   : > { %2966 = vmatprep.subr.mxu0 %v3947_v0  ;;  %2968 = vmatprep.mubr.msk.f32.mxu0 %vm3948_vm0, %v3947_v0  ;;  %v238_v1 = vld [vmem:[#allocation5] sm:$0x3]  ;;  %v237_v2 = vld [vmem:[%s204_s29] sm:$0xf]  ;;  %vm445_vm3 = vcmask 31744   ;;  %v317_v4 = vld [vmem:[#allocation7] sm:$0xff] }
  0x74   : > { %2967 = vmatpush3.msk.msra.mxu0 %vm243_vm1, %v238_v1  ;;  %v379_v3 = vld [vmem:[#allocation7 + $0x1f0] sm:$0xff]  ;;  %vm830_vm4 = vcmask 1043456   ;;  %v380_v6 = vld [vmem:[#allocation7 + $0x1f8] sm:$0xff]  ;;  %v318_v7 = vld [vmem:[#allocation7 + $0x8] sm:$0xff]  ;;  %s2569_s20 = sshll.u32 %s4150_s9, 10  ;;  %vm2307_vm5 = vcmask 261120  }
  0x75   : > { %2969 = vmatmul.mubr.msk.f32.vlgmr.msra.gmra.mrb[0].mxu0 %vm239_vm2, %v237_v2  ;;  %3066 = vmatprep.mubr.msk.f32.mxu1 %vm445_vm3, %v379_v3  ;;  %v381_v9 = vld [vmem:[#allocation7 + $0x200] sm:$0xff]  ;;  %v319_v10 = vld [vmem:[#allocation7 + $0x10] sm:$0xff]  ;;  %v382_v11 = vld [vmem:[#allocation7 + $0x208] sm:$0xff]  ;;  %s4307_s22 = scalar_lea.vmem [#allocation8], %s2569_s20  ;;  %s2834_s24 = sshll.u32 %s3932_s15, 14 }
  0x76   : > { %2973 = vmatprep.mubr.msk.f32.mxu0 %vm445_vm3, %v317_v4  ;;  %v320_v12 = vld [vmem:[#allocation7 + $0x18] sm:$0xff]  ;;  %v383_v13 = vld [vmem:[#allocation7 + $0x210] sm:$0xff]  ;;  %v321_v14 = vld [vmem:[#allocation7 + $0x20] sm:$0xff]  ;;  %s2452_s6 = sshll.u32 %s4307_s22, 4  ;;  %s4874_s8 = scalar_lea.hbm %s4932_s3, %s2834_s24  ;;  %s4876_s6 = int_to_ptr.vmem [resolvable:$true] %s2452_s6 }
  0x77   : > { %v384_v15 = vld [vmem:[#allocation7 + $0x218] sm:$0xff]  ;;  %v322_v16 = vld [vmem:[#allocation7 + $0x28] sm:$0xff]  ;;  %v385_v17 = vld [vmem:[#allocation7 + $0x220] sm:$0xff]  ;;  %s2437_s15 = scalar_lea.sflag [#allocation4], %s4150_s9  ;;  %s3854_s28 = scalar_lea.vmem %s4876_s6, 16384 }
  0x78   : > { %v323_v18 = vld [vmem:[#allocation7 + $0x30] sm:$0xff]  ;;  %v386_v19 = vld [vmem:[#allocation7 + $0x228] sm:$0xff]  ;;  %v324_v20 = vld [vmem:[#allocation7 + $0x38] sm:$0xff]  ;;  %p3855_p11 = scmp.ne.s32.totalorder %s4876_s6, %s3854_s28  ;;  %s3949_s27 = smov [#allocation8]  }
  0x79   : > { %v387_v21 = vld [vmem:[#allocation7 + $0x230] sm:$0xff]  ;;  %v325_v22 = vld [vmem:[#allocation7 + $0x40] sm:$0xff]  ;;  %v388_v23 = vld [vmem:[#allocation7 + $0x238] sm:$0xff]  ;;  %s3858_s25 = sshll.u32 %s3949_s27, 4  ;;  %s3859_s25 = int_to_ptr.vmem [resolvable:$false] %s3858_s25 }
  0x7a   : > { %v326_v24 = vld [vmem:[#allocation7 + $0x48] sm:$0xff]  ;;  %v389_v25 = vld [vmem:[#allocation7 + $0x240] sm:$0xff]  ;;  %v327_v26 = vld [vmem:[#allocation7 + $0x50] sm:$0xff]  ;;  %p3856_p4 = pnand %p3855_p11, %p4098_p8  ;;  %s3860_s4 = scalar_lea.vmem %s3859_s25, 32768 }
  0x7b   : > { %v390_v27 = vld [vmem:[#allocation7 + $0x248] sm:$0xff]  ;;  %v328_v28 = vld [vmem:[#allocation7 + $0x58] sm:$0xff]  ;;  %v391_v29 = vld [vmem:[#allocation7 + $0x250] sm:$0xff]  ;;  %p3861_p6 = scmp.lt.s32.totalorder %s4876_s6, %s3859_s25  ;;  %p3862_p12 = scmp.lt.s32.totalorder %s3860_s4, %s3854_s28 }
  0x7c   : > { %v329_v30 = vld [vmem:[#allocation7 + $0x60] sm:$0xff]  ;;  %v392_v31 = vld [vmem:[#allocation7 + $0x258] sm:$0xff]  ;;  %v330_v32 = vld [vmem:[#allocation7 + $0x68] sm:$0xff]  ;;  %p3857_p2 = pneg %p3856_p4 }
  0x7d   : > { %v393_v33 = vld [vmem:[#allocation7 + $0x260] sm:$0xff]  ;;  %v331_v34 = vld [vmem:[#allocation7 + $0x70] sm:$0xff]  ;;  %v394_v35 = vld [vmem:[#allocation7 + $0x268] sm:$0xff]  ;;  %p3863_p0 = por %p3862_p12, %p3861_p6 }
  0x7e   : > { %v332_v36 = vld [vmem:[#allocation7 + $0x78] sm:$0xff]  ;;  %v395_v37 = vld [vmem:[#allocation7 + $0x270] sm:$0xff]  ;;  %v333_v38 = vld [vmem:[#allocation7 + $0x80] sm:$0xff] }
  0x7f   : > { %v396_v39 = vld [vmem:[#allocation7 + $0x278] sm:$0xff]  ;;  %v334_v40 = vld [vmem:[#allocation7 + $0x88] sm:$0xff]  ;;  %v397_v41 = vld [vmem:[#allocation7 + $0x280] sm:$0xff]  ;;  %p3864_p5 = pnand %p3863_p0, %p3857_p2 }
  0x80   : > { %v335_v42 = vld [vmem:[#allocation7 + $0x90] sm:$0xff]  ;;  %v398_v43 = vld [vmem:[#allocation7 + $0x288] sm:$0xff]  ;;  %v336_v44 = vld [vmem:[#allocation7 + $0x98] sm:$0xff] }
  0x81   : > { %v399_v45 = vld [vmem:[#allocation7 + $0x290] sm:$0xff]  ;;  %v337_v46 = vld [vmem:[#allocation7 + $0xa0] sm:$0xff]  ;;  %v400_v47 = vld [vmem:[#allocation7 + $0x298] sm:$0xff] }
  0x82   : > { %v338_v48 = vld [vmem:[#allocation7 + $0xa8] sm:$0xff]  ;;  %v401_v49 = vld [vmem:[#allocation7 + $0x2a0] sm:$0xff]  ;;  %v339_v50 = vld [vmem:[#allocation7 + $0xb0] sm:$0xff] }
  0x83   : > { %v402_v51 = vld [vmem:[#allocation7 + $0x2a8] sm:$0xff]  ;;  %v340_v52 = vld [vmem:[#allocation7 + $0xb8] sm:$0xff]  ;;  %v403_v53 = vld [vmem:[#allocation7 + $0x2b0] sm:$0xff] }
  0x84   : > { %v341_v54 = vld [vmem:[#allocation7 + $0xc0] sm:$0xff]  ;;  %v404_v55 = vld [vmem:[#allocation7 + $0x2b8] sm:$0xff]  ;;  %v342_v56 = vld [vmem:[#allocation7 + $0xc8] sm:$0xff] }
  0x85   : > { %v405_v57 = vld [vmem:[#allocation7 + $0x2c0] sm:$0xff]  ;;  %v343_v58 = vld [vmem:[#allocation7 + $0xd0] sm:$0xff]  ;;  %v406_v59 = vld [vmem:[#allocation7 + $0x2c8] sm:$0xff] }
  0x86   : > { %v344_v60 = vld [vmem:[#allocation7 + $0xd8] sm:$0xff]  ;;  %v407_v61 = vld [vmem:[#allocation7 + $0x2d0] sm:$0xff]  ;;  %v345_v62 = vld [vmem:[#allocation7 + $0xe0] sm:$0xff] }
  0x87   : > { %v408_v63 = vld [vmem:[#allocation7 + $0x2d8] sm:$0xff]  ;;  %v346_v0 = vld [vmem:[#allocation7 + $0xe8] sm:$0xff]  ;;  %v409_v1 = vld [vmem:[#allocation7 + $0x2e0] sm:$0xff] }
  0x88   : > { %v347_v2 = vld [vmem:[#allocation7 + $0xf0] sm:$0xff]  ;;  %v410_v3 = vld [vmem:[#allocation7 + $0x2e8] sm:$0xff]  ;;  %v348_v4 = vld [vmem:[#allocation7 + $0xf8] sm:$0xff] }
 0x148   : > { %v313_v5 = vpop.f32.mrb[0].mxu0 }
 0x149   : > { %v2970_v8 = vpop.f32.mrb[1].mxu0  ;;  %2971 = vmatprep.subr.msk.mxu0 %vm830_vm4, %v313_v5  ;;  %3165 = vmatprep.subr.msk.mxu1 %vm830_vm4, %v313_v5 }
 0x14a   : > { %2972 = vmatpush3.msk.msra.mxu0 %vm830_vm4, %v313_v5  ;;  %3166 = vmatpush3.msk.msra.mxu1 %vm830_vm4, %v313_v5  ;;  %v411_v5 = vld [vmem:[#allocation7 + $0x2f0] sm:$0xff]  ;;  %v350_v8 = vld [vmem:[#allocation7 + $0x108] sm:$0xff] }
 0x14b   : > { %3067 = vmatmul.mubr.msk.f32.vlgmr.msra.gmra.mrb[0].mxu1 %vm445_vm3, %v380_v6  ;;  %2974 = vmatmul.mubr.msk.f32.vlgmr.msra.gmra.mrb[2].mxu0 %vm445_vm3, %v318_v7  ;;  %v349_v6 = vld [vmem:[#allocation7 + $0x100] sm:$0xff]  ;;  %v412_v7 = vld [vmem:[#allocation7 + $0x2f8] sm:$0xff] }
 0x14c   : > { %3069 = vmatprep.mubr.msk.f32.mxu1 %vm445_vm3, %v381_v9  ;;  %2976 = vmatprep.mubr.msk.f32.mxu0 %vm445_vm3, %v319_v10  ;;  %v413_v9 = vld [vmem:[#allocation7 + $0x300] sm:$0xff]  ;;  %v351_v10 = vld [vmem:[#allocation7 + $0x110] sm:$0xff] }
 0x14f   : > { %3070 = vmatmul.mubr.msk.f32.gmra.mrb[2].mxu1 %vm445_vm3, %v382_v11  ;;  %2977 = vmatmul.mubr.msk.f32.gmra.mrb[4].mxu0 %vm445_vm3, %v320_v12  ;;  %v414_v11 = vld [vmem:[#allocation7 + $0x308] sm:$0xff]  ;;  %v352_v12 = vld [vmem:[#allocation7 + $0x118] sm:$0xff] }
 0x150   : > { %3072 = vmatprep.mubr.msk.f32.mxu1 %vm445_vm3, %v383_v13  ;;  %2979 = vmatprep.mubr.msk.f32.mxu0 %vm445_vm3, %v321_v14  ;;  %v415_v13 = vld [vmem:[#allocation7 + $0x310] sm:$0xff]  ;;  %v353_v14 = vld [vmem:[#allocation7 + $0x120] sm:$0xff] }
 0x153   : > { %3073 = vmatmul.mubr.msk.f32.gmra.mrb[4].mxu1 %vm445_vm3, %v384_v15  ;;  %2980 = vmatmul.mubr.msk.f32.gmra.mrb[6].mxu0 %vm445_vm3, %v322_v16  ;;  %v416_v15 = vld [vmem:[#allocation7 + $0x318] sm:$0xff]  ;;  %v354_v16 = vld [vmem:[#allocation7 + $0x128] sm:$0xff] }
 0x154   : > { %3075 = vmatprep.mubr.msk.f32.mxu1 %vm445_vm3, %v385_v17  ;;  %2982 = vmatprep.mubr.msk.f32.mxu0 %vm445_vm3, %v323_v18  ;;  %v417_v17 = vld [vmem:[#allocation7 + $0x320] sm:$0xff]  ;;  %v355_v18 = vld [vmem:[#allocation7 + $0x130] sm:$0xff] }
 0x157   : > { %3076 = vmatmul.mubr.msk.f32.gmra.mrb[6].mxu1 %vm445_vm3, %v386_v19  ;;  %2983 = vmatmul.mubr.msk.f32.gmra.mrb[8].mxu0 %vm445_vm3, %v324_v20  ;;  %v418_v19 = vld [vmem:[#allocation7 + $0x328] sm:$0xff]  ;;  %v356_v20 = vld [vmem:[#allocation7 + $0x138] sm:$0xff] }
 0x158   : > { %3078 = vmatprep.mubr.msk.f32.mxu1 %vm445_vm3, %v387_v21  ;;  %2985 = vmatprep.mubr.msk.f32.mxu0 %vm445_vm3, %v325_v22  ;;  %v419_v21 = vld [vmem:[#allocation7 + $0x330] sm:$0xff]  ;;  %v357_v22 = vld [vmem:[#allocation7 + $0x140] sm:$0xff] }
 0x15b   : > { %3079 = vmatmul.mubr.msk.f32.gmra.mrb[8].mxu1 %vm445_vm3, %v388_v23  ;;  %2986 = vmatmul.mubr.msk.f32.gmra.mrb[10].mxu0 %vm445_vm3, %v326_v24  ;;  %v420_v23 = vld [vmem:[#allocation7 + $0x338] sm:$0xff]  ;;  %v358_v24 = vld [vmem:[#allocation7 + $0x148] sm:$0xff] }
 0x15c   : > { %3081 = vmatprep.mubr.msk.f32.mxu1 %vm445_vm3, %v389_v25  ;;  %2988 = vmatprep.mubr.msk.f32.mxu0 %vm445_vm3, %v327_v26  ;;  %v421_v25 = vld [vmem:[#allocation7 + $0x340] sm:$0xff]  ;;  %v359_v26 = vld [vmem:[#allocation7 + $0x150] sm:$0xff] }
 0x15f   : > { %3082 = vmatmul.mubr.msk.f32.gmra.mrb[10].mxu1 %vm445_vm3, %v390_v27  ;;  %2989 = vmatmul.mubr.msk.f32.gmra.mrb[12].mxu0 %vm445_vm3, %v328_v28  ;;  %v422_v27 = vld [vmem:[#allocation7 + $0x348] sm:$0xff]  ;;  %v360_v28 = vld [vmem:[#allocation7 + $0x158] sm:$0xff] }
 0x160   : > { %3084 = vmatprep.mubr.msk.f32.mxu1 %vm445_vm3, %v391_v29  ;;  %2991 = vmatprep.mubr.msk.f32.mxu0 %vm445_vm3, %v329_v30  ;;  %v423_v29 = vld [vmem:[#allocation7 + $0x350] sm:$0xff]  ;;  %v361_v30 = vld [vmem:[#allocation7 + $0x160] sm:$0xff] }
 0x163   : > { %3085 = vmatmul.mubr.msk.f32.gmra.mrb[12].mxu1 %vm445_vm3, %v392_v31  ;;  %2992 = vmatmul.mubr.msk.f32.gmra.mrb[14].mxu0 %vm445_vm3, %v330_v32  ;;  %v424_v31 = vld [vmem:[#allocation7 + $0x358] sm:$0xff]  ;;  %v362_v32 = vld [vmem:[#allocation7 + $0x168] sm:$0xff] }
 0x164   : > { %3087 = vmatprep.mubr.msk.f32.mxu1 %vm445_vm3, %v393_v33  ;;  %2994 = vmatprep.mubr.msk.f32.mxu0 %vm445_vm3, %v331_v34  ;;  %v425_v33 = vld [vmem:[#allocation7 + $0x360] sm:$0xff]  ;;  %v363_v34 = vld [vmem:[#allocation7 + $0x170] sm:$0xff] }
 0x167   : > { %3088 = vmatmul.mubr.msk.f32.gmra.mrb[14].mxu1 %vm445_vm3, %v394_v35  ;;  %2995 = vmatmul.mubr.msk.f32.gmra.mrb[16].mxu0 %vm445_vm3, %v332_v36  ;;  %v426_v35 = vld [vmem:[#allocation7 + $0x368] sm:$0xff]  ;;  %v364_v36 = vld [vmem:[#allocation7 + $0x178] sm:$0xff] }
 0x168   : > { %3090 = vmatprep.mubr.msk.f32.mxu1 %vm445_vm3, %v395_v37  ;;  %2997 = vmatprep.mubr.msk.f32.mxu0 %vm445_vm3, %v333_v38  ;;  %v427_v37 = vld [vmem:[#allocation7 + $0x370] sm:$0xff]  ;;  %v365_v38 = vld [vmem:[#allocation7 + $0x180] sm:$0xff] }
 0x16b   : > { %3091 = vmatmul.mubr.msk.f32.gmra.mrb[16].mxu1 %vm445_vm3, %v396_v39  ;;  %2998 = vmatmul.mubr.msk.f32.gmra.mrb[18].mxu0 %vm445_vm3, %v334_v40  ;;  %v428_v39 = vld [vmem:[#allocation7 + $0x378] sm:$0xff]  ;;  %v366_v40 = vld [vmem:[#allocation7 + $0x188] sm:$0xff] }
 0x16c   : > { %3093 = vmatprep.mubr.msk.f32.mxu1 %vm445_vm3, %v397_v41  ;;  %3000 = vmatprep.mubr.msk.f32.mxu0 %vm445_vm3, %v335_v42  ;;  %v429_v41 = vld [vmem:[#allocation7 + $0x380] sm:$0xff]  ;;  %v367_v42 = vld [vmem:[#allocation7 + $0x190] sm:$0xff] }
 0x16f   : > { %3094 = vmatmul.mubr.msk.f32.gmra.mrb[18].mxu1 %vm445_vm3, %v398_v43  ;;  %3001 = vmatmul.mubr.msk.f32.gmra.mrb[20].mxu0 %vm445_vm3, %v336_v44  ;;  %v430_v43 = vld [vmem:[#allocation7 + $0x388] sm:$0xff]  ;;  %v368_v44 = vld [vmem:[#allocation7 + $0x198] sm:$0xff] }
 0x170   : > { %3096 = vmatprep.mubr.msk.f32.mxu1 %vm445_vm3, %v399_v45  ;;  %3003 = vmatprep.mubr.msk.f32.mxu0 %vm445_vm3, %v337_v46  ;;  %v431_v45 = vld [vmem:[#allocation7 + $0x390] sm:$0xff]  ;;  %v369_v46 = vld [vmem:[#allocation7 + $0x1a0] sm:$0xff] }
 0x173   : > { %3097 = vmatmul.mubr.msk.f32.gmra.mrb[20].mxu1 %vm445_vm3, %v400_v47  ;;  %3004 = vmatmul.mubr.msk.f32.gmra.mrb[22].mxu0 %vm445_vm3, %v338_v48  ;;  %v432_v47 = vld [vmem:[#allocation7 + $0x398] sm:$0xff]  ;;  %v370_v48 = vld [vmem:[#allocation7 + $0x1a8] sm:$0xff] }
 0x174   : > { %3099 = vmatprep.mubr.msk.f32.mxu1 %vm445_vm3, %v401_v49  ;;  %3006 = vmatprep.mubr.msk.f32.mxu0 %vm445_vm3, %v339_v50  ;;  %v433_v49 = vld [vmem:[#allocation7 + $0x3a0] sm:$0xff]  ;;  %v371_v50 = vld [vmem:[#allocation7 + $0x1b0] sm:$0xff] }
 0x177   : > { %3100 = vmatmul.mubr.msk.f32.gmra.mrb[22].mxu1 %vm445_vm3, %v402_v51  ;;  %3007 = vmatmul.mubr.msk.f32.gmra.mrb[24].mxu0 %vm445_vm3, %v340_v52  ;;  %v434_v51 = vld [vmem:[#allocation7 + $0x3a8] sm:$0xff]  ;;  %v372_v52 = vld [vmem:[#allocation7 + $0x1b8] sm:$0xff] }
 0x178   : > { %3102 = vmatprep.mubr.msk.f32.mxu1 %vm445_vm3, %v403_v53  ;;  %3009 = vmatprep.mubr.msk.f32.mxu0 %vm445_vm3, %v341_v54  ;;  %v435_v53 = vld [vmem:[#allocation7 + $0x3b0] sm:$0xff]  ;;  %v373_v54 = vld [vmem:[#allocation7 + $0x1c0] sm:$0xff] }
 0x17b   : > { %3103 = vmatmul.mubr.msk.f32.gmra.mrb[24].mxu1 %vm445_vm3, %v404_v55  ;;  %3010 = vmatmul.mubr.msk.f32.gmra.mrb[26].mxu0 %vm445_vm3, %v342_v56  ;;  %v436_v55 = vld [vmem:[#allocation7 + $0x3b8] sm:$0xff]  ;;  %v374_v56 = vld [vmem:[#allocation7 + $0x1c8] sm:$0xff] }
 0x17c   : > { %3105 = vmatprep.mubr.msk.f32.mxu1 %vm445_vm3, %v405_v57  ;;  %3012 = vmatprep.mubr.msk.f32.mxu0 %vm445_vm3, %v343_v58  ;;  %v437_v57 = vld [vmem:[#allocation7 + $0x3c0] sm:$0xff]  ;;  %v375_v58 = vld [vmem:[#allocation7 + $0x1d0] sm:$0xff] }
 0x17f   : > { %3106 = vmatmul.mubr.msk.f32.gmra.mrb[26].mxu1 %vm445_vm3, %v406_v59  ;;  %3013 = vmatmul.mubr.msk.f32.gmra.mrb[28].mxu0 %vm445_vm3, %v344_v60  ;;  %v438_v59 = vld [vmem:[#allocation7 + $0x3c8] sm:$0xff]  ;;  %v376_v60 = vld [vmem:[#allocation7 + $0x1d8] sm:$0xff] }
 0x180   : > { %3108 = vmatprep.mubr.msk.f32.mxu1 %vm445_vm3, %v407_v61  ;;  %3015 = vmatprep.mubr.msk.f32.mxu0 %vm445_vm3, %v345_v62  ;;  %v439_v61 = vld [vmem:[#allocation7 + $0x3d0] sm:$0xff]  ;;  %v377_v62 = vld [vmem:[#allocation7 + $0x1e0] sm:$0xff] }
 0x183   : > { %3109 = vmatmul.mubr.msk.f32.gmra.mrb[28].mxu1 %vm445_vm3, %v408_v63  ;;  %3016 = vmatmul.mubr.msk.f32.gmra.mrb[30].mxu0 %vm445_vm3, %v346_v0  ;;  %v440_v63 = vld [vmem:[#allocation7 + $0x3d8] sm:$0xff]  ;;  %v378_v0 = vld [vmem:[#allocation7 + $0x1e8] sm:$0xff] }
 0x184   : > { %3111 = vmatprep.mubr.msk.f32.mxu1 %vm445_vm3, %v409_v1  ;;  %3018 = vmatprep.mubr.msk.f32.mxu0 %vm445_vm3, %v347_v2  ;;  %v441_v1 = vld [vmem:[#allocation7 + $0x3e0] sm:$0xff]  ;;  %v442_v2 = vld [vmem:[#allocation7 + $0x3e8] sm:$0xff] }
 0x187   : > { %3112 = vmatmul.mubr.msk.f32.gmra.mrb[30].mxu1 %vm445_vm3, %v410_v3  ;;  %3019 = vmatmul.mubr.msk.f32.gmra.mrb[32].mxu0 %vm445_vm3, %v348_v4  ;;  %v443_v3 = vld [vmem:[#allocation7 + $0x3f0] sm:$0xff]  ;;  %v444_v4 = vld [vmem:[#allocation7 + $0x3f8] sm:$0xff] }
 0x188   : > { %3114 = vmatprep.mubr.msk.f32.mxu1 %vm445_vm3, %v411_v5  ;;  %3021 = vmatprep.mubr.msk.f32.mxu0 %vm445_vm3, %v349_v6 }
 0x18b   : > { %3115 = vmatmul.mubr.msk.f32.gmra.mrb[32].mxu1 %vm445_vm3, %v412_v7  ;;  %3022 = vmatmul.mubr.msk.f32.gmra.mrb[34].mxu0 %vm445_vm3, %v350_v8 }
 0x18c   : > { %3117 = vmatprep.mubr.msk.f32.mxu1 %vm445_vm3, %v413_v9  ;;  %3024 = vmatprep.mubr.msk.f32.mxu0 %vm445_vm3, %v351_v10 }
 0x18f   : > { %3118 = vmatmul.mubr.msk.f32.gmra.mrb[34].mxu1 %vm445_vm3, %v414_v11  ;;  %3025 = vmatmul.mubr.msk.f32.gmra.mrb[36].mxu0 %vm445_vm3, %v352_v12 }
 0x190   : > { %3120 = vmatprep.mubr.msk.f32.mxu1 %vm445_vm3, %v415_v13  ;;  %3027 = vmatprep.mubr.msk.f32.mxu0 %vm445_vm3, %v353_v14 }
 0x193   : > { %3121 = vmatmul.mubr.msk.f32.gmra.mrb[36].mxu1 %vm445_vm3, %v416_v15  ;;  %3028 = vmatmul.mubr.msk.f32.gmra.mrb[38].mxu0 %vm445_vm3, %v354_v16 }
 0x194   : > { %3123 = vmatprep.mubr.msk.f32.mxu1 %vm445_vm3, %v417_v17  ;;  %3030 = vmatprep.mubr.msk.f32.mxu0 %vm445_vm3, %v355_v18 }
 0x197   : > { %3124 = vmatmul.mubr.msk.f32.gmra.mrb[38].mxu1 %vm445_vm3, %v418_v19  ;;  %3031 = vmatmul.mubr.msk.f32.gmra.mrb[40].mxu0 %vm445_vm3, %v356_v20 }
 0x198   : > { %3126 = vmatprep.mubr.msk.f32.mxu1 %vm445_vm3, %v419_v21  ;;  %3033 = vmatprep.mubr.msk.f32.mxu0 %vm445_vm3, %v357_v22 }
 0x19b   : > { %3127 = vmatmul.mubr.msk.f32.gmra.mrb[40].mxu1 %vm445_vm3, %v420_v23  ;;  %3034 = vmatmul.mubr.msk.f32.gmra.mrb[42].mxu0 %vm445_vm3, %v358_v24 }
 0x19c   : > { %3129 = vmatprep.mubr.msk.f32.mxu1 %vm445_vm3, %v421_v25  ;;  %3036 = vmatprep.mubr.msk.f32.mxu0 %vm445_vm3, %v359_v26 }
 0x19f   : > { %3130 = vmatmul.mubr.msk.f32.gmra.mrb[42].mxu1 %vm445_vm3, %v422_v27  ;;  %3037 = vmatmul.mubr.msk.f32.gmra.mrb[44].mxu0 %vm445_vm3, %v360_v28 }
 0x1a0   : > { %3132 = vmatprep.mubr.msk.f32.mxu1 %vm445_vm3, %v423_v29  ;;  %3039 = vmatprep.mubr.msk.f32.mxu0 %vm445_vm3, %v361_v30 }
 0x1a3   : > { %3133 = vmatmul.mubr.msk.f32.gmra.mrb[44].mxu1 %vm445_vm3, %v424_v31  ;;  %3040 = vmatmul.mubr.msk.f32.gmra.mrb[46].mxu0 %vm445_vm3, %v362_v32 }
 0x1a4   : > { %3135 = vmatprep.mubr.msk.f32.mxu1 %vm445_vm3, %v425_v33  ;;  %3042 = vmatprep.mubr.msk.f32.mxu0 %vm445_vm3, %v363_v34 }
 0x1a7   : > { %3136 = vmatmul.mubr.msk.f32.gmra.mrb[46].mxu1 %vm445_vm3, %v426_v35  ;;  %3043 = vmatmul.mubr.msk.f32.gmra.mrb[48].mxu0 %vm445_vm3, %v364_v36 }
 0x1a8   : > { %3138 = vmatprep.mubr.msk.f32.mxu1 %vm445_vm3, %v427_v37  ;;  %3045 = vmatprep.mubr.msk.f32.mxu0 %vm445_vm3, %v365_v38 }
 0x1ab   : > { %3139 = vmatmul.mubr.msk.f32.gmra.mrb[48].mxu1 %vm445_vm3, %v428_v39  ;;  %3046 = vmatmul.mubr.msk.f32.gmra.mrb[50].mxu0 %vm445_vm3, %v366_v40 }
 0x1ac   : > { %3141 = vmatprep.mubr.msk.f32.mxu1 %vm445_vm3, %v429_v41  ;;  %3048 = vmatprep.mubr.msk.f32.mxu0 %vm445_vm3, %v367_v42 }
 0x1af   : > { %3142 = vmatmul.mubr.msk.f32.gmra.mrb[50].mxu1 %vm445_vm3, %v430_v43  ;;  %3049 = vmatmul.mubr.msk.f32.gmra.mrb[52].mxu0 %vm445_vm3, %v368_v44 }
 0x1b0   : > { %3144 = vmatprep.mubr.msk.f32.mxu1 %vm445_vm3, %v431_v45  ;;  %3051 = vmatprep.mubr.msk.f32.mxu0 %vm445_vm3, %v369_v46 }
 0x1b3   : > { %3145 = vmatmul.mubr.msk.f32.gmra.mrb[52].mxu1 %vm445_vm3, %v432_v47  ;;  %3052 = vmatmul.mubr.msk.f32.gmra.mrb[54].mxu0 %vm445_vm3, %v370_v48 }
 0x1b4   : > { %3147 = vmatprep.mubr.msk.f32.mxu1 %vm445_vm3, %v433_v49  ;;  %3054 = vmatprep.mubr.msk.f32.mxu0 %vm445_vm3, %v371_v50 }
 0x1b7   : > { %3148 = vmatmul.mubr.msk.f32.gmra.mrb[54].mxu1 %vm445_vm3, %v434_v51  ;;  %3055 = vmatmul.mubr.msk.f32.gmra.mrb[56].mxu0 %vm445_vm3, %v372_v52 }
 0x1b8   : > { %3150 = vmatprep.mubr.msk.f32.mxu1 %vm445_vm3, %v435_v53  ;;  %3057 = vmatprep.mubr.msk.f32.mxu0 %vm445_vm3, %v373_v54 }
 0x1bb   : > { %3151 = vmatmul.mubr.msk.f32.gmra.mrb[56].mxu1 %vm445_vm3, %v436_v55  ;;  %3058 = vmatmul.mubr.msk.f32.gmra.mrb[58].mxu0 %vm445_vm3, %v374_v56 }
 0x1bc   : > { %3153 = vmatprep.mubr.msk.f32.mxu1 %vm445_vm3, %v437_v57  ;;  %3060 = vmatprep.mubr.msk.f32.mxu0 %vm445_vm3, %v375_v58 }
 0x1bf   : > { %3154 = vmatmul.mubr.msk.f32.gmra.mrb[58].mxu1 %vm445_vm3, %v438_v59  ;;  %3061 = vmatmul.mubr.msk.f32.gmra.mrb[60].mxu0 %vm445_vm3, %v376_v60 }
 0x1c0   : > { %3156 = vmatprep.mubr.msk.f32.mxu1 %vm445_vm3, %v439_v61  ;;  %3063 = vmatprep.mubr.msk.f32.mxu0 %vm445_vm3, %v377_v62 }
 0x1c3   : > { %3157 = vmatmul.mubr.msk.f32.gmra.mrb[60].mxu1 %vm445_vm3, %v440_v63  ;;  %3064 = vmatmul.mubr.msk.f32.gmra.mrb[62].mxu0 %vm445_vm3, %v378_v0 }
 0x1c4   : > { %3159 = vmatprep.mubr.msk.f32.mxu1 %vm445_vm3, %v441_v1 }
 0x1c7   : > { %3160 = vmatmul.mubr.msk.f32.gmra.mrb[62].mxu1 %vm445_vm3, %v442_v2 }
 0x1c8   : > { %3162 = vmatprep.mubr.msk.f32.mxu1 %vm445_vm3, %v443_v3 }
 0x1cb   : > { %3163 = vmatmul.mubr.msk.f32.gmra.mrb[64].mxu1 %vm445_vm3, %v444_v4 }
 0x21e   : > { %v3068_v5 = vpop.f32.mrb[0].mxu1  ;;  %v2975_v6 = vpop.f32.mrb[2].mxu0 }
 0x21f   : > { %v2764_v7 = vmul.f32 -1.442695, %v3068_v5  ;;  %v1210_v8 = vpop.f32.mrb[1].mxu1  ;;  %v2702_v9 = vmul.f32 -1.442695, %v2975_v6  ;;  %v900_v10 = vpop.f32.mrb[3].mxu0 }
 0x220   : > { %v2763_v11 = vmul.f32 -1.442695, %v1210_v8  ;;  %v2701_v12 = vmul.f32 -1.442695, %v900_v10 }
 0x221   : > { %3256 = vpow2.f32 %v2764_v7 }
 0x222   : > { %3258 = vpow2.f32 %v2763_v11  ;;  %v3071_v13 = vpop.f32.mrb[2].mxu1  ;;  %v2978_v14 = vpop.f32.mrb[4].mxu0 }
 0x223   : > { %v2766_v15 = vmul.f32 -1.442695, %v3071_v13  ;;  %v1220_v16 = vpop.f32.mrb[3].mxu1  ;;  %3260 = vpow2.f32 %v2702_v9  ;;  %v2704_v17 = vmul.f32 -1.442695, %v2978_v14  ;;  %v910_v18 = vpop.f32.mrb[5].mxu0 }
 0x224   : > { %v2765_v19 = vmul.f32 -1.442695, %v1220_v16  ;;  %3262 = vpow2.f32 %v2701_v12  ;;  %v2703_v20 = vmul.f32 -1.442695, %v910_v18 }
 0x225   : > { %3264 = vpow2.f32 %v2766_v15 }
 0x226   : > { %3266 = vpow2.f32 %v2765_v19  ;;  %v3074_v21 = vpop.f32.mrb[4].mxu1  ;;  %v2981_v22 = vpop.f32.mrb[6].mxu0 }
 0x227   : > { %v2768_v23 = vmul.f32 -1.442695, %v3074_v21  ;;  %v1230_v24 = vpop.f32.mrb[5].mxu1  ;;  %3268 = vpow2.f32 %v2704_v17  ;;  %v2706_v25 = vmul.f32 -1.442695, %v2981_v22  ;;  %v920_v26 = vpop.f32.mrb[7].mxu0 }
 0x228   : > { %v2767_v27 = vmul.f32 -1.442695, %v1230_v24  ;;  %3270 = vpow2.f32 %v2703_v20  ;;  %v2705_v28 = vmul.f32 -1.442695, %v920_v26 }
 0x229   : > { %3272 = vpow2.f32 %v2768_v23 }
 0x22a   : > { %3274 = vpow2.f32 %v2767_v27  ;;  %v3077_v29 = vpop.f32.mrb[6].mxu1  ;;  %v4290_v30 = vpop.f32.mrb[8].mxu0 }
 0x22b   : > { %v3257_v31 = vpop.eup %3256  ;;  %v2770_v32 = vmul.f32 -1.442695, %v3077_v29  ;;  %v1240_v33 = vpop.f32.mrb[7].mxu1  ;;  %3276 = vpow2.f32 %v2706_v25  ;;  %v2708_v14 = vmul.f32 -1.442695, %v4290_v30 }
 0x22c   : > { %v4292_v34 = vpop.f32.mrb[9].mxu0  ;;  %v3259_v35 = vpop.eup %3258  ;;  %v1986_v36 = vadd.f32 1.0, %v3257_v31  ;;  %3278 = vpow2.f32 %v2705_v28  ;;  %v2769_v60 = vmul.f32 -1.442695, %v1240_v33 }
 0x22d   : > { %v3261_v37 = vpop.eup %3260  ;;  %v1985_v38 = vadd.f32 1.0, %v3259_v35  ;;  %3280 = vpow2.f32 %v2770_v32  ;;  %v2707_v18 = vmul.f32 -1.442695, %v4292_v34 }
 0x22e   : > { %v3263_v39 = vpop.eup %3262  ;;  %3282 = vrcp.f32 %v1986_v36  ;;  %v1924_v40 = vadd.f32 1.0, %v3261_v37  ;;  %v3080_v41 = vpop.f32.mrb[8].mxu1 }
 0x22f   : > { %v4294_v42 = vpop.f32.mrb[10].mxu0  ;;  %v3265_v43 = vpop.eup %3264  ;;  %3284 = vrcp.f32 %v1985_v38  ;;  %v1923_v44 = vadd.f32 1.0, %v3263_v39  ;;  %v2772_v9 = vmul.f32 -1.442695, %v3080_v41 }
 0x230   : > { %v1250_v45 = vpop.f32.mrb[9].mxu1  ;;  %v3267_v46 = vpop.eup %3266  ;;  %v1988_v47 = vadd.f32 1.0, %v3265_v43  ;;  %3286 = vrcp.f32 %v1924_v40  ;;  %v2710_v26 = vmul.f32 -1.442695, %v4294_v42 }
 0x231   : > { %v4296_v48 = vpop.f32.mrb[11].mxu0  ;;  %v3269_v49 = vpop.eup %3268  ;;  %v1987_v50 = vadd.f32 1.0, %v3267_v46  ;;  %3288 = vrcp.f32 %v1923_v44  ;;  %v2771_v12 = vmul.f32 -1.442695, %v1250_v45 }
 0x232   : > { %v3271_v51 = vpop.eup %3270  ;;  %3290 = vrcp.f32 %v1988_v47  ;;  %v1926_v52 = vadd.f32 1.0, %v3269_v49  ;;  %v3083_v53 = vpop.f32.mrb[10].mxu1  ;;  %v2709_v30 = vmul.f32 -1.442695, %v4296_v48 }
 0x233   : > { %v4298_v54 = vpop.f32.mrb[12].mxu0  ;;  %v3273_v55 = vpop.eup %3272  ;;  %3292 = vrcp.f32 %v1987_v50  ;;  %v1925_v56 = vadd.f32 1.0, %v3271_v51  ;;  %v2774_v22 = vmul.f32 -1.442695, %v3083_v53 }
 0x234   : > { %v1260_v57 = vpop.f32.mrb[11].mxu1  ;;  %v3275_v58 = vpop.eup %3274  ;;  %v1990_v59 = vadd.f32 1.0, %v3273_v55  ;;  %3294 = vrcp.f32 %v1926_v52  ;;  %v2712_v42 = vmul.f32 -1.442695, %v4298_v54 }
 0x235   : > { %v4301_v61 = vpop.f32.mrb[13].mxu0  ;;  %v3277_v62 = vpop.eup %3276  ;;  %v1989_v63 = vadd.f32 1.0, %v3275_v58  ;;  %3296 = vrcp.f32 %v1925_v56  ;;  %v2773_v24 = vmul.f32 -1.442695, %v1260_v57 }
 0x236   : > { %v3279_v0 = vpop.eup %3278  ;;  %3298 = vrcp.f32 %v1990_v59  ;;  %v1928_v1 = vadd.f32 1.0, %v3277_v62  ;;  %v3086_v2 = vpop.f32.mrb[12].mxu1  ;;  %v2711_v45 = vmul.f32 -1.442695, %v4301_v61 }
 0x237   : > { %v4303_v3 = vpop.f32.mrb[14].mxu0  ;;  %v3281_v4 = vpop.eup %3280  ;;  %3300 = vrcp.f32 %v1989_v63  ;;  %v1927_v5 = vadd.f32 1.0, %v3279_v0  ;;  %v2776_v34 = vmul.f32 -1.442695, %v3086_v2 }
 0x238   : > { %v1270_v6 = vpop.f32.mrb[13].mxu1  ;;  %v3283_v7 = vpop.eup %3282  ;;  %v1992_v8 = vadd.f32 1.0, %v3281_v4  ;;  %3302 = vpow2.f32 %v2769_v60 }
 0x239   : > { %v4305_v10 = vpop.f32.mrb[15].mxu0  ;;  %v3285_v11 = vpop.eup %3284  ;;  %2371 = vst.msk [vmem:[%s4307_s22 + $0x1f8] sm:$0xff] %vm2307_vm5, %v3283_v7  ;;  %3304 = vrcp.f32 %v1928_v1  ;;  %v2775_v37 = vmul.f32 -1.442695, %v1270_v6 }
 0x23a   : > { %v3287_v13 = vpop.eup %3286  ;;  %2370 = vst.msk [vmem:[%s4307_s22 + $0x1f0] sm:$0xff] %vm2307_vm5, %v3285_v11  ;;  %3306 = vrcp.f32 %v1992_v8  ;;  %v4314_v15 = vpop.f32.mrb[14].mxu1 }
 0x23b   : > { %v4316_v16 = vpop.f32.mrb[16].mxu0  ;;  %v3289_v17 = vpop.eup %3288  ;;  %2309 = vst.msk [vmem:[%s4307_s22 + $0x8] sm:$0xff] %vm2307_vm5, %v3287_v13  ;;  %3308 = vrcp.f32 %v1927_v5  ;;  %v2778_v11 = vmul.f32 -1.442695, %v4314_v15 }
 0x23c   : > { %v4321_v19 = vpop.f32.mrb[15].mxu1  ;;  %v4323_v20 = vpop.f32.mrb[17].mxu0  ;;  %2308 = vst.msk [vmem:[%s4307_s22] sm:$0xff] %vm2307_vm5, %v3289_v17  ;;  %3310 = vpow2.f32 %v2772_v9 }
 0x23d   : > { %v3291_v21 = vpop.eup %3290  ;;  %3312 = vpow2.f32 %v2771_v12 }
 0x23e   : > { %v3293_v23 = vpop.eup %3292  ;;  %2373 = vst.msk [vmem:[%s4307_s22 + $0x208] sm:$0xff] %vm2307_vm5, %v3291_v21  ;;  %3314 = vpow2.f32 %v2708_v14  ;;  %v4332_v27 = vpop.f32.mrb[16].mxu1 }
 0x23f   : > { %v3295_v25 = vpop.eup %3294  ;;  %2372 = vst.msk [vmem:[%s4307_s22 + $0x200] sm:$0xff] %vm2307_vm5, %v3293_v23  ;;  %v4334_v28 = vpop.f32.mrb[18].mxu0  ;;  %3316 = vpow2.f32 %v2707_v18 }
 0x240   : > { %v3297_v29 = vpop.eup %3296  ;;  %2311 = vst.msk [vmem:[%s4307_s22 + $0x18] sm:$0xff] %vm2307_vm5, %v3295_v25  ;;  %v4339_v31 = vpop.f32.mrb[17].mxu1  ;;  %3318 = vpow2.f32 %v2774_v22 }
 0x241   : > { %v4341_v32 = vpop.f32.mrb[19].mxu0  ;;  %v3299_v33 = vpop.eup %3298  ;;  %2310 = vst.msk [vmem:[%s4307_s22 + $0x10] sm:$0xff] %vm2307_vm5, %v3297_v29  ;;  %3320 = vpow2.f32 %v2773_v24 }
 0x242   : > { %v3301_v35 = vpop.eup %3300  ;;  %2375 = vst.msk [vmem:[%s4307_s22 + $0x218] sm:$0xff] %vm2307_vm5, %v3299_v33  ;;  %3322 = vpow2.f32 %v2710_v26  ;;  %v4349_v38 = vpop.f32.mrb[18].mxu1  ;;  %v2777_v26 = vmul.f32 -1.442695, %v4321_v19 }
 0x243   : > { %v3303_v36 = vpop.eup %3302  ;;  %2374 = vst.msk [vmem:[%s4307_s22 + $0x210] sm:$0xff] %vm2307_vm5, %v3301_v35  ;;  %v4351_v39 = vpop.f32.mrb[20].mxu0  ;;  %3324 = vpow2.f32 %v2709_v30  ;;  %v2714_v35 = vmul.f32 -1.442695, %v4303_v3  ;;  %v2779_v3 = vmul.f32 -1.442695, %v4339_v31 }
 0x244   : > { %v3305_v40 = vpop.eup %3304  ;;  %v1991_v41 = vadd.f32 1.0, %v3303_v36  ;;  %v4354_v43 = vpop.f32.mrb[19].mxu1  ;;  %3326 = vpow2.f32 %v2776_v34  ;;  %v2715_v31 = vmul.f32 -1.442695, %v4323_v20 }
 0x245   : > { %v3307_v44 = vpop.eup %3306  ;;  %2313 = vst.msk [vmem:[%s4307_s22 + $0x28] sm:$0xff] %vm2307_vm5, %v3305_v40  ;;  %v4359_v46 = vpop.f32.mrb[21].mxu0  ;;  %v2713_v40 = vmul.f32 -1.442695, %v4305_v10 }
 0x246   : > { %v3309_v47 = vpop.eup %3308  ;;  %2377 = vst.msk [vmem:[%s4307_s22 + $0x228] sm:$0xff] %vm2307_vm5, %v3307_v44  ;;  %3328 = vrcp.f32 %v1991_v41  ;;  %v4365_v49 = vpop.f32.mrb[20].mxu1 }
 0x247   : > { %v3311_v48 = vpop.eup %3310  ;;  %2312 = vst.msk [vmem:[%s4307_s22 + $0x20] sm:$0xff] %vm2307_vm5, %v3309_v47  ;;  %3330 = vpow2.f32 %v2775_v37  ;;  %v4367_v50 = vpop.f32.mrb[22].mxu0 }
 0x248   : > { %v3313_v51 = vpop.eup %3312  ;;  %v1994_v52 = vadd.f32 1.0, %v3311_v48  ;;  %3332 = vpow2.f32 %v2712_v42  ;;  %v4369_v53 = vpop.f32.mrb[21].mxu1  ;;  %v2780_v42 = vmul.f32 -1.442695, %v4332_v27  ;;  %v2716_v48 = vmul.f32 -1.442695, %v4316_v16 }
 0x249   : > { %v3315_v54 = vpop.eup %3314  ;;  %v1993_v55 = vadd.f32 1.0, %v3313_v51  ;;  %3334 = vpow2.f32 %v2711_v45  ;;  %v4371_v56 = vpop.f32.mrb[23].mxu0  ;;  %v2781_v16 = vmul.f32 -1.442695, %v4354_v43  ;;  %v2718_v43 = vmul.f32 -1.442695, %v4334_v28 }
 0x24a   : > { %v3317_v57 = vpop.eup %3316  ;;  %3336 = vrcp.f32 %v1994_v52  ;;  %v1930_v58 = vadd.f32 1.0, %v3315_v54  ;;  %v4373_v61 = vpop.f32.mrb[22].mxu1 }
 0x24b   : > { %v3319_v59 = vpop.eup %3318  ;;  %3338 = vrcp.f32 %v1993_v55  ;;  %v1929_v60 = vadd.f32 1.0, %v3317_v57  ;;  %v4375_v62 = vpop.f32.mrb[24].mxu0  ;;  %v2782_v55 = vmul.f32 -1.442695, %v4349_v38 }
 0x24c   : > { %v3321_v63 = vpop.eup %3320  ;;  %3340 = vrcp.f32 %v1930_v58  ;;  %v1996_v0 = vadd.f32 1.0, %v3319_v59  ;;  %v4377_v1 = vpop.f32.mrb[23].mxu1 }
 0x24d   : > { %v3323_v2 = vpop.eup %3322  ;;  %3342 = vrcp.f32 %v1929_v60  ;;  %v1995_v4 = vadd.f32 1.0, %v3321_v63  ;;  %v4379_v5 = vpop.f32.mrb[25].mxu0 }
 0x24e   : > { %v3325_v6 = vpop.eup %3324  ;;  %3344 = vrcp.f32 %v1996_v0  ;;  %v1932_v7 = vadd.f32 1.0, %v3323_v2  ;;  %v4382_v12 = vpop.f32.mrb[24].mxu1 }
 0x24f   : > { %v3327_v8 = vpop.eup %3326  ;;  %3346 = vrcp.f32 %v1995_v4  ;;  %v1931_v9 = vadd.f32 1.0, %v3325_v6  ;;  %v4384_v13 = vpop.f32.mrb[26].mxu0  ;;  %v2717_v4 = vmul.f32 -1.442695, %v4341_v32 }
 0x250   : > { %v3329_v14 = vpop.eup %3328  ;;  %3348 = vrcp.f32 %v1932_v7  ;;  %v1998_v17 = vadd.f32 1.0, %v3327_v8  ;;  %v4386_v18 = vpop.f32.mrb[25].mxu1  ;;  %v2784_v7 = vmul.f32 -1.442695, %v4365_v49 }
 0x251   : > { %v3331_v21 = vpop.eup %3330  ;;  %2376 = vst.msk [vmem:[%s4307_s22 + $0x220] sm:$0xff] %vm2307_vm5, %v3329_v14  ;;  %3350 = vrcp.f32 %v1931_v9  ;;  %v4390_v22 = vpop.f32.mrb[27].mxu0 }
 0x252   : > { %v3333_v23 = vpop.eup %3332  ;;  %3352 = vrcp.f32 %v1998_v17  ;;  %v1997_v24 = vadd.f32 1.0, %v3331_v21  ;;  %v4393_v29 = vpop.f32.mrb[26].mxu1 }
 0x253   : > { %v3335_v15 = vpop.eup %3334  ;;  %v1934_v25 = vadd.f32 1.0, %v3333_v23  ;;  %3354 = vpow2.f32 %v2778_v11  ;;  %v4395_v30 = vpop.f32.mrb[28].mxu0 }
 0x254   : > { %v3337_v33 = vpop.eup %3336  ;;  %3356 = vrcp.f32 %v1997_v24  ;;  %v1933_v34 = vadd.f32 1.0, %v3335_v15  ;;  %v4398_v36 = vpop.f32.mrb[27].mxu1 }
 0x255   : > { %v3339_v37 = vpop.eup %3338  ;;  %2379 = vst.msk [vmem:[%s4307_s22 + $0x238] sm:$0xff] %vm2307_vm5, %v3337_v33  ;;  %3358 = vrcp.f32 %v1934_v25  ;;  %v4403_v19 = vpop.f32.mrb[29].mxu0 }
 0x256   : > { %v3341_v41 = vpop.eup %3340  ;;  %2378 = vst.msk [vmem:[%s4307_s22 + $0x230] sm:$0xff] %vm2307_vm5, %v3339_v37  ;;  %3360 = vrcp.f32 %v1933_v34  ;;  %v4411_v45 = vpop.f32.mrb[28].mxu1 }
 0x257   : > { %v3343_v44 = vpop.eup %3342  ;;  %2315 = vst.msk [vmem:[%s4307_s22 + $0x38] sm:$0xff] %vm2307_vm5, %v3341_v41  ;;  %3362 = vpow2.f32 %v2777_v26  ;;  %v4413_v47 = vpop.f32.mrb[30].mxu0 }
 0x258   : > { %v3345_v10 = vpop.eup %3344  ;;  %2314 = vst.msk [vmem:[%s4307_s22 + $0x30] sm:$0xff] %vm2307_vm5, %v3343_v44  ;;  %3364 = vpow2.f32 %v2714_v35  ;;  %v4418_v51 = vpop.f32.mrb[29].mxu1 }
 0x259   : > { %v4420_v27 = vpop.f32.mrb[31].mxu0  ;;  %v3347_v52 = vpop.eup %3346  ;;  %2381 = vst.msk [vmem:[%s4307_s22 + $0x248] sm:$0xff] %vm2307_vm5, %v3345_v10  ;;  %3366 = vpow2.f32 %v2713_v40 }
 0x25a   : > { %v3349_v54 = vpop.eup %3348  ;;  %2380 = vst.msk [vmem:[%s4307_s22 + $0x240] sm:$0xff] %vm2307_vm5, %v3347_v52  ;;  %3368 = vpow2.f32 %v2780_v42  ;;  %v4431_v58 = vpop.f32.mrb[30].mxu1 }
 0x25b   : > { %v3351_v57 = vpop.eup %3350  ;;  %2317 = vst.msk [vmem:[%s4307_s22 + $0x48] sm:$0xff] %vm2307_vm5, %v3349_v54  ;;  %3370 = vpow2.f32 %v2779_v3  ;;  %v4433_v59 = vpop.f32.mrb[32].mxu0 }
 0x25c   : > { %v3353_v60 = vpop.eup %3352  ;;  %2316 = vst.msk [vmem:[%s4307_s22 + $0x40] sm:$0xff] %vm2307_vm5, %v3351_v57  ;;  %3372 = vpow2.f32 %v2716_v48  ;;  %v4437_v20 = vpop.f32.mrb[31].mxu1  ;;  %v2783_v57 = vmul.f32 -1.442695, %v4369_v53 }
 0x25d   : > { %v4439_v63 = vpop.f32.mrb[33].mxu0  ;;  %v3355_v38 = vpop.eup %3354  ;;  %2383 = vst.msk [vmem:[%s4307_s22 + $0x258] sm:$0xff] %vm2307_vm5, %v3353_v60  ;;  %3374 = vpow2.f32 %v2715_v31 }
 0x25e   : > { %v3357_v0 = vpop.eup %3356  ;;  %v2000_v2 = vadd.f32 1.0, %v3355_v38  ;;  %3376 = vpow2.f32 %v2782_v55  ;;  %v4448_v8 = vpop.f32.mrb[32].mxu1 }
 0x25f   : > { %v3359_v6 = vpop.eup %3358  ;;  %2382 = vst.msk [vmem:[%s4307_s22 + $0x250] sm:$0xff] %vm2307_vm5, %v3357_v0  ;;  %3378 = vpow2.f32 %v2781_v16  ;;  %v4450_v9 = vpop.f32.mrb[34].mxu0 }
 0x260   : > { %v3361_v11 = vpop.eup %3360  ;;  %2319 = vst.msk [vmem:[%s4307_s22 + $0x58] sm:$0xff] %vm2307_vm5, %v3359_v6  ;;  %3380 = vrcp.f32 %v2000_v2  ;;  %v4454_v28 = vpop.f32.mrb[33].mxu1 }
 0x261   : > { %v4456_v14 = vpop.f32.mrb[35].mxu0  ;;  %v3363_v17 = vpop.eup %3362  ;;  %2318 = vst.msk [vmem:[%s4307_s22 + $0x50] sm:$0xff] %vm2307_vm5, %v3361_v11  ;;  %3382 = vpow2.f32 %v2718_v43 }
 0x262   : > { %v3365_v32 = vpop.eup %3364  ;;  %v1999_v21 = vadd.f32 1.0, %v3363_v17  ;;  %3384 = vpow2.f32 %v2717_v4  ;;  %v4460_v24 = vpop.f32.mrb[34].mxu1  ;;  %v2720_v17 = vmul.f32 -1.442695, %v4351_v39 }
 0x263   : > { %v3367_v49 = vpop.eup %3366  ;;  %v1936_v23 = vadd.f32 1.0, %v3365_v32  ;;  %3386 = vpow2.f32 %v2784_v7  ;;  %v4462_v15 = vpop.f32.mrb[36].mxu0 }
 0x264   : > { %v3369_v25 = vpop.eup %3368  ;;  %3388 = vrcp.f32 %v1999_v21  ;;  %v1935_v26 = vadd.f32 1.0, %v3367_v49  ;;  %v4464_v33 = vpop.f32.mrb[35].mxu1 }
 0x265   : > { %v3371_v34 = vpop.eup %3370  ;;  %3390 = vrcp.f32 %v1936_v23  ;;  %v2002_v35 = vadd.f32 1.0, %v3369_v25  ;;  %v4466_v37 = vpop.f32.mrb[37].mxu0  ;;  %v2719_v23 = vmul.f32 -1.442695, %v4359_v46 }
 0x266   : > { %v3373_v40 = vpop.eup %3372  ;;  %3392 = vrcp.f32 %v1935_v26  ;;  %v2001_v41 = vadd.f32 1.0, %v3371_v34  ;;  %v4468_v3 = vpop.f32.mrb[36].mxu1  ;;  %v2786_v26 = vmul.f32 -1.442695, %v4373_v61  ;;  %v2722_v61 = vmul.f32 -1.442695, %v4367_v50 }
 0x267   : > { %v3375_v42 = vpop.eup %3374  ;;  %3394 = vrcp.f32 %v2002_v35  ;;  %v1938_v44 = vadd.f32 1.0, %v3373_v40  ;;  %v4470_v10 = vpop.f32.mrb[38].mxu0  ;;  %v2785_v40 = vmul.f32 -1.442695, %v4377_v1  ;;  %v2788_v1 = vmul.f32 -1.442695, %v4382_v12 }
 0x268   : > { %v3377_v48 = vpop.eup %3376  ;;  %3396 = vrcp.f32 %v2001_v41  ;;  %v1937_v52 = vadd.f32 1.0, %v3375_v42  ;;  %v4472_v31 = vpop.f32.mrb[37].mxu1  ;;  %v2724_v12 = vmul.f32 -1.442695, %v4375_v62  ;;  %v2790_v62 = vmul.f32 -1.442695, %v4393_v29 }
 0x269   : > { %v3379_v54 = vpop.eup %3378  ;;  %3398 = vrcp.f32 %v1938_v44  ;;  %v2004_v55 = vadd.f32 1.0, %v3377_v48  ;;  %v4475_v16 = vpop.f32.mrb[39].mxu0  ;;  %v2721_v48 = vmul.f32 -1.442695, %v4371_v56 }
 0x26a   : > { %v3381_v60 = vpop.eup %3380  ;;  %3400 = vrcp.f32 %v1937_v52  ;;  %v2003_v38 = vadd.f32 1.0, %v3379_v54  ;;  %v4479_v0 = vpop.f32.mrb[38].mxu1 }
 0x26b   : > { %v3383_v43 = vpop.eup %3382  ;;  %2385 = vst.msk [vmem:[%s4307_s22 + $0x268] sm:$0xff] %vm2307_vm5, %v3381_v60  ;;  %3402 = vrcp.f32 %v2004_v55  ;;  %v4481_v2 = vpop.f32.mrb[40].mxu0 }
 0x26c   : > { %v3385_v4 = vpop.eup %3384  ;;  %3404 = vrcp.f32 %v2003_v38  ;;  %v1940_v6 = vadd.f32 1.0, %v3383_v43  ;;  %v4483_v7 = vpop.f32.mrb[39].mxu1 }
 0x26d   : > { %v3387_v53 = vpop.eup %3386  ;;  %v1939_v11 = vadd.f32 1.0, %v3385_v4  ;;  %3406 = vpow2.f32 %v2783_v57  ;;  %v4486_v32 = vpop.f32.mrb[41].mxu0  ;;  %v2787_v57 = vmul.f32 -1.442695, %v4386_v18  ;;  %v2723_v18 = vmul.f32 -1.442695, %v4379_v5 }
 0x26e   : > { %v3389_v21 = vpop.eup %3388  ;;  %3408 = vrcp.f32 %v1940_v6  ;;  %v2006_v49 = vadd.f32 1.0, %v3387_v53  ;;  %v4492_v34 = vpop.f32.mrb[40].mxu1 }
 0x26f   : > { %v3391_v25 = vpop.eup %3390  ;;  %2384 = vst.msk [vmem:[%s4307_s22 + $0x260] sm:$0xff] %vm2307_vm5, %v3389_v21  ;;  %3410 = vrcp.f32 %v1939_v11  ;;  %v4494_v35 = vpop.f32.mrb[42].mxu0 }
 0x270   : > { %v3393_v39 = vpop.eup %3392  ;;  %2321 = vst.msk [vmem:[%s4307_s22 + $0x68] sm:$0xff] %vm2307_vm5, %v3391_v25  ;;  %3412 = vrcp.f32 %v2006_v49  ;;  %v4499_v41 = vpop.f32.mrb[41].mxu1 }
 0x271   : > { %v4501_v46 = vpop.f32.mrb[43].mxu0  ;;  %v3395_v42 = vpop.eup %3394  ;;  %2320 = vst.msk [vmem:[%s4307_s22 + $0x60] sm:$0xff] %vm2307_vm5, %v3393_v39  ;;  %3414 = vpow2.f32 %v2720_v17 }
 0x272   : > { %v3397_v44 = vpop.eup %3396  ;;  %2387 = vst.msk [vmem:[%s4307_s22 + $0x278] sm:$0xff] %vm2307_vm5, %v3395_v42  ;;  %3416 = vpow2.f32 %v2719_v23  ;;  %v4512_v54 = vpop.f32.mrb[42].mxu1  ;;  %v2789_v23 = vmul.f32 -1.442695, %v4398_v36 }
 0x273   : > { %v3399_v52 = vpop.eup %3398  ;;  %2386 = vst.msk [vmem:[%s4307_s22 + $0x270] sm:$0xff] %vm2307_vm5, %v3397_v44  ;;  %3418 = vpow2.f32 %v2786_v26  ;;  %v4514_v55 = vpop.f32.mrb[44].mxu0 }
 0x274   : > { %v3401_v50 = vpop.eup %3400  ;;  %2323 = vst.msk [vmem:[%s4307_s22 + $0x78] sm:$0xff] %vm2307_vm5, %v3399_v52  ;;  %3420 = vpow2.f32 %v2785_v40  ;;  %v4519_v60 = vpop.f32.mrb[43].mxu1 }
 0x275   : > { %v4521_v56 = vpop.f32.mrb[45].mxu0  ;;  %v3403_v38 = vpop.eup %3402  ;;  %2322 = vst.msk [vmem:[%s4307_s22 + $0x70] sm:$0xff] %vm2307_vm5, %v3401_v50  ;;  %3422 = vpow2.f32 %v2722_v61 }
 0x276   : > { %v3405_v43 = vpop.eup %3404  ;;  %2389 = vst.msk [vmem:[%s4307_s22 + $0x288] sm:$0xff] %vm2307_vm5, %v3403_v38  ;;  %3424 = vpow2.f32 %v2721_v48  ;;  %v4531_v6 = vpop.f32.mrb[44].mxu1 }
 0x277   : > { %v3407_v4 = vpop.eup %3406  ;;  %2388 = vst.msk [vmem:[%s4307_s22 + $0x280] sm:$0xff] %vm2307_vm5, %v3405_v43  ;;  %3426 = vpow2.f32 %v2788_v1  ;;  %v4533_v53 = vpop.f32.mrb[46].mxu0 }
 0x278   : > { %v3409_v11 = vpop.eup %3408  ;;  %v2005_v17 = vadd.f32 1.0, %v3407_v4  ;;  %3428 = vpow2.f32 %v2787_v57  ;;  %v4536_v21 = vpop.f32.mrb[45].mxu1 }
 0x279   : > { %v3411_v49 = vpop.eup %3410  ;;  %2325 = vst.msk [vmem:[%s4307_s22 + $0x88] sm:$0xff] %vm2307_vm5, %v3409_v11  ;;  %3430 = vpow2.f32 %v2724_v12  ;;  %v4541_v25 = vpop.f32.mrb[47].mxu0 }
 0x27a   : > { %v3413_v5 = vpop.eup %3412  ;;  %2324 = vst.msk [vmem:[%s4307_s22 + $0x80] sm:$0xff] %vm2307_vm5, %v3411_v49  ;;  %3432 = vrcp.f32 %v2005_v17  ;;  %v4547_v39 = vpop.f32.mrb[46].mxu1 }
 0x27b   : > { %v3415_v26 = vpop.eup %3414  ;;  %2391 = vst.msk [vmem:[%s4307_s22 + $0x298] sm:$0xff] %vm2307_vm5, %v3413_v5  ;;  %3434 = vpow2.f32 %v2723_v18  ;;  %v4549_v29 = vpop.f32.mrb[48].mxu0 }
 0x27c   : > { %v3417_v40 = vpop.eup %3416  ;;  %v1942_v42 = vadd.f32 1.0, %v3415_v26  ;;  %3436 = vpow2.f32 %v2790_v62  ;;  %v4551_v61 = vpop.f32.mrb[47].mxu1 }
 0x27d   : > { %v3419_v36 = vpop.eup %3418  ;;  %v1941_v44 = vadd.f32 1.0, %v3417_v40  ;;  %3438 = vpow2.f32 %v2789_v23  ;;  %v4553_v48 = vpop.f32.mrb[49].mxu0  ;;  %v2726_v40 = vmul.f32 -1.442695, %v4384_v13 }
 0x27e   : > { %v3421_v52 = vpop.eup %3420  ;;  %3440 = vrcp.f32 %v1942_v42  ;;  %v2008_v1 = vadd.f32 1.0, %v3419_v36  ;;  %v4555_v38 = vpop.f32.mrb[48].mxu1 }
 0x27f   : > { %v3423_v50 = vpop.eup %3422  ;;  %3442 = vrcp.f32 %v1941_v44  ;;  %v2007_v57 = vadd.f32 1.0, %v3421_v52  ;;  %v4557_v12 = vpop.f32.mrb[50].mxu0 }
 0x280   : > { %v3425_v43 = vpop.eup %3424  ;;  %3444 = vrcp.f32 %v2008_v1  ;;  %v1944_v4 = vadd.f32 1.0, %v3423_v50  ;;  %v4559_v18 = vpop.f32.mrb[49].mxu1 }
 0x281   : > { %v3427_v11 = vpop.eup %3426  ;;  %3446 = vrcp.f32 %v2007_v57  ;;  %v1943_v17 = vadd.f32 1.0, %v3425_v43  ;;  %v4561_v62 = vpop.f32.mrb[51].mxu0 }
 0x282   : > { %v3429_v49 = vpop.eup %3428  ;;  %3448 = vrcp.f32 %v1944_v4  ;;  %v2010_v23 = vadd.f32 1.0, %v3427_v11  ;;  %v4564_v42 = vpop.f32.mrb[50].mxu1 }
 0x283   : > { %v3431_v5 = vpop.eup %3430  ;;  %3450 = vrcp.f32 %v1943_v17  ;;  %v2009_v26 = vadd.f32 1.0, %v3429_v49  ;;  %v4566_v36 = vpop.f32.mrb[52].mxu0  ;;  %v2725_v17 = vmul.f32 -1.442695, %v4390_v22 }
 0x284   : > { %v3433_v44 = vpop.eup %3432  ;;  %3452 = vrcp.f32 %v2010_v23  ;;  %v1946_v52 = vadd.f32 1.0, %v3431_v5  ;;  %v4568_v1 = vpop.f32.mrb[51].mxu1 }
 0x285   : > { %v3435_v50 = vpop.eup %3434  ;;  %2390 = vst.msk [vmem:[%s4307_s22 + $0x290] sm:$0xff] %vm2307_vm5, %v3433_v44  ;;  %3454 = vrcp.f32 %v2009_v26  ;;  %v4572_v57 = vpop.f32.mrb[53].mxu0  ;;  %v2792_v44 = vmul.f32 -1.442695, %v4411_v45  ;;  %v2727_v45 = vmul.f32 -1.442695, %v4403_v19 }
 0x286   : > { %4949 = vst [vmem:[#allocation12_spill] sm:$0xff] %v4572_v57  ;;  %v3437_v43 = vpop.eup %3436  ;;  %3456 = vrcp.f32 %v1946_v52  ;;  %v1945_v4 = vadd.f32 1.0, %v3435_v50  ;;  %v4575_v49 = vpop.f32.mrb[52].mxu1  ;;  %v2793_v19 = vmul.f32 -1.442695, %v4437_v20 }
 0x287   : > { %v3439_v13 = vpop.eup %3438  ;;  %v2012_v11 = vadd.f32 1.0, %v3437_v43  ;;  %3458 = vpow2.f32 %v2726_v40  ;;  %v4577_v23 = vpop.f32.mrb[54].mxu0  ;;  %v2791_v40 = vmul.f32 -1.442695, %v4418_v51  ;;  %v2728_v43 = vmul.f32 -1.442695, %v4395_v30 }
 0x288   : > { %v3441_v5 = vpop.eup %3440  ;;  %3460 = vrcp.f32 %v1945_v4  ;;  %v2011_v26 = vadd.f32 1.0, %v3439_v13  ;;  %v4580_v57 = vpop.f32.mrb[53].mxu1 }
 0x289   : > { %v3443_v52 = vpop.eup %3442  ;;  %2327 = vst.msk [vmem:[%s4307_s22 + $0x98] sm:$0xff] %vm2307_vm5, %v3441_v5  ;;  %3462 = vrcp.f32 %v2012_v11  ;;  %v4585_v22 = vpop.f32.mrb[55].mxu0  ;;  %v2794_v5 = vmul.f32 -1.442695, %v4431_v58  ;;  %v2729_v58 = vmul.f32 -1.442695, %v4420_v27 }
 0x28a   : > { %v3445_v50 = vpop.eup %3444  ;;  %2326 = vst.msk [vmem:[%s4307_s22 + $0x90] sm:$0xff] %vm2307_vm5, %v3443_v52  ;;  %3464 = vrcp.f32 %v2011_v26  ;;  %v4593_v13 = vpop.f32.mrb[54].mxu1  ;;  %v2796_v27 = vmul.f32 -1.442695, %v4448_v8 }
 0x28b   : > { %v3447_v4 = vpop.eup %3446  ;;  %2393 = vst.msk [vmem:[%s4307_s22 + $0x2a8] sm:$0xff] %vm2307_vm5, %v3445_v50  ;;  %3466 = vpow2.f32 %v2725_v17  ;;  %v4595_v11 = vpop.f32.mrb[56].mxu0 }
 0x28c   : > { %v3449_v51 = vpop.eup %3448  ;;  %2392 = vst.msk [vmem:[%s4307_s22 + $0x2a0] sm:$0xff] %vm2307_vm5, %v3447_v4  ;;  %3468 = vpow2.f32 %v2792_v44  ;;  %v4600_v26 = vpop.f32.mrb[55].mxu1  ;;  %v2730_v44 = vmul.f32 -1.442695, %v4413_v47 }
 0x28d   : > { %v4602_v30 = vpop.f32.mrb[57].mxu0  ;;  %v3451_v52 = vpop.eup %3450  ;;  %2329 = vst.msk [vmem:[%s4307_s22 + $0xa8] sm:$0xff] %vm2307_vm5, %v3449_v51  ;;  %3470 = vpow2.f32 %v2791_v40 }
 0x28e   : > { %v3453_v17 = vpop.eup %3452  ;;  %2328 = vst.msk [vmem:[%s4307_s22 + $0xa0] sm:$0xff] %vm2307_vm5, %v3451_v52  ;;  %3472 = vpow2.f32 %v2728_v43  ;;  %v4613_v4 = vpop.f32.mrb[56].mxu1 }
 0x28f   : > { %v3455_v50 = vpop.eup %3454  ;;  %2395 = vst.msk [vmem:[%s4307_s22 + $0x2b8] sm:$0xff] %vm2307_vm5, %v3453_v17  ;;  %3474 = vpow2.f32 %v2727_v45  ;;  %v4615_v51 = vpop.f32.mrb[58].mxu0  ;;  %v2795_v17 = vmul.f32 -1.442695, %v4454_v28 }
 0x290   : > { %4950 = vst [vmem:[#allocation13_spill] sm:$0xff] %v4615_v51  ;;  %v3457_v40 = vpop.eup %3456  ;;  %2394 = vst.msk [vmem:[%s4307_s22 + $0x2b0] sm:$0xff] %vm2307_vm5, %v3455_v50  ;;  %3476 = vpow2.f32 %v2794_v5  ;;  %v4619_v20 = vpop.f32.mrb[57].mxu1  ;;  %v2732_v5 = vmul.f32 -1.442695, %v4433_v59 }
 0x291   : > { %v4621_v43 = vpop.f32.mrb[59].mxu0  ;;  %v3459_v47 = vpop.eup %3458  ;;  %2331 = vst.msk [vmem:[%s4307_s22 + $0xb8] sm:$0xff] %vm2307_vm5, %v3457_v40  ;;  %3478 = vpow2.f32 %v2793_v19 }
 0x292   : > { %4951 = vst [vmem:[#allocation14_spill] sm:$0xff] %v4621_v43  ;;  %v3461_v45 = vpop.eup %3460  ;;  %v1948_v52 = vadd.f32 1.0, %v3459_v47  ;;  %3480 = vpow2.f32 %v2730_v44  ;;  %v4630_v50 = vpop.f32.mrb[58].mxu1 }
 0x293   : > { %v3463_v51 = vpop.eup %3462  ;;  %2330 = vst.msk [vmem:[%s4307_s22 + $0xb0] sm:$0xff] %vm2307_vm5, %v3461_v45  ;;  %3482 = vpow2.f32 %v2729_v58  ;;  %4952 = vst [vmem:[#allocation15_spill] sm:$0xff] %v4630_v50  ;;  %v4632_v43 = vpop.f32.mrb[60].mxu0 }
 0x294   : > { %4953 = vst [vmem:[#allocation16_spill] sm:$0xff] %v4632_v43  ;;  %v3465_v40 = vpop.eup %3464  ;;  %2397 = vst.msk [vmem:[%s4307_s22 + $0x2c8] sm:$0xff] %vm2307_vm5, %v3463_v51  ;;  %3484 = vrcp.f32 %v1948_v52  ;;  %v4636_v8 = vpop.f32.mrb[59].mxu1 }
 0x295   : > { %4954 = vst [vmem:[#allocation17_spill] sm:$0xff] %v4636_v8  ;;  %v4638_v19 = vpop.f32.mrb[61].mxu0  ;;  %v3467_v44 = vpop.eup %3466  ;;  %2396 = vst.msk [vmem:[%s4307_s22 + $0x2c0] sm:$0xff] %vm2307_vm5, %v3465_v40  ;;  %3486 = vpow2.f32 %v2796_v27 }
 0x296   : > { %4955 = vst [vmem:[#allocation18_spill] sm:$0xff] %v4638_v19  ;;  %v3469_v28 = vpop.eup %3468  ;;  %v1947_v58 = vadd.f32 1.0, %v3467_v44  ;;  %3488 = vpow2.f32 %v2795_v17  ;;  %v4642_v45 = vpop.f32.mrb[60].mxu1 }
 0x297   : > { %v3471_v59 = vpop.eup %3470  ;;  %v2014_v47 = vadd.f32 1.0, %v3469_v28  ;;  %3490 = vpow2.f32 %v2732_v5  ;;  %v4644_v43 = vpop.f32.mrb[62].mxu0 }
 0x298   : > { %4956 = vst [vmem:[#allocation19_spill] sm:$0xff] %v4644_v43  ;;  %v3473_v51 = vpop.eup %3472  ;;  %3492 = vrcp.f32 %v1947_v58  ;;  %v2013_v52 = vadd.f32 1.0, %v3471_v59  ;;  %v4646_v8 = vpop.f32.mrb[61].mxu1 }
 0x299   : > { %4957 = vst [vmem:[#allocation20_spill] sm:$0xff] %v4646_v8  ;;  %v3475_v19 = vpop.eup %3474  ;;  %3494 = vrcp.f32 %v2014_v47  ;;  %v1950_v50 = vadd.f32 1.0, %v3473_v51  ;;  %v4648_v40 = vpop.f32.mrb[63].mxu0  ;;  %v2731_v51 = vmul.f32 -1.442695, %v4439_v63 }
 0x29a   : > { %4958 = vst [vmem:[#allocation21_spill] sm:$0xff] %v4648_v40  ;;  %v3477_v27 = vpop.eup %3476  ;;  %3496 = vrcp.f32 %v2013_v52  ;;  %v1949_v17 = vadd.f32 1.0, %v3475_v19  ;;  %v4650_v28 = vpop.f32.mrb[62].mxu1  ;;  %v2798_v63 = vmul.f32 -1.442695, %v4460_v24 }
 0x29b   : > { %v3479_v44 = vpop.eup %3478  ;;  %3498 = vrcp.f32 %v1950_v50  ;;  %v2016_v5 = vadd.f32 1.0, %v3477_v27  ;;  %v4652_v59 = vpop.f32.mrb[63].mxu1  ;;  %v2733_v24 = vmul.f32 -1.442695, %v4456_v14  ;;  %v2736_v14 = vmul.f32 -1.442695, %v4462_v15 }
 0x29c   : > { %v3481_v43 = vpop.eup %3480  ;;  %3500 = vrcp.f32 %v1949_v17  ;;  %v2015_v58 = vadd.f32 1.0, %v3479_v44  ;;  %v2801_v15 = vmul.f32 -1.442695, %v4483_v7 }
 0x29d   : > { %v3483_v8 = vpop.eup %3482  ;;  %3502 = vrcp.f32 %v2016_v5  ;;  %v1952_v47 = vadd.f32 1.0, %v3481_v43 }
 0x29e   : > { %v3485_v40 = vpop.eup %3484  ;;  %3504 = vrcp.f32 %v2015_v58  ;;  %v1951_v52 = vadd.f32 1.0, %v3483_v8  ;;  %v4657_v50 = vpop.f32.mrb[64].mxu1  ;;  %v2797_v58 = vmul.f32 -1.442695, %v4464_v33  ;;  %v2800_v33 = vmul.f32 -1.442695, %v4468_v3 }
 0x29f   : > { %v3487_v19 = vpop.eup %3486  ;;  %2333 = vst.msk [vmem:[%s4307_s22 + $0xc8] sm:$0xff] %vm2307_vm5, %v3485_v40  ;;  %3506 = vrcp.f32 %v1952_v47  ;;  %v4659_v44 = vpop.f32.mrb[65].mxu1  ;;  %v2735_v3 = vmul.f32 -1.442695, %v4466_v37 }
 0x2a0   : > { %v3489_v27 = vpop.eup %3488  ;;  %3508 = vrcp.f32 %v1951_v52  ;;  %v2018_v17 = vadd.f32 1.0, %v3487_v19  ;;  %v2734_v52 = vmul.f32 -1.442695, %v4450_v9  ;;  %v2799_v9 = vmul.f32 -1.442695, %v4472_v31 }
 0x2a1   : > { %v3491_v5 = vpop.eup %3490  ;;  %v2017_v43 = vadd.f32 1.0, %v3489_v27  ;;  %3510 = vpow2.f32 %v2731_v51  ;;  %v2802_v31 = vmul.f32 -1.442695, %v4479_v0  ;;  %v2737_v0 = vmul.f32 -1.442695, %v4475_v16 }
 0x2a2   : > { %v3493_v8 = vpop.eup %3492  ;;  %3512 = vrcp.f32 %v2018_v17  ;;  %v1954_v40 = vadd.f32 1.0, %v3491_v5 }
 0x2a3   : > { %v3495_v47 = vpop.eup %3494  ;;  %2332 = vst.msk [vmem:[%s4307_s22 + $0xc0] sm:$0xff] %vm2307_vm5, %v3493_v8  ;;  %3514 = vrcp.f32 %v2017_v43 }
 0x2a4   : > { %v3497_v19 = vpop.eup %3496  ;;  %2399 = vst.msk [vmem:[%s4307_s22 + $0x2d8] sm:$0xff] %vm2307_vm5, %v3495_v47  ;;  %3516 = vrcp.f32 %v1954_v40 }
 0x2a5   : > { %v3499_v51 = vpop.eup %3498  ;;  %2398 = vst.msk [vmem:[%s4307_s22 + $0x2d0] sm:$0xff] %vm2307_vm5, %v3497_v19  ;;  %3518 = vpow2.f32 %v2798_v63 }
 0x2a6   : > { %v3501_v27 = vpop.eup %3500  ;;  %2335 = vst.msk [vmem:[%s4307_s22 + $0xd8] sm:$0xff] %vm2307_vm5, %v3499_v51  ;;  %3520 = vpow2.f32 %v2797_v58  ;;  %v2738_v58 = vmul.f32 -1.442695, %v4470_v10 }
 0x2a7   : > { %v3503_v17 = vpop.eup %3502  ;;  %2334 = vst.msk [vmem:[%s4307_s22 + $0xd0] sm:$0xff] %vm2307_vm5, %v3501_v27  ;;  %3522 = vpow2.f32 %v2734_v52 }
 0x2a8   : > { %v3505_v5 = vpop.eup %3504  ;;  %2401 = vst.msk [vmem:[%s4307_s22 + $0x2e8] sm:$0xff] %vm2307_vm5, %v3503_v17  ;;  %3524 = vpow2.f32 %v2733_v24 }
 0x2a9   : > { %v3507_v43 = vpop.eup %3506  ;;  %2400 = vst.msk [vmem:[%s4307_s22 + $0x2e0] sm:$0xff] %vm2307_vm5, %v3505_v5  ;;  %3526 = vpow2.f32 %v2800_v33 }
 0x2aa   : > { %v3509_v63 = vpop.eup %3508  ;;  %2337 = vst.msk [vmem:[%s4307_s22 + $0xe8] sm:$0xff] %vm2307_vm5, %v3507_v43  ;;  %3528 = vpow2.f32 %v2799_v9 }
 0x2ab   : > { %v3511_v8 = vpop.eup %3510  ;;  %2336 = vst.msk [vmem:[%s4307_s22 + $0xe0] sm:$0xff] %vm2307_vm5, %v3509_v63  ;;  %3530 = vpow2.f32 %v2736_v14 }
 0x2ac   : > { %v3513_v37 = vpop.eup %3512  ;;  %v1953_v40 = vadd.f32 1.0, %v3511_v8  ;;  %3532 = vpow2.f32 %v2735_v3 }
 0x2ad   : > { %v3515_v47 = vpop.eup %3514  ;;  %2403 = vst.msk [vmem:[%s4307_s22 + $0x2f8] sm:$0xff] %vm2307_vm5, %v3513_v37  ;;  %3534 = vpow2.f32 %v2802_v31 }
 0x2ae   : > { %v3517_v52 = vpop.eup %3516  ;;  %2402 = vst.msk [vmem:[%s4307_s22 + $0x2f0] sm:$0xff] %vm2307_vm5, %v3515_v47  ;;  %3536 = vrcp.f32 %v1953_v40 }
 0x2af   : > { %v3519_v19 = vpop.eup %3518  ;;  %2339 = vst.msk [vmem:[%s4307_s22 + $0xf8] sm:$0xff] %vm2307_vm5, %v3517_v52  ;;  %3538 = vpow2.f32 %v2801_v15  ;;  %v2804_v15 = vmul.f32 -1.442695, %v4492_v34 }
 0x2b0   : > { %v3521_v7 = vpop.eup %3520  ;;  %v2020_v24 = vadd.f32 1.0, %v3519_v19  ;;  %3540 = vpow2.f32 %v2738_v58 }
 0x2b1   : > { %v3523_v51 = vpop.eup %3522  ;;  %v2019_v33 = vadd.f32 1.0, %v3521_v7  ;;  %3542 = vpow2.f32 %v2737_v0  ;;  %v2803_v7 = vmul.f32 -1.442695, %v4499_v41  ;;  %v2806_v41 = vmul.f32 -1.442695, %v4512_v54 }
 0x2b2   : > { %v3525_v10 = vpop.eup %3524  ;;  %3544 = vrcp.f32 %v2020_v24  ;;  %v1956_v27 = vadd.f32 1.0, %v3523_v51  ;;  %v2740_v51 = vmul.f32 -1.442695, %v4481_v2  ;;  %v2805_v2 = vmul.f32 -1.442695, %v4519_v60 }
 0x2b3   : > { %v3527_v9 = vpop.eup %3526  ;;  %3546 = vrcp.f32 %v2019_v33  ;;  %v1955_v16 = vadd.f32 1.0, %v3525_v10  ;;  %v2739_v10 = vmul.f32 -1.442695, %v4486_v32  ;;  %v2742_v32 = vmul.f32 -1.442695, %v4494_v35 }
 0x2b4   : > { %v3529_v17 = vpop.eup %3528  ;;  %3548 = vrcp.f32 %v1956_v27  ;;  %v2022_v14 = vadd.f32 1.0, %v3527_v9  ;;  %v2741_v54 = vmul.f32 -1.442695, %v4501_v46  ;;  %v2808_v60 = vmul.f32 -1.442695, %v4531_v6 }
 0x2b5   : > { %v3531_v5 = vpop.eup %3530  ;;  %3550 = vrcp.f32 %v1955_v16  ;;  %v2021_v3 = vadd.f32 1.0, %v3529_v17  ;;  %v2807_v35 = vmul.f32 -1.442695, %v4536_v21  ;;  %v2744_v46 = vmul.f32 -1.442695, %v4514_v55 }
 0x2b6   : > { %v3533_v43 = vpop.eup %3532  ;;  %3552 = vrcp.f32 %v2022_v14  ;;  %v1958_v31 = vadd.f32 1.0, %v3531_v5  ;;  %v2810_v21 = vmul.f32 -1.442695, %v4547_v39 }
 0x2b7   : > { %v3535_v63 = vpop.eup %3534  ;;  %3554 = vrcp.f32 %v2021_v3  ;;  %v1957_v8 = vadd.f32 1.0, %v3533_v43 }
 0x2b8   : > { %v3537_v37 = vpop.eup %3536  ;;  %3556 = vrcp.f32 %v1958_v31  ;;  %v2024_v40 = vadd.f32 1.0, %v3535_v63  ;;  %v2743_v63 = vmul.f32 -1.442695, %v4521_v56 }
 0x2b9   : > { %v3539_v58 = vpop.eup %3538  ;;  %2338 = vst.msk [vmem:[%s4307_s22 + $0xf0] sm:$0xff] %vm2307_vm5, %v3537_v37  ;;  %3558 = vrcp.f32 %v1957_v8 }
 0x2ba   : > { %v3541_v47 = vpop.eup %3540  ;;  %3560 = vrcp.f32 %v2024_v40  ;;  %v2023_v0 = vadd.f32 1.0, %v3539_v58 }
 0x2bb   : > { %v3543_v52 = vpop.eup %3542  ;;  %v1960_v19 = vadd.f32 1.0, %v3541_v47  ;;  %3562 = vpow2.f32 %v2804_v15 }
 0x2bc   : > { %v3545_v24 = vpop.eup %3544  ;;  %3564 = vrcp.f32 %v2023_v0  ;;  %v1959_v34 = vadd.f32 1.0, %v3543_v52 }
 0x2bd   : > { %v3547_v33 = vpop.eup %3546  ;;  %2405 = vst.msk [vmem:[%s4307_s22 + $0x308] sm:$0xff] %vm2307_vm5, %v3545_v24  ;;  %3566 = vrcp.f32 %v1960_v19 }
 0x2be   : > { %v3549_v27 = vpop.eup %3548  ;;  %2404 = vst.msk [vmem:[%s4307_s22 + $0x300] sm:$0xff] %vm2307_vm5, %v3547_v33  ;;  %3568 = vrcp.f32 %v1959_v34 }
 0x2bf   : > { %v3551_v9 = vpop.eup %3550  ;;  %2341 = vst.msk [vmem:[%s4307_s22 + $0x108] sm:$0xff] %vm2307_vm5, %v3549_v27  ;;  %3570 = vpow2.f32 %v2803_v7 }
 0x2c0   : > { %v3553_v16 = vpop.eup %3552  ;;  %2340 = vst.msk [vmem:[%s4307_s22 + $0x100] sm:$0xff] %vm2307_vm5, %v3551_v9  ;;  %3572 = vpow2.f32 %v2740_v51 }
 0x2c1   : > { %v3555_v17 = vpop.eup %3554  ;;  %2407 = vst.msk [vmem:[%s4307_s22 + $0x318] sm:$0xff] %vm2307_vm5, %v3553_v16  ;;  %3574 = vpow2.f32 %v2739_v10 }
 0x2c2   : > { %v3557_v14 = vpop.eup %3556  ;;  %2406 = vst.msk [vmem:[%s4307_s22 + $0x310] sm:$0xff] %vm2307_vm5, %v3555_v17  ;;  %3576 = vpow2.f32 %v2806_v41  ;;  %v2809_v41 = vmul.f32 -1.442695, %v4551_v61 }
 0x2c3   : > { %v3559_v5 = vpop.eup %3558  ;;  %2343 = vst.msk [vmem:[%s4307_s22 + $0x118] sm:$0xff] %vm2307_vm5, %v3557_v14  ;;  %3578 = vpow2.f32 %v2805_v2 }
 0x2c4   : > { %v3561_v3 = vpop.eup %3560  ;;  %2342 = vst.msk [vmem:[%s4307_s22 + $0x110] sm:$0xff] %vm2307_vm5, %v3559_v5  ;;  %3580 = vpow2.f32 %v2742_v32 }
 0x2c5   : > { %v3563_v43 = vpop.eup %3562  ;;  %2409 = vst.msk [vmem:[%s4307_s22 + $0x328] sm:$0xff] %vm2307_vm5, %v3561_v3  ;;  %3582 = vpow2.f32 %v2741_v54 }
 0x2c6   : > { %v3565_v6 = vpop.eup %3564  ;;  %v2026_v31 = vadd.f32 1.0, %v3563_v43  ;;  %3584 = vpow2.f32 %v2808_v60  ;;  %v2746_v60 = vmul.f32 -1.442695, %v4533_v53  ;;  %v2812_v43 = vmul.f32 -1.442695, %v4555_v38 }
 0x2c7   : > { %v3567_v8 = vpop.eup %3566  ;;  %2408 = vst.msk [vmem:[%s4307_s22 + $0x320] sm:$0xff] %vm2307_vm5, %v3565_v6  ;;  %3586 = vpow2.f32 %v2807_v35  ;;  %v2745_v35 = vmul.f32 -1.442695, %v4541_v25  ;;  %v2811_v53 = vmul.f32 -1.442695, %v4559_v18 }
 0x2c8   : > { %v3569_v15 = vpop.eup %3568  ;;  %2345 = vst.msk [vmem:[%s4307_s22 + $0x128] sm:$0xff] %vm2307_vm5, %v3567_v8  ;;  %3588 = vrcp.f32 %v2026_v31  ;;  %v2748_v25 = vmul.f32 -1.442695, %v4549_v29  ;;  %v2747_v38 = vmul.f32 -1.442695, %v4553_v48 }
 0x2c9   : > { %v3571_v37 = vpop.eup %3570  ;;  %2344 = vst.msk [vmem:[%s4307_s22 + $0x120] sm:$0xff] %vm2307_vm5, %v3569_v15  ;;  %3590 = vpow2.f32 %v2744_v46  ;;  %v2814_v18 = vmul.f32 -1.442695, %v4564_v42  ;;  %v2813_v29 = vmul.f32 -1.442695, %v4568_v1 }
 0x2ca   : > { %v3573_v55 = vpop.eup %3572  ;;  %v2025_v40 = vadd.f32 1.0, %v3571_v37  ;;  %3592 = vpow2.f32 %v2743_v63  ;;  %v2750_v48 = vmul.f32 -1.442695, %v4557_v12  ;;  %v2749_v42 = vmul.f32 -1.442695, %v4561_v62 }
 0x2cb   : > { %v3575_v58 = vpop.eup %3574  ;;  %v1962_v47 = vadd.f32 1.0, %v3573_v55  ;;  %3594 = vpow2.f32 %v2810_v21  ;;  %v2815_v12 = vmul.f32 -1.442695, %v4580_v57 }
 0x2cc   : > { %v3577_v56 = vpop.eup %3576  ;;  %3596 = vrcp.f32 %v2025_v40  ;;  %v1961_v0 = vadd.f32 1.0, %v3575_v58  ;;  %v2816_v40 = vmul.f32 -1.442695, %v4575_v49 }
 0x2cd   : > { %v3579_v52 = vpop.eup %3578  ;;  %3598 = vrcp.f32 %v1962_v47  ;;  %v2028_v39 = vadd.f32 1.0, %v3577_v56 }
 0x2ce   : > { %v3581_v19 = vpop.eup %3580  ;;  %3600 = vrcp.f32 %v1961_v0  ;;  %v2027_v7 = vadd.f32 1.0, %v3579_v52 }
 0x2cf   : > { %v3583_v24 = vpop.eup %3582  ;;  %3602 = vrcp.f32 %v2028_v39  ;;  %v1964_v34 = vadd.f32 1.0, %v3581_v19 }
 0x2d0   : > { %v3585_v51 = vpop.eup %3584  ;;  %3604 = vrcp.f32 %v2027_v7  ;;  %v1963_v33 = vadd.f32 1.0, %v3583_v24 }
 0x2d1   : > { %v3587_v10 = vpop.eup %3586  ;;  %3606 = vrcp.f32 %v1964_v34  ;;  %v2030_v27 = vadd.f32 1.0, %v3585_v51 }
 0x2d2   : > { %v3589_v9 = vpop.eup %3588  ;;  %3608 = vrcp.f32 %v1963_v33  ;;  %v2029_v2 = vadd.f32 1.0, %v3587_v10 }
 0x2d3   : > { %v3591_v16 = vpop.eup %3590  ;;  %2411 = vst.msk [vmem:[%s4307_s22 + $0x338] sm:$0xff] %vm2307_vm5, %v3589_v9  ;;  %3610 = vrcp.f32 %v2030_v27 }
 0x2d4   : > { %v3593_v32 = vpop.eup %3592  ;;  %3612 = vrcp.f32 %v2029_v2  ;;  %v1966_v17 = vadd.f32 1.0, %v3591_v16  ;;  %v2752_v2 = vmul.f32 -1.442695, %v4566_v36 }
 0x2d5   : > { %v3595_v54 = vpop.eup %3594  ;;  %v1965_v14 = vadd.f32 1.0, %v3593_v32  ;;  %3614 = vpow2.f32 %v2809_v41 }
 0x2d6   : > { %v3597_v5 = vpop.eup %3596  ;;  %3616 = vrcp.f32 %v1966_v17  ;;  %v2032_v61 = vadd.f32 1.0, %v3595_v54 }
 0x2d7   : > { %v3599_v3 = vpop.eup %3598  ;;  %2410 = vst.msk [vmem:[%s4307_s22 + $0x330] sm:$0xff] %vm2307_vm5, %v3597_v5  ;;  %3618 = vrcp.f32 %v1965_v14 }
 0x2d8   : > { %v3601_v46 = vpop.eup %3600  ;;  %2347 = vst.msk [vmem:[%s4307_s22 + $0x138] sm:$0xff] %vm2307_vm5, %v3599_v3  ;;  %3620 = vrcp.f32 %v2032_v61  ;;  %v4959_v61 = vld [vmem:[#allocation12_spill] sm:$0xff] }
 0x2d9   : > { %v3603_v6 = vpop.eup %3602  ;;  %2346 = vst.msk [vmem:[%s4307_s22 + $0x130] sm:$0xff] %vm2307_vm5, %v3601_v46  ;;  %3622 = vpow2.f32 %v2746_v60 }
 0x2da   : > { %v3605_v31 = vpop.eup %3604  ;;  %2413 = vst.msk [vmem:[%s4307_s22 + $0x348] sm:$0xff] %vm2307_vm5, %v3603_v6  ;;  %3624 = vpow2.f32 %v2745_v35  ;;  %v2751_v35 = vmul.f32 -1.442695, %v4959_v61 }
 0x2db   : > { %v3607_v63 = vpop.eup %3606  ;;  %2412 = vst.msk [vmem:[%s4307_s22 + $0x340] sm:$0xff] %vm2307_vm5, %v3605_v31  ;;  %3626 = vpow2.f32 %v2812_v43  ;;  %v2818_v43 = vmul.f32 -1.442695, %v4593_v13  ;;  %v2753_v13 = vmul.f32 -1.442695, %v4585_v22 }
 0x2dc   : > { %v3609_v8 = vpop.eup %3608  ;;  %2349 = vst.msk [vmem:[%s4307_s22 + $0x148] sm:$0xff] %vm2307_vm5, %v3607_v63  ;;  %3628 = vpow2.f32 %v2811_v53  ;;  %v2817_v53 = vmul.f32 -1.442695, %v4600_v26  ;;  %v2820_v26 = vmul.f32 -1.442695, %v4613_v4 }
 0x2dd   : > { %v3611_v21 = vpop.eup %3610  ;;  %2348 = vst.msk [vmem:[%s4307_s22 + $0x140] sm:$0xff] %vm2307_vm5, %v3609_v8  ;;  %3630 = vpow2.f32 %v2748_v25  ;;  %v2754_v25 = vmul.f32 -1.442695, %v4577_v23  ;;  %v2819_v23 = vmul.f32 -1.442695, %v4619_v20  ;;  %v4960_v20 = vld [vmem:[#allocation15_spill] sm:$0xff] }
 0x2de   : > { %v3613_v15 = vpop.eup %3612  ;;  %2415 = vst.msk [vmem:[%s4307_s22 + $0x358] sm:$0xff] %vm2307_vm5, %v3611_v21  ;;  %3632 = vpow2.f32 %v2747_v38  ;;  %v2756_v22 = vmul.f32 -1.442695, %v4595_v11  ;;  %v2755_v4 = vmul.f32 -1.442695, %v4602_v30  ;;  %v4962_v30 = vld [vmem:[#allocation13_spill] sm:$0xff] }
 0x2df   : > { %v3615_v37 = vpop.eup %3614  ;;  %2414 = vst.msk [vmem:[%s4307_s22 + $0x350] sm:$0xff] %vm2307_vm5, %v3613_v15  ;;  %3634 = vpow2.f32 %v2814_v18 }
 0x2e0   : > { %v3617_v1 = vpop.eup %3616  ;;  %v2031_v55 = vadd.f32 1.0, %v3615_v37  ;;  %3636 = vpow2.f32 %v2813_v29  ;;  %v4961_v37 = vld [vmem:[#allocation17_spill] sm:$0xff] }
 0x2e1   : > { %v3619_v58 = vpop.eup %3618  ;;  %2351 = vst.msk [vmem:[%s4307_s22 + $0x158] sm:$0xff] %vm2307_vm5, %v3617_v1  ;;  %3638 = vpow2.f32 %v2750_v48  ;;  %v2822_v48 = vmul.f32 -1.442695, %v4960_v20 }
 0x2e2   : > { %v3621_v47 = vpop.eup %3620  ;;  %2350 = vst.msk [vmem:[%s4307_s22 + $0x150] sm:$0xff] %vm2307_vm5, %v3619_v58  ;;  %3640 = vrcp.f32 %v2031_v55  ;;  %v2758_v55 = vmul.f32 -1.442695, %v4962_v30 }
 0x2e3   : > { %v3623_v56 = vpop.eup %3622  ;;  %2417 = vst.msk [vmem:[%s4307_s22 + $0x368] sm:$0xff] %vm2307_vm5, %v3621_v47  ;;  %3642 = vpow2.f32 %v2749_v42  ;;  %v2821_v42 = vmul.f32 -1.442695, %v4961_v37 }
 0x2e4   : > { %v3625_v62 = vpop.eup %3624  ;;  %v1968_v0 = vadd.f32 1.0, %v3623_v56  ;;  %3644 = vpow2.f32 %v2816_v40 }
 0x2e5   : > { %v3627_v52 = vpop.eup %3626  ;;  %v1967_v39 = vadd.f32 1.0, %v3625_v62  ;;  %3646 = vpow2.f32 %v2815_v12 }
 0x2e6   : > { %v3629_v49 = vpop.eup %3628  ;;  %3648 = vrcp.f32 %v1968_v0  ;;  %v2034_v19 = vadd.f32 1.0, %v3627_v52 }
 0x2e7   : > { %v3631_v7 = vpop.eup %3630  ;;  %3650 = vrcp.f32 %v1967_v39  ;;  %v2033_v57 = vadd.f32 1.0, %v3629_v49 }
 0x2e8   : > { %v3633_v24 = vpop.eup %3632  ;;  %3652 = vrcp.f32 %v2034_v19  ;;  %v1970_v34 = vadd.f32 1.0, %v3631_v7 }
 0x2e9   : > { %v3635_v51 = vpop.eup %3634  ;;  %3654 = vrcp.f32 %v2033_v57  ;;  %v1969_v33 = vadd.f32 1.0, %v3633_v24 }
 0x2ea   : > { %v3637_v10 = vpop.eup %3636  ;;  %3656 = vrcp.f32 %v1970_v34  ;;  %v2036_v27 = vadd.f32 1.0, %v3635_v51 }
 0x2eb   : > { %v3639_v41 = vpop.eup %3638  ;;  %3658 = vrcp.f32 %v1969_v33  ;;  %v2035_v9 = vadd.f32 1.0, %v3637_v10 }
 0x2ec   : > { %v3641_v16 = vpop.eup %3640  ;;  %3660 = vrcp.f32 %v2036_v27  ;;  %v1972_v32 = vadd.f32 1.0, %v3639_v41  ;;  %v4963_v27 = vld [vmem:[#allocation14_spill] sm:$0xff] }
 0x2ed   : > { %v3643_v17 = vpop.eup %3642  ;;  %2416 = vst.msk [vmem:[%s4307_s22 + $0x360] sm:$0xff] %vm2307_vm5, %v3641_v16  ;;  %3662 = vrcp.f32 %v2035_v9  ;;  %v2757_v41 = vmul.f32 -1.442695, %v4963_v27 }
 0x2ee   : > { %v3645_v54 = vpop.eup %3644  ;;  %3664 = vrcp.f32 %v1972_v32  ;;  %v1971_v14 = vadd.f32 1.0, %v3643_v17 }
 0x2ef   : > { %v3647_v60 = vpop.eup %3646  ;;  %v2038_v5 = vadd.f32 1.0, %v3645_v54  ;;  %3666 = vpow2.f32 %v2752_v2 }
 0x2f0   : > { %v3649_v3 = vpop.eup %3648  ;;  %3668 = vrcp.f32 %v1971_v14  ;;  %v2037_v36 = vadd.f32 1.0, %v3647_v60  ;;  %v2824_v60 = vmul.f32 -1.442695, %v4642_v45 }
 0x2f1   : > { %v3651_v46 = vpop.eup %3650  ;;  %2353 = vst.msk [vmem:[%s4307_s22 + $0x168] sm:$0xff] %vm2307_vm5, %v3649_v3  ;;  %3670 = vrcp.f32 %v2038_v5 }
 0x2f2   : > { %v3653_v6 = vpop.eup %3652  ;;  %2352 = vst.msk [vmem:[%s4307_s22 + $0x160] sm:$0xff] %vm2307_vm5, %v3651_v46  ;;  %3672 = vrcp.f32 %v2037_v36 }
 0x2f3   : > { %v3655_v31 = vpop.eup %3654  ;;  %2419 = vst.msk [vmem:[%s4307_s22 + $0x378] sm:$0xff] %vm2307_vm5, %v3653_v6  ;;  %3674 = vpow2.f32 %v2751_v35  ;;  %v4964_v35 = vld [vmem:[#allocation20_spill] sm:$0xff]  ;;  %v4966_v6 = vld [vmem:[#allocation18_spill] sm:$0xff] }
 0x2f4   : > { %v3657_v38 = vpop.eup %3656  ;;  %2418 = vst.msk [vmem:[%s4307_s22 + $0x370] sm:$0xff] %vm2307_vm5, %v3655_v31  ;;  %3676 = vpow2.f32 %v2818_v43  ;;  %v2823_v3 = vmul.f32 -1.442695, %v4964_v35  ;;  %v4965_v43 = vld [vmem:[#allocation16_spill] sm:$0xff]  ;;  %v2759_v45 = vmul.f32 -1.442695, %v4966_v6 }
 0x2f5   : > { %v3659_v63 = vpop.eup %3658  ;;  %2355 = vst.msk [vmem:[%s4307_s22 + $0x178] sm:$0xff] %vm2307_vm5, %v3657_v38  ;;  %3678 = vpow2.f32 %v2817_v53  ;;  %v2760_v46 = vmul.f32 -1.442695, %v4965_v43  ;;  %v2826_v31 = vmul.f32 -1.442695, %v4650_v28 }
 0x2f6   : > { %v3661_v18 = vpop.eup %3660  ;;  %2354 = vst.msk [vmem:[%s4307_s22 + $0x170] sm:$0xff] %vm2307_vm5, %v3659_v63  ;;  %3680 = vpow2.f32 %v2754_v25  ;;  %v2825_v38 = vmul.f32 -1.442695, %v4652_v59  ;;  %v4967_v63 = vld [vmem:[#allocation19_spill] sm:$0xff]  ;;  %v2828_v59 = vmul.f32 -1.442695, %v4657_v50 }
 0x2f7   : > { %v3663_v8 = vpop.eup %3662  ;;  %2421 = vst.msk [vmem:[%s4307_s22 + $0x388] sm:$0xff] %vm2307_vm5, %v3661_v18  ;;  %3682 = vpow2.f32 %v2753_v13 }
 0x2f8   : > { %v3665_v29 = vpop.eup %3664  ;;  %2420 = vst.msk [vmem:[%s4307_s22 + $0x380] sm:$0xff] %vm2307_vm5, %v3663_v8  ;;  %3684 = vpow2.f32 %v2820_v26 }
 0x2f9   : > { %v3667_v21 = vpop.eup %3666  ;;  %2357 = vst.msk [vmem:[%s4307_s22 + $0x188] sm:$0xff] %vm2307_vm5, %v3665_v29  ;;  %3686 = vpow2.f32 %v2819_v23  ;;  %v2762_v23 = vmul.f32 -1.442695, %v4967_v63 }
 0x2fa   : > { %v3669_v11 = vpop.eup %3668  ;;  %v1974_v15 = vadd.f32 1.0, %v3667_v21  ;;  %3688 = vpow2.f32 %v2756_v22  ;;  %v4968_v22 = vld [vmem:[#allocation21_spill] sm:$0xff]  ;;  %v2827_v21 = vmul.f32 -1.442695, %v4659_v44 }
 0x2fb   : > { %v3671_v1 = vpop.eup %3670  ;;  %2356 = vst.msk [vmem:[%s4307_s22 + $0x180] sm:$0xff] %vm2307_vm5, %v3669_v11  ;;  %3690 = vpow2.f32 %v2755_v4  ;;  %v2761_v28 = vmul.f32 -1.442695, %v4968_v22 }
 0x2fc   : > { %v3673_v40 = vpop.eup %3672  ;;  %2423 = vst.msk [vmem:[%s4307_s22 + $0x398] sm:$0xff] %vm2307_vm5, %v3671_v1  ;;  %3692 = vrcp.f32 %v1974_v15 }
 0x2fd   : > { %v3675_v58 = vpop.eup %3674  ;;  %2422 = vst.msk [vmem:[%s4307_s22 + $0x390] sm:$0xff] %vm2307_vm5, %v3673_v40  ;;  %3694 = vpow2.f32 %v2822_v48 }
 0x2fe   : > { %v3677_v12 = vpop.eup %3676  ;;  %v1973_v47 = vadd.f32 1.0, %v3675_v58  ;;  %3696 = vpow2.f32 %v2821_v42 }
 0x2ff   : > { %v3679_v56 = vpop.eup %3678  ;;  %v2040_v62 = vadd.f32 1.0, %v3677_v12  ;;  %3698 = vpow2.f32 %v2758_v55 }
 0x300   : > { %v3681_v0 = vpop.eup %3680  ;;  %3700 = vrcp.f32 %v1973_v47  ;;  %v2039_v52 = vadd.f32 1.0, %v3679_v56 }
 0x301   : > { %v3683_v39 = vpop.eup %3682  ;;  %3702 = vrcp.f32 %v2040_v62  ;;  %v1976_v49 = vadd.f32 1.0, %v3681_v0 }
 0x302   : > { %v3685_v19 = vpop.eup %3684  ;;  %3704 = vrcp.f32 %v2039_v52  ;;  %v1975_v7 = vadd.f32 1.0, %v3683_v39 }
 0x303   : > { %v3687_v57 = vpop.eup %3686  ;;  %3706 = vrcp.f32 %v1976_v49  ;;  %v2042_v24 = vadd.f32 1.0, %v3685_v19 }
 0x304   : > { %v3689_v34 = vpop.eup %3688  ;;  %3708 = vrcp.f32 %v1975_v7  ;;  %v2041_v51 = vadd.f32 1.0, %v3687_v57 }
 0x305   : > { %v3691_v33 = vpop.eup %3690  ;;  %3710 = vrcp.f32 %v2042_v24  ;;  %v1978_v10 = vadd.f32 1.0, %v3689_v34 }
 0x306   : > { %v3693_v9 = vpop.eup %3692  ;;  %3712 = vrcp.f32 %v2041_v51  ;;  %v1977_v2 = vadd.f32 1.0, %v3691_v33 }
 0x307   : > { %v3695_v16 = vpop.eup %3694  ;;  %2359 = vst.msk [vmem:[%s4307_s22 + $0x198] sm:$0xff] %vm2307_vm5, %v3693_v9  ;;  %3714 = vrcp.f32 %v1978_v10 }
 0x308   : > { %v3697_v32 = vpop.eup %3696  ;;  %3716 = vrcp.f32 %v1977_v2  ;;  %v2044_v17 = vadd.f32 1.0, %v3695_v16 }
 0x309   : > { %v3699_v54 = vpop.eup %3698  ;;  %v2043_v14 = vadd.f32 1.0, %v3697_v32  ;;  %3718 = vpow2.f32 %v2757_v41 }
 0x30a   : > { %v3701_v5 = vpop.eup %3700  ;;  %3720 = vrcp.f32 %v2044_v17  ;;  %v1980_v61 = vadd.f32 1.0, %v3699_v54 }
 0x30b   : > { %v3703_v36 = vpop.eup %3702  ;;  %2358 = vst.msk [vmem:[%s4307_s22 + $0x190] sm:$0xff] %vm2307_vm5, %v3701_v5  ;;  %3722 = vrcp.f32 %v2043_v14 }
 0x30c   : > { %v3705_v53 = vpop.eup %3704  ;;  %2425 = vst.msk [vmem:[%s4307_s22 + $0x3a8] sm:$0xff] %vm2307_vm5, %v3703_v36  ;;  %3724 = vrcp.f32 %v1980_v61 }
 0x30d   : > { %v3707_v25 = vpop.eup %3706  ;;  %2424 = vst.msk [vmem:[%s4307_s22 + $0x3a0] sm:$0xff] %vm2307_vm5, %v3705_v53  ;;  %3726 = vpow2.f32 %v2824_v60 }
 0x30e   : > { %v3709_v13 = vpop.eup %3708  ;;  %2361 = vst.msk [vmem:[%s4307_s22 + $0x1a8] sm:$0xff] %vm2307_vm5, %v3707_v25  ;;  %3728 = vpow2.f32 %v2823_v3 }
 0x30f   : > { %v3711_v26 = vpop.eup %3710  ;;  %2360 = vst.msk [vmem:[%s4307_s22 + $0x1a0] sm:$0xff] %vm2307_vm5, %v3709_v13  ;;  %3730 = vpow2.f32 %v2760_v46 }
 0x310   : > { %v3713_v18 = vpop.eup %3712  ;;  %2427 = vst.msk [vmem:[%s4307_s22 + $0x3b8] sm:$0xff] %vm2307_vm5, %v3711_v26  ;;  %3732 = vpow2.f32 %v2759_v45 }
 0x311   : > { %v3715_v8 = vpop.eup %3714  ;;  %2426 = vst.msk [vmem:[%s4307_s22 + $0x3b0] sm:$0xff] %vm2307_vm5, %v3713_v18  ;;  %3734 = vpow2.f32 %v2826_v31 }
 0x312   : > { %v3717_v4 = vpop.eup %3716  ;;  %2363 = vst.msk [vmem:[%s4307_s22 + $0x1b8] sm:$0xff] %vm2307_vm5, %v3715_v8  ;;  %3736 = vpow2.f32 %v2825_v38 }
 0x313   : > { %v3719_v29 = vpop.eup %3718  ;;  %2362 = vst.msk [vmem:[%s4307_s22 + $0x1b0] sm:$0xff] %vm2307_vm5, %v3717_v4  ;;  %3738 = vpow2.f32 %v2762_v23 }
 0x314   : > { %v3721_v20 = vpop.eup %3720  ;;  %v1979_v48 = vadd.f32 1.0, %v3719_v29  ;;  %3740 = vpow2.f32 %v2761_v28 }
 0x315   : > { %v3723_v11 = vpop.eup %3722  ;;  %2429 = vst.msk [vmem:[%s4307_s22 + $0x3c8] sm:$0xff] %vm2307_vm5, %v3721_v20  ;;  %3742 = vpow2.f32 %v2828_v59 }
 0x316   : > { %v3725_v15 = vpop.eup %3724  ;;  %2428 = vst.msk [vmem:[%s4307_s22 + $0x3c0] sm:$0xff] %vm2307_vm5, %v3723_v11  ;;  %3744 = vrcp.f32 %v1979_v48 }
 0x317   : > { %v3727_v50 = vpop.eup %3726  ;;  %2365 = vst.msk [vmem:[%s4307_s22 + $0x1c8] sm:$0xff] %vm2307_vm5, %v3725_v15  ;;  %3746 = vpow2.f32 %v2827_v21 }
 0x318   : > { %v3729_v37 = vpop.eup %3728  ;;  %v2046_v42 = vadd.f32 1.0, %v3727_v50 }
 0x319   : > { %v3731_v1 = vpop.eup %3730  ;;  %v2045_v30 = vadd.f32 1.0, %v3729_v37 }
 0x31a   : > { %v3733_v44 = vpop.eup %3732  ;;  %3748 = vrcp.f32 %v2046_v42  ;;  %v1982_v55 = vadd.f32 1.0, %v3731_v1 }
 0x31b   : > { %v3735_v40 = vpop.eup %3734  ;;  %3750 = vrcp.f32 %v2045_v30  ;;  %v1981_v58 = vadd.f32 1.0, %v3733_v44 }
 0x31c   : > { %v3737_v12 = vpop.eup %3736  ;;  %3752 = vrcp.f32 %v1982_v55  ;;  %v2048_v47 = vadd.f32 1.0, %v3735_v40 }
 0x31d   : > { %v3739_v56 = vpop.eup %3738  ;;  %3754 = vrcp.f32 %v1981_v58  ;;  %v2047_v62 = vadd.f32 1.0, %v3737_v12 }
 0x31e   : > { %v3741_v0 = vpop.eup %3740  ;;  %3756 = vrcp.f32 %v2048_v47  ;;  %v1984_v52 = vadd.f32 1.0, %v3739_v56 }
 0x31f   : > { %v3743_v39 = vpop.eup %3742  ;;  %3758 = vrcp.f32 %v2047_v62  ;;  %v1983_v49 = vadd.f32 1.0, %v3741_v0 }
 0x320   : > { %v3745_v19 = vpop.eup %3744  ;;  %3760 = vrcp.f32 %v1984_v52  ;;  %v2050_v7 = vadd.f32 1.0, %v3743_v39 }
 0x321   : > { %v3747_v57 = vpop.eup %3746  ;;  %2364 = vst.msk [vmem:[%s4307_s22 + $0x1c0] sm:$0xff] %vm2307_vm5, %v3745_v19  ;;  %3762 = vrcp.f32 %v1983_v49 }
 0x322   : > { %3764 = vrcp.f32 %v2050_v7  ;;  %v2049_v24 = vadd.f32 1.0, %v3747_v57 }
 0x324   : > { %v3749_v34 = vpop.eup %3748  ;;  %3766 = vrcp.f32 %v2049_v24 }
 0x325   : > { %v3751_v51 = vpop.eup %3750  ;;  %2431 = vst.msk [vmem:[%s4307_s22 + $0x3d8] sm:$0xff] %vm2307_vm5, %v3749_v34 }
 0x326   : > { %v3753_v33 = vpop.eup %3752  ;;  %2430 = vst.msk [vmem:[%s4307_s22 + $0x3d0] sm:$0xff] %vm2307_vm5, %v3751_v51 }
 0x327   : > { %v3755_v10 = vpop.eup %3754  ;;  %2367 = vst.msk [vmem:[%s4307_s22 + $0x1d8] sm:$0xff] %vm2307_vm5, %v3753_v33 }
 0x328   : > { %v3757_v27 = vpop.eup %3756  ;;  %2366 = vst.msk [vmem:[%s4307_s22 + $0x1d0] sm:$0xff] %vm2307_vm5, %v3755_v10 }
 0x329   : > { %v3759_v41 = vpop.eup %3758  ;;  %2433 = vst.msk [vmem:[%s4307_s22 + $0x3e8] sm:$0xff] %vm2307_vm5, %v3757_v27 }
 0x32a   : > { %v3761_v9 = vpop.eup %3760  ;;  %2432 = vst.msk [vmem:[%s4307_s22 + $0x3e0] sm:$0xff] %vm2307_vm5, %v3759_v41 }
 0x32b   : > { %v3763_v2 = vpop.eup %3762  ;;  %2369 = vst.msk [vmem:[%s4307_s22 + $0x1e8] sm:$0xff] %vm2307_vm5, %v3761_v9 }
 0x32c   : > { %v3765_v16 = vpop.eup %3764  ;;  %2368 = vst.msk [vmem:[%s4307_s22 + $0x1e0] sm:$0xff] %vm2307_vm5, %v3763_v2 }
 0x32d   : > { %2435 = vst.msk [vmem:[%s4307_s22 + $0x3f8] sm:$0xff] %vm2307_vm5, %v3765_v16 }
 0x32e   : > { %v3767_v32 = vpop.eup %3766 }
 0x32f   : > { %2434 = vst.msk [vmem:[%s4307_s22 + $0x3f0] sm:$0xff] %vm2307_vm5, %v3767_v32 }
 0x330   : > { %3867 = shalt.err (!%p3864_p5)
}
 0x331   : > { %s3868_s5 = scalar_lea.hbm %s4874_s8, 16384  ;;  %s3872_s18 = scalar_lea.hbm %s4932_s3, 32768 }
 0x332   : > { %p3869_p10 = scmp.ne.s32.totalorder %s4874_s8, %s3868_s5  ;;  %p3873_p7 = scmp.lt.u32.totalorder %s4874_s8, %s4932_s3 }
 0x333   : > { %p3874_p3 = scmp.lt.u32.totalorder %s3872_s18, %s3868_s5  ;;  %p3876_p11 = scmp.lt.u32.totalorder %s3868_s5, %s4874_s8 }
 0x334   : > { %p3870_p13 = pnand %p3869_p10, %p4098_p8 }
 0x335   : > { %p3875_p1 = por %p3874_p3, %p3873_p7 }
 0x336   : > { %p3871_p9 = pneg %p3870_p13 }
 0x337   : > { %p3877_p4 = por %p3876_p11, %p3875_p1 }
 0x339   : > { %p3878_p2 = pnand %p3877_p4, %p3871_p9 }
 0x33b   : > { %3881 = shalt.err (!%p3878_p2)
}
 0x33c   : > { %s3950_s22 = smov 128   ;;  %s3951_s24 = smov 8  }
 0x33d   : > { %3177 = dma.vmem_to_hbm [thread:$0]  (%p4098_p8), %s4876_s6, 16384, %s4874_s8, %s2437_s15, %s3950_s22, %s3950_s22, %s3951_s24  }
 0x33e PF: > { %s2467_s26 = sand.u32 1, %s3920_s12   ;;  %p4969_p6 = scmp.ne.s32.totalorder %s4940_s23, 0 }
 0x33f   : > { %p4970_p12 = scmp.ge.s32.totalorder %s3940_s17, 2  ;;  %s2468_s7 = scalar_lea.sflag [#allocation4], %s2467_s26 }
 0x341   : > { %p3191_p0 = pnand %p4970_p12, %p4969_p6 }
 0x343   : > { %3915 = dma.done.wait (!%p3191_p0), %s2468_s7, 16384  }
 0x344   : > { %3917 = vsyncadd (!%p3191_p0), %s2468_s7, 4294950912  ;;  %s20_s17 = sadd.s32 1, %s3940_s17   ;;  %s4971_s12 = smov %s3924_s13 }
 0x345   : > { %p17_p5 = scmp.ge.s32.totalorder %s20_s17, 4   ;;  %s4972_s13 = smov %s3928_s14 }
 0x346   : > { %s4973_s14 = smov %s4107_s30  ;;  %s4974_s15 = smov %s3936_s16 }
 0x347   : > { %s4975_s16 = smov %s4977_s11  ;;  %19 = sbr.rel (!%p17_p5) target bundleno = 7 (0x7), region = 86 }
 0x34e   :  { %2473 = vsyncpa [#allocation3], 1 }
 0x34f   :  { %2475 = vsyncpa [#allocation3 + $0x1], 1 }
 0x350   :  { %2476 = vsyncpa [#allocation6], 1 }
 0x351   :  { %2477 = vsyncpa [#allocation4], 1 }
 0x352   :  { %2479 = vsyncpa [#allocation4 + $0x1], 1 }

</bundles_post_ra>
